<compile_context>
chip_gen: v7x
topology: tpu7x:2x2x1
jax: 0.10.0
libtpu: 0.0.40
codegen_flags: <defaults>
</compile_context>

<pallas_src>
import functools

import jax
import jax.numpy as jnp
from jax.experimental import pallas as pl
from jax.experimental.pallas import tpu as pltpu

IN_DIM = 3 * 32 * 32       # 3072
H1 = 1024
H2 = 512
NUM_CLASSES = 10
OUT_PAD = 128              # fc3 output padded to one full lane width
NEG_BIG = -1e30            # bias for pad columns -> exp() == 0 under log_softmax


def _dropout(a, p_drop):
    """Inverted dropout using the TPU hardware PRNG (already seeded).

    Compares the raw 32-bit draws against an integer threshold (no int->float
    conversion on the hot VPU path).
    """
    keep = 1.0 - p_drop
    thresh = jnp.uint32(min(int(keep * (1 << 32)), (1 << 32) - 1))
    bits = pltpu.prng_random_bits(a.shape)
    if bits.dtype != jnp.dtype(jnp.uint32):
        bits = pltpu.bitcast(bits, jnp.uint32)
    mask = bits < thresh
    scale = jnp.asarray(1.0 / keep, dtype=a.dtype)
    return jnp.where(mask, a * scale, jnp.zeros_like(a))


def _mlp_kernel(seed_ref, x_ref, w1_ref, b1_ref, w2_ref, b2_ref, w3_ref, b3_ref,
                o_ref, *, p_drop, training, last):
    use_dropout = training and p_drop > 0.0
    if use_dropout:
        # Per-tile seed so different batch tiles draw different masks.
        pltpu.prng_seed(seed_ref[0] + pl.program_id(0))

    x = x_ref[...]                                                # (TB, 3072) bf16
    if use_dropout:
        x = _dropout(x, p_drop)                                   # dropout1

    h1 = jnp.dot(x, w1_ref[...], preferred_element_type=jnp.float32) + b1_ref[...]
    h1 = jnp.maximum(h1, 0.0)                                     # relu(fc1), f32
    if use_dropout:
        h1 = _dropout(h1, p_drop)                                 # dropout2

    h2 = jnp.dot(h1.astype(jnp.bfloat16), w2_ref[...],
                 preferred_element_type=jnp.float32) + b2_ref[...]
    h2 = jnp.maximum(h2, 0.0)                                     # relu(fc2), f32
    if use_dropout:
        h2 = _dropout(h2, p_drop)                                 # dropout3

    logits = jnp.dot(h2.astype(jnp.bfloat16), w3_ref[...],
                     preferred_element_type=jnp.float32) + b3_ref[...]   # (TB, 128)

    if last == 'logsoftmax':
        m = jnp.max(logits, axis=-1, keepdims=True)               # pad cols are -1e30
        shifted = logits - m
        lse = jnp.log(jnp.sum(jnp.exp(shifted), axis=-1, keepdims=True))
        o_ref[...] = shifted - lse                                # log_softmax(dim=1)
    elif last == 'logits':
        o_ref[...] = logits
    else:
        raise ValueError('Unknown last operation')


def prepare_params(params):
    """One-time prep: cast weights to bf16 and pad fc3 to 128 output lanes."""
    w3 = jnp.zeros((H2, OUT_PAD), jnp.bfloat16)
    w3 = w3.at[:, :NUM_CLASSES].set(params['w3'].astype(jnp.bfloat16))
    b3 = jnp.full((1, OUT_PAD), NEG_BIG, jnp.float32)
    b3 = b3.at[0, :NUM_CLASSES].set(params['b3'].astype(jnp.float32))
    return dict(
        w1=params['w1'].astype(jnp.bfloat16),
        b1=params['b1'].reshape(1, H1).astype(jnp.float32),
        w2=params['w2'].astype(jnp.bfloat16),
        b2=params['b2'].reshape(1, H2).astype(jnp.float32),
        w3=w3,
        b3=b3,
    )


def mlp_cifar10_dropout_forward(x_nchw, prepared, *, density=1.0, training=False,
                                last='logsoftmax', seed=0, tile_batch=256):
    """Pallas forward of MLP_CIFAR10_DROPOUT.

    x_nchw:   (B, 3, 32, 32) float32, NCHW like PyTorch.
    prepared: output of prepare_params() (bf16 weights, padded fc3).
    training=False reproduces PyTorch eval() (dropout = identity);
    training=True applies inverted dropout with p = 1 - density via TPU PRNG.
    """
    B = x_nchw.shape[0]
    x = x_nchw.reshape(B, IN_DIM).astype(jnp.bfloat16)   # == view(-1, 3*32*32)
    p_drop = 1.0 - density

    # Batch tile: multiple of 8 sublanes; pad batch to a whole number of tiles.
    TB = min(tile_batch, ((B + 7) // 8) * 8)
    n_tiles = pl.cdiv(B, TB)
    B_pad = n_tiles * TB
    if B_pad != B:
        x = jnp.pad(x, ((0, B_pad - B), (0, 0)))

    seed_arr = jnp.asarray([seed], dtype=jnp.int32)
    kernel = functools.partial(_mlp_kernel, p_drop=p_drop, training=training, last=last)

    # Advisory cost hint for XLA scheduling around the custom call.
    flops = 2 * B_pad * (IN_DIM * H1 + H1 * H2 + H2 * OUT_PAD)
    bytes_accessed = (
        B_pad * IN_DIM * 2                                   # x (bf16)
        + (IN_DIM * H1 + H1 * H2 + H2 * OUT_PAD) * 2         # weights (bf16)
        + (H1 + H2 + OUT_PAD) * 4                            # biases (f32)
        + B_pad * OUT_PAD * 4                                # output (f32)
    )
    cost = pl.CostEstimate(flops=flops,
                           transcendentals=B_pad * OUT_PAD,
                           bytes_accessed=bytes_accessed)

    grid_spec = pltpu.PrefetchScalarGridSpec(
        num_scalar_prefetch=1,                               # seed -> SMEM
        grid=(n_tiles,),
        in_specs=[
            pl.BlockSpec((TB, IN_DIM), lambda i, seed: (i, 0)),     # x tile
            pl.BlockSpec((IN_DIM, H1), lambda i, seed: (0, 0)),     # w1 (resident)
            pl.BlockSpec((1, H1),      lambda i, seed: (0, 0)),     # b1
            pl.BlockSpec((H1, H2),     lambda i, seed: (0, 0)),     # w2
            pl.BlockSpec((1, H2),      lambda i, seed: (0, 0)),     # b2
            pl.BlockSpec((H2, OUT_PAD), lambda i, seed: (0, 0)),    # w3 (padded)
            pl.BlockSpec((1, OUT_PAD), lambda i, seed: (0, 0)),     # b3 (padded)
        ],
        out_specs=pl.BlockSpec((TB, OUT_PAD), lambda i, seed: (i, 0)),
    )

    out = pl.pallas_call(
        kernel,
        out_shape=jax.ShapeDtypeStruct((B_pad, OUT_PAD), jnp.float32),
        grid_spec=grid_spec,
        compiler_params=pltpu.CompilerParams(
            dimension_semantics=("parallel",),               # v7x: shard tiles over 2 TCs
            vmem_limit_bytes=48 << 20,                       # fits v7x's 64 MiB VMEM
        ),
        cost_estimate=cost,
    )(seed_arr, x, prepared['w1'], prepared['b1'], prepared['w2'], prepared['b2'],
      prepared['w3'], prepared['b3'])

    return out[:B, :NUM_CLASSES]


def init_params(key):
    """Deterministic init mimicking nn.Linear default U(-1/sqrt(fan_in), +)."""
    ks = jax.random.split(key, 6)

    def linear(kw, kb, fan_in, fan_out):
        bound = 1.0 / jnp.sqrt(fan_in)
        # stored as (in, out) so the kernel does x @ W
        w = jax.random.uniform(kw, (fan_in, fan_out), jnp.float32, -bound, bound)
        b = jax.random.uniform(kb, (fan_out,), jnp.float32, -bound, bound)
        return w, b

    w1, b1 = linear(ks[0], ks[1], IN_DIM, H1)
    w2, b2 = linear(ks[2], ks[3], H1, H2)
    w3, b3 = linear(ks[4], ks[5], H2, NUM_CLASSES)
    return dict(w1=w1, b1=b1, w2=w2, b2=b2, w3=w3, b3=b3)


def _reference_eval(x_nchw, params):
    """Pure-JAX reference (eval mode) with the same bf16-in / f32-acc numerics."""
    x = x_nchw.reshape(x_nchw.shape[0], IN_DIM).astype(jnp.bfloat16)
    w1 = params['w1'].astype(jnp.bfloat16)
    w2 = params['w2'].astype(jnp.bfloat16)
    w3 = params['w3'].astype(jnp.bfloat16)
    h1 = jnp.maximum(jnp.dot(x, w1, preferred_element_type=jnp.float32)
                     + params['b1'], 0.0)
    h2 = jnp.maximum(jnp.dot(h1.astype(jnp.bfloat16), w2,
                             preferred_element_type=jnp.float32) + params['b2'], 0.0)
    logits = jnp.dot(h2.astype(jnp.bfloat16), w3,
                     preferred_element_type=jnp.float32) + params['b3']
    return jax.nn.log_softmax(logits, axis=1)


if __name__ == "__main__":
    key = jax.random.PRNGKey(0)
    kx, kp = jax.random.split(key)

    B = 2
    x = jax.random.normal(kx, (B, 3, 32, 32), dtype=jnp.float32)   # NCHW like PyTorch
    params = init_params(kp)
    prepared = prepare_params(params)                              # bf16 cast ONCE

    # density=0.7 -> dropout p=0.3 in the module; eval mode makes dropout identity,
    # matching PyTorch model.eval() semantics.
    out = mlp_cifar10_dropout_forward(x, prepared, density=0.7, training=False,
                                      last='logsoftmax')
    out = jax.block_until_ready(out)

    ref = _reference_eval(x, params)
    assert out.shape == (B, NUM_CLASSES)
    assert jnp.allclose(out, ref, atol=2e-2, rtol=2e-2), "mismatch vs JAX reference"

    print("KERNEL_OK")
</pallas_src>

<mosaic_0001>
module attributes {stable_mosaic.version = 11 : i64} {
  func.func @_mlp_kernel(%arg0: i32, %arg1: memref<1xi32, #tpu.memory_space<smem>>, %arg2: memref<8x3072xbf16, #tpu.memory_space<vmem>>, %arg3: memref<3072x1024xbf16, #tpu.memory_space<vmem>>, %arg4: memref<1x1024xf32, #tpu.memory_space<vmem>>, %arg5: memref<1024x512xbf16, #tpu.memory_space<vmem>>, %arg6: memref<1x512xf32, #tpu.memory_space<vmem>>, %arg7: memref<512x128xbf16, #tpu.memory_space<vmem>>, %arg8: memref<1x128xf32, #tpu.memory_space<vmem>>, %arg9: memref<8x128xf32, #tpu.memory_space<vmem>>) attributes {dimension_semantics = [#tpu.dimension_semantics<parallel>], iteration_bounds = array<i64: 1>, scalar_prefetch = 1 : i64, scratch_operands = 0 : i64, tpu.core_type = #tpu.core_type<tc>, window_params = [{transform_indices = @transform_0, window_bounds = array<i64: 8, 3072>}, {pipeline_mode = #tpu.pipeline_mode<synchronous>, transform_indices = @transform_1, window_bounds = array<i64: 3072, 1024>}, {pipeline_mode = #tpu.pipeline_mode<synchronous>, transform_indices = @transform_2, window_bounds = array<i64: 1, 1024>}, {pipeline_mode = #tpu.pipeline_mode<synchronous>, transform_indices = @transform_3, window_bounds = array<i64: 1024, 512>}, {pipeline_mode = #tpu.pipeline_mode<synchronous>, transform_indices = @transform_4, window_bounds = array<i64: 1, 512>}, {pipeline_mode = #tpu.pipeline_mode<synchronous>, transform_indices = @transform_5, window_bounds = array<i64: 512, 128>}, {pipeline_mode = #tpu.pipeline_mode<synchronous>, transform_indices = @transform_6, window_bounds = array<i64: 1, 128>}, {transform_indices = @transform_7, window_bounds = array<i64: 8, 128>}]} {
    %c0 = arith.constant 0 : index
    %c0_0 = arith.constant 0 : index
    %0 = vector.load %arg2[%c0, %c0_0] : memref<8x3072xbf16, #tpu.memory_space<vmem>>, vector<8x3072xbf16>
    %c0_1 = arith.constant 0 : index
    %c0_2 = arith.constant 0 : index
    %1 = vector.load %arg3[%c0_1, %c0_2] : memref<3072x1024xbf16, #tpu.memory_space<vmem>>, vector<3072x1024xbf16>
    %cst = arith.constant dense<0.000000e+00> : vector<8x1024xf32>
    %2 = tpu.matmul %0, %1, %cst {dimension_numbers = #tpu.dot_dimension_numbers<[1], [0], [0], [1], [0, 0, 1, 1], [], []>} : vector<8x3072xbf16>, vector<3072x1024xbf16>, vector<8x1024xf32> -> vector<8x1024xf32>
    %c0_3 = arith.constant 0 : index
    %c0_4 = arith.constant 0 : index
    %3 = vector.load %arg4[%c0_3, %c0_4] : memref<1x1024xf32, #tpu.memory_space<vmem>>, vector<1x1024xf32>
    %4 = vector.broadcast %3 : vector<1x1024xf32> to vector<8x1024xf32>
    %5 = arith.addf %2, %4 : vector<8x1024xf32>
    %cst_5 = arith.constant 0.000000e+00 : f32
    %6 = vector.broadcast %cst_5 : f32 to vector<8x1024xf32>
    %7 = arith.maximumf %5, %6 : vector<8x1024xf32>
    %8 = arith.truncf %7 : vector<8x1024xf32> to vector<8x1024xbf16>
    %c0_6 = arith.constant 0 : index
    %c0_7 = arith.constant 0 : index
    %9 = vector.load %arg5[%c0_6, %c0_7] : memref<1024x512xbf16, #tpu.memory_space<vmem>>, vector<1024x512xbf16>
    %cst_8 = arith.constant dense<0.000000e+00> : vector<8x512xf32>
    %10 = tpu.matmul %8, %9, %cst_8 {dimension_numbers = #tpu.dot_dimension_numbers<[1], [0], [0], [1], [0, 0, 1, 1], [], []>} : vector<8x1024xbf16>, vector<1024x512xbf16>, vector<8x512xf32> -> vector<8x512xf32>
    %c0_9 = arith.constant 0 : index
    %c0_10 = arith.constant 0 : index
    %11 = vector.load %arg6[%c0_9, %c0_10] : memref<1x512xf32, #tpu.memory_space<vmem>>, vector<1x512xf32>
    %12 = vector.broadcast %11 : vector<1x512xf32> to vector<8x512xf32>
    %13 = arith.addf %10, %12 : vector<8x512xf32>
    %cst_11 = arith.constant 0.000000e+00 : f32
    %14 = vector.broadcast %cst_11 : f32 to vector<8x512xf32>
    %15 = arith.maximumf %13, %14 : vector<8x512xf32>
    %16 = arith.truncf %15 : vector<8x512xf32> to vector<8x512xbf16>
    %c0_12 = arith.constant 0 : index
    %c0_13 = arith.constant 0 : index
    %17 = vector.load %arg7[%c0_12, %c0_13] : memref<512x128xbf16, #tpu.memory_space<vmem>>, vector<512x128xbf16>
    %cst_14 = arith.constant dense<0.000000e+00> : vector<8x128xf32>
    %18 = tpu.matmul %16, %17, %cst_14 {dimension_numbers = #tpu.dot_dimension_numbers<[1], [0], [0], [1], [0, 0, 1, 1], [], []>} : vector<8x512xbf16>, vector<512x128xbf16>, vector<8x128xf32> -> vector<8x128xf32>
    %c0_15 = arith.constant 0 : index
    %c0_16 = arith.constant 0 : index
    %19 = vector.load %arg8[%c0_15, %c0_16] : memref<1x128xf32, #tpu.memory_space<vmem>>, vector<1x128xf32>
    %20 = vector.broadcast %19 : vector<1x128xf32> to vector<8x128xf32>
    %21 = arith.addf %18, %20 : vector<8x128xf32>
    %cst_17 = arith.constant dense<0xFF800000> : vector<8xf32>
    %22 = vector.multi_reduction <maximumf>, %21, %cst_17 [1] : vector<8x128xf32> to vector<8xf32>
    %23 = vector.shape_cast %22 : vector<8xf32> to vector<8x1xf32>
    %24 = vector.broadcast %23 : vector<8x1xf32> to vector<8x128xf32>
    %25 = arith.subf %21, %24 : vector<8x128xf32>
    %26 = math.exp %25 : vector<8x128xf32>
    %cst_18 = arith.constant dense<0.000000e+00> : vector<8xf32>
    %27 = vector.multi_reduction <add>, %26, %cst_18 [1] : vector<8x128xf32> to vector<8xf32>
    %28 = vector.shape_cast %27 : vector<8xf32> to vector<8x1xf32>
    %29 = math.log %28 : vector<8x1xf32>
    %30 = vector.broadcast %29 : vector<8x1xf32> to vector<8x128xf32>
    %31 = arith.subf %25, %30 : vector<8x128xf32>
    %c0_19 = arith.constant 0 : index
    %c0_20 = arith.constant 0 : index
    %32 = vector.load %arg9[%c0_19, %c0_20] : memref<8x128xf32, #tpu.memory_space<vmem>>, vector<8x128xf32>
    tpu.vector_store %arg9[%c0_19, %c0_20], %31 {strides = array<i32>} : memref<8x128xf32, #tpu.memory_space<vmem>>, vector<8x128xf32>,
    return
  }
  func.func @transform_0(%arg0: i32, %arg1: memref<1xi32, #tpu.memory_space<smem>>) -> (i32, i32) {
    %c0_i32 = arith.constant 0 : i32
    %c0_i32_0 = arith.constant 0 : i32
    return %arg0, %c0_i32 : i32, i32
  }
  func.func @transform_1(%arg0: i32, %arg1: memref<1xi32, #tpu.memory_space<smem>>) -> (i32, i32) {
    %c0_i32 = arith.constant 0 : i32
    %c0_i32_0 = arith.constant 0 : i32
    %c0_i32_1 = arith.constant 0 : i32
    return %c0_i32, %c0_i32_0 : i32, i32
  }
  func.func @transform_2(%arg0: i32, %arg1: memref<1xi32, #tpu.memory_space<smem>>) -> (i32, i32) {
    %c0_i32 = arith.constant 0 : i32
    %c0_i32_0 = arith.constant 0 : i32
    %c0_i32_1 = arith.constant 0 : i32
    return %c0_i32, %c0_i32_0 : i32, i32
  }
  func.func @transform_3(%arg0: i32, %arg1: memref<1xi32, #tpu.memory_space<smem>>) -> (i32, i32) {
    %c0_i32 = arith.constant 0 : i32
    %c0_i32_0 = arith.constant 0 : i32
    %c0_i32_1 = arith.constant 0 : i32
    return %c0_i32, %c0_i32_0 : i32, i32
  }
  func.func @transform_4(%arg0: i32, %arg1: memref<1xi32, #tpu.memory_space<smem>>) -> (i32, i32) {
    %c0_i32 = arith.constant 0 : i32
    %c0_i32_0 = arith.constant 0 : i32
    %c0_i32_1 = arith.constant 0 : i32
    return %c0_i32, %c0_i32_0 : i32, i32
  }
  func.func @transform_5(%arg0: i32, %arg1: memref<1xi32, #tpu.memory_space<smem>>) -> (i32, i32) {
    %c0_i32 = arith.constant 0 : i32
    %c0_i32_0 = arith.constant 0 : i32
    %c0_i32_1 = arith.constant 0 : i32
    return %c0_i32, %c0_i32_0 : i32, i32
  }
  func.func @transform_6(%arg0: i32, %arg1: memref<1xi32, #tpu.memory_space<smem>>) -> (i32, i32) {
    %c0_i32 = arith.constant 0 : i32
    %c0_i32_0 = arith.constant 0 : i32
    %c0_i32_1 = arith.constant 0 : i32
    return %c0_i32, %c0_i32_0 : i32, i32
  }
  func.func @transform_7(%arg0: i32, %arg1: memref<1xi32, #tpu.memory_space<smem>>) -> (i32, i32) {
    %c0_i32 = arith.constant 0 : i32
    %c0_i32_0 = arith.constant 0 : i32
    return %arg0, %c0_i32 : i32, i32
  }
}

</mosaic_0001>

<bundles_post_ra>
// kernel: tpu_custom_call.1
= control target key start
LH: loop header
LB: loop body
LE: loop exit
PB: predicated region body
PF: predicated region fallthrough
CT: control target
= control target key end

     0   :  { %14 = vsyncpa [#allocation5], 0  ;;  %s16892_s0 = inlined_call_operand.<no memory space> [shape: s32[1], index: 0, kind: input, shape index: {}]   ;;  %s16893_s1 = inlined_call_operand.hbm [shape: bf16[8,3072], index: 1, kind: input, shape index: {}]   ;;  %s16894_s2 = inlined_call_operand.hbm [shape: bf16[3072,1024], index: 2, kind: input, shape index: {}]   ;;  %s16895_s3 = inlined_call_operand.hbm [shape: f32[1,1024], index: 3, kind: input, shape index: {}]   ;;  %s16896_s4 = inlined_call_operand.hbm [shape: bf16[1024,512], index: 4, kind: input, shape index: {}]   ;;  %s16897_s5 = inlined_call_operand.hbm [shape: f32[1,512], index: 5, kind: input, shape index: {}]   ;;  %s16898_s6 = inlined_call_operand.hbm [shape: bf16[512,128], index: 6, kind: input, shape index: {}]   ;;  %s16899_s7 = inlined_call_operand.hbm [shape: f32[1,128], index: 7, kind: input, shape index: {}]   ;;  %s16900_s8 = inlined_call_operand.hbm [shape: f32[8,128], index: 8, kind: output, shape index: {}]  }
   0x1   :  { %15 = vsyncpa [#allocation8], 0 }
   0x2   :  { %16 = vsyncpa [#allocation11], 0 }
   0x3   :  { %17 = vsyncpa [#allocation14], 0 }
   0x4   :  { %18 = vsyncpa [#allocation6], 0  ;;  %s16471_s26 = smov [#allocation7]   ;;  %s16285_s30 = scalar_lea.hbm %s16894_s2, 196608 }
   0x5   :  { %s34_s27 = sshll.u32 %s16471_s26, 4  ;;  %p16286_p0 = scmp.ne.s32.totalorder %s16894_s2, %s16285_s30  ;;  %s35_s27 = int_to_ptr.vmem [resolvable:$true] %s34_s27 }
   0x6   :  { %p16289_p1 = scmp.lt.u32.totalorder %s16285_s30, %s16894_s2 }
   0x8   :  { %p16291_p2 = pnand %p16289_p1, %p16286_p0 }
   0xa   :  { %16294 = shalt.err (!%p16291_p2)
}
   0xb   :  { %s16295_s13 = scalar_lea.vmem %s35_s27, 196608  ;;  %p16300_p4 = scmp.lt.s32.totalorder %s35_s27, %s35_s27 }
   0xc   :  { %p16296_p3 = scmp.ne.s32.totalorder %s35_s27, %s16295_s13  ;;  %p16301_p5 = scmp.lt.s32.totalorder %s16295_s13, %s16295_s13 }
   0xe   :  { %p16302_p6 = por %p16301_p5, %p16300_p4 }
  0x10   :  { %p16303_p7 = pnand %p16302_p6, %p16296_p3 }
  0x12   :  { %16306 = shalt.err (!%p16303_p7)
}
  0x13   :  { %s16472_s14 = smov 512   ;;  %s16473_s15 = smov 32  }
  0x14   :  { %40 = dma.hbm_to_vmem [thread:$0]  %s16894_s2, 196608, %s35_s27, [#allocation8], %s16472_s14, %s16472_s14, %s16473_s15  }
  0x15   :  { %s16474_s18 = smov [#allocation10]   ;;  %s16307_s22 = scalar_lea.hbm %s16896_s4, 32768 }
  0x16   :  { %s56_s19 = sshll.u32 %s16474_s18, 4  ;;  %p16308_p8 = scmp.ne.s32.totalorder %s16896_s4, %s16307_s22  ;;  %s57_s19 = int_to_ptr.vmem [resolvable:$true] %s56_s19 }
  0x17   :  { %p16311_p9 = scmp.lt.u32.totalorder %s16307_s22, %s16896_s4 }
  0x19   :  { %p16313_p10 = pnand %p16311_p9, %p16308_p8 }
  0x1b   :  { %16316 = shalt.err (!%p16313_p10)
}
  0x1c   :  { %s16317_s26 = scalar_lea.vmem %s57_s19, 32768  ;;  %p16322_p12 = scmp.lt.s32.totalorder %s57_s19, %s57_s19 }
  0x1d   :  { %p16318_p11 = scmp.ne.s32.totalorder %s57_s19, %s16317_s26  ;;  %p16323_p13 = scmp.lt.s32.totalorder %s16317_s26, %s16317_s26 }
  0x1f   :  { %p16324_p0 = por %p16323_p13, %p16322_p12 }
  0x21   :  { %p16325_p1 = pnand %p16324_p0, %p16318_p11 }
  0x23   :  { %16328 = shalt.err (!%p16325_p1)
}
  0x24   :  { %s16475_s2 = smov 256   ;;  %s16476_s27 = smov 16  }
  0x25   :  { %62 = dma.hbm_to_vmem [thread:$0]  %s16896_s4, 32768, %s57_s19, [#allocation11], %s16475_s2, %s16475_s2, %s16476_s27  }
  0x26   :  { %s16477_s30 = smov [#allocation13]   ;;  %s16329_s12 = scalar_lea.hbm %s16898_s6, 4096 }
  0x27   :  { %s78_s9 = sshll.u32 %s16477_s30, 4  ;;  %p16330_p2 = scmp.ne.s32.totalorder %s16898_s6, %s16329_s12  ;;  %s79_s9 = int_to_ptr.vmem [resolvable:$true] %s78_s9 }
  0x28   :  { %p16333_p3 = scmp.lt.u32.totalorder %s16329_s12, %s16898_s6 }
  0x2a   :  { %p16335_p4 = pnand %p16333_p3, %p16330_p2 }
  0x2c   :  { %16338 = shalt.err (!%p16335_p4)
}
  0x2d   :  { %s16339_s17 = scalar_lea.vmem %s79_s9, 4096  ;;  %p16344_p6 = scmp.lt.s32.totalorder %s79_s9, %s79_s9 }
  0x2e   :  { %p16340_p5 = scmp.ne.s32.totalorder %s79_s9, %s16339_s17  ;;  %p16345_p7 = scmp.lt.s32.totalorder %s16339_s17, %s16339_s17 }
  0x30   :  { %p16346_p8 = por %p16345_p7, %p16344_p6 }
  0x32   :  { %p16347_p9 = pnand %p16346_p8, %p16340_p5 }
  0x34   :  { %16350 = shalt.err (!%p16347_p9)
}
  0x35   :  { %s16478_s4 = smov 64   ;;  %s16479_s18 = smov 4  }
  0x36   :  { %84 = dma.hbm_to_vmem [thread:$0]  %s16898_s6, 4096, %s79_s9, [#allocation14], %s16478_s4, %s16478_s4, %s16479_s18  }
  0x37   :  { %s16480_s21 = smov [#allocation4]   ;;  %s16481_s23 = smov [#allocation9]  }
  0x38   :  { %s25_s22 = sshll.u32 %s16480_s21, 4  ;;  %s47_s0 = sshll.u32 %s16481_s23, 4  ;;  %s26_s22 = int_to_ptr.vmem [resolvable:$true] %s25_s22  ;;  %s48_s0 = int_to_ptr.vmem [resolvable:$true] %s47_s0 }
  0x39   :  { %s16351_s26 = scalar_lea.hbm %s16893_s1, 1536 }
  0x3a   :  { %p16352_p10 = scmp.ne.s32.totalorder %s16893_s1, %s16351_s26  ;;  %p16355_p11 = scmp.lt.u32.totalorder %s16351_s26, %s16893_s1 }
  0x3c   :  { %p16357_p12 = pnand %p16355_p11, %p16352_p10 }
  0x3e   :  { %16360 = shalt.err (!%p16357_p12)
}
  0x3f   :  { %s16361_s6 = scalar_lea.vmem %s26_s22, 1536  ;;  %p16366_p0 = scmp.lt.s32.totalorder %s26_s22, %s26_s22 }
  0x40   :  { %p16362_p13 = scmp.ne.s32.totalorder %s26_s22, %s16361_s6  ;;  %p16367_p1 = scmp.lt.s32.totalorder %s16361_s6, %s16361_s6 }
  0x42   :  { %p16368_p2 = por %p16367_p1, %p16366_p0 }
  0x44   :  { %p16369_p3 = pnand %p16368_p2, %p16362_p13 }
  0x46   :  { %16372 = shalt.err (!%p16369_p3)
}
  0x47   :  { %28 = dma.hbm_to_vmem [thread:$0]  %s16893_s1, 1536, %s26_s22, [#allocation5]  }
  0x48   :  { %s16373_s12 = scalar_lea.hbm %s16895_s3, 128 }
  0x49   :  { %p16374_p4 = scmp.ne.s32.totalorder %s16895_s3, %s16373_s12  ;;  %p16377_p5 = scmp.lt.u32.totalorder %s16373_s12, %s16895_s3 }
  0x4b   :  { %p16379_p6 = pnand %p16377_p5, %p16374_p4 }
  0x4d   :  { %16382 = shalt.err (!%p16379_p6)
}
  0x4e   :  { %s16383_s17 = scalar_lea.vmem %s48_s0, 128  ;;  %p16388_p8 = scmp.lt.s32.totalorder %s48_s0, %s48_s0 }
  0x4f   :  { %p16384_p7 = scmp.ne.s32.totalorder %s48_s0, %s16383_s17  ;;  %p16389_p9 = scmp.lt.s32.totalorder %s16383_s17, %s16383_s17 }
  0x51   :  { %p16390_p10 = por %p16389_p9, %p16388_p8 }
  0x53   :  { %p16391_p11 = pnand %p16390_p10, %p16384_p7 }
  0x55   :  { %16394 = shalt.err (!%p16391_p11)
}
  0x56   :  { %50 = dma.hbm_to_vmem [thread:$0]  %s16895_s3, 128, %s48_s0, [#allocation8]  }
  0x57   :  { %s16482_s18 = smov [#allocation12]   ;;  %s16483_s20 = smov [#allocation15]  }
  0x58   :  { %s69_s19 = sshll.u32 %s16482_s18, 4  ;;  %s91_s21 = sshll.u32 %s16483_s20, 4  ;;  %s70_s19 = int_to_ptr.vmem [resolvable:$true] %s69_s19  ;;  %s92_s21 = int_to_ptr.vmem [resolvable:$true] %s91_s21 }
  0x59   :  { %s16395_s24 = scalar_lea.hbm %s16897_s5, 64 }
  0x5a   :  { %p16396_p12 = scmp.ne.s32.totalorder %s16897_s5, %s16395_s24  ;;  %p16399_p13 = scmp.lt.u32.totalorder %s16395_s24, %s16897_s5 }
  0x5c   :  { %p16401_p0 = pnand %p16399_p13, %p16396_p12 }
  0x5e   :  { %16404 = shalt.err (!%p16401_p0)
}
  0x5f   :  { %s16405_s3 = scalar_lea.vmem %s70_s19, 64  ;;  %p16410_p2 = scmp.lt.s32.totalorder %s70_s19, %s70_s19 }
  0x60   :  { %p16406_p1 = scmp.ne.s32.totalorder %s70_s19, %s16405_s3  ;;  %p16411_p3 = scmp.lt.s32.totalorder %s16405_s3, %s16405_s3 }
  0x62   :  { %p16412_p4 = por %p16411_p3, %p16410_p2 }
  0x64   :  { %p16413_p5 = pnand %p16412_p4, %p16406_p1 }
  0x66   :  { %16416 = shalt.err (!%p16413_p5)
}
  0x67   :  { %72 = dma.hbm_to_vmem [thread:$0]  %s16897_s5, 64, %s70_s19, [#allocation11]  }
  0x68   :  { %s16417_s30 = scalar_lea.hbm %s16899_s7, 16 }
  0x69   :  { %p16418_p6 = scmp.ne.s32.totalorder %s16899_s7, %s16417_s30  ;;  %p16421_p7 = scmp.lt.u32.totalorder %s16417_s30, %s16899_s7 }
  0x6b   :  { %p16423_p8 = pnand %p16421_p7, %p16418_p6 }
  0x6d   :  { %16426 = shalt.err (!%p16423_p8)
}
  0x6e   :  { %s16427_s13 = scalar_lea.vmem %s92_s21, 16  ;;  %s16431_s14 = scalar_lea.vmem %s92_s21, 32 }
  0x6f   :  { %p16428_p9 = scmp.ne.s32.totalorder %s92_s21, %s16427_s13  ;;  %p16432_p10 = scmp.lt.s32.totalorder %s92_s21, %s92_s21 }
  0x70   :  { %p16433_p11 = scmp.lt.s32.totalorder %s16431_s14, %s16427_s13 }
  0x72   :  { %p16434_p12 = por %p16433_p11, %p16432_p10 }
  0x74   :  { %p16435_p13 = pnand %p16434_p12, %p16428_p9 }
  0x76   :  { %16438 = shalt.err (!%p16435_p13)
}
  0x77   :  { %94 = dma.hbm_to_vmem [thread:$0]  %s16899_s7, 16, %s92_s21, [#allocation14]  }
  0x78   :  { %16461 = dma.done.wait [#allocation5], 1536  }
  0x79   :  { %16462 = vsyncadd [#allocation5], 4294965760 }
  0x7a   :  { %16463 = dma.done.wait [#allocation8], 196736  }
  0x7b   :  { %16464 = vsyncadd [#allocation8], 4294770560 }
  0x7c   :  { %16465 = dma.done.wait [#allocation11], 32832  }
  0x7d   :  { %16466 = vsyncadd [#allocation11], 4294934464 }
  0x7e   :  { %16467 = dma.done.wait [#allocation14], 4112  }
  0x7f   :  { %16468 = vsyncadd [#allocation14], 4294963184  ;;  %v129_v0 = vld [vmem:[#allocation7] sm:$0xff]  ;;  %v130_v2 = vld [vmem:[#allocation7 + $0x8] sm:$0xff]  ;;  %s16484_s7 = smov [#allocation16]  }
  0x80   :  { %v133_v1 = vld [vmem:[#allocation7 + $0x20] sm:$0xff]  ;;  %v134_v4 = vld [vmem:[#allocation7 + $0x28] sm:$0xff]  ;;  %s13709_s16 = sshll.u32 %s16484_s7, 4  ;;  %s13710_s16 = int_to_ptr.vmem [resolvable:$true] %s13709_s16 }
  0x81   :  { %v13746_v3 = vcombine.high %v129_v0, %v133_v1  ;;  %v13745_v5 = vcombine.low %v129_v0, %v133_v1  ;;  %v137_v6 = vld [vmem:[#allocation7 + $0x40] sm:$0xff]  ;;  %v13748_v8 = vcombine.high %v130_v2, %v134_v4  ;;  %v13747_v9 = vcombine.low %v130_v2, %v134_v4  ;;  %v138_v11 = vld [vmem:[#allocation7 + $0x48] sm:$0xff]  ;;  %s16439_s17 = scalar_lea.vmem %s13710_s16, 128  ;;  %p16444_p1 = scmp.lt.s32.totalorder %s13710_s16, %s13710_s16 }
  0x82   :  { %v141_v7 = vld [vmem:[#allocation7 + $0x60] sm:$0xff]  ;;  %v142_v12 = vld [vmem:[#allocation7 + $0x68] sm:$0xff]  ;;  %p16440_p0 = scmp.ne.s32.totalorder %s13710_s16, %s16439_s17  ;;  %p16445_p2 = scmp.lt.s32.totalorder %s16439_s17, %s16439_s17 }
  0x83   :  { %v13754_v10 = vcombine.high %v137_v6, %v141_v7  ;;  %v145_v13 = vld [vmem:[#allocation7 + $0x80] sm:$0xff]  ;;  %9471 = vmatprep.subr.bf16.mxu0 %v13746_v3  ;;  %v13756_v14 = vcombine.high %v138_v11, %v142_v12  ;;  %v146_v16 = vld [vmem:[#allocation7 + $0x88] sm:$0xff]  ;;  %9963 = vmatprep.subr.bf16.mxu1 %v13748_v8  ;;  %v13753_v18 = vcombine.low %v137_v6, %v141_v7 }
  0x84   :  { %v149_v15 = vld [vmem:[#allocation7 + $0xa0] sm:$0xff]  ;;  %v150_v17 = vld [vmem:[#allocation7 + $0xa8] sm:$0xff]  ;;  %9472 = vmatpush1.bf16.msra.mxu0 %v13745_v5  ;;  %9964 = vmatpush1.bf16.msra.mxu1 %v13747_v9  ;;  %v13755_v19 = vcombine.low %v138_v11, %v142_v12  ;;  %p16446_p3 = por %p16445_p2, %p16444_p1 }
  0x85   :  { %9473 = vmatprep.subr.bf16.mxu0 %v13754_v10  ;;  %v13762_v20 = vcombine.high %v145_v13, %v149_v15  ;;  %9965 = vmatprep.subr.bf16.mxu1 %v13756_v14  ;;  %v13764_v21 = vcombine.high %v146_v16, %v150_v17  ;;  %v153_v22 = vld [vmem:[#allocation7 + $0xc0] sm:$0xff]  ;;  %v154_v24 = vld [vmem:[#allocation7 + $0xc8] sm:$0xff]  ;;  %v13761_v26 = vcombine.low %v145_v13, %v149_v15 }
  0x86   :  { %v157_v23 = vld [vmem:[#allocation7 + $0xe0] sm:$0xff]  ;;  %v158_v25 = vld [vmem:[#allocation7 + $0xe8] sm:$0xff]  ;;  %v13763_v27 = vcombine.low %v146_v16, %v150_v17  ;;  %p16447_p4 = pnand %p16446_p3, %p16440_p0 }
  0x87   :  { %v13770_v28 = vcombine.high %v153_v22, %v157_v23  ;;  %v13772_v29 = vcombine.high %v154_v24, %v158_v25  ;;  %v161_v30 = vld [vmem:[#allocation7 + $0x100] sm:$0xff]  ;;  %v162_v32 = vld [vmem:[#allocation7 + $0x108] sm:$0xff]  ;;  %v13769_v34 = vcombine.low %v153_v22, %v157_v23  ;;  %v13771_v35 = vcombine.low %v154_v24, %v158_v25 }
  0x88   :  { %9474 = vmatpush1.bf16.msra.mxu0 %v13753_v18  ;;  %9966 = vmatpush1.bf16.msra.mxu1 %v13755_v19  ;;  %v165_v31 = vld [vmem:[#allocation7 + $0x120] sm:$0xff]  ;;  %v166_v33 = vld [vmem:[#allocation7 + $0x128] sm:$0xff] }
  0x89   :  { %9475 = vmatprep.subr.bf16.mxu0 %v13762_v20  ;;  %9967 = vmatprep.subr.bf16.mxu1 %v13764_v21  ;;  %v13778_v36 = vcombine.high %v161_v30, %v165_v31  ;;  %v13780_v37 = vcombine.high %v162_v32, %v166_v33  ;;  %v169_v38 = vld [vmem:[#allocation7 + $0x140] sm:$0xff]  ;;  %v170_v40 = vld [vmem:[#allocation7 + $0x148] sm:$0xff]  ;;  %v13777_v42 = vcombine.low %v161_v30, %v165_v31 }
  0x8a   :  { %v173_v39 = vld [vmem:[#allocation7 + $0x160] sm:$0xff]  ;;  %v174_v41 = vld [vmem:[#allocation7 + $0x168] sm:$0xff]  ;;  %v13779_v43 = vcombine.low %v162_v32, %v166_v33 }
  0x8b   :  { %v13786_v44 = vcombine.high %v169_v38, %v173_v39  ;;  %v13788_v45 = vcombine.high %v170_v40, %v174_v41  ;;  %v177_v46 = vld [vmem:[#allocation7 + $0x180] sm:$0xff]  ;;  %v178_v48 = vld [vmem:[#allocation7 + $0x188] sm:$0xff]  ;;  %v13785_v50 = vcombine.low %v169_v38, %v173_v39  ;;  %v13787_v51 = vcombine.low %v170_v40, %v174_v41 }
  0x8c   :  { %9476 = vmatpush1.bf16.msra.mxu0 %v13761_v26  ;;  %9968 = vmatpush1.bf16.msra.mxu1 %v13763_v27  ;;  %v181_v47 = vld [vmem:[#allocation7 + $0x1a0] sm:$0xff]  ;;  %v182_v49 = vld [vmem:[#allocation7 + $0x1a8] sm:$0xff] }
  0x8d   :  { %9477 = vmatprep.subr.bf16.mxu0 %v13770_v28  ;;  %9969 = vmatprep.subr.bf16.mxu1 %v13772_v29  ;;  %v13794_v52 = vcombine.high %v177_v46, %v181_v47  ;;  %v16614_v53 = vld [vmem:[#allocation4] sm:$0xff]  ;;  %v13796_v54 = vcombine.high %v178_v48, %v182_v49  ;;  %v186_v58 = vld [vmem:[#allocation7 + $0x1c8] sm:$0xff]  ;;  %v13793_v60 = vcombine.low %v177_v46, %v181_v47 }
  0x8e   :  { %v185_v55 = vld [vmem:[#allocation7 + $0x1c0] sm:$0xff]  ;;  %v16618_v57 = vcombine.high %v16614_v53, %v16614_v53  ;;  %v190_v59 = vld [vmem:[#allocation7 + $0x1e8] sm:$0xff]  ;;  %v13795_v61 = vcombine.low %v178_v48, %v182_v49 }
  0x8f   :  { %v189_v56 = vld [vmem:[#allocation7 + $0x1e0] sm:$0xff]  ;;  %v13804_v63 = vcombine.high %v186_v58, %v190_v59  ;;  %v194_v2 = vld [vmem:[#allocation7 + $0x208] sm:$0xff]  ;;  %v13803_v5 = vcombine.low %v186_v58, %v190_v59 }
  0x90   :  { %9478 = vmatpush1.bf16.msra.mxu0 %v13769_v34  ;;  %9970 = vmatpush1.bf16.msra.mxu1 %v13771_v35  ;;  %v13802_v62 = vcombine.high %v185_v55, %v189_v56  ;;  %v193_v0 = vld [vmem:[#allocation7 + $0x200] sm:$0xff]  ;;  %v198_v3 = vld [vmem:[#allocation7 + $0x228] sm:$0xff]  ;;  %v13801_v4 = vcombine.low %v185_v55, %v189_v56 }
  0x91   :  { %9479 = vmatprep.subr.bf16.mxu0 %v13778_v36  ;;  %9971 = vmatprep.subr.bf16.mxu1 %v13780_v37  ;;  %v197_v1 = vld [vmem:[#allocation7 + $0x220] sm:$0xff]  ;;  %v13812_v7 = vcombine.high %v194_v2, %v198_v3  ;;  %v202_v10 = vld [vmem:[#allocation7 + $0x248] sm:$0xff]  ;;  %v13811_v13 = vcombine.low %v194_v2, %v198_v3 }
  0x92   :  { %9503 = vmatprep.mubr.bf16.mxu0 %v16618_v57  ;;  %9995 = vmatprep.mubr.bf16.mxu1 %v16618_v57  ;;  %v13810_v6 = vcombine.high %v193_v0, %v197_v1  ;;  %v201_v8 = vld [vmem:[#allocation7 + $0x240] sm:$0xff]  ;;  %v206_v11 = vld [vmem:[#allocation7 + $0x268] sm:$0xff]  ;;  %v13809_v12 = vcombine.low %v193_v0, %v197_v1 }
  0x93   :  { %v205_v9 = vld [vmem:[#allocation7 + $0x260] sm:$0xff]  ;;  %v13820_v15 = vcombine.high %v202_v10, %v206_v11  ;;  %v210_v18 = vld [vmem:[#allocation7 + $0x288] sm:$0xff]  ;;  %v13819_v21 = vcombine.low %v202_v10, %v206_v11 }
  0x94   :  { %9480 = vmatpush1.bf16.msra.mxu0 %v13777_v42  ;;  %9972 = vmatpush1.bf16.msra.mxu1 %v13779_v43  ;;  %v13818_v14 = vcombine.high %v201_v8, %v205_v9  ;;  %v209_v16 = vld [vmem:[#allocation7 + $0x280] sm:$0xff]  ;;  %v214_v19 = vld [vmem:[#allocation7 + $0x2a8] sm:$0xff]  ;;  %v13817_v20 = vcombine.low %v201_v8, %v205_v9 }
  0x95   :  { %9481 = vmatprep.subr.bf16.mxu0 %v13786_v44  ;;  %9973 = vmatprep.subr.bf16.mxu1 %v13788_v45  ;;  %v213_v17 = vld [vmem:[#allocation7 + $0x2a0] sm:$0xff]  ;;  %v13828_v23 = vcombine.high %v210_v18, %v214_v19  ;;  %v218_v26 = vld [vmem:[#allocation7 + $0x2c8] sm:$0xff]  ;;  %v13827_v29 = vcombine.low %v210_v18, %v214_v19 }
  0x96   :  { %v13826_v22 = vcombine.high %v209_v16, %v213_v17  ;;  %v217_v24 = vld [vmem:[#allocation7 + $0x2c0] sm:$0xff]  ;;  %v222_v27 = vld [vmem:[#allocation7 + $0x2e8] sm:$0xff]  ;;  %v13825_v28 = vcombine.low %v209_v16, %v213_v17 }
  0x97   :  { %v221_v25 = vld [vmem:[#allocation7 + $0x2e0] sm:$0xff]  ;;  %v13836_v31 = vcombine.high %v218_v26, %v222_v27  ;;  %v226_v34 = vld [vmem:[#allocation7 + $0x308] sm:$0xff]  ;;  %v13835_v37 = vcombine.low %v218_v26, %v222_v27 }
  0x98   :  { %9482 = vmatpush1.bf16.msra.mxu0 %v13785_v50  ;;  %9974 = vmatpush1.bf16.msra.mxu1 %v13787_v51  ;;  %v13834_v30 = vcombine.high %v217_v24, %v221_v25  ;;  %v225_v32 = vld [vmem:[#allocation7 + $0x300] sm:$0xff]  ;;  %v230_v35 = vld [vmem:[#allocation7 + $0x328] sm:$0xff]  ;;  %v13833_v36 = vcombine.low %v217_v24, %v221_v25 }
  0x99   :  { %9483 = vmatprep.subr.bf16.mxu0 %v13794_v52  ;;  %9975 = vmatprep.subr.bf16.mxu1 %v13796_v54  ;;  %v229_v33 = vld [vmem:[#allocation7 + $0x320] sm:$0xff]  ;;  %v13844_v39 = vcombine.high %v226_v34, %v230_v35  ;;  %v234_v42 = vld [vmem:[#allocation7 + $0x348] sm:$0xff]  ;;  %v13843_v45 = vcombine.low %v226_v34, %v230_v35 }
  0x9a   :  { %v13842_v38 = vcombine.high %v225_v32, %v229_v33  ;;  %v233_v40 = vld [vmem:[#allocation7 + $0x340] sm:$0xff]  ;;  %v238_v43 = vld [vmem:[#allocation7 + $0x368] sm:$0xff]  ;;  %v13841_v44 = vcombine.low %v225_v32, %v229_v33 }
  0x9b   :  { %v237_v41 = vld [vmem:[#allocation7 + $0x360] sm:$0xff]  ;;  %v13852_v47 = vcombine.high %v234_v42, %v238_v43  ;;  %v242_v50 = vld [vmem:[#allocation7 + $0x388] sm:$0xff]  ;;  %v13851_v54 = vcombine.low %v234_v42, %v238_v43 }
  0x9c   :  { %9484 = vmatpush1.bf16.msra.mxu0 %v13793_v60  ;;  %9976 = vmatpush1.bf16.msra.mxu1 %v13795_v61  ;;  %v13850_v46 = vcombine.high %v233_v40, %v237_v41  ;;  %v241_v48 = vld [vmem:[#allocation7 + $0x380] sm:$0xff]  ;;  %v246_v51 = vld [vmem:[#allocation7 + $0x3a8] sm:$0xff]  ;;  %v13849_v52 = vcombine.low %v233_v40, %v237_v41 }
  0x9d   :  { %9485 = vmatprep.subr.bf16.mxu0 %v13802_v62  ;;  %9977 = vmatprep.subr.bf16.mxu1 %v13804_v63  ;;  %v245_v49 = vld [vmem:[#allocation7 + $0x3a0] sm:$0xff]  ;;  %v13860_v56 = vcombine.high %v242_v50, %v246_v51  ;;  %v250_v60 = vld [vmem:[#allocation7 + $0x3c8] sm:$0xff]  ;;  %v13859_v63 = vcombine.low %v242_v50, %v246_v51 }
  0x9e   :  { %v13858_v55 = vcombine.high %v241_v48, %v245_v49  ;;  %v249_v58 = vld [vmem:[#allocation7 + $0x3c0] sm:$0xff]  ;;  %v254_v61 = vld [vmem:[#allocation7 + $0x3e8] sm:$0xff]  ;;  %v13857_v62 = vcombine.low %v241_v48, %v245_v49 }
  0x9f   :  { %v253_v59 = vld [vmem:[#allocation7 + $0x3e0] sm:$0xff]  ;;  %v13868_v1 = vcombine.high %v250_v60, %v254_v61 }
  0xa0   :  { %9486 = vmatpush1.bf16.msra.mxu0 %v13801_v4  ;;  %9978 = vmatpush1.bf16.msra.mxu1 %v13803_v5  ;;  %v13866_v0 = vcombine.high %v249_v58, %v253_v59  ;;  %v257_v2 = vld [vmem:[#allocation7 + $0x400] sm:$0xff]  ;;  %v258_v4 = vld [vmem:[#allocation7 + $0x408] sm:$0xff] }
  0xa1   :  { %9487 = vmatprep.subr.bf16.mxu0 %v13810_v6  ;;  %9979 = vmatprep.subr.bf16.mxu1 %v13812_v7  ;;  %v261_v3 = vld [vmem:[#allocation7 + $0x420] sm:$0xff]  ;;  %v262_v5 = vld [vmem:[#allocation7 + $0x428] sm:$0xff]  ;;  %v13865_v6 = vcombine.low %v249_v58, %v253_v59  ;;  %v13867_v7 = vcombine.low %v250_v60, %v254_v61 }
  0xa2   :  { %v13874_v8 = vcombine.high %v257_v2, %v261_v3  ;;  %v13876_v9 = vcombine.high %v258_v4, %v262_v5  ;;  %v265_v10 = vld [vmem:[#allocation7 + $0x440] sm:$0xff]  ;;  %v13873_v16 = vcombine.low %v257_v2, %v261_v3  ;;  %v13875_v17 = vcombine.low %v258_v4, %v262_v5 }
  0xa3   :  { %v269_v11 = vld [vmem:[#allocation7 + $0x460] sm:$0xff] }
  0xa4   :  { %9488 = vmatpush1.bf16.msra.mxu0 %v13809_v12  ;;  %9980 = vmatpush1.bf16.msra.mxu1 %v13811_v13  ;;  %v16624_v12 = vcombine.low %v16614_v53, %v16614_v53  ;;  %v266_v13 = vld [vmem:[#allocation7 + $0x448] sm:$0xff]  ;;  %v13882_v18 = vcombine.high %v265_v10, %v269_v11  ;;  %v273_v19 = vld [vmem:[#allocation7 + $0x480] sm:$0xff]  ;;  %v13881_v24 = vcombine.low %v265_v10, %v269_v11 }
  0xa5   :  { %9489 = vmatprep.subr.bf16.mxu0 %v13818_v14  ;;  %9981 = vmatprep.subr.bf16.mxu1 %v13820_v15  ;;  %v270_v14 = vld [vmem:[#allocation7 + $0x468] sm:$0xff]  ;;  %v281_v27 = vld [vmem:[#allocation7 + $0x4c0] sm:$0xff] }
  0xa6   :  { %v16626_v15 = vld [vmem:[#allocation4 + $0x8] sm:$0xff]  ;;  %v13883_v25 = vcombine.low %v266_v13, %v270_v14  ;;  %v289_v35 = vld [vmem:[#allocation7 + $0x500] sm:$0xff] }
  0xa7   :  { %v16630_v53 = vcombine.high %v16626_v15, %v16626_v15  ;;  %v297_v43 = vld [vmem:[#allocation7 + $0x540] sm:$0xff] }
  0xa8   :  { %9490 = vmatpush1.bf16.msra.mxu0 %v13817_v20  ;;  %9982 = vmatpush1.bf16.msra.mxu1 %v13819_v21  ;;  %v277_v20 = vld [vmem:[#allocation7 + $0x4a0] sm:$0xff]  ;;  %v13884_v21 = vcombine.high %v266_v13, %v270_v14 }
  0xa9   :  { %9491 = vmatprep.subr.bf16.mxu0 %v13826_v22  ;;  %9983 = vmatprep.subr.bf16.mxu1 %v13828_v23  ;;  %v274_v22 = vld [vmem:[#allocation7 + $0x488] sm:$0xff]  ;;  %v13890_v26 = vcombine.high %v273_v19, %v277_v20  ;;  %v13889_v32 = vcombine.low %v273_v19, %v277_v20  ;;  %v305_v51 = vld [vmem:[#allocation7 + $0x580] sm:$0xff] }
  0xaa   :  { %v278_v23 = vld [vmem:[#allocation7 + $0x4a8] sm:$0xff]  ;;  %v313_v61 = vld [vmem:[#allocation7 + $0x5c0] sm:$0xff] }
  0xab   :  { %v13891_v33 = vcombine.low %v274_v22, %v278_v23  ;;  %v321_v5 = vld [vmem:[#allocation7 + $0x600] sm:$0xff]  ;;  %v334_v19 = vld [vmem:[#allocation7 + $0x668] sm:$0xff] }
  0xac   :  { %9492 = vmatpush1.bf16.msra.mxu0 %v13825_v28  ;;  %9984 = vmatpush1.bf16.msra.mxu1 %v13827_v29  ;;  %v285_v28 = vld [vmem:[#allocation7 + $0x4e0] sm:$0xff]  ;;  %v282_v29 = vld [vmem:[#allocation7 + $0x4c8] sm:$0xff] }
  0xad   :  { %9493 = vmatprep.subr.bf16.mxu0 %v13834_v30  ;;  %9985 = vmatprep.subr.bf16.mxu1 %v13836_v31  ;;  %v13892_v30 = vcombine.high %v274_v22, %v278_v23  ;;  %v286_v31 = vld [vmem:[#allocation7 + $0x4e8] sm:$0xff]  ;;  %v13898_v34 = vcombine.high %v281_v27, %v285_v28  ;;  %v13897_v40 = vcombine.low %v281_v27, %v285_v28  ;;  %v329_v14 = vld [vmem:[#allocation7 + $0x640] sm:$0xff] }
  0xae   :  { %v13899_v41 = vcombine.low %v282_v29, %v286_v31  ;;  %v337_v23 = vld [vmem:[#allocation7 + $0x680] sm:$0xff]  ;;  %v342_v27 = vld [vmem:[#allocation7 + $0x6a8] sm:$0xff] }
  0xb0   :  { %9494 = vmatpush1.bf16.msra.mxu0 %v13833_v36  ;;  %9986 = vmatpush1.bf16.msra.mxu1 %v13835_v37  ;;  %v293_v36 = vld [vmem:[#allocation7 + $0x520] sm:$0xff]  ;;  %v290_v37 = vld [vmem:[#allocation7 + $0x508] sm:$0xff] }
  0xb1   :  { %9495 = vmatprep.subr.bf16.mxu0 %v13842_v38  ;;  %9987 = vmatprep.subr.bf16.mxu1 %v13844_v39  ;;  %v13900_v38 = vcombine.high %v282_v29, %v286_v31  ;;  %v294_v39 = vld [vmem:[#allocation7 + $0x528] sm:$0xff]  ;;  %v13906_v42 = vcombine.high %v289_v35, %v293_v36  ;;  %v13905_v48 = vcombine.low %v289_v35, %v293_v36  ;;  %v345_v31 = vld [vmem:[#allocation7 + $0x6c0] sm:$0xff] }
  0xb2   :  { %v13907_v49 = vcombine.low %v290_v37, %v294_v39  ;;  %v350_v35 = vld [vmem:[#allocation7 + $0x6e8] sm:$0xff] }
  0xb4   :  { %9496 = vmatpush1.bf16.msra.mxu0 %v13841_v44  ;;  %9988 = vmatpush1.bf16.msra.mxu1 %v13843_v45  ;;  %v301_v44 = vld [vmem:[#allocation7 + $0x560] sm:$0xff]  ;;  %v298_v45 = vld [vmem:[#allocation7 + $0x548] sm:$0xff] }
  0xb5   :  { %9497 = vmatprep.subr.bf16.mxu0 %v13850_v46  ;;  %9989 = vmatprep.subr.bf16.mxu1 %v13852_v47  ;;  %v13908_v46 = vcombine.high %v290_v37, %v294_v39  ;;  %v302_v47 = vld [vmem:[#allocation7 + $0x568] sm:$0xff]  ;;  %v13914_v50 = vcombine.high %v297_v43, %v301_v44  ;;  %v13913_v58 = vcombine.low %v297_v43, %v301_v44  ;;  %v353_v39 = vld [vmem:[#allocation7 + $0x700] sm:$0xff] }
  0xb6   :  { %v13915_v59 = vcombine.low %v298_v45, %v302_v47  ;;  %v358_v43 = vld [vmem:[#allocation7 + $0x728] sm:$0xff] }
  0xb8   :  { %9498 = vmatpush1.bf16.msra.mxu0 %v13849_v52  ;;  %9990 = vmatpush1.bf16.msra.mxu1 %v13851_v54  ;;  %v309_v52 = vld [vmem:[#allocation7 + $0x5a0] sm:$0xff]  ;;  %v306_v54 = vld [vmem:[#allocation7 + $0x588] sm:$0xff] }
  0xb9   :  { %9499 = vmatprep.subr.bf16.mxu0 %v13858_v55  ;;  %9991 = vmatprep.subr.bf16.mxu1 %v13860_v56  ;;  %v13916_v55 = vcombine.high %v298_v45, %v302_v47  ;;  %v310_v56 = vld [vmem:[#allocation7 + $0x5a8] sm:$0xff]  ;;  %v13922_v60 = vcombine.high %v305_v51, %v309_v52  ;;  %v13921_v2 = vcombine.low %v305_v51, %v309_v52  ;;  %v361_v47 = vld [vmem:[#allocation7 + $0x740] sm:$0xff] }
  0xba   :  { %v13923_v3 = vcombine.low %v306_v54, %v310_v56  ;;  %v366_v51 = vld [vmem:[#allocation7 + $0x768] sm:$0xff] }
  0xbc   :  { %9500 = vmatpush1.bf16.msra.mxu0 %v13857_v62  ;;  %9992 = vmatpush1.bf16.msra.mxu1 %v13859_v63  ;;  %v317_v62 = vld [vmem:[#allocation7 + $0x5e0] sm:$0xff]  ;;  %v314_v63 = vld [vmem:[#allocation7 + $0x5c8] sm:$0xff] }
  0xbd   :  { %9501 = vmatprep.subr.bf16.mxu0 %v13866_v0  ;;  %9993 = vmatprep.subr.bf16.mxu1 %v13868_v1  ;;  %v13924_v0 = vcombine.high %v306_v54, %v310_v56  ;;  %v318_v1 = vld [vmem:[#allocation7 + $0x5e8] sm:$0xff]  ;;  %v13930_v4 = vcombine.high %v313_v61, %v317_v62  ;;  %v13929_v10 = vcombine.low %v313_v61, %v317_v62  ;;  %v369_v56 = vld [vmem:[#allocation7 + $0x780] sm:$0xff] }
  0xbe   :  { %v13931_v11 = vcombine.low %v314_v63, %v318_v1  ;;  %v374_v61 = vld [vmem:[#allocation7 + $0x7a8] sm:$0xff] }
  0xc0   :  { %9502 = vmatpush1.bf16.msra.mxu0 %v13865_v6  ;;  %9994 = vmatpush1.bf16.msra.mxu1 %v13867_v7  ;;  %v325_v6 = vld [vmem:[#allocation7 + $0x620] sm:$0xff]  ;;  %v322_v7 = vld [vmem:[#allocation7 + $0x608] sm:$0xff] }
  0xc1   :  { %9512 = vmatprep.subr.bf16.mxu0 %v13874_v8  ;;  %10004 = vmatprep.subr.bf16.mxu1 %v13876_v9  ;;  %v13932_v8 = vcombine.high %v314_v63, %v318_v1  ;;  %v326_v9 = vld [vmem:[#allocation7 + $0x628] sm:$0xff]  ;;  %v13938_v13 = vcombine.high %v321_v5, %v325_v6  ;;  %v13937_v20 = vcombine.low %v321_v5, %v325_v6  ;;  %v377_v1 = vld [vmem:[#allocation7 + $0x7c0] sm:$0xff] }
  0xc2   :  { %v382_v5 = vld [vmem:[#allocation7 + $0x7e8] sm:$0xff] }
  0xc3   :  { %9504 = vmatmul.mubr.bf16.vlgmr.msra.gmra.mrb[0].mxu0 %v16624_v12  ;;  %9996 = vmatmul.mubr.bf16.vlgmr.msra.gmra.mrb[0].mxu1 %v16624_v12 }
  0xc4   :  { %9513 = vmatpush1.bf16.msra.mxu0 %v13873_v16  ;;  %10005 = vmatpush1.bf16.msra.mxu1 %v13875_v17  ;;  %v333_v16 = vld [vmem:[#allocation7 + $0x660] sm:$0xff]  ;;  %v330_v17 = vld [vmem:[#allocation7 + $0x648] sm:$0xff] }
  0xc5   :  { %9514 = vmatprep.subr.bf16.mxu0 %v13882_v18  ;;  %10006 = vmatprep.subr.bf16.mxu1 %v13884_v21  ;;  %v13940_v18 = vcombine.high %v322_v7, %v326_v9  ;;  %v13939_v21 = vcombine.low %v322_v7, %v326_v9  ;;  %v13946_v22 = vcombine.high %v329_v14, %v333_v16  ;;  %v385_v9 = vld [vmem:[#allocation7 + $0x800] sm:$0xff] }
  0xc6   :  { %9544 = vmatprep.mubr.bf16.mxu0 %v16630_v53  ;;  %10036 = vmatprep.mubr.bf16.mxu1 %v16630_v53  ;;  %v13945_v28 = vcombine.low %v329_v14, %v333_v16  ;;  %v13947_v29 = vcombine.low %v330_v17, %v334_v19  ;;  %v390_v14 = vld [vmem:[#allocation7 + $0x828] sm:$0xff] }
  0xc8   :  { %9515 = vmatpush1.bf16.msra.mxu0 %v13881_v24  ;;  %10007 = vmatpush1.bf16.msra.mxu1 %v13883_v25  ;;  %v341_v24 = vld [vmem:[#allocation7 + $0x6a0] sm:$0xff]  ;;  %v338_v25 = vld [vmem:[#allocation7 + $0x688] sm:$0xff] }
  0xc9   :  { %9516 = vmatprep.subr.bf16.mxu0 %v13890_v26  ;;  %10008 = vmatprep.subr.bf16.mxu1 %v13892_v30  ;;  %v13948_v26 = vcombine.high %v330_v17, %v334_v19  ;;  %v13954_v30 = vcombine.high %v337_v23, %v341_v24  ;;  %v13953_v36 = vcombine.low %v337_v23, %v341_v24  ;;  %v393_v17 = vld [vmem:[#allocation7 + $0x840] sm:$0xff]  ;;  %v16636_v24 = vld [vmem:[#allocation4 + $0x10] sm:$0xff] }
  0xca   :  { %v13955_v37 = vcombine.low %v338_v25, %v342_v27 }
  0xcc   :  { %9517 = vmatpush1.bf16.msra.mxu0 %v13889_v32  ;;  %10009 = vmatpush1.bf16.msra.mxu1 %v13891_v33  ;;  %v349_v32 = vld [vmem:[#allocation7 + $0x6e0] sm:$0xff]  ;;  %v346_v33 = vld [vmem:[#allocation7 + $0x6c8] sm:$0xff] }
  0xcd   :  { %9518 = vmatprep.subr.bf16.mxu0 %v13898_v34  ;;  %10010 = vmatprep.subr.bf16.mxu1 %v13900_v38  ;;  %v13956_v34 = vcombine.high %v338_v25, %v342_v27  ;;  %v13962_v38 = vcombine.high %v345_v31, %v349_v32  ;;  %v13961_v44 = vcombine.low %v345_v31, %v349_v32  ;;  %v402_v32 = vld [vmem:[#allocation7 + $0x888] sm:$0xff] }
  0xce   :  { %v13963_v45 = vcombine.low %v346_v33, %v350_v35  ;;  %v16640_v25 = vcombine.low %v16626_v15, %v16626_v15 }
  0xd0   :  { %9519 = vmatpush1.bf16.msra.mxu0 %v13897_v40  ;;  %10011 = vmatpush1.bf16.msra.mxu1 %v13899_v41  ;;  %v357_v40 = vld [vmem:[#allocation7 + $0x720] sm:$0xff]  ;;  %v354_v41 = vld [vmem:[#allocation7 + $0x708] sm:$0xff] }
  0xd1   :  { %9520 = vmatprep.subr.bf16.mxu0 %v13906_v42  ;;  %10012 = vmatprep.subr.bf16.mxu1 %v13908_v46  ;;  %v13964_v42 = vcombine.high %v346_v33, %v350_v35  ;;  %v13970_v46 = vcombine.high %v353_v39, %v357_v40  ;;  %v13969_v52 = vcombine.low %v353_v39, %v357_v40  ;;  %v406_v33 = vld [vmem:[#allocation7 + $0x8a8] sm:$0xff] }
  0xd2   :  { %v13971_v54 = vcombine.low %v354_v41, %v358_v43  ;;  %v410_v39 = vld [vmem:[#allocation7 + $0x8c8] sm:$0xff]  ;;  %v14020_v40 = vcombine.high %v402_v32, %v406_v33 }
  0xd4   :  { %9521 = vmatpush1.bf16.msra.mxu0 %v13905_v48  ;;  %10013 = vmatpush1.bf16.msra.mxu1 %v13907_v49  ;;  %v365_v48 = vld [vmem:[#allocation7 + $0x760] sm:$0xff]  ;;  %v362_v49 = vld [vmem:[#allocation7 + $0x748] sm:$0xff] }
  0xd5   :  { %9522 = vmatprep.subr.bf16.mxu0 %v13914_v50  ;;  %10014 = vmatprep.subr.bf16.mxu1 %v13916_v55  ;;  %v13972_v50 = vcombine.high %v354_v41, %v358_v43  ;;  %v13978_v55 = vcombine.high %v361_v47, %v365_v48  ;;  %v13977_v62 = vcombine.low %v361_v47, %v365_v48  ;;  %v414_v41 = vld [vmem:[#allocation7 + $0x8e8] sm:$0xff] }
  0xd6   :  { %v13979_v63 = vcombine.low %v362_v49, %v366_v51  ;;  %v14019_v43 = vcombine.low %v402_v32, %v406_v33  ;;  %v418_v47 = vld [vmem:[#allocation7 + $0x908] sm:$0xff]  ;;  %v14028_v48 = vcombine.high %v410_v39, %v414_v41 }
  0xd8   :  { %9523 = vmatpush1.bf16.msra.mxu0 %v13913_v58  ;;  %10015 = vmatpush1.bf16.msra.mxu1 %v13915_v59  ;;  %v373_v58 = vld [vmem:[#allocation7 + $0x7a0] sm:$0xff]  ;;  %v370_v59 = vld [vmem:[#allocation7 + $0x788] sm:$0xff] }
  0xd9   :  { %9524 = vmatprep.subr.bf16.mxu0 %v13922_v60  ;;  %10016 = vmatprep.subr.bf16.mxu1 %v13924_v0  ;;  %v13980_v60 = vcombine.high %v362_v49, %v366_v51  ;;  %v13986_v0 = vcombine.high %v369_v56, %v373_v58  ;;  %v13985_v6 = vcombine.low %v369_v56, %v373_v58  ;;  %v422_v49 = vld [vmem:[#allocation7 + $0x928] sm:$0xff] }
  0xda   :  { %v13987_v7 = vcombine.low %v370_v59, %v374_v61  ;;  %v14027_v51 = vcombine.low %v410_v39, %v414_v41  ;;  %v426_v56 = vld [vmem:[#allocation7 + $0x948] sm:$0xff]  ;;  %v14036_v58 = vcombine.high %v418_v47, %v422_v49 }
  0xdb   :  { %v470_v39 = vld [vmem:[#allocation7 + $0xaa8] sm:$0xff] }
  0xdc   :  { %9525 = vmatpush1.bf16.msra.mxu0 %v13921_v2  ;;  %10017 = vmatpush1.bf16.msra.mxu1 %v13923_v3  ;;  %v381_v2 = vld [vmem:[#allocation7 + $0x7e0] sm:$0xff]  ;;  %v378_v3 = vld [vmem:[#allocation7 + $0x7c8] sm:$0xff] }
  0xdd   :  { %9526 = vmatprep.subr.bf16.mxu0 %v13930_v4  ;;  %10018 = vmatprep.subr.bf16.mxu1 %v13932_v8  ;;  %v13988_v4 = vcombine.high %v370_v59, %v374_v61  ;;  %v13994_v8 = vcombine.high %v377_v1, %v381_v2  ;;  %v13993_v16 = vcombine.low %v377_v1, %v381_v2  ;;  %v430_v59 = vld [vmem:[#allocation7 + $0x968] sm:$0xff] }
  0xde   :  { %v14035_v61 = vcombine.low %v418_v47, %v422_v49  ;;  %v434_v1 = vld [vmem:[#allocation7 + $0x988] sm:$0xff]  ;;  %v14044_v2 = vcombine.high %v426_v56, %v430_v59 }
  0xdf   :  { %v478_v47 = vld [vmem:[#allocation7 + $0xae8] sm:$0xff] }
  0xe0   :  { %9527 = vmatpush1.bf16.msra.mxu0 %v13929_v10  ;;  %10019 = vmatpush1.bf16.msra.mxu1 %v13931_v11  ;;  %v389_v10 = vld [vmem:[#allocation7 + $0x820] sm:$0xff]  ;;  %v386_v11 = vld [vmem:[#allocation7 + $0x808] sm:$0xff] }
  0xe1   :  { %9528 = vmatprep.subr.bf16.mxu0 %v13938_v13  ;;  %10020 = vmatprep.subr.bf16.mxu1 %v13940_v18  ;;  %v13996_v13 = vcombine.high %v378_v3, %v382_v5  ;;  %v13995_v18 = vcombine.low %v378_v3, %v382_v5  ;;  %v14002_v19 = vcombine.high %v385_v9, %v389_v10  ;;  %v438_v3 = vld [vmem:[#allocation7 + $0x9a8] sm:$0xff] }
  0xe2   :  { %v14004_v23 = vcombine.high %v386_v11, %v390_v14  ;;  %v14003_v27 = vcombine.low %v386_v11, %v390_v14  ;;  %v14043_v5 = vcombine.low %v426_v56, %v430_v59  ;;  %v446_v11 = vld [vmem:[#allocation7 + $0x9e8] sm:$0xff]  ;;  %v14051_v14 = vcombine.low %v434_v1, %v438_v3 }
  0xe3   :  { %v486_v56 = vld [vmem:[#allocation7 + $0xb28] sm:$0xff] }
  0xe4   :  { %9529 = vmatpush1.bf16.msra.mxu0 %v13937_v20  ;;  %10021 = vmatpush1.bf16.msra.mxu1 %v13939_v21  ;;  %v397_v20 = vld [vmem:[#allocation7 + $0x860] sm:$0xff]  ;;  %v394_v21 = vld [vmem:[#allocation7 + $0x848] sm:$0xff] }
  0xe5   :  { %9530 = vmatprep.subr.bf16.mxu0 %v13946_v22  ;;  %10022 = vmatprep.subr.bf16.mxu1 %v13948_v26  ;;  %v398_v22 = vld [vmem:[#allocation7 + $0x868] sm:$0xff]  ;;  %v14001_v26 = vcombine.low %v385_v9, %v389_v10  ;;  %v14009_v15 = vcombine.low %v393_v17, %v397_v20  ;;  %v14052_v10 = vcombine.high %v434_v1, %v438_v3 }
  0xe6   :  { %v14012_v31 = vcombine.high %v394_v21, %v398_v22  ;;  %v14011_v35 = vcombine.low %v394_v21, %v398_v22  ;;  %v442_v9 = vld [vmem:[#allocation7 + $0x9c8] sm:$0xff] }
  0xe7   :  { %v454_v21 = vld [vmem:[#allocation7 + $0xa28] sm:$0xff] }
  0xe8   :  { %9531 = vmatpush1.bf16.msra.mxu0 %v13945_v28  ;;  %10023 = vmatpush1.bf16.msra.mxu1 %v13947_v29  ;;  %v14010_v28 = vcombine.high %v393_v17, %v397_v20  ;;  %v401_v29 = vld [vmem:[#allocation7 + $0x880] sm:$0xff]  ;;  %v14060_v20 = vcombine.high %v442_v9, %v446_v11  ;;  %v494_v1 = vld [vmem:[#allocation7 + $0xb68] sm:$0xff] }
  0xe9   :  { %9532 = vmatprep.subr.bf16.mxu0 %v13954_v30  ;;  %10024 = vmatprep.subr.bf16.mxu1 %v13956_v34  ;;  %v405_v30 = vld [vmem:[#allocation7 + $0x8a0] sm:$0xff]  ;;  %v16644_v34 = vcombine.high %v16636_v24, %v16636_v24 }
  0xea   :  { %v449_v17 = vld [vmem:[#allocation7 + $0xa00] sm:$0xff] }
  0xec   :  { %9533 = vmatpush1.bf16.msra.mxu0 %v13953_v36  ;;  %10025 = vmatpush1.bf16.msra.mxu1 %v13955_v37  ;;  %v14018_v36 = vcombine.high %v401_v29, %v405_v30  ;;  %v409_v37 = vld [vmem:[#allocation7 + $0x8c0] sm:$0xff] }
  0xed   :  { %9534 = vmatprep.subr.bf16.mxu0 %v13962_v38  ;;  %10026 = vmatprep.subr.bf16.mxu1 %v13964_v42  ;;  %v413_v38 = vld [vmem:[#allocation7 + $0x8e0] sm:$0xff]  ;;  %v14017_v42 = vcombine.low %v401_v29, %v405_v30  ;;  %v458_v29 = vld [vmem:[#allocation7 + $0xa48] sm:$0xff] }
  0xf0   :  { %9535 = vmatpush1.bf16.msra.mxu0 %v13961_v44  ;;  %10027 = vmatpush1.bf16.msra.mxu1 %v13963_v45  ;;  %v14026_v44 = vcombine.high %v409_v37, %v413_v38  ;;  %v417_v45 = vld [vmem:[#allocation7 + $0x900] sm:$0xff] }
  0xf1   :  { %9536 = vmatprep.subr.bf16.mxu0 %v13970_v46  ;;  %10028 = vmatprep.subr.bf16.mxu1 %v13972_v50  ;;  %v421_v46 = vld [vmem:[#allocation7 + $0x920] sm:$0xff]  ;;  %v14025_v50 = vcombine.low %v409_v37, %v413_v38  ;;  %v466_v37 = vld [vmem:[#allocation7 + $0xa88] sm:$0xff] }
  0xf2   :  { %v14083_v49 = vcombine.low %v466_v37, %v470_v39 }
  0xf4   :  { %9537 = vmatpush1.bf16.msra.mxu0 %v13969_v52  ;;  %10029 = vmatpush1.bf16.msra.mxu1 %v13971_v54  ;;  %v14034_v52 = vcombine.high %v417_v45, %v421_v46  ;;  %v425_v54 = vld [vmem:[#allocation7 + $0x940] sm:$0xff] }
  0xf5   :  { %9538 = vmatprep.subr.bf16.mxu0 %v13978_v55  ;;  %10030 = vmatprep.subr.bf16.mxu1 %v13980_v60  ;;  %v429_v55 = vld [vmem:[#allocation7 + $0x960] sm:$0xff]  ;;  %v14033_v60 = vcombine.low %v417_v45, %v421_v46  ;;  %v474_v45 = vld [vmem:[#allocation7 + $0xac8] sm:$0xff]  ;;  %v14084_v46 = vcombine.high %v466_v37, %v470_v39  ;;  %v16654_v39 = vcombine.low %v16636_v24, %v16636_v24 }
  0xf6   :  { %v14091_v59 = vcombine.low %v474_v45, %v478_v47 }
  0xf8   :  { %9539 = vmatpush1.bf16.msra.mxu0 %v13977_v62  ;;  %10031 = vmatpush1.bf16.msra.mxu1 %v13979_v63  ;;  %v14042_v62 = vcombine.high %v425_v54, %v429_v55  ;;  %v433_v63 = vld [vmem:[#allocation7 + $0x980] sm:$0xff] }
  0xf9   :  { %9540 = vmatprep.subr.bf16.mxu0 %v13986_v0  ;;  %10032 = vmatprep.subr.bf16.mxu1 %v13988_v4  ;;  %v437_v0 = vld [vmem:[#allocation7 + $0x9a0] sm:$0xff]  ;;  %v14041_v4 = vcombine.low %v425_v54, %v429_v55  ;;  %v482_v54 = vld [vmem:[#allocation7 + $0xb08] sm:$0xff]  ;;  %v14092_v55 = vcombine.high %v474_v45, %v478_v47 }
  0xfa   :  { %v14099_v3 = vcombine.low %v482_v54, %v486_v56  ;;  %v534_v47 = vld [vmem:[#allocation7 + $0xca8] sm:$0xff] }
  0xfc   :  { %9541 = vmatpush1.bf16.msra.mxu0 %v13985_v6  ;;  %10033 = vmatpush1.bf16.msra.mxu1 %v13987_v7  ;;  %v14050_v6 = vcombine.high %v433_v63, %v437_v0  ;;  %v441_v7 = vld [vmem:[#allocation7 + $0x9c0] sm:$0xff] }
  0xfd   :  { %9542 = vmatprep.subr.bf16.mxu0 %v13994_v8  ;;  %10034 = vmatprep.subr.bf16.mxu1 %v13996_v13  ;;  %v445_v8 = vld [vmem:[#allocation7 + $0x9e0] sm:$0xff]  ;;  %v14049_v13 = vcombine.low %v433_v63, %v437_v0  ;;  %v490_v63 = vld [vmem:[#allocation7 + $0xb48] sm:$0xff]  ;;  %v14100_v0 = vcombine.high %v482_v54, %v486_v56 }
  0xfe   :  { %v14057_v22 = vcombine.low %v441_v7, %v445_v8  ;;  %v538_v54 = vld [vmem:[#allocation7 + $0xcc8] sm:$0xff] }
  0xff   :  { %v542_v56 = vld [vmem:[#allocation7 + $0xce8] sm:$0xff] }
 0x100   :  { %9543 = vmatpush1.bf16.msra.mxu0 %v13993_v16  ;;  %10035 = vmatpush1.bf16.msra.mxu1 %v13995_v18  ;;  %v14058_v16 = vcombine.high %v441_v7, %v445_v8  ;;  %v453_v18 = vld [vmem:[#allocation7 + $0xa20] sm:$0xff]  ;;  %v498_v7 = vld [vmem:[#allocation7 + $0xb88] sm:$0xff]  ;;  %v14108_v8 = vcombine.high %v490_v63, %v494_v1 }
 0x101   :  { %9553 = vmatprep.subr.bf16.mxu0 %v14002_v19  ;;  %10045 = vmatprep.subr.bf16.mxu1 %v14004_v23  ;;  %v450_v19 = vld [vmem:[#allocation7 + $0xa08] sm:$0xff]  ;;  %v14059_v23 = vcombine.low %v442_v9, %v446_v11  ;;  %v14065_v32 = vcombine.low %v449_v17, %v453_v18  ;;  %v14107_v11 = vcombine.low %v490_v63, %v494_v1 }
 0x102   :  { %v14068_v30 = vcombine.high %v450_v19, %v454_v21  ;;  %v14067_v33 = vcombine.low %v450_v19, %v454_v21  ;;  %v502_v9 = vld [vmem:[#allocation7 + $0xba8] sm:$0xff] }
 0x103   :  { %9545 = vmatmul.mubr.bf16.vlgmr.msra.gmra.mrb[0].mxu0 %v16640_v25  ;;  %10037 = vmatmul.mubr.bf16.vlgmr.msra.gmra.mrb[0].mxu1 %v16640_v25  ;;  %v510_v19 = vld [vmem:[#allocation7 + $0xbe8] sm:$0xff]  ;;  %v14115_v21 = vcombine.low %v498_v7, %v502_v9 }
 0x104   :  { %9554 = vmatpush1.bf16.msra.mxu0 %v14001_v26  ;;  %10046 = vmatpush1.bf16.msra.mxu1 %v14003_v27  ;;  %v14066_v26 = vcombine.high %v449_v17, %v453_v18  ;;  %v457_v27 = vld [vmem:[#allocation7 + $0xa40] sm:$0xff]  ;;  %v506_v17 = vld [vmem:[#allocation7 + $0xbc8] sm:$0xff]  ;;  %v14116_v18 = vcombine.high %v498_v7, %v502_v9 }
 0x105   :  { %9555 = vmatprep.subr.bf16.mxu0 %v14010_v28  ;;  %10047 = vmatprep.subr.bf16.mxu1 %v14012_v31  ;;  %v461_v28 = vld [vmem:[#allocation7 + $0xa60] sm:$0xff]  ;;  %v462_v31 = vld [vmem:[#allocation7 + $0xa68] sm:$0xff] }
 0x106   :  { %9585 = vmatprep.mubr.bf16.mxu0 %v16644_v34  ;;  %10077 = vmatprep.mubr.bf16.mxu1 %v16644_v34  ;;  %v14076_v38 = vcombine.high %v458_v29, %v462_v31  ;;  %v14075_v41 = vcombine.low %v458_v29, %v462_v31  ;;  %v518_v29 = vld [vmem:[#allocation7 + $0xc28] sm:$0xff]  ;;  %v521_v31 = vld [vmem:[#allocation7 + $0xc40] sm:$0xff] }
 0x107   :  { %v546_v63 = vld [vmem:[#allocation7 + $0xd08] sm:$0xff] }
 0x108   :  { %9556 = vmatpush1.bf16.msra.mxu0 %v14009_v15  ;;  %10048 = vmatpush1.bf16.msra.mxu1 %v14011_v35  ;;  %v14074_v15 = vcombine.high %v457_v27, %v461_v28  ;;  %v465_v35 = vld [vmem:[#allocation7 + $0xa80] sm:$0xff]  ;;  %v550_v1 = vld [vmem:[#allocation7 + $0xd28] sm:$0xff] }
 0x109   :  { %9557 = vmatprep.subr.bf16.mxu0 %v14018_v36  ;;  %10049 = vmatprep.subr.bf16.mxu1 %v14020_v40  ;;  %v469_v36 = vld [vmem:[#allocation7 + $0xaa0] sm:$0xff]  ;;  %v14073_v40 = vcombine.low %v457_v27, %v461_v28  ;;  %v514_v27 = vld [vmem:[#allocation7 + $0xc08] sm:$0xff]  ;;  %v14124_v28 = vcombine.high %v506_v17, %v510_v19 }
 0x10a   :  { %v14132_v37 = vcombine.high %v514_v27, %v518_v29  ;;  %v554_v7 = vld [vmem:[#allocation7 + $0xd48] sm:$0xff] }
 0x10b   :  { %v558_v9 = vld [vmem:[#allocation7 + $0xd68] sm:$0xff] }
 0x10c   :  { %9558 = vmatpush1.bf16.msra.mxu0 %v14017_v42  ;;  %10050 = vmatpush1.bf16.msra.mxu1 %v14019_v43  ;;  %v14082_v42 = vcombine.high %v465_v35, %v469_v36  ;;  %v473_v43 = vld [vmem:[#allocation7 + $0xac0] sm:$0xff] }
 0x10d   :  { %9559 = vmatprep.subr.bf16.mxu0 %v14026_v44  ;;  %10051 = vmatprep.subr.bf16.mxu1 %v14028_v48  ;;  %v477_v44 = vld [vmem:[#allocation7 + $0xae0] sm:$0xff]  ;;  %v14081_v48 = vcombine.low %v465_v35, %v469_v36  ;;  %v522_v35 = vld [vmem:[#allocation7 + $0xc48] sm:$0xff] }
 0x10e   :  { %v526_v36 = vld [vmem:[#allocation7 + $0xc68] sm:$0xff] }
 0x10f   :  { %v14140_v45 = vcombine.high %v522_v35, %v526_v36 }
 0x110   :  { %9560 = vmatpush1.bf16.msra.mxu0 %v14025_v50  ;;  %10052 = vmatpush1.bf16.msra.mxu1 %v14027_v51  ;;  %v14090_v50 = vcombine.high %v473_v43, %v477_v44  ;;  %v481_v51 = vld [vmem:[#allocation7 + $0xb00] sm:$0xff] }
 0x111   :  { %9561 = vmatprep.subr.bf16.mxu0 %v14034_v52  ;;  %10053 = vmatprep.subr.bf16.mxu1 %v14036_v58  ;;  %v485_v52 = vld [vmem:[#allocation7 + $0xb20] sm:$0xff]  ;;  %v14089_v58 = vcombine.low %v473_v43, %v477_v44 }
 0x112   :  { %v529_v43 = vld [vmem:[#allocation7 + $0xc80] sm:$0xff] }
 0x113   :  { %v533_v44 = vld [vmem:[#allocation7 + $0xca0] sm:$0xff] }
 0x114   :  { %9562 = vmatpush1.bf16.msra.mxu0 %v14033_v60  ;;  %10054 = vmatpush1.bf16.msra.mxu1 %v14035_v61  ;;  %v14098_v60 = vcombine.high %v481_v51, %v485_v52  ;;  %v489_v61 = vld [vmem:[#allocation7 + $0xb40] sm:$0xff] }
 0x115   :  { %9563 = vmatprep.subr.bf16.mxu0 %v14042_v62  ;;  %10055 = vmatprep.subr.bf16.mxu1 %v14044_v2  ;;  %v493_v62 = vld [vmem:[#allocation7 + $0xb60] sm:$0xff]  ;;  %v14097_v2 = vcombine.low %v481_v51, %v485_v52 }
 0x116   :  { %v537_v51 = vld [vmem:[#allocation7 + $0xcc0] sm:$0xff] }
 0x117   :  { %v541_v52 = vld [vmem:[#allocation7 + $0xce0] sm:$0xff] }
 0x118   :  { %9564 = vmatpush1.bf16.msra.mxu0 %v14041_v4  ;;  %10056 = vmatpush1.bf16.msra.mxu1 %v14043_v5  ;;  %v14106_v4 = vcombine.high %v489_v61, %v493_v62  ;;  %v497_v5 = vld [vmem:[#allocation7 + $0xb80] sm:$0xff] }
 0x119   :  { %9565 = vmatprep.subr.bf16.mxu0 %v14050_v6  ;;  %10057 = vmatprep.subr.bf16.mxu1 %v14052_v10  ;;  %v501_v6 = vld [vmem:[#allocation7 + $0xba0] sm:$0xff]  ;;  %v14105_v10 = vcombine.low %v489_v61, %v493_v62 }
 0x11a   :  { %v545_v61 = vld [vmem:[#allocation7 + $0xd00] sm:$0xff] }
 0x11b   :  { %v549_v62 = vld [vmem:[#allocation7 + $0xd20] sm:$0xff] }
 0x11c   :  { %9566 = vmatpush1.bf16.msra.mxu0 %v14049_v13  ;;  %10058 = vmatpush1.bf16.msra.mxu1 %v14051_v14  ;;  %v14114_v13 = vcombine.high %v497_v5, %v501_v6  ;;  %v505_v14 = vld [vmem:[#allocation7 + $0xbc0] sm:$0xff] }
 0x11d   :  { %9567 = vmatprep.subr.bf16.mxu0 %v14058_v16  ;;  %10059 = vmatprep.subr.bf16.mxu1 %v14060_v20  ;;  %v509_v16 = vld [vmem:[#allocation7 + $0xbe0] sm:$0xff]  ;;  %v14113_v20 = vcombine.low %v497_v5, %v501_v6 }
 0x11e   :  { %v553_v5 = vld [vmem:[#allocation7 + $0xd40] sm:$0xff] }
 0x11f   :  { %v557_v6 = vld [vmem:[#allocation7 + $0xd60] sm:$0xff] }
 0x120   :  { %9568 = vmatpush1.bf16.msra.mxu0 %v14057_v22  ;;  %10060 = vmatpush1.bf16.msra.mxu1 %v14059_v23  ;;  %v14122_v22 = vcombine.high %v505_v14, %v509_v16  ;;  %v513_v23 = vld [vmem:[#allocation7 + $0xc00] sm:$0xff] }
 0x121   :  { %9569 = vmatprep.subr.bf16.mxu0 %v14066_v26  ;;  %10061 = vmatprep.subr.bf16.mxu1 %v14068_v30  ;;  %v517_v26 = vld [vmem:[#allocation7 + $0xc20] sm:$0xff]  ;;  %v14121_v30 = vcombine.low %v505_v14, %v509_v16 }
 0x122   :  { %v561_v14 = vld [vmem:[#allocation7 + $0xd80] sm:$0xff] }
 0x123   :  { %v565_v16 = vld [vmem:[#allocation7 + $0xda0] sm:$0xff] }
 0x124   :  { %9570 = vmatpush1.bf16.msra.mxu0 %v14065_v32  ;;  %10062 = vmatpush1.bf16.msra.mxu1 %v14067_v33  ;;  %v14123_v32 = vcombine.low %v506_v17, %v510_v19  ;;  %v14130_v33 = vcombine.high %v513_v23, %v517_v26  ;;  %v562_v17 = vld [vmem:[#allocation7 + $0xd88] sm:$0xff] }
 0x125   :  { %9571 = vmatprep.subr.bf16.mxu0 %v14074_v15  ;;  %10063 = vmatprep.subr.bf16.mxu1 %v14076_v38  ;;  %v525_v15 = vld [vmem:[#allocation7 + $0xc60] sm:$0xff]  ;;  %v16650_v38 = vld [vmem:[#allocation4 + $0x18] sm:$0xff]  ;;  %v566_v19 = vld [vmem:[#allocation7 + $0xda8] sm:$0xff] }
 0x126   :  { %v14137_v24 = vcombine.low %v521_v31, %v525_v15 }
 0x128   :  { %9572 = vmatpush1.bf16.msra.mxu0 %v14073_v40  ;;  %10064 = vmatpush1.bf16.msra.mxu1 %v14075_v41  ;;  %v14129_v40 = vcombine.low %v513_v23, %v517_v26  ;;  %v14131_v41 = vcombine.low %v514_v27, %v518_v29  ;;  %v569_v23 = vld [vmem:[#allocation7 + $0xdc0] sm:$0xff]  ;;  %v570_v27 = vld [vmem:[#allocation7 + $0xdc8] sm:$0xff] }
 0x129   :  { %9573 = vmatprep.subr.bf16.mxu0 %v14082_v42  ;;  %10065 = vmatprep.subr.bf16.mxu1 %v14084_v46  ;;  %v14138_v42 = vcombine.high %v521_v31, %v525_v15  ;;  %v530_v46 = vld [vmem:[#allocation7 + $0xc88] sm:$0xff]  ;;  %v573_v26 = vld [vmem:[#allocation7 + $0xde0] sm:$0xff]  ;;  %v14179_v31 = vcombine.low %v562_v17, %v566_v19 }
 0x12a   :  { %v574_v29 = vld [vmem:[#allocation7 + $0xde8] sm:$0xff]  ;;  %v581_v15 = vld [vmem:[#allocation7 + $0xe20] sm:$0xff] }
 0x12c   :  { %9574 = vmatpush1.bf16.msra.mxu0 %v14081_v48  ;;  %10066 = vmatpush1.bf16.msra.mxu1 %v14083_v49  ;;  %v16658_v48 = vcombine.high %v16650_v38, %v16650_v38  ;;  %v14139_v49 = vcombine.low %v522_v35, %v526_v36  ;;  %v578_v35 = vld [vmem:[#allocation7 + $0xe08] sm:$0xff]  ;;  %v14188_v36 = vcombine.high %v570_v27, %v574_v29 }
 0x12d   :  { %9575 = vmatprep.subr.bf16.mxu0 %v14090_v50  ;;  %10067 = vmatprep.subr.bf16.mxu1 %v14092_v55  ;;  %v14146_v50 = vcombine.high %v529_v43, %v533_v44  ;;  %v14148_v55 = vcombine.high %v530_v46, %v534_v47 }
 0x130   :  { %9576 = vmatpush1.bf16.msra.mxu0 %v14089_v58  ;;  %10068 = vmatpush1.bf16.msra.mxu1 %v14091_v59  ;;  %v14145_v58 = vcombine.low %v529_v43, %v533_v44  ;;  %v14147_v59 = vcombine.low %v530_v46, %v534_v47  ;;  %v585_v43 = vld [vmem:[#allocation7 + $0xe40] sm:$0xff]  ;;  %v590_v47 = vld [vmem:[#allocation7 + $0xe68] sm:$0xff] }
 0x131   :  { %9577 = vmatprep.subr.bf16.mxu0 %v14098_v60  ;;  %10069 = vmatprep.subr.bf16.mxu1 %v14100_v0  ;;  %v14154_v60 = vcombine.high %v537_v51, %v541_v52  ;;  %v14156_v0 = vcombine.high %v538_v54, %v542_v56  ;;  %v589_v44 = vld [vmem:[#allocation7 + $0xe60] sm:$0xff] }
 0x134   :  { %9578 = vmatpush1.bf16.msra.mxu0 %v14097_v2  ;;  %10070 = vmatpush1.bf16.msra.mxu1 %v14099_v3  ;;  %v14153_v2 = vcombine.low %v537_v51, %v541_v52  ;;  %v14155_v3 = vcombine.low %v538_v54, %v542_v56  ;;  %v593_v51 = vld [vmem:[#allocation7 + $0xe80] sm:$0xff]  ;;  %v598_v56 = vld [vmem:[#allocation7 + $0xea8] sm:$0xff] }
 0x135   :  { %9579 = vmatprep.subr.bf16.mxu0 %v14106_v4  ;;  %10071 = vmatprep.subr.bf16.mxu1 %v14108_v8  ;;  %v14162_v4 = vcombine.high %v545_v61, %v549_v62  ;;  %v14164_v8 = vcombine.high %v546_v63, %v550_v1  ;;  %v597_v54 = vld [vmem:[#allocation7 + $0xea0] sm:$0xff] }
 0x138   :  { %9580 = vmatpush1.bf16.msra.mxu0 %v14105_v10  ;;  %10072 = vmatpush1.bf16.msra.mxu1 %v14107_v11  ;;  %v14161_v10 = vcombine.low %v545_v61, %v549_v62  ;;  %v14163_v11 = vcombine.low %v546_v63, %v550_v1  ;;  %v601_v62 = vld [vmem:[#allocation7 + $0xec0] sm:$0xff]  ;;  %v606_v1 = vld [vmem:[#allocation7 + $0xee8] sm:$0xff] }
 0x139   :  { %9581 = vmatprep.subr.bf16.mxu0 %v14114_v13  ;;  %10073 = vmatprep.subr.bf16.mxu1 %v14116_v18  ;;  %v14170_v13 = vcombine.high %v553_v5, %v557_v6  ;;  %v14172_v18 = vcombine.high %v554_v7, %v558_v9  ;;  %v605_v63 = vld [vmem:[#allocation7 + $0xee0] sm:$0xff] }
 0x13c   :  { %9582 = vmatpush1.bf16.msra.mxu0 %v14113_v20  ;;  %10074 = vmatpush1.bf16.msra.mxu1 %v14115_v21  ;;  %v14169_v20 = vcombine.low %v553_v5, %v557_v6  ;;  %v14171_v21 = vcombine.low %v554_v7, %v558_v9  ;;  %v609_v6 = vld [vmem:[#allocation7 + $0xf00] sm:$0xff]  ;;  %v614_v9 = vld [vmem:[#allocation7 + $0xf28] sm:$0xff] }
 0x13d   :  { %9583 = vmatprep.subr.bf16.mxu0 %v14122_v22  ;;  %10075 = vmatprep.subr.bf16.mxu1 %v14124_v28  ;;  %v14178_v22 = vcombine.high %v561_v14, %v565_v16  ;;  %v14180_v28 = vcombine.high %v562_v17, %v566_v19  ;;  %v613_v7 = vld [vmem:[#allocation7 + $0xf20] sm:$0xff]  ;;  %v622_v19 = vld [vmem:[#allocation7 + $0xf68] sm:$0xff] }
 0x13e   :  { %v621_v17 = vld [vmem:[#allocation7 + $0xf60] sm:$0xff] }
 0x140   :  { %9584 = vmatpush1.bf16.msra.mxu0 %v14121_v30  ;;  %10076 = vmatpush1.bf16.msra.mxu1 %v14123_v32  ;;  %v14177_v30 = vcombine.low %v561_v14, %v565_v16  ;;  %v14186_v32 = vcombine.high %v569_v23, %v573_v26  ;;  %v617_v16 = vld [vmem:[#allocation7 + $0xf40] sm:$0xff] }
 0x141   :  { %9594 = vmatprep.subr.bf16.mxu0 %v14130_v33  ;;  %10086 = vmatprep.subr.bf16.mxu1 %v14132_v37  ;;  %v577_v33 = vld [vmem:[#allocation7 + $0xe00] sm:$0xff]  ;;  %v582_v37 = vld [vmem:[#allocation7 + $0xe28] sm:$0xff] }
 0x142   :  { %v14196_v46 = vcombine.high %v578_v35, %v582_v37 }
 0x143   :  { %9586 = vmatmul.mubr.bf16.vlgmr.msra.gmra.mrb[0].mxu0 %v16654_v39  ;;  %10078 = vmatmul.mubr.bf16.vlgmr.msra.gmra.mrb[0].mxu1 %v16654_v39 }
 0x144   :  { %9595 = vmatpush1.bf16.msra.mxu0 %v14129_v40  ;;  %10087 = vmatpush1.bf16.msra.mxu1 %v14131_v41  ;;  %v14185_v40 = vcombine.low %v569_v23, %v573_v26  ;;  %v14187_v41 = vcombine.low %v570_v27, %v574_v29  ;;  %v625_v26 = vld [vmem:[#allocation7 + $0xf80] sm:$0xff]  ;;  %v630_v29 = vld [vmem:[#allocation7 + $0xfa8] sm:$0xff] }
 0x145   :  { %9596 = vmatprep.subr.bf16.mxu0 %v14138_v42  ;;  %10088 = vmatprep.subr.bf16.mxu1 %v14140_v45  ;;  %v14194_v42 = vcombine.high %v577_v33, %v581_v15  ;;  %v586_v45 = vld [vmem:[#allocation7 + $0xe48] sm:$0xff]  ;;  %v629_v27 = vld [vmem:[#allocation7 + $0xfa0] sm:$0xff] }
 0x146   :  { %9626 = vmatprep.mubr.bf16.mxu0 %v16658_v48  ;;  %10118 = vmatprep.mubr.bf16.mxu1 %v16658_v48  ;;  %v14204_v52 = vcombine.high %v586_v45, %v590_v47 }
 0x148   :  { %9597 = vmatpush1.bf16.msra.mxu0 %v14137_v24  ;;  %10089 = vmatpush1.bf16.msra.mxu1 %v14139_v49  ;;  %v14193_v24 = vcombine.low %v577_v33, %v581_v15  ;;  %v14195_v49 = vcombine.low %v578_v35, %v582_v37  ;;  %v633_v15 = vld [vmem:[#allocation7 + $0xfc0] sm:$0xff]  ;;  %v638_v37 = vld [vmem:[#allocation7 + $0xfe8] sm:$0xff] }
 0x149   :  { %9598 = vmatprep.subr.bf16.mxu0 %v14146_v50  ;;  %10090 = vmatprep.subr.bf16.mxu1 %v14148_v55  ;;  %v14202_v50 = vcombine.high %v585_v43, %v589_v44  ;;  %v594_v55 = vld [vmem:[#allocation7 + $0xe88] sm:$0xff]  ;;  %v637_v35 = vld [vmem:[#allocation7 + $0xfe0] sm:$0xff] }
 0x14a   :  { %v14212_v61 = vcombine.high %v594_v55, %v598_v56 }
 0x14c   :  { %9599 = vmatpush1.bf16.msra.mxu0 %v14145_v58  ;;  %10091 = vmatpush1.bf16.msra.mxu1 %v14147_v59  ;;  %v14201_v58 = vcombine.low %v585_v43, %v589_v44  ;;  %v14203_v59 = vcombine.low %v586_v45, %v590_v47  ;;  %v641_v44 = vld [vmem:[#allocation7 + $0x1000] sm:$0xff]  ;;  %v646_v47 = vld [vmem:[#allocation7 + $0x1028] sm:$0xff] }
 0x14d   :  { %9600 = vmatprep.subr.bf16.mxu0 %v14154_v60  ;;  %10092 = vmatprep.subr.bf16.mxu1 %v14156_v0  ;;  %v14210_v60 = vcombine.high %v593_v51, %v597_v54  ;;  %v602_v0 = vld [vmem:[#allocation7 + $0xec8] sm:$0xff]  ;;  %v645_v45 = vld [vmem:[#allocation7 + $0x1020] sm:$0xff] }
 0x14e   :  { %v14220_v5 = vcombine.high %v602_v0, %v606_v1 }
 0x150   :  { %9601 = vmatpush1.bf16.msra.mxu0 %v14153_v2  ;;  %10093 = vmatpush1.bf16.msra.mxu1 %v14155_v3  ;;  %v14209_v2 = vcombine.low %v593_v51, %v597_v54  ;;  %v14211_v3 = vcombine.low %v594_v55, %v598_v56  ;;  %v653_v54 = vld [vmem:[#allocation7 + $0x1060] sm:$0xff]  ;;  %v16666_v55 = vcombine.low %v16650_v38, %v16650_v38  ;;  %v650_v56 = vld [vmem:[#allocation7 + $0x1048] sm:$0xff] }
 0x151   :  { %9602 = vmatprep.subr.bf16.mxu0 %v14162_v4  ;;  %10094 = vmatprep.subr.bf16.mxu1 %v14164_v8  ;;  %v14218_v4 = vcombine.high %v601_v62, %v605_v63  ;;  %v610_v8 = vld [vmem:[#allocation7 + $0xf08] sm:$0xff] }
 0x152   :  { %v14228_v14 = vcombine.high %v610_v8, %v614_v9  ;;  %v658_v38 = vld [vmem:[#allocation7 + $0x1088] sm:$0xff] }
 0x154   :  { %9603 = vmatpush1.bf16.msra.mxu0 %v14161_v10  ;;  %10095 = vmatpush1.bf16.msra.mxu1 %v14163_v11  ;;  %v14217_v10 = vcombine.low %v601_v62, %v605_v63  ;;  %v14219_v11 = vcombine.low %v602_v0, %v606_v1  ;;  %v657_v0 = vld [vmem:[#allocation7 + $0x1080] sm:$0xff] }
 0x155   :  { %9604 = vmatprep.subr.bf16.mxu0 %v14170_v13  ;;  %10096 = vmatprep.subr.bf16.mxu1 %v14172_v18  ;;  %v14226_v13 = vcombine.high %v609_v6, %v613_v7  ;;  %v618_v18 = vld [vmem:[#allocation7 + $0xf48] sm:$0xff]  ;;  %v661_v1 = vld [vmem:[#allocation7 + $0x10a0] sm:$0xff] }
 0x156   :  { %v14236_v23 = vcombine.high %v618_v18, %v622_v19 }
 0x158   :  { %9605 = vmatpush1.bf16.msra.mxu0 %v14169_v20  ;;  %10097 = vmatpush1.bf16.msra.mxu1 %v14171_v21  ;;  %v14225_v20 = vcombine.low %v609_v6, %v613_v7  ;;  %v14227_v21 = vcombine.low %v610_v8, %v614_v9  ;;  %v14274_v6 = vcombine.high %v657_v0, %v661_v1  ;;  %v665_v8 = vld [vmem:[#allocation7 + $0x10c0] sm:$0xff] }
 0x159   :  { %9606 = vmatprep.subr.bf16.mxu0 %v14178_v22  ;;  %10098 = vmatprep.subr.bf16.mxu1 %v14180_v28  ;;  %v14234_v22 = vcombine.high %v617_v16, %v621_v17  ;;  %v626_v28 = vld [vmem:[#allocation7 + $0xf88] sm:$0xff]  ;;  %v669_v9 = vld [vmem:[#allocation7 + $0x10e0] sm:$0xff] }
 0x15a   :  { %v14244_v33 = vcombine.high %v626_v28, %v630_v29 }
 0x15c   :  { %9607 = vmatpush1.bf16.msra.mxu0 %v14177_v30  ;;  %10099 = vmatpush1.bf16.msra.mxu1 %v14179_v31  ;;  %v14233_v30 = vcombine.low %v617_v16, %v621_v17  ;;  %v14235_v31 = vcombine.low %v618_v18, %v622_v19  ;;  %v14282_v16 = vcombine.high %v665_v8, %v669_v9  ;;  %v673_v18 = vld [vmem:[#allocation7 + $0x1100] sm:$0xff] }
 0x15d   :  { %9608 = vmatprep.subr.bf16.mxu0 %v14186_v32  ;;  %10100 = vmatprep.subr.bf16.mxu1 %v14188_v36  ;;  %v14242_v32 = vcombine.high %v625_v26, %v629_v27  ;;  %v634_v36 = vld [vmem:[#allocation7 + $0xfc8] sm:$0xff]  ;;  %v677_v19 = vld [vmem:[#allocation7 + $0x1120] sm:$0xff] }
 0x15e   :  { %v14252_v43 = vcombine.high %v634_v36, %v638_v37 }
 0x160   :  { %9609 = vmatpush1.bf16.msra.mxu0 %v14185_v40  ;;  %10101 = vmatpush1.bf16.msra.mxu1 %v14187_v41  ;;  %v14241_v40 = vcombine.low %v625_v26, %v629_v27  ;;  %v14243_v41 = vcombine.low %v626_v28, %v630_v29  ;;  %v14290_v26 = vcombine.high %v673_v18, %v677_v19  ;;  %v681_v28 = vld [vmem:[#allocation7 + $0x1140] sm:$0xff] }
 0x161   :  { %9610 = vmatprep.subr.bf16.mxu0 %v14194_v42  ;;  %10102 = vmatprep.subr.bf16.mxu1 %v14196_v46  ;;  %v14250_v42 = vcombine.high %v633_v15, %v637_v35  ;;  %v642_v46 = vld [vmem:[#allocation7 + $0x1008] sm:$0xff]  ;;  %v685_v29 = vld [vmem:[#allocation7 + $0x1160] sm:$0xff] }
 0x162   :  { %v14260_v51 = vcombine.high %v642_v46, %v646_v47 }
 0x164   :  { %9611 = vmatpush1.bf16.msra.mxu0 %v14193_v24  ;;  %10103 = vmatpush1.bf16.msra.mxu1 %v14195_v49  ;;  %v14249_v24 = vcombine.low %v633_v15, %v637_v35  ;;  %v14251_v49 = vcombine.low %v634_v36, %v638_v37  ;;  %v14298_v15 = vcombine.high %v681_v28, %v685_v29  ;;  %v689_v36 = vld [vmem:[#allocation7 + $0x1180] sm:$0xff] }
 0x165   :  { %9612 = vmatprep.subr.bf16.mxu0 %v14202_v50  ;;  %10104 = vmatprep.subr.bf16.mxu1 %v14204_v52  ;;  %v14258_v50 = vcombine.high %v641_v44, %v645_v45  ;;  %v649_v52 = vld [vmem:[#allocation7 + $0x1040] sm:$0xff] }
 0x166   :  { %v14266_v62 = vcombine.high %v649_v52, %v653_v54  ;;  %v693_v37 = vld [vmem:[#allocation7 + $0x11a0] sm:$0xff] }
 0x168   :  { %9613 = vmatpush1.bf16.msra.mxu0 %v14201_v58  ;;  %10105 = vmatpush1.bf16.msra.mxu1 %v14203_v59  ;;  %v654_v58 = vld [vmem:[#allocation7 + $0x1068] sm:$0xff]  ;;  %v16668_v59 = vld [vmem:[#allocation4 + $0x20] sm:$0xff] }
 0x169   :  { %9614 = vmatprep.subr.bf16.mxu0 %v14210_v60  ;;  %10106 = vmatprep.subr.bf16.mxu1 %v14212_v61  ;;  %v14257_v60 = vcombine.low %v641_v44, %v645_v45  ;;  %v14259_v61 = vcombine.low %v642_v46, %v646_v47  ;;  %v14268_v63 = vcombine.high %v650_v56, %v654_v58  ;;  %v697_v46 = vld [vmem:[#allocation7 + $0x11c0] sm:$0xff] }
 0x16a   :  { %v14306_v44 = vcombine.high %v689_v36, %v693_v37  ;;  %v701_v47 = vld [vmem:[#allocation7 + $0x11e0] sm:$0xff] }
 0x16c   :  { %9615 = vmatpush1.bf16.msra.mxu0 %v14209_v2  ;;  %10107 = vmatpush1.bf16.msra.mxu1 %v14211_v3  ;;  %v16672_v2 = vcombine.high %v16668_v59, %v16668_v59  ;;  %v662_v3 = vld [vmem:[#allocation7 + $0x10a8] sm:$0xff] }
 0x16d   :  { %9616 = vmatprep.subr.bf16.mxu0 %v14218_v4  ;;  %10108 = vmatprep.subr.bf16.mxu1 %v14220_v5  ;;  %v14265_v4 = vcombine.low %v649_v52, %v653_v54  ;;  %v14267_v5 = vcombine.low %v650_v56, %v654_v58  ;;  %v14276_v7 = vcombine.high %v658_v38, %v662_v3  ;;  %v705_v56 = vld [vmem:[#allocation7 + $0x1200] sm:$0xff] }
 0x16e   :  { %v14314_v52 = vcombine.high %v697_v46, %v701_v47  ;;  %v709_v58 = vld [vmem:[#allocation7 + $0x1220] sm:$0xff] }
 0x170   :  { %9617 = vmatpush1.bf16.msra.mxu0 %v14217_v10  ;;  %10109 = vmatpush1.bf16.msra.mxu1 %v14219_v11  ;;  %v666_v10 = vld [vmem:[#allocation7 + $0x10c8] sm:$0xff] }
 0x171   :  { %9618 = vmatprep.subr.bf16.mxu0 %v14226_v13  ;;  %10110 = vmatprep.subr.bf16.mxu1 %v14228_v14  ;;  %v670_v11 = vld [vmem:[#allocation7 + $0x10e8] sm:$0xff]  ;;  %v14273_v13 = vcombine.low %v657_v0, %v661_v1  ;;  %v14275_v14 = vcombine.low %v658_v38, %v662_v3  ;;  %v14322_v0 = vcombine.high %v705_v56, %v709_v58  ;;  %v713_v38 = vld [vmem:[#allocation7 + $0x1240] sm:$0xff] }
 0x172   :  { %v14284_v17 = vcombine.high %v666_v10, %v670_v11  ;;  %v717_v3 = vld [vmem:[#allocation7 + $0x1260] sm:$0xff] }
 0x174   :  { %9619 = vmatpush1.bf16.msra.mxu0 %v14225_v20  ;;  %10111 = vmatpush1.bf16.msra.mxu1 %v14227_v21  ;;  %v674_v20 = vld [vmem:[#allocation7 + $0x1108] sm:$0xff] }
 0x175   :  { %9620 = vmatprep.subr.bf16.mxu0 %v14234_v22  ;;  %10112 = vmatprep.subr.bf16.mxu1 %v14236_v23  ;;  %v678_v21 = vld [vmem:[#allocation7 + $0x1128] sm:$0xff]  ;;  %v14281_v22 = vcombine.low %v665_v8, %v669_v9  ;;  %v14283_v23 = vcombine.low %v666_v10, %v670_v11  ;;  %v14330_v8 = vcombine.high %v713_v38, %v717_v3  ;;  %v721_v10 = vld [vmem:[#allocation7 + $0x1280] sm:$0xff] }
 0x176   :  { %v14292_v27 = vcombine.high %v674_v20, %v678_v21  ;;  %v725_v11 = vld [vmem:[#allocation7 + $0x12a0] sm:$0xff] }
 0x178   :  { %9621 = vmatpush1.bf16.msra.mxu0 %v14233_v30  ;;  %10113 = vmatpush1.bf16.msra.mxu1 %v14235_v31  ;;  %v682_v30 = vld [vmem:[#allocation7 + $0x1148] sm:$0xff] }
 0x179   :  { %9622 = vmatprep.subr.bf16.mxu0 %v14242_v32  ;;  %10114 = vmatprep.subr.bf16.mxu1 %v14244_v33  ;;  %v686_v31 = vld [vmem:[#allocation7 + $0x1168] sm:$0xff]  ;;  %v14289_v32 = vcombine.low %v673_v18, %v677_v19  ;;  %v14291_v33 = vcombine.low %v674_v20, %v678_v21  ;;  %v14338_v18 = vcombine.high %v721_v10, %v725_v11  ;;  %v729_v20 = vld [vmem:[#allocation7 + $0x12c0] sm:$0xff] }
 0x17a   :  { %v14300_v35 = vcombine.high %v682_v30, %v686_v31  ;;  %v733_v21 = vld [vmem:[#allocation7 + $0x12e0] sm:$0xff] }
 0x17c   :  { %9623 = vmatpush1.bf16.msra.mxu0 %v14241_v40  ;;  %10115 = vmatpush1.bf16.msra.mxu1 %v14243_v41  ;;  %v690_v40 = vld [vmem:[#allocation7 + $0x1188] sm:$0xff] }
 0x17d   :  { %9624 = vmatprep.subr.bf16.mxu0 %v14250_v42  ;;  %10116 = vmatprep.subr.bf16.mxu1 %v14252_v43  ;;  %v694_v41 = vld [vmem:[#allocation7 + $0x11a8] sm:$0xff]  ;;  %v14297_v42 = vcombine.low %v681_v28, %v685_v29  ;;  %v14299_v43 = vcombine.low %v682_v30, %v686_v31  ;;  %v14346_v28 = vcombine.high %v729_v20, %v733_v21  ;;  %v737_v30 = vld [vmem:[#allocation7 + $0x1300] sm:$0xff] }
 0x17e   :  { %v14308_v45 = vcombine.high %v690_v40, %v694_v41  ;;  %v741_v31 = vld [vmem:[#allocation7 + $0x1320] sm:$0xff] }
 0x180   :  { %9625 = vmatpush1.bf16.msra.mxu0 %v14249_v24  ;;  %10117 = vmatpush1.bf16.msra.mxu1 %v14251_v49  ;;  %v698_v24 = vld [vmem:[#allocation7 + $0x11c8] sm:$0xff] }
 0x181   :  { %9635 = vmatprep.subr.bf16.mxu0 %v14258_v50  ;;  %10127 = vmatprep.subr.bf16.mxu1 %v14260_v51  ;;  %v702_v49 = vld [vmem:[#allocation7 + $0x11e8] sm:$0xff]  ;;  %v14305_v50 = vcombine.low %v689_v36, %v693_v37  ;;  %v14307_v51 = vcombine.low %v690_v40, %v694_v41  ;;  %v14354_v36 = vcombine.high %v737_v30, %v741_v31  ;;  %v745_v40 = vld [vmem:[#allocation7 + $0x1340] sm:$0xff] }
 0x182   :  { %v14316_v54 = vcombine.high %v698_v24, %v702_v49  ;;  %v749_v41 = vld [vmem:[#allocation7 + $0x1360] sm:$0xff] }
 0x183   :  { %9627 = vmatmul.mubr.bf16.vlgmr.msra.gmra.mrb[0].mxu0 %v16666_v55  ;;  %10119 = vmatmul.mubr.bf16.vlgmr.msra.gmra.mrb[0].mxu1 %v16666_v55 }
 0x184   :  { %9636 = vmatpush1.bf16.msra.mxu0 %v14257_v60  ;;  %10128 = vmatpush1.bf16.msra.mxu1 %v14259_v61  ;;  %v706_v60 = vld [vmem:[#allocation7 + $0x1208] sm:$0xff] }
 0x185   :  { %9637 = vmatprep.subr.bf16.mxu0 %v14266_v62  ;;  %10129 = vmatprep.subr.bf16.mxu1 %v14268_v63  ;;  %v710_v61 = vld [vmem:[#allocation7 + $0x1228] sm:$0xff]  ;;  %v14313_v62 = vcombine.low %v697_v46, %v701_v47  ;;  %v14315_v63 = vcombine.low %v698_v24, %v702_v49  ;;  %v14362_v46 = vcombine.high %v745_v40, %v749_v41  ;;  %v753_v24 = vld [vmem:[#allocation7 + $0x1380] sm:$0xff] }
 0x186   :  { %9667 = vmatprep.mubr.bf16.mxu0 %v16672_v2  ;;  %10159 = vmatprep.mubr.bf16.mxu1 %v16672_v2  ;;  %v14324_v1 = vcombine.high %v706_v60, %v710_v61  ;;  %v757_v49 = vld [vmem:[#allocation7 + $0x13a0] sm:$0xff] }
 0x188   :  { %9638 = vmatpush1.bf16.msra.mxu0 %v14265_v4  ;;  %10130 = vmatpush1.bf16.msra.mxu1 %v14267_v5  ;;  %v714_v4 = vld [vmem:[#allocation7 + $0x1248] sm:$0xff] }
 0x189   :  { %9639 = vmatprep.subr.bf16.mxu0 %v14274_v6  ;;  %10131 = vmatprep.subr.bf16.mxu1 %v14276_v7  ;;  %v718_v5 = vld [vmem:[#allocation7 + $0x1268] sm:$0xff]  ;;  %v14321_v6 = vcombine.low %v705_v56, %v709_v58  ;;  %v14323_v7 = vcombine.low %v706_v60, %v710_v61  ;;  %v14370_v56 = vcombine.high %v753_v24, %v757_v49  ;;  %v761_v60 = vld [vmem:[#allocation7 + $0x13c0] sm:$0xff] }
 0x18a   :  { %v14332_v9 = vcombine.high %v714_v4, %v718_v5  ;;  %v765_v61 = vld [vmem:[#allocation7 + $0x13e0] sm:$0xff] }
 0x18c   :  { %9640 = vmatpush1.bf16.msra.mxu0 %v14273_v13  ;;  %10132 = vmatpush1.bf16.msra.mxu1 %v14275_v14  ;;  %v722_v13 = vld [vmem:[#allocation7 + $0x1288] sm:$0xff] }
 0x18d   :  { %9641 = vmatprep.subr.bf16.mxu0 %v14282_v16  ;;  %10133 = vmatprep.subr.bf16.mxu1 %v14284_v17  ;;  %v726_v14 = vld [vmem:[#allocation7 + $0x12a8] sm:$0xff]  ;;  %v14329_v16 = vcombine.low %v713_v38, %v717_v3  ;;  %v14331_v17 = vcombine.low %v714_v4, %v718_v5  ;;  %v14378_v38 = vcombine.high %v761_v60, %v765_v61  ;;  %v769_v4 = vld [vmem:[#allocation7 + $0x1400] sm:$0xff] }
 0x18e   :  { %v14340_v19 = vcombine.high %v722_v13, %v726_v14  ;;  %v773_v5 = vld [vmem:[#allocation7 + $0x1420] sm:$0xff] }
 0x190   :  { %9642 = vmatpush1.bf16.msra.mxu0 %v14281_v22  ;;  %10134 = vmatpush1.bf16.msra.mxu1 %v14283_v23  ;;  %v730_v22 = vld [vmem:[#allocation7 + $0x12c8] sm:$0xff] }
 0x191   :  { %9643 = vmatprep.subr.bf16.mxu0 %v14290_v26  ;;  %10135 = vmatprep.subr.bf16.mxu1 %v14292_v27  ;;  %v734_v23 = vld [vmem:[#allocation7 + $0x12e8] sm:$0xff]  ;;  %v14337_v26 = vcombine.low %v721_v10, %v725_v11  ;;  %v14339_v27 = vcombine.low %v722_v13, %v726_v14  ;;  %v14386_v10 = vcombine.high %v769_v4, %v773_v5  ;;  %v777_v13 = vld [vmem:[#allocation7 + $0x1440] sm:$0xff] }
 0x192   :  { %v14348_v29 = vcombine.high %v730_v22, %v734_v23  ;;  %v781_v14 = vld [vmem:[#allocation7 + $0x1460] sm:$0xff] }
 0x194   :  { %9644 = vmatpush1.bf16.msra.mxu0 %v14289_v32  ;;  %10136 = vmatpush1.bf16.msra.mxu1 %v14291_v33  ;;  %v738_v32 = vld [vmem:[#allocation7 + $0x1308] sm:$0xff] }
 0x195   :  { %9645 = vmatprep.subr.bf16.mxu0 %v14298_v15  ;;  %10137 = vmatprep.subr.bf16.mxu1 %v14300_v35  ;;  %v742_v33 = vld [vmem:[#allocation7 + $0x1328] sm:$0xff]  ;;  %v14345_v15 = vcombine.low %v729_v20, %v733_v21  ;;  %v14347_v35 = vcombine.low %v730_v22, %v734_v23  ;;  %v14385_v20 = vcombine.low %v769_v4, %v773_v5 }
 0x196   :  { %v14356_v37 = vcombine.high %v738_v32, %v742_v33  ;;  %v14394_v22 = vcombine.high %v777_v13, %v781_v14 }
 0x198   :  { %9646 = vmatpush1.bf16.msra.mxu0 %v14297_v42  ;;  %10138 = vmatpush1.bf16.msra.mxu1 %v14299_v43  ;;  %v746_v42 = vld [vmem:[#allocation7 + $0x1348] sm:$0xff] }
 0x199   :  { %9647 = vmatprep.subr.bf16.mxu0 %v14306_v44  ;;  %10139 = vmatprep.subr.bf16.mxu1 %v14308_v45  ;;  %v750_v43 = vld [vmem:[#allocation7 + $0x1368] sm:$0xff]  ;;  %v14353_v44 = vcombine.low %v737_v30, %v741_v31  ;;  %v14355_v45 = vcombine.low %v738_v32, %v742_v33  ;;  %v14393_v30 = vcombine.low %v777_v13, %v781_v14 }
 0x19a   :  { %v14364_v47 = vcombine.high %v746_v42, %v750_v43 }
 0x19c   :  { %9648 = vmatpush1.bf16.msra.mxu0 %v14305_v50  ;;  %10140 = vmatpush1.bf16.msra.mxu1 %v14307_v51  ;;  %v754_v50 = vld [vmem:[#allocation7 + $0x1388] sm:$0xff] }
 0x19d   :  { %9649 = vmatprep.subr.bf16.mxu0 %v14314_v52  ;;  %10141 = vmatprep.subr.bf16.mxu1 %v14316_v54  ;;  %v758_v51 = vld [vmem:[#allocation7 + $0x13a8] sm:$0xff]  ;;  %v14361_v52 = vcombine.low %v745_v40, %v749_v41  ;;  %v14363_v54 = vcombine.low %v746_v42, %v750_v43 }
 0x19e   :  { %v14372_v58 = vcombine.high %v754_v50, %v758_v51 }
 0x1a0   :  { %9650 = vmatpush1.bf16.msra.mxu0 %v14313_v62  ;;  %10142 = vmatpush1.bf16.msra.mxu1 %v14315_v63  ;;  %v762_v62 = vld [vmem:[#allocation7 + $0x13c8] sm:$0xff] }
 0x1a1   :  { %9651 = vmatprep.subr.bf16.mxu0 %v14322_v0  ;;  %10143 = vmatprep.subr.bf16.mxu1 %v14324_v1  ;;  %v766_v63 = vld [vmem:[#allocation7 + $0x13e8] sm:$0xff]  ;;  %v14369_v0 = vcombine.low %v753_v24, %v757_v49  ;;  %v14371_v1 = vcombine.low %v754_v50, %v758_v51 }
 0x1a2   :  { %v14380_v3 = vcombine.high %v762_v62, %v766_v63 }
 0x1a4   :  { %9652 = vmatpush1.bf16.msra.mxu0 %v14321_v6  ;;  %10144 = vmatpush1.bf16.msra.mxu1 %v14323_v7  ;;  %v770_v6 = vld [vmem:[#allocation7 + $0x1408] sm:$0xff] }
 0x1a5   :  { %9653 = vmatprep.subr.bf16.mxu0 %v14330_v8  ;;  %10145 = vmatprep.subr.bf16.mxu1 %v14332_v9  ;;  %v774_v7 = vld [vmem:[#allocation7 + $0x1428] sm:$0xff]  ;;  %v14377_v8 = vcombine.low %v761_v60, %v765_v61  ;;  %v14379_v9 = vcombine.low %v762_v62, %v766_v63 }
 0x1a6   :  { %v14388_v11 = vcombine.high %v770_v6, %v774_v7  ;;  %v14387_v21 = vcombine.low %v770_v6, %v774_v7 }
 0x1a8   :  { %9654 = vmatpush1.bf16.msra.mxu0 %v14329_v16  ;;  %10146 = vmatpush1.bf16.msra.mxu1 %v14331_v17  ;;  %v16680_v16 = vcombine.low %v16668_v59, %v16668_v59  ;;  %v778_v17 = vld [vmem:[#allocation7 + $0x1448] sm:$0xff] }
 0x1a9   :  { %9655 = vmatprep.subr.bf16.mxu0 %v14338_v18  ;;  %10147 = vmatprep.subr.bf16.mxu1 %v14340_v19  ;;  %v782_v18 = vld [vmem:[#allocation7 + $0x1468] sm:$0xff] }
 0x1aa   :  { %v16682_v19 = vld [vmem:[#allocation4 + $0x28] sm:$0xff]  ;;  %v14396_v23 = vcombine.high %v778_v17, %v782_v18  ;;  %v14395_v31 = vcombine.low %v778_v17, %v782_v18 }
 0x1ab   :  { %v786_v59 = vld [vmem:[#allocation7 + $0x1488] sm:$0xff] }
 0x1ac   :  { %9656 = vmatpush1.bf16.msra.mxu0 %v14337_v26  ;;  %10148 = vmatpush1.bf16.msra.mxu1 %v14339_v27  ;;  %v785_v26 = vld [vmem:[#allocation7 + $0x1480] sm:$0xff] }
 0x1ad   :  { %9657 = vmatprep.subr.bf16.mxu0 %v14346_v28  ;;  %10149 = vmatprep.subr.bf16.mxu1 %v14348_v29  ;;  %v789_v27 = vld [vmem:[#allocation7 + $0x14a0] sm:$0xff]  ;;  %v16686_v28 = vcombine.high %v16682_v19, %v16682_v19  ;;  %v790_v29 = vld [vmem:[#allocation7 + $0x14a8] sm:$0xff] }
 0x1ae   :  { %v14402_v32 = vcombine.high %v785_v26, %v789_v27  ;;  %v14404_v33 = vcombine.high %v786_v59, %v790_v29  ;;  %v14401_v40 = vcombine.low %v785_v26, %v789_v27  ;;  %v14403_v41 = vcombine.low %v786_v59, %v790_v29 }
 0x1b0   :  { %9658 = vmatpush1.bf16.msra.mxu0 %v14345_v15  ;;  %10150 = vmatpush1.bf16.msra.mxu1 %v14347_v35  ;;  %v793_v15 = vld [vmem:[#allocation7 + $0x14c0] sm:$0xff] }
 0x1b1   :  { %9659 = vmatprep.subr.bf16.mxu0 %v14354_v36  ;;  %10151 = vmatprep.subr.bf16.mxu1 %v14356_v37  ;;  %v797_v35 = vld [vmem:[#allocation7 + $0x14e0] sm:$0xff]  ;;  %v794_v36 = vld [vmem:[#allocation7 + $0x14c8] sm:$0xff] }
 0x1b2   :  { %v798_v37 = vld [vmem:[#allocation7 + $0x14e8] sm:$0xff]  ;;  %v14410_v42 = vcombine.high %v793_v15, %v797_v35  ;;  %v14409_v24 = vcombine.low %v793_v15, %v797_v35 }
 0x1b3   :  { %v14412_v43 = vcombine.high %v794_v36, %v798_v37  ;;  %v14411_v49 = vcombine.low %v794_v36, %v798_v37 }
 0x1b4   :  { %9660 = vmatpush1.bf16.msra.mxu0 %v14353_v44  ;;  %10152 = vmatpush1.bf16.msra.mxu1 %v14355_v45  ;;  %v801_v44 = vld [vmem:[#allocation7 + $0x1500] sm:$0xff] }
 0x1b5   :  { %9661 = vmatprep.subr.bf16.mxu0 %v14362_v46  ;;  %10153 = vmatprep.subr.bf16.mxu1 %v14364_v47  ;;  %v805_v45 = vld [vmem:[#allocation7 + $0x1520] sm:$0xff]  ;;  %v802_v46 = vld [vmem:[#allocation7 + $0x1508] sm:$0xff] }
 0x1b6   :  { %v806_v47 = vld [vmem:[#allocation7 + $0x1528] sm:$0xff]  ;;  %v14418_v50 = vcombine.high %v801_v44, %v805_v45  ;;  %v14417_v60 = vcombine.low %v801_v44, %v805_v45 }
 0x1b7   :  { %v14420_v51 = vcombine.high %v802_v46, %v806_v47  ;;  %v14419_v61 = vcombine.low %v802_v46, %v806_v47 }
 0x1b8   :  { %9662 = vmatpush1.bf16.msra.mxu0 %v14361_v52  ;;  %10154 = vmatpush1.bf16.msra.mxu1 %v14363_v54  ;;  %v809_v52 = vld [vmem:[#allocation7 + $0x1540] sm:$0xff] }
 0x1b9   :  { %9663 = vmatprep.subr.bf16.mxu0 %v14370_v56  ;;  %10155 = vmatprep.subr.bf16.mxu1 %v14372_v58  ;;  %v813_v54 = vld [vmem:[#allocation7 + $0x1560] sm:$0xff]  ;;  %v810_v56 = vld [vmem:[#allocation7 + $0x1548] sm:$0xff] }
 0x1ba   :  { %v814_v58 = vld [vmem:[#allocation7 + $0x1568] sm:$0xff]  ;;  %v14426_v62 = vcombine.high %v809_v52, %v813_v54  ;;  %v14425_v4 = vcombine.low %v809_v52, %v813_v54 }
 0x1bb   :  { %v14428_v63 = vcombine.high %v810_v56, %v814_v58  ;;  %v14427_v5 = vcombine.low %v810_v56, %v814_v58 }
 0x1bc   :  { %9664 = vmatpush1.bf16.msra.mxu0 %v14369_v0  ;;  %10156 = vmatpush1.bf16.msra.mxu1 %v14371_v1  ;;  %v817_v0 = vld [vmem:[#allocation7 + $0x1580] sm:$0xff] }
 0x1bd   :  { %9665 = vmatprep.subr.bf16.mxu0 %v14378_v38  ;;  %10157 = vmatprep.subr.bf16.mxu1 %v14380_v3  ;;  %v821_v1 = vld [vmem:[#allocation7 + $0x15a0] sm:$0xff]  ;;  %v818_v38 = vld [vmem:[#allocation7 + $0x1588] sm:$0xff] }
 0x1be   :  { %v822_v3 = vld [vmem:[#allocation7 + $0x15a8] sm:$0xff]  ;;  %v14434_v6 = vcombine.high %v817_v0, %v821_v1  ;;  %v14433_v13 = vcombine.low %v817_v0, %v821_v1 }
 0x1bf   :  { %v14436_v7 = vcombine.high %v818_v38, %v822_v3  ;;  %v14435_v14 = vcombine.low %v818_v38, %v822_v3 }
 0x1c0   :  { %9666 = vmatpush1.bf16.msra.mxu0 %v14377_v8  ;;  %10158 = vmatpush1.bf16.msra.mxu1 %v14379_v9  ;;  %v825_v8 = vld [vmem:[#allocation7 + $0x15c0] sm:$0xff] }
 0x1c1   :  { %9676 = vmatprep.subr.bf16.mxu0 %v14386_v10  ;;  %10168 = vmatprep.subr.bf16.mxu1 %v14388_v11  ;;  %v829_v9 = vld [vmem:[#allocation7 + $0x15e0] sm:$0xff]  ;;  %v826_v10 = vld [vmem:[#allocation7 + $0x15c8] sm:$0xff] }
 0x1c2   :  { %v830_v11 = vld [vmem:[#allocation7 + $0x15e8] sm:$0xff]  ;;  %v14442_v17 = vcombine.high %v825_v8, %v829_v9  ;;  %v14441_v26 = vcombine.low %v825_v8, %v829_v9 }
 0x1c3   :  { %9668 = vmatmul.mubr.bf16.vlgmr.msra.gmra.mrb[0].mxu0 %v16680_v16  ;;  %10160 = vmatmul.mubr.bf16.vlgmr.msra.gmra.mrb[0].mxu1 %v16680_v16  ;;  %v14444_v18 = vcombine.high %v826_v10, %v830_v11  ;;  %v14443_v27 = vcombine.low %v826_v10, %v830_v11 }
 0x1c4   :  { %9677 = vmatpush1.bf16.msra.mxu0 %v14385_v20  ;;  %10169 = vmatpush1.bf16.msra.mxu1 %v14387_v21  ;;  %v833_v20 = vld [vmem:[#allocation7 + $0x1600] sm:$0xff] }
 0x1c5   :  { %9678 = vmatprep.subr.bf16.mxu0 %v14394_v22  ;;  %10170 = vmatprep.subr.bf16.mxu1 %v14396_v23  ;;  %v837_v21 = vld [vmem:[#allocation7 + $0x1620] sm:$0xff]  ;;  %v834_v22 = vld [vmem:[#allocation7 + $0x1608] sm:$0xff] }
 0x1c6   :  { %9708 = vmatprep.mubr.bf16.mxu0 %v16686_v28  ;;  %10200 = vmatprep.mubr.bf16.mxu1 %v16686_v28  ;;  %v838_v23 = vld [vmem:[#allocation7 + $0x1628] sm:$0xff]  ;;  %v14450_v59 = vcombine.high %v833_v20, %v837_v21  ;;  %v14449_v15 = vcombine.low %v833_v20, %v837_v21 }
 0x1c7   :  { %v14452_v29 = vcombine.high %v834_v22, %v838_v23  ;;  %v14451_v35 = vcombine.low %v834_v22, %v838_v23 }
 0x1c8   :  { %9679 = vmatpush1.bf16.msra.mxu0 %v14393_v30  ;;  %10171 = vmatpush1.bf16.msra.mxu1 %v14395_v31  ;;  %v841_v30 = vld [vmem:[#allocation7 + $0x1640] sm:$0xff] }
 0x1c9   :  { %9680 = vmatprep.subr.bf16.mxu0 %v14402_v32  ;;  %10172 = vmatprep.subr.bf16.mxu1 %v14404_v33  ;;  %v845_v31 = vld [vmem:[#allocation7 + $0x1660] sm:$0xff]  ;;  %v842_v32 = vld [vmem:[#allocation7 + $0x1648] sm:$0xff] }
 0x1ca   :  { %v846_v33 = vld [vmem:[#allocation7 + $0x1668] sm:$0xff]  ;;  %v14458_v36 = vcombine.high %v841_v30, %v845_v31  ;;  %v14457_v44 = vcombine.low %v841_v30, %v845_v31 }
 0x1cb   :  { %v14460_v37 = vcombine.high %v842_v32, %v846_v33  ;;  %v14459_v45 = vcombine.low %v842_v32, %v846_v33 }
 0x1cc   :  { %9681 = vmatpush1.bf16.msra.mxu0 %v14401_v40  ;;  %10173 = vmatpush1.bf16.msra.mxu1 %v14403_v41  ;;  %v849_v40 = vld [vmem:[#allocation7 + $0x1680] sm:$0xff] }
 0x1cd   :  { %9682 = vmatprep.subr.bf16.mxu0 %v14410_v42  ;;  %10174 = vmatprep.subr.bf16.mxu1 %v14412_v43  ;;  %v853_v41 = vld [vmem:[#allocation7 + $0x16a0] sm:$0xff]  ;;  %v850_v42 = vld [vmem:[#allocation7 + $0x1688] sm:$0xff] }
 0x1ce   :  { %v854_v43 = vld [vmem:[#allocation7 + $0x16a8] sm:$0xff]  ;;  %v14466_v46 = vcombine.high %v849_v40, %v853_v41  ;;  %v14465_v52 = vcombine.low %v849_v40, %v853_v41 }
 0x1cf   :  { %v14468_v47 = vcombine.high %v850_v42, %v854_v43  ;;  %v14467_v54 = vcombine.low %v850_v42, %v854_v43 }
 0x1d0   :  { %9683 = vmatpush1.bf16.msra.mxu0 %v14409_v24  ;;  %10175 = vmatpush1.bf16.msra.mxu1 %v14411_v49  ;;  %v857_v24 = vld [vmem:[#allocation7 + $0x16c0] sm:$0xff] }
 0x1d1   :  { %9684 = vmatprep.subr.bf16.mxu0 %v14418_v50  ;;  %10176 = vmatprep.subr.bf16.mxu1 %v14420_v51  ;;  %v861_v49 = vld [vmem:[#allocation7 + $0x16e0] sm:$0xff]  ;;  %v858_v50 = vld [vmem:[#allocation7 + $0x16c8] sm:$0xff] }
 0x1d2   :  { %v862_v51 = vld [vmem:[#allocation7 + $0x16e8] sm:$0xff]  ;;  %v14474_v56 = vcombine.high %v857_v24, %v861_v49  ;;  %v14473_v0 = vcombine.low %v857_v24, %v861_v49  ;;  %v16696_v49 = vld [vmem:[#allocation4 + $0x30] sm:$0xff] }
 0x1d3   :  { %v14476_v58 = vcombine.high %v858_v50, %v862_v51  ;;  %v14475_v1 = vcombine.low %v858_v50, %v862_v51  ;;  %v910_v24 = vld [vmem:[#allocation7 + $0x1868] sm:$0xff] }
 0x1d4   :  { %9685 = vmatpush1.bf16.msra.mxu0 %v14417_v60  ;;  %10177 = vmatpush1.bf16.msra.mxu1 %v14419_v61  ;;  %v865_v60 = vld [vmem:[#allocation7 + $0x1700] sm:$0xff] }
 0x1d5   :  { %9686 = vmatprep.subr.bf16.mxu0 %v14426_v62  ;;  %10178 = vmatprep.subr.bf16.mxu1 %v14428_v63  ;;  %v869_v61 = vld [vmem:[#allocation7 + $0x1720] sm:$0xff]  ;;  %v866_v62 = vld [vmem:[#allocation7 + $0x1708] sm:$0xff] }
 0x1d6   :  { %v870_v63 = vld [vmem:[#allocation7 + $0x1728] sm:$0xff]  ;;  %v14482_v38 = vcombine.high %v865_v60, %v869_v61  ;;  %v14481_v8 = vcombine.low %v865_v60, %v869_v61  ;;  %v16700_v60 = vcombine.high %v16696_v49, %v16696_v49 }
 0x1d7   :  { %v14484_v3 = vcombine.high %v866_v62, %v870_v63  ;;  %v14483_v9 = vcombine.low %v866_v62, %v870_v63  ;;  %v918_v61 = vld [vmem:[#allocation7 + $0x18a8] sm:$0xff] }
 0x1d8   :  { %9687 = vmatpush1.bf16.msra.mxu0 %v14425_v4  ;;  %10179 = vmatpush1.bf16.msra.mxu1 %v14427_v5  ;;  %v873_v4 = vld [vmem:[#allocation7 + $0x1740] sm:$0xff] }
 0x1d9   :  { %9688 = vmatprep.subr.bf16.mxu0 %v14434_v6  ;;  %10180 = vmatprep.subr.bf16.mxu1 %v14436_v7  ;;  %v877_v5 = vld [vmem:[#allocation7 + $0x1760] sm:$0xff]  ;;  %v874_v6 = vld [vmem:[#allocation7 + $0x1748] sm:$0xff] }
 0x1da   :  { %v878_v7 = vld [vmem:[#allocation7 + $0x1768] sm:$0xff]  ;;  %v14490_v10 = vcombine.high %v873_v4, %v877_v5  ;;  %v14489_v20 = vcombine.low %v873_v4, %v877_v5 }
 0x1db   :  { %v14492_v11 = vcombine.high %v874_v6, %v878_v7  ;;  %v14491_v21 = vcombine.low %v874_v6, %v878_v7  ;;  %v922_v4 = vld [vmem:[#allocation7 + $0x18c8] sm:$0xff] }
 0x1dc   :  { %9689 = vmatpush1.bf16.msra.mxu0 %v14433_v13  ;;  %10181 = vmatpush1.bf16.msra.mxu1 %v14435_v14  ;;  %v881_v13 = vld [vmem:[#allocation7 + $0x1780] sm:$0xff]  ;;  %v926_v5 = vld [vmem:[#allocation7 + $0x18e8] sm:$0xff] }
 0x1dd   :  { %9690 = vmatprep.subr.bf16.mxu0 %v14442_v17  ;;  %10182 = vmatprep.subr.bf16.mxu1 %v14444_v18  ;;  %v885_v14 = vld [vmem:[#allocation7 + $0x17a0] sm:$0xff]  ;;  %v882_v17 = vld [vmem:[#allocation7 + $0x1788] sm:$0xff] }
 0x1de   :  { %v886_v18 = vld [vmem:[#allocation7 + $0x17a8] sm:$0xff]  ;;  %v14498_v22 = vcombine.high %v881_v13, %v885_v14  ;;  %v14497_v30 = vcombine.low %v881_v13, %v885_v14 }
 0x1df   :  { %v14500_v23 = vcombine.high %v882_v17, %v886_v18  ;;  %v14499_v31 = vcombine.low %v882_v17, %v886_v18  ;;  %v930_v13 = vld [vmem:[#allocation7 + $0x1908] sm:$0xff]  ;;  %v14539_v18 = vcombine.low %v922_v4, %v926_v5 }
 0x1e0   :  { %9691 = vmatpush1.bf16.msra.mxu0 %v14441_v26  ;;  %10183 = vmatpush1.bf16.msra.mxu1 %v14443_v27  ;;  %v889_v26 = vld [vmem:[#allocation7 + $0x17c0] sm:$0xff]  ;;  %v934_v14 = vld [vmem:[#allocation7 + $0x1928] sm:$0xff] }
 0x1e1   :  { %9692 = vmatprep.subr.bf16.mxu0 %v14450_v59  ;;  %10184 = vmatprep.subr.bf16.mxu1 %v14452_v29  ;;  %v893_v27 = vld [vmem:[#allocation7 + $0x17e0] sm:$0xff]  ;;  %v890_v59 = vld [vmem:[#allocation7 + $0x17c8] sm:$0xff] }
 0x1e2   :  { %v894_v29 = vld [vmem:[#allocation7 + $0x17e8] sm:$0xff]  ;;  %v14506_v32 = vcombine.high %v889_v26, %v893_v27  ;;  %v14505_v40 = vcombine.low %v889_v26, %v893_v27 }
 0x1e3   :  { %v14508_v33 = vcombine.high %v890_v59, %v894_v29  ;;  %v14507_v41 = vcombine.low %v890_v59, %v894_v29  ;;  %v938_v26 = vld [vmem:[#allocation7 + $0x1948] sm:$0xff]  ;;  %v14547_v29 = vcombine.low %v930_v13, %v934_v14 }
 0x1e4   :  { %9693 = vmatpush1.bf16.msra.mxu0 %v14449_v15  ;;  %10185 = vmatpush1.bf16.msra.mxu1 %v14451_v35  ;;  %v897_v15 = vld [vmem:[#allocation7 + $0x1800] sm:$0xff]  ;;  %v942_v27 = vld [vmem:[#allocation7 + $0x1968] sm:$0xff] }
 0x1e5   :  { %9694 = vmatprep.subr.bf16.mxu0 %v14458_v36  ;;  %10186 = vmatprep.subr.bf16.mxu1 %v14460_v37  ;;  %v901_v35 = vld [vmem:[#allocation7 + $0x1820] sm:$0xff]  ;;  %v898_v36 = vld [vmem:[#allocation7 + $0x1808] sm:$0xff] }
 0x1e6   :  { %v902_v37 = vld [vmem:[#allocation7 + $0x1828] sm:$0xff]  ;;  %v14514_v42 = vcombine.high %v897_v15, %v901_v35  ;;  %v14513_v50 = vcombine.low %v897_v15, %v901_v35 }
 0x1e7   :  { %v14516_v43 = vcombine.high %v898_v36, %v902_v37  ;;  %v14515_v51 = vcombine.low %v898_v36, %v902_v37  ;;  %v946_v15 = vld [vmem:[#allocation7 + $0x1988] sm:$0xff]  ;;  %v14555_v37 = vcombine.low %v938_v26, %v942_v27 }
 0x1e8   :  { %9695 = vmatpush1.bf16.msra.mxu0 %v14457_v44  ;;  %10187 = vmatpush1.bf16.msra.mxu1 %v14459_v45  ;;  %v905_v44 = vld [vmem:[#allocation7 + $0x1840] sm:$0xff]  ;;  %v950_v35 = vld [vmem:[#allocation7 + $0x19a8] sm:$0xff] }
 0x1e9   :  { %9696 = vmatprep.subr.bf16.mxu0 %v14466_v46  ;;  %10188 = vmatprep.subr.bf16.mxu1 %v14468_v47  ;;  %v909_v45 = vld [vmem:[#allocation7 + $0x1860] sm:$0xff]  ;;  %v16694_v46 = vcombine.low %v16682_v19, %v16682_v19  ;;  %v906_v47 = vld [vmem:[#allocation7 + $0x1848] sm:$0xff] }
 0x1ea   :  { %v914_v19 = vld [vmem:[#allocation7 + $0x1888] sm:$0xff]  ;;  %v14521_v62 = vcombine.low %v905_v44, %v909_v45  ;;  %v14523_v63 = vcombine.low %v906_v47, %v910_v24 }
 0x1eb   :  { %v14531_v7 = vcombine.low %v914_v19, %v918_v61 }
 0x1ec   :  { %9697 = vmatpush1.bf16.msra.mxu0 %v14465_v52  ;;  %10189 = vmatpush1.bf16.msra.mxu1 %v14467_v54  ;;  %v14522_v52 = vcombine.high %v905_v44, %v909_v45  ;;  %v14524_v54 = vcombine.high %v906_v47, %v910_v24  ;;  %v954_v44 = vld [vmem:[#allocation7 + $0x19c8] sm:$0xff]  ;;  %v14563_v24 = vcombine.low %v946_v15, %v950_v35 }
 0x1ed   :  { %9698 = vmatprep.subr.bf16.mxu0 %v14474_v56  ;;  %10190 = vmatprep.subr.bf16.mxu1 %v14476_v58  ;;  %v913_v56 = vld [vmem:[#allocation7 + $0x1880] sm:$0xff]  ;;  %v958_v45 = vld [vmem:[#allocation7 + $0x19e8] sm:$0xff] }
 0x1ee   :  { %v917_v58 = vld [vmem:[#allocation7 + $0x18a0] sm:$0xff] }
 0x1ef   :  { %v14529_v6 = vcombine.low %v913_v56, %v917_v58 }
 0x1f0   :  { %9699 = vmatpush1.bf16.msra.mxu0 %v14473_v0  ;;  %10191 = vmatpush1.bf16.msra.mxu1 %v14475_v1  ;;  %v14530_v0 = vcombine.high %v913_v56, %v917_v58  ;;  %v14532_v1 = vcombine.high %v914_v19, %v918_v61  ;;  %v962_v56 = vld [vmem:[#allocation7 + $0x1a08] sm:$0xff]  ;;  %v14571_v61 = vcombine.low %v954_v44, %v958_v45 }
 0x1f1   :  { %9700 = vmatprep.subr.bf16.mxu0 %v14482_v38  ;;  %10192 = vmatprep.subr.bf16.mxu1 %v14484_v3  ;;  %v921_v38 = vld [vmem:[#allocation7 + $0x18c0] sm:$0xff]  ;;  %v966_v58 = vld [vmem:[#allocation7 + $0x1a28] sm:$0xff] }
 0x1f2   :  { %v925_v3 = vld [vmem:[#allocation7 + $0x18e0] sm:$0xff] }
 0x1f3   :  { %v14537_v17 = vcombine.low %v921_v38, %v925_v3 }
 0x1f4   :  { %9701 = vmatpush1.bf16.msra.mxu0 %v14481_v8  ;;  %10193 = vmatpush1.bf16.msra.mxu1 %v14483_v9  ;;  %v14538_v8 = vcombine.high %v921_v38, %v925_v3  ;;  %v14540_v9 = vcombine.high %v922_v4, %v926_v5  ;;  %v970_v38 = vld [vmem:[#allocation7 + $0x1a48] sm:$0xff]  ;;  %v14579_v5 = vcombine.low %v962_v56, %v966_v58 }
 0x1f5   :  { %9702 = vmatprep.subr.bf16.mxu0 %v14490_v10  ;;  %10194 = vmatprep.subr.bf16.mxu1 %v14492_v11  ;;  %v929_v10 = vld [vmem:[#allocation7 + $0x1900] sm:$0xff]  ;;  %v974_v3 = vld [vmem:[#allocation7 + $0x1a68] sm:$0xff] }
 0x1f6   :  { %v933_v11 = vld [vmem:[#allocation7 + $0x1920] sm:$0xff] }
 0x1f7   :  { %v14545_v59 = vcombine.low %v929_v10, %v933_v11 }
 0x1f8   :  { %9703 = vmatpush1.bf16.msra.mxu0 %v14489_v20  ;;  %10195 = vmatpush1.bf16.msra.mxu1 %v14491_v21  ;;  %v14546_v20 = vcombine.high %v929_v10, %v933_v11  ;;  %v14548_v21 = vcombine.high %v930_v13, %v934_v14  ;;  %v978_v10 = vld [vmem:[#allocation7 + $0x1a88] sm:$0xff]  ;;  %v14587_v14 = vcombine.low %v970_v38, %v974_v3 }
 0x1f9   :  { %9704 = vmatprep.subr.bf16.mxu0 %v14498_v22  ;;  %10196 = vmatprep.subr.bf16.mxu1 %v14500_v23  ;;  %v937_v22 = vld [vmem:[#allocation7 + $0x1940] sm:$0xff]  ;;  %v982_v11 = vld [vmem:[#allocation7 + $0x1aa8] sm:$0xff] }
 0x1fa   :  { %v941_v23 = vld [vmem:[#allocation7 + $0x1960] sm:$0xff] }
 0x1fb   :  { %v14553_v36 = vcombine.low %v937_v22, %v941_v23 }
 0x1fc   :  { %9705 = vmatpush1.bf16.msra.mxu0 %v14497_v30  ;;  %10197 = vmatpush1.bf16.msra.mxu1 %v14499_v31  ;;  %v14554_v30 = vcombine.high %v937_v22, %v941_v23  ;;  %v14556_v31 = vcombine.high %v938_v26, %v942_v27  ;;  %v986_v22 = vld [vmem:[#allocation7 + $0x1ac8] sm:$0xff]  ;;  %v14595_v27 = vcombine.low %v978_v10, %v982_v11 }
 0x1fd   :  { %9706 = vmatprep.subr.bf16.mxu0 %v14506_v32  ;;  %10198 = vmatprep.subr.bf16.mxu1 %v14508_v33  ;;  %v945_v32 = vld [vmem:[#allocation7 + $0x1980] sm:$0xff]  ;;  %v990_v23 = vld [vmem:[#allocation7 + $0x1ae8] sm:$0xff] }
 0x1fe   :  { %v949_v33 = vld [vmem:[#allocation7 + $0x19a0] sm:$0xff] }
 0x1ff   :  { %v14561_v47 = vcombine.low %v945_v32, %v949_v33 }
 0x200   :  { %9707 = vmatpush1.bf16.msra.mxu0 %v14505_v40  ;;  %10199 = vmatpush1.bf16.msra.mxu1 %v14507_v41  ;;  %v14562_v40 = vcombine.high %v945_v32, %v949_v33  ;;  %v14564_v41 = vcombine.high %v946_v15, %v950_v35  ;;  %v994_v32 = vld [vmem:[#allocation7 + $0x1b08] sm:$0xff]  ;;  %v14603_v35 = vcombine.low %v986_v22, %v990_v23 }
 0x201   :  { %9717 = vmatprep.subr.bf16.mxu0 %v14514_v42  ;;  %10209 = vmatprep.subr.bf16.mxu1 %v14516_v43  ;;  %v953_v42 = vld [vmem:[#allocation7 + $0x19c0] sm:$0xff]  ;;  %v998_v33 = vld [vmem:[#allocation7 + $0x1b28] sm:$0xff] }
 0x202   :  { %v957_v43 = vld [vmem:[#allocation7 + $0x19e0] sm:$0xff] }
 0x203   :  { %9709 = vmatmul.mubr.bf16.vlgmr.msra.gmra.mrb[0].mxu0 %v16694_v46  ;;  %10201 = vmatmul.mubr.bf16.vlgmr.msra.gmra.mrb[0].mxu1 %v16694_v46  ;;  %v14569_v19 = vcombine.low %v953_v42, %v957_v43 }
 0x204   :  { %9718 = vmatpush1.bf16.msra.mxu0 %v14513_v50  ;;  %10210 = vmatpush1.bf16.msra.mxu1 %v14515_v51  ;;  %v14570_v50 = vcombine.high %v953_v42, %v957_v43  ;;  %v14572_v51 = vcombine.high %v954_v44, %v958_v45  ;;  %v1002_v42 = vld [vmem:[#allocation7 + $0x1b48] sm:$0xff]  ;;  %v14611_v45 = vcombine.low %v994_v32, %v998_v33 }
 0x205   :  { %9719 = vmatprep.subr.bf16.mxu0 %v14522_v52  ;;  %10211 = vmatprep.subr.bf16.mxu1 %v14524_v54  ;;  %v961_v52 = vld [vmem:[#allocation7 + $0x1a00] sm:$0xff]  ;;  %v1006_v43 = vld [vmem:[#allocation7 + $0x1b68] sm:$0xff] }
 0x206   :  { %9749 = vmatprep.mubr.bf16.mxu0 %v16700_v60  ;;  %10241 = vmatprep.mubr.bf16.mxu1 %v16700_v60  ;;  %v965_v54 = vld [vmem:[#allocation7 + $0x1a20] sm:$0xff] }
 0x207   :  { %v14577_v4 = vcombine.low %v961_v52, %v965_v54 }
 0x208   :  { %9720 = vmatpush1.bf16.msra.mxu0 %v14521_v62  ;;  %10212 = vmatpush1.bf16.msra.mxu1 %v14523_v63  ;;  %v14578_v62 = vcombine.high %v961_v52, %v965_v54  ;;  %v14580_v63 = vcombine.high %v962_v56, %v966_v58  ;;  %v1010_v52 = vld [vmem:[#allocation7 + $0x1b88] sm:$0xff]  ;;  %v14619_v58 = vcombine.low %v1002_v42, %v1006_v43 }
 0x209   :  { %9721 = vmatprep.subr.bf16.mxu0 %v14530_v0  ;;  %10213 = vmatprep.subr.bf16.mxu1 %v14532_v1  ;;  %v969_v0 = vld [vmem:[#allocation7 + $0x1a40] sm:$0xff]  ;;  %v1014_v54 = vld [vmem:[#allocation7 + $0x1ba8] sm:$0xff] }
 0x20a   :  { %v973_v1 = vld [vmem:[#allocation7 + $0x1a60] sm:$0xff] }
 0x20b   :  { %v14585_v13 = vcombine.low %v969_v0, %v973_v1 }
 0x20c   :  { %9722 = vmatpush1.bf16.msra.mxu0 %v14529_v6  ;;  %10214 = vmatpush1.bf16.msra.mxu1 %v14531_v7  ;;  %v14586_v6 = vcombine.high %v969_v0, %v973_v1  ;;  %v14588_v7 = vcombine.high %v970_v38, %v974_v3  ;;  %v1018_v0 = vld [vmem:[#allocation7 + $0x1bc8] sm:$0xff]  ;;  %v14627_v3 = vcombine.low %v1010_v52, %v1014_v54 }
 0x20d   :  { %9723 = vmatprep.subr.bf16.mxu0 %v14538_v8  ;;  %10215 = vmatprep.subr.bf16.mxu1 %v14540_v9  ;;  %v977_v8 = vld [vmem:[#allocation7 + $0x1a80] sm:$0xff]  ;;  %v1022_v1 = vld [vmem:[#allocation7 + $0x1be8] sm:$0xff] }
 0x20e   :  { %v981_v9 = vld [vmem:[#allocation7 + $0x1aa0] sm:$0xff] }
 0x20f   :  { %v14593_v26 = vcombine.low %v977_v8, %v981_v9 }
 0x210   :  { %9724 = vmatpush1.bf16.msra.mxu0 %v14537_v17  ;;  %10216 = vmatpush1.bf16.msra.mxu1 %v14539_v18  ;;  %v14594_v17 = vcombine.high %v977_v8, %v981_v9  ;;  %v14596_v18 = vcombine.high %v978_v10, %v982_v11  ;;  %v1026_v8 = vld [vmem:[#allocation7 + $0x1c08] sm:$0xff]  ;;  %v14635_v11 = vcombine.low %v1018_v0, %v1022_v1 }
 0x211   :  { %9725 = vmatprep.subr.bf16.mxu0 %v14546_v20  ;;  %10217 = vmatprep.subr.bf16.mxu1 %v14548_v21  ;;  %v985_v20 = vld [vmem:[#allocation7 + $0x1ac0] sm:$0xff]  ;;  %v1030_v9 = vld [vmem:[#allocation7 + $0x1c28] sm:$0xff] }
 0x212   :  { %v989_v21 = vld [vmem:[#allocation7 + $0x1ae0] sm:$0xff] }
 0x213   :  { %v14601_v15 = vcombine.low %v985_v20, %v989_v21 }
 0x214   :  { %9726 = vmatpush1.bf16.msra.mxu0 %v14545_v59  ;;  %10218 = vmatpush1.bf16.msra.mxu1 %v14547_v29  ;;  %v14602_v59 = vcombine.high %v985_v20, %v989_v21  ;;  %v14604_v29 = vcombine.high %v986_v22, %v990_v23  ;;  %v16708_v20 = vcombine.low %v16696_v49, %v16696_v49  ;;  %v1034_v21 = vld [vmem:[#allocation7 + $0x1c48] sm:$0xff]  ;;  %v16710_v23 = vld [vmem:[#allocation4 + $0x38] sm:$0xff] }
 0x215   :  { %9727 = vmatprep.subr.bf16.mxu0 %v14554_v30  ;;  %10219 = vmatprep.subr.bf16.mxu1 %v14556_v31  ;;  %v993_v30 = vld [vmem:[#allocation7 + $0x1b00] sm:$0xff]  ;;  %v1038_v22 = vld [vmem:[#allocation7 + $0x1c68] sm:$0xff] }
 0x216   :  { %v997_v31 = vld [vmem:[#allocation7 + $0x1b20] sm:$0xff]  ;;  %v1042_v49 = vld [vmem:[#allocation7 + $0x1c88] sm:$0xff] }
 0x217   :  { %v14609_v44 = vcombine.low %v993_v30, %v997_v31 }
 0x218   :  { %9728 = vmatpush1.bf16.msra.mxu0 %v14553_v36  ;;  %10220 = vmatpush1.bf16.msra.mxu1 %v14555_v37  ;;  %v14610_v36 = vcombine.high %v993_v30, %v997_v31  ;;  %v14612_v37 = vcombine.high %v994_v32, %v998_v33  ;;  %v1041_v30 = vld [vmem:[#allocation7 + $0x1c80] sm:$0xff]  ;;  %v16714_v32 = vcombine.high %v16710_v23, %v16710_v23  ;;  %v1046_v33 = vld [vmem:[#allocation7 + $0x1ca8] sm:$0xff] }
 0x219   :  { %9729 = vmatprep.subr.bf16.mxu0 %v14562_v40  ;;  %10221 = vmatprep.subr.bf16.mxu1 %v14564_v41  ;;  %v1001_v40 = vld [vmem:[#allocation7 + $0x1b40] sm:$0xff] }
 0x21a   :  { %v1005_v41 = vld [vmem:[#allocation7 + $0x1b60] sm:$0xff] }
 0x21b   :  { %v14617_v56 = vcombine.low %v1001_v40, %v1005_v41  ;;  %v1045_v31 = vld [vmem:[#allocation7 + $0x1ca0] sm:$0xff] }
 0x21c   :  { %9730 = vmatpush1.bf16.msra.mxu0 %v14561_v47  ;;  %10222 = vmatpush1.bf16.msra.mxu1 %v14563_v24  ;;  %v14618_v47 = vcombine.high %v1001_v40, %v1005_v41  ;;  %v14620_v24 = vcombine.high %v1002_v42, %v1006_v43  ;;  %v1049_v40 = vld [vmem:[#allocation7 + $0x1cc0] sm:$0xff]  ;;  %v1050_v42 = vld [vmem:[#allocation7 + $0x1cc8] sm:$0xff] }
 0x21d   :  { %9731 = vmatprep.subr.bf16.mxu0 %v14570_v50  ;;  %10223 = vmatprep.subr.bf16.mxu1 %v14572_v51  ;;  %v1009_v50 = vld [vmem:[#allocation7 + $0x1b80] sm:$0xff]  ;;  %v1054_v43 = vld [vmem:[#allocation7 + $0x1ce8] sm:$0xff] }
 0x21e   :  { %v1013_v51 = vld [vmem:[#allocation7 + $0x1ba0] sm:$0xff] }
 0x21f   :  { %v14625_v38 = vcombine.low %v1009_v50, %v1013_v51  ;;  %v1053_v41 = vld [vmem:[#allocation7 + $0x1ce0] sm:$0xff] }
 0x220   :  { %9732 = vmatpush1.bf16.msra.mxu0 %v14569_v19  ;;  %10224 = vmatpush1.bf16.msra.mxu1 %v14571_v61  ;;  %v14626_v19 = vcombine.high %v1009_v50, %v1013_v51  ;;  %v14628_v61 = vcombine.high %v1010_v52, %v1014_v54  ;;  %v1057_v50 = vld [vmem:[#allocation7 + $0x1d00] sm:$0xff]  ;;  %v1058_v52 = vld [vmem:[#allocation7 + $0x1d08] sm:$0xff] }
 0x221   :  { %9733 = vmatprep.subr.bf16.mxu0 %v14578_v62  ;;  %10225 = vmatprep.subr.bf16.mxu1 %v14580_v63  ;;  %v1017_v62 = vld [vmem:[#allocation7 + $0x1bc0] sm:$0xff]  ;;  %v1062_v54 = vld [vmem:[#allocation7 + $0x1d28] sm:$0xff] }
 0x222   :  { %v1021_v63 = vld [vmem:[#allocation7 + $0x1be0] sm:$0xff] }
 0x223   :  { %v14633_v10 = vcombine.low %v1017_v62, %v1021_v63  ;;  %v1061_v51 = vld [vmem:[#allocation7 + $0x1d20] sm:$0xff] }
 0x224   :  { %9734 = vmatpush1.bf16.msra.mxu0 %v14577_v4  ;;  %10226 = vmatpush1.bf16.msra.mxu1 %v14579_v5  ;;  %v14634_v4 = vcombine.high %v1017_v62, %v1021_v63  ;;  %v14636_v5 = vcombine.high %v1018_v0, %v1022_v1  ;;  %v1065_v62 = vld [vmem:[#allocation7 + $0x1d40] sm:$0xff]  ;;  %v1066_v0 = vld [vmem:[#allocation7 + $0x1d48] sm:$0xff] }
 0x225   :  { %9735 = vmatprep.subr.bf16.mxu0 %v14586_v6  ;;  %10227 = vmatprep.subr.bf16.mxu1 %v14588_v7  ;;  %v1025_v6 = vld [vmem:[#allocation7 + $0x1c00] sm:$0xff]  ;;  %v1070_v1 = vld [vmem:[#allocation7 + $0x1d68] sm:$0xff] }
 0x226   :  { %v1029_v7 = vld [vmem:[#allocation7 + $0x1c20] sm:$0xff] }
 0x227   :  { %v1069_v63 = vld [vmem:[#allocation7 + $0x1d60] sm:$0xff] }
 0x228   :  { %9736 = vmatpush1.bf16.msra.mxu0 %v14585_v13  ;;  %10228 = vmatpush1.bf16.msra.mxu1 %v14587_v14  ;;  %v14642_v13 = vcombine.high %v1025_v6, %v1029_v7  ;;  %v14644_v14 = vcombine.high %v1026_v8, %v1030_v9 }
 0x229   :  { %9737 = vmatprep.subr.bf16.mxu0 %v14594_v17  ;;  %10229 = vmatprep.subr.bf16.mxu1 %v14596_v18  ;;  %v1033_v17 = vld [vmem:[#allocation7 + $0x1c40] sm:$0xff] }
 0x22a   :  { %v1037_v18 = vld [vmem:[#allocation7 + $0x1c60] sm:$0xff] }
 0x22c   :  { %9738 = vmatpush1.bf16.msra.mxu0 %v14593_v26  ;;  %10230 = vmatpush1.bf16.msra.mxu1 %v14595_v27  ;;  %v14641_v26 = vcombine.low %v1025_v6, %v1029_v7  ;;  %v14643_v27 = vcombine.low %v1026_v8, %v1030_v9  ;;  %v1073_v6 = vld [vmem:[#allocation7 + $0x1d80] sm:$0xff]  ;;  %v1074_v8 = vld [vmem:[#allocation7 + $0x1d88] sm:$0xff] }
 0x22d   :  { %9739 = vmatprep.subr.bf16.mxu0 %v14602_v59  ;;  %10231 = vmatprep.subr.bf16.mxu1 %v14604_v29  ;;  %v14650_v59 = vcombine.high %v1033_v17, %v1037_v18  ;;  %v14652_v29 = vcombine.high %v1034_v21, %v1038_v22  ;;  %v1077_v7 = vld [vmem:[#allocation7 + $0x1da0] sm:$0xff]  ;;  %v1078_v9 = vld [vmem:[#allocation7 + $0x1da8] sm:$0xff] }
 0x230   :  { %9740 = vmatpush1.bf16.msra.mxu0 %v14601_v15  ;;  %10232 = vmatpush1.bf16.msra.mxu1 %v14603_v35  ;;  %v14649_v15 = vcombine.low %v1033_v17, %v1037_v18  ;;  %v14651_v35 = vcombine.low %v1034_v21, %v1038_v22  ;;  %v1081_v17 = vld [vmem:[#allocation7 + $0x1dc0] sm:$0xff]  ;;  %v1082_v21 = vld [vmem:[#allocation7 + $0x1dc8] sm:$0xff] }
 0x231   :  { %9741 = vmatprep.subr.bf16.mxu0 %v14610_v36  ;;  %10233 = vmatprep.subr.bf16.mxu1 %v14612_v37  ;;  %v14658_v36 = vcombine.high %v1041_v30, %v1045_v31  ;;  %v14660_v37 = vcombine.high %v1042_v49, %v1046_v33  ;;  %v1085_v18 = vld [vmem:[#allocation7 + $0x1de0] sm:$0xff]  ;;  %v1086_v22 = vld [vmem:[#allocation7 + $0x1de8] sm:$0xff] }
 0x234   :  { %9742 = vmatpush1.bf16.msra.mxu0 %v14609_v44  ;;  %10234 = vmatpush1.bf16.msra.mxu1 %v14611_v45  ;;  %v14657_v44 = vcombine.low %v1041_v30, %v1045_v31  ;;  %v14659_v45 = vcombine.low %v1042_v49, %v1046_v33  ;;  %v1089_v30 = vld [vmem:[#allocation7 + $0x1e00] sm:$0xff]  ;;  %v1090_v49 = vld [vmem:[#allocation7 + $0x1e08] sm:$0xff] }
 0x235   :  { %9743 = vmatprep.subr.bf16.mxu0 %v14618_v47  ;;  %10235 = vmatprep.subr.bf16.mxu1 %v14620_v24  ;;  %v14666_v47 = vcombine.high %v1049_v40, %v1053_v41  ;;  %v14668_v24 = vcombine.high %v1050_v42, %v1054_v43  ;;  %v1093_v31 = vld [vmem:[#allocation7 + $0x1e20] sm:$0xff]  ;;  %v1094_v33 = vld [vmem:[#allocation7 + $0x1e28] sm:$0xff] }
 0x238   :  { %9744 = vmatpush1.bf16.msra.mxu0 %v14617_v56  ;;  %10236 = vmatpush1.bf16.msra.mxu1 %v14619_v58  ;;  %v14665_v56 = vcombine.low %v1049_v40, %v1053_v41  ;;  %v14667_v58 = vcombine.low %v1050_v42, %v1054_v43  ;;  %v1097_v40 = vld [vmem:[#allocation7 + $0x1e40] sm:$0xff]  ;;  %v1098_v42 = vld [vmem:[#allocation7 + $0x1e48] sm:$0xff] }
 0x239   :  { %9745 = vmatprep.subr.bf16.mxu0 %v14626_v19  ;;  %10237 = vmatprep.subr.bf16.mxu1 %v14628_v61  ;;  %v14674_v19 = vcombine.high %v1057_v50, %v1061_v51  ;;  %v14676_v61 = vcombine.high %v1058_v52, %v1062_v54  ;;  %v1101_v41 = vld [vmem:[#allocation7 + $0x1e60] sm:$0xff]  ;;  %v1102_v43 = vld [vmem:[#allocation7 + $0x1e68] sm:$0xff] }
 0x23c   :  { %9746 = vmatpush1.bf16.msra.mxu0 %v14625_v38  ;;  %10238 = vmatpush1.bf16.msra.mxu1 %v14627_v3  ;;  %v14673_v38 = vcombine.low %v1057_v50, %v1061_v51  ;;  %v14675_v3 = vcombine.low %v1058_v52, %v1062_v54  ;;  %v1105_v50 = vld [vmem:[#allocation7 + $0x1e80] sm:$0xff]  ;;  %v1106_v52 = vld [vmem:[#allocation7 + $0x1e88] sm:$0xff] }
 0x23d   :  { %9747 = vmatprep.subr.bf16.mxu0 %v14634_v4  ;;  %10239 = vmatprep.subr.bf16.mxu1 %v14636_v5  ;;  %v14682_v4 = vcombine.high %v1065_v62, %v1069_v63  ;;  %v14684_v5 = vcombine.high %v1066_v0, %v1070_v1  ;;  %v1109_v51 = vld [vmem:[#allocation7 + $0x1ea0] sm:$0xff]  ;;  %v1110_v54 = vld [vmem:[#allocation7 + $0x1ea8] sm:$0xff] }
 0x240   :  { %9748 = vmatpush1.bf16.msra.mxu0 %v14633_v10  ;;  %10240 = vmatpush1.bf16.msra.mxu1 %v14635_v11  ;;  %v14681_v10 = vcombine.low %v1065_v62, %v1069_v63  ;;  %v14683_v11 = vcombine.low %v1066_v0, %v1070_v1  ;;  %v1113_v62 = vld [vmem:[#allocation7 + $0x1ec0] sm:$0xff]  ;;  %v1114_v0 = vld [vmem:[#allocation7 + $0x1ec8] sm:$0xff] }
 0x241   :  { %9758 = vmatprep.subr.bf16.mxu0 %v14642_v13  ;;  %10250 = vmatprep.subr.bf16.mxu1 %v14644_v14  ;;  %v14690_v13 = vcombine.high %v1073_v6, %v1077_v7  ;;  %v14692_v14 = vcombine.high %v1074_v8, %v1078_v9  ;;  %v1117_v63 = vld [vmem:[#allocation7 + $0x1ee0] sm:$0xff]  ;;  %v1118_v1 = vld [vmem:[#allocation7 + $0x1ee8] sm:$0xff] }
 0x243   :  { %9750 = vmatmul.mubr.bf16.vlgmr.msra.gmra.mrb[0].mxu0 %v16708_v20  ;;  %10242 = vmatmul.mubr.bf16.vlgmr.msra.gmra.mrb[0].mxu1 %v16708_v20 }
 0x244   :  { %9759 = vmatpush1.bf16.msra.mxu0 %v14641_v26  ;;  %10251 = vmatpush1.bf16.msra.mxu1 %v14643_v27  ;;  %v14689_v26 = vcombine.low %v1073_v6, %v1077_v7  ;;  %v14691_v27 = vcombine.low %v1074_v8, %v1078_v9  ;;  %v1121_v6 = vld [vmem:[#allocation7 + $0x1f00] sm:$0xff]  ;;  %v1122_v8 = vld [vmem:[#allocation7 + $0x1f08] sm:$0xff] }
 0x245   :  { %9760 = vmatprep.subr.bf16.mxu0 %v14650_v59  ;;  %10252 = vmatprep.subr.bf16.mxu1 %v14652_v29  ;;  %v14698_v59 = vcombine.high %v1081_v17, %v1085_v18  ;;  %v14700_v29 = vcombine.high %v1082_v21, %v1086_v22  ;;  %v1125_v7 = vld [vmem:[#allocation7 + $0x1f20] sm:$0xff]  ;;  %v1126_v9 = vld [vmem:[#allocation7 + $0x1f28] sm:$0xff] }
 0x246   :  { %9790 = vmatprep.mubr.bf16.mxu0 %v16714_v32  ;;  %10282 = vmatprep.mubr.bf16.mxu1 %v16714_v32 }
 0x248   :  { %9761 = vmatpush1.bf16.msra.mxu0 %v14649_v15  ;;  %10253 = vmatpush1.bf16.msra.mxu1 %v14651_v35  ;;  %v14697_v15 = vcombine.low %v1081_v17, %v1085_v18  ;;  %v14699_v35 = vcombine.low %v1082_v21, %v1086_v22  ;;  %v1129_v17 = vld [vmem:[#allocation7 + $0x1f40] sm:$0xff]  ;;  %v1130_v21 = vld [vmem:[#allocation7 + $0x1f48] sm:$0xff] }
 0x249   :  { %9762 = vmatprep.subr.bf16.mxu0 %v14658_v36  ;;  %10254 = vmatprep.subr.bf16.mxu1 %v14660_v37  ;;  %v14706_v36 = vcombine.high %v1089_v30, %v1093_v31  ;;  %v14708_v37 = vcombine.high %v1090_v49, %v1094_v33  ;;  %v1133_v18 = vld [vmem:[#allocation7 + $0x1f60] sm:$0xff]  ;;  %v1134_v22 = vld [vmem:[#allocation7 + $0x1f68] sm:$0xff] }
 0x24c   :  { %9763 = vmatpush1.bf16.msra.mxu0 %v14657_v44  ;;  %10255 = vmatpush1.bf16.msra.mxu1 %v14659_v45  ;;  %v14705_v44 = vcombine.low %v1089_v30, %v1093_v31  ;;  %v14707_v45 = vcombine.low %v1090_v49, %v1094_v33  ;;  %v1137_v30 = vld [vmem:[#allocation7 + $0x1f80] sm:$0xff]  ;;  %v1138_v49 = vld [vmem:[#allocation7 + $0x1f88] sm:$0xff] }
 0x24d   :  { %9764 = vmatprep.subr.bf16.mxu0 %v14666_v47  ;;  %10256 = vmatprep.subr.bf16.mxu1 %v14668_v24  ;;  %v14714_v47 = vcombine.high %v1097_v40, %v1101_v41  ;;  %v14716_v24 = vcombine.high %v1098_v42, %v1102_v43  ;;  %v1141_v31 = vld [vmem:[#allocation7 + $0x1fa0] sm:$0xff]  ;;  %v1142_v33 = vld [vmem:[#allocation7 + $0x1fa8] sm:$0xff] }
 0x250   :  { %9765 = vmatpush1.bf16.msra.mxu0 %v14665_v56  ;;  %10257 = vmatpush1.bf16.msra.mxu1 %v14667_v58  ;;  %v14713_v56 = vcombine.low %v1097_v40, %v1101_v41  ;;  %v14715_v58 = vcombine.low %v1098_v42, %v1102_v43  ;;  %v1145_v40 = vld [vmem:[#allocation7 + $0x1fc0] sm:$0xff]  ;;  %v1146_v42 = vld [vmem:[#allocation7 + $0x1fc8] sm:$0xff] }
 0x251   :  { %9766 = vmatprep.subr.bf16.mxu0 %v14674_v19  ;;  %10258 = vmatprep.subr.bf16.mxu1 %v14676_v61  ;;  %v14722_v19 = vcombine.high %v1105_v50, %v1109_v51  ;;  %v14724_v61 = vcombine.high %v1106_v52, %v1110_v54  ;;  %v1149_v41 = vld [vmem:[#allocation7 + $0x1fe0] sm:$0xff]  ;;  %v1150_v43 = vld [vmem:[#allocation7 + $0x1fe8] sm:$0xff] }
 0x254   :  { %9767 = vmatpush1.bf16.msra.mxu0 %v14673_v38  ;;  %10259 = vmatpush1.bf16.msra.mxu1 %v14675_v3  ;;  %v14721_v38 = vcombine.low %v1105_v50, %v1109_v51  ;;  %v14723_v3 = vcombine.low %v1106_v52, %v1110_v54  ;;  %v1153_v50 = vld [vmem:[#allocation7 + $0x2000] sm:$0xff]  ;;  %v1154_v52 = vld [vmem:[#allocation7 + $0x2008] sm:$0xff] }
 0x255   :  { %9768 = vmatprep.subr.bf16.mxu0 %v14682_v4  ;;  %10260 = vmatprep.subr.bf16.mxu1 %v14684_v5  ;;  %v14730_v4 = vcombine.high %v1113_v62, %v1117_v63  ;;  %v14732_v5 = vcombine.high %v1114_v0, %v1118_v1  ;;  %v1157_v51 = vld [vmem:[#allocation7 + $0x2020] sm:$0xff]  ;;  %v1158_v54 = vld [vmem:[#allocation7 + $0x2028] sm:$0xff] }
 0x258   :  { %9769 = vmatpush1.bf16.msra.mxu0 %v14681_v10  ;;  %10261 = vmatpush1.bf16.msra.mxu1 %v14683_v11  ;;  %v14729_v10 = vcombine.low %v1113_v62, %v1117_v63  ;;  %v14731_v11 = vcombine.low %v1114_v0, %v1118_v1  ;;  %v1161_v62 = vld [vmem:[#allocation7 + $0x2040] sm:$0xff]  ;;  %v16722_v0 = vcombine.low %v16710_v23, %v16710_v23  ;;  %v1162_v1 = vld [vmem:[#allocation7 + $0x2048] sm:$0xff] }
 0x259   :  { %9770 = vmatprep.subr.bf16.mxu0 %v14690_v13  ;;  %10262 = vmatprep.subr.bf16.mxu1 %v14692_v14  ;;  %v14738_v13 = vcombine.high %v1121_v6, %v1125_v7  ;;  %v14740_v14 = vcombine.high %v1122_v8, %v1126_v9  ;;  %v1165_v63 = vld [vmem:[#allocation7 + $0x2060] sm:$0xff]  ;;  %v1170_v23 = vld [vmem:[#allocation7 + $0x2088] sm:$0xff] }
 0x25c   :  { %9771 = vmatpush1.bf16.msra.mxu0 %v14689_v26  ;;  %10263 = vmatpush1.bf16.msra.mxu1 %v14691_v27  ;;  %v14737_v26 = vcombine.low %v1121_v6, %v1125_v7  ;;  %v14739_v27 = vcombine.low %v1122_v8, %v1126_v9  ;;  %v14778_v6 = vcombine.high %v1161_v62, %v1165_v63  ;;  %v1169_v8 = vld [vmem:[#allocation7 + $0x2080] sm:$0xff] }
 0x25d   :  { %9772 = vmatprep.subr.bf16.mxu0 %v14698_v59  ;;  %10264 = vmatprep.subr.bf16.mxu1 %v14700_v29  ;;  %v14746_v59 = vcombine.high %v1129_v17, %v1133_v18  ;;  %v14748_v29 = vcombine.high %v1130_v21, %v1134_v22  ;;  %v1173_v9 = vld [vmem:[#allocation7 + $0x20a0] sm:$0xff] }
 0x260   :  { %9773 = vmatpush1.bf16.msra.mxu0 %v14697_v15  ;;  %10265 = vmatpush1.bf16.msra.mxu1 %v14699_v35  ;;  %v14745_v15 = vcombine.low %v1129_v17, %v1133_v18  ;;  %v14747_v35 = vcombine.low %v1130_v21, %v1134_v22  ;;  %v14786_v17 = vcombine.high %v1169_v8, %v1173_v9  ;;  %v1177_v21 = vld [vmem:[#allocation7 + $0x20c0] sm:$0xff] }
 0x261   :  { %9774 = vmatprep.subr.bf16.mxu0 %v14706_v36  ;;  %10266 = vmatprep.subr.bf16.mxu1 %v14708_v37  ;;  %v14754_v36 = vcombine.high %v1137_v30, %v1141_v31  ;;  %v14756_v37 = vcombine.high %v1138_v49, %v1142_v33  ;;  %v1181_v22 = vld [vmem:[#allocation7 + $0x20e0] sm:$0xff] }
 0x264   :  { %9775 = vmatpush1.bf16.msra.mxu0 %v14705_v44  ;;  %10267 = vmatpush1.bf16.msra.mxu1 %v14707_v45  ;;  %v14753_v44 = vcombine.low %v1137_v30, %v1141_v31  ;;  %v14755_v45 = vcombine.low %v1138_v49, %v1142_v33  ;;  %v14794_v30 = vcombine.high %v1177_v21, %v1181_v22  ;;  %v1185_v49 = vld [vmem:[#allocation7 + $0x2100] sm:$0xff] }
 0x265   :  { %9776 = vmatprep.subr.bf16.mxu0 %v14714_v47  ;;  %10268 = vmatprep.subr.bf16.mxu1 %v14716_v24  ;;  %v14762_v47 = vcombine.high %v1145_v40, %v1149_v41  ;;  %v14764_v24 = vcombine.high %v1146_v42, %v1150_v43  ;;  %v1189_v33 = vld [vmem:[#allocation7 + $0x2120] sm:$0xff] }
 0x268   :  { %9777 = vmatpush1.bf16.msra.mxu0 %v14713_v56  ;;  %10269 = vmatpush1.bf16.msra.mxu1 %v14715_v58  ;;  %v14761_v56 = vcombine.low %v1145_v40, %v1149_v41  ;;  %v14763_v58 = vcombine.low %v1146_v42, %v1150_v43  ;;  %v14802_v40 = vcombine.high %v1185_v49, %v1189_v33  ;;  %v1193_v42 = vld [vmem:[#allocation7 + $0x2140] sm:$0xff] }
 0x269   :  { %9778 = vmatprep.subr.bf16.mxu0 %v14722_v19  ;;  %10270 = vmatprep.subr.bf16.mxu1 %v14724_v61  ;;  %v14770_v19 = vcombine.high %v1153_v50, %v1157_v51  ;;  %v14772_v61 = vcombine.high %v1154_v52, %v1158_v54  ;;  %v1197_v43 = vld [vmem:[#allocation7 + $0x2160] sm:$0xff] }
 0x26c   :  { %9779 = vmatpush1.bf16.msra.mxu0 %v14721_v38  ;;  %10271 = vmatpush1.bf16.msra.mxu1 %v14723_v3  ;;  %v1166_v38 = vld [vmem:[#allocation7 + $0x2068] sm:$0xff]  ;;  %v16724_v3 = vld [vmem:[#allocation4 + $0x40] sm:$0xff] }
 0x26d   :  { %9780 = vmatprep.subr.bf16.mxu0 %v14730_v4  ;;  %10272 = vmatprep.subr.bf16.mxu1 %v14732_v5  ;;  %v14769_v4 = vcombine.low %v1153_v50, %v1157_v51  ;;  %v14771_v5 = vcombine.low %v1154_v52, %v1158_v54  ;;  %v14780_v7 = vcombine.high %v1162_v1, %v1166_v38  ;;  %v1201_v52 = vld [vmem:[#allocation7 + $0x2180] sm:$0xff] }
 0x26e   :  { %v14810_v50 = vcombine.high %v1193_v42, %v1197_v43  ;;  %v1205_v54 = vld [vmem:[#allocation7 + $0x21a0] sm:$0xff] }
 0x270   :  { %9781 = vmatpush1.bf16.msra.mxu0 %v14729_v10  ;;  %10273 = vmatpush1.bf16.msra.mxu1 %v14731_v11  ;;  %v16728_v10 = vcombine.high %v16724_v3, %v16724_v3  ;;  %v1174_v11 = vld [vmem:[#allocation7 + $0x20a8] sm:$0xff] }
 0x271   :  { %9782 = vmatprep.subr.bf16.mxu0 %v14738_v13  ;;  %10274 = vmatprep.subr.bf16.mxu1 %v14740_v14  ;;  %v14777_v13 = vcombine.low %v1161_v62, %v1165_v63  ;;  %v14779_v14 = vcombine.low %v1162_v1, %v1166_v38  ;;  %v14788_v18 = vcombine.high %v1170_v23, %v1174_v11  ;;  %v1209_v1 = vld [vmem:[#allocation7 + $0x21c0] sm:$0xff] }
 0x272   :  { %v14818_v62 = vcombine.high %v1201_v52, %v1205_v54  ;;  %v1213_v38 = vld [vmem:[#allocation7 + $0x21e0] sm:$0xff] }
 0x274   :  { %9783 = vmatpush1.bf16.msra.mxu0 %v14737_v26  ;;  %10275 = vmatpush1.bf16.msra.mxu1 %v14739_v27  ;;  %v1178_v26 = vld [vmem:[#allocation7 + $0x20c8] sm:$0xff] }
 0x275   :  { %9784 = vmatprep.subr.bf16.mxu0 %v14746_v59  ;;  %10276 = vmatprep.subr.bf16.mxu1 %v14748_v29  ;;  %v1182_v27 = vld [vmem:[#allocation7 + $0x20e8] sm:$0xff]  ;;  %v14785_v59 = vcombine.low %v1169_v8, %v1173_v9  ;;  %v14787_v29 = vcombine.low %v1170_v23, %v1174_v11  ;;  %v14826_v8 = vcombine.high %v1209_v1, %v1213_v38  ;;  %v1217_v23 = vld [vmem:[#allocation7 + $0x2200] sm:$0xff] }
 0x276   :  { %v14796_v31 = vcombine.high %v1178_v26, %v1182_v27  ;;  %v1221_v11 = vld [vmem:[#allocation7 + $0x2220] sm:$0xff] }
 0x278   :  { %9785 = vmatpush1.bf16.msra.mxu0 %v14745_v15  ;;  %10277 = vmatpush1.bf16.msra.mxu1 %v14747_v35  ;;  %v1186_v15 = vld [vmem:[#allocation7 + $0x2108] sm:$0xff] }
 0x279   :  { %9786 = vmatprep.subr.bf16.mxu0 %v14754_v36  ;;  %10278 = vmatprep.subr.bf16.mxu1 %v14756_v37  ;;  %v1190_v35 = vld [vmem:[#allocation7 + $0x2128] sm:$0xff]  ;;  %v14793_v36 = vcombine.low %v1177_v21, %v1181_v22  ;;  %v14795_v37 = vcombine.low %v1178_v26, %v1182_v27  ;;  %v14834_v21 = vcombine.high %v1217_v23, %v1221_v11  ;;  %v1225_v26 = vld [vmem:[#allocation7 + $0x2240] sm:$0xff] }
 0x27a   :  { %v14804_v41 = vcombine.high %v1186_v15, %v1190_v35  ;;  %v1229_v27 = vld [vmem:[#allocation7 + $0x2260] sm:$0xff] }
 0x27c   :  { %9787 = vmatpush1.bf16.msra.mxu0 %v14753_v44  ;;  %10279 = vmatpush1.bf16.msra.mxu1 %v14755_v45  ;;  %v1194_v44 = vld [vmem:[#allocation7 + $0x2148] sm:$0xff] }
 0x27d   :  { %9788 = vmatprep.subr.bf16.mxu0 %v14762_v47  ;;  %10280 = vmatprep.subr.bf16.mxu1 %v14764_v24  ;;  %v1198_v45 = vld [vmem:[#allocation7 + $0x2168] sm:$0xff]  ;;  %v14801_v47 = vcombine.low %v1185_v49, %v1189_v33  ;;  %v14803_v24 = vcombine.low %v1186_v15, %v1190_v35  ;;  %v14842_v49 = vcombine.high %v1225_v26, %v1229_v27  ;;  %v1233_v15 = vld [vmem:[#allocation7 + $0x2280] sm:$0xff] }
 0x27e   :  { %v14812_v51 = vcombine.high %v1194_v44, %v1198_v45  ;;  %v1237_v35 = vld [vmem:[#allocation7 + $0x22a0] sm:$0xff] }
 0x280   :  { %9789 = vmatpush1.bf16.msra.mxu0 %v14761_v56  ;;  %10281 = vmatpush1.bf16.msra.mxu1 %v14763_v58  ;;  %v1202_v56 = vld [vmem:[#allocation7 + $0x2188] sm:$0xff] }
 0x281   :  { %9799 = vmatprep.subr.bf16.mxu0 %v14770_v19  ;;  %10291 = vmatprep.subr.bf16.mxu1 %v14772_v61  ;;  %v1206_v58 = vld [vmem:[#allocation7 + $0x21a8] sm:$0xff]  ;;  %v14809_v19 = vcombine.low %v1193_v42, %v1197_v43  ;;  %v14811_v61 = vcombine.low %v1194_v44, %v1198_v45  ;;  %v14850_v42 = vcombine.high %v1233_v15, %v1237_v35  ;;  %v1241_v44 = vld [vmem:[#allocation7 + $0x22c0] sm:$0xff] }
 0x282   :  { %v14820_v63 = vcombine.high %v1202_v56, %v1206_v58  ;;  %v1245_v45 = vld [vmem:[#allocation7 + $0x22e0] sm:$0xff] }
 0x283   :  { %9791 = vmatmul.mubr.bf16.vlgmr.msra.gmra.mrb[0].mxu0 %v16722_v0  ;;  %10283 = vmatmul.mubr.bf16.vlgmr.msra.gmra.mrb[0].mxu1 %v16722_v0 }
 0x284   :  { %9800 = vmatpush1.bf16.msra.mxu0 %v14769_v4  ;;  %10292 = vmatpush1.bf16.msra.mxu1 %v14771_v5  ;;  %v1210_v4 = vld [vmem:[#allocation7 + $0x21c8] sm:$0xff] }
 0x285   :  { %9801 = vmatprep.subr.bf16.mxu0 %v14778_v6  ;;  %10293 = vmatprep.subr.bf16.mxu1 %v14780_v7  ;;  %v1214_v5 = vld [vmem:[#allocation7 + $0x21e8] sm:$0xff]  ;;  %v14817_v6 = vcombine.low %v1201_v52, %v1205_v54  ;;  %v14819_v7 = vcombine.low %v1202_v56, %v1206_v58  ;;  %v14858_v52 = vcombine.high %v1241_v44, %v1245_v45  ;;  %v1249_v56 = vld [vmem:[#allocation7 + $0x2300] sm:$0xff] }
 0x286   :  { %9831 = vmatprep.mubr.bf16.mxu0 %v16728_v10  ;;  %10323 = vmatprep.mubr.bf16.mxu1 %v16728_v10  ;;  %v14828_v9 = vcombine.high %v1210_v4, %v1214_v5  ;;  %v1253_v58 = vld [vmem:[#allocation7 + $0x2320] sm:$0xff] }
 0x288   :  { %9802 = vmatpush1.bf16.msra.mxu0 %v14777_v13  ;;  %10294 = vmatpush1.bf16.msra.mxu1 %v14779_v14  ;;  %v1218_v13 = vld [vmem:[#allocation7 + $0x2208] sm:$0xff] }
 0x289   :  { %9803 = vmatprep.subr.bf16.mxu0 %v14786_v17  ;;  %10295 = vmatprep.subr.bf16.mxu1 %v14788_v18  ;;  %v1222_v14 = vld [vmem:[#allocation7 + $0x2228] sm:$0xff]  ;;  %v14825_v17 = vcombine.low %v1209_v1, %v1213_v38  ;;  %v14827_v18 = vcombine.low %v1210_v4, %v1214_v5  ;;  %v14866_v1 = vcombine.high %v1249_v56, %v1253_v58  ;;  %v1257_v4 = vld [vmem:[#allocation7 + $0x2340] sm:$0xff] }
 0x28a   :  { %v14836_v22 = vcombine.high %v1218_v13, %v1222_v14  ;;  %v1261_v5 = vld [vmem:[#allocation7 + $0x2360] sm:$0xff] }
 0x28c   :  { %9804 = vmatpush1.bf16.msra.mxu0 %v14785_v59  ;;  %10296 = vmatpush1.bf16.msra.mxu1 %v14787_v29  ;;  %v1226_v59 = vld [vmem:[#allocation7 + $0x2248] sm:$0xff] }
 0x28d   :  { %9805 = vmatprep.subr.bf16.mxu0 %v14794_v30  ;;  %10297 = vmatprep.subr.bf16.mxu1 %v14796_v31  ;;  %v1230_v29 = vld [vmem:[#allocation7 + $0x2268] sm:$0xff]  ;;  %v14833_v30 = vcombine.low %v1217_v23, %v1221_v11  ;;  %v14835_v31 = vcombine.low %v1218_v13, %v1222_v14  ;;  %v14874_v23 = vcombine.high %v1257_v4, %v1261_v5  ;;  %v1265_v13 = vld [vmem:[#allocation7 + $0x2380] sm:$0xff] }
 0x28e   :  { %v14844_v33 = vcombine.high %v1226_v59, %v1230_v29  ;;  %v1269_v14 = vld [vmem:[#allocation7 + $0x23a0] sm:$0xff] }
 0x290   :  { %9806 = vmatpush1.bf16.msra.mxu0 %v14793_v36  ;;  %10298 = vmatpush1.bf16.msra.mxu1 %v14795_v37  ;;  %v1234_v36 = vld [vmem:[#allocation7 + $0x2288] sm:$0xff] }
 0x291   :  { %9807 = vmatprep.subr.bf16.mxu0 %v14802_v40  ;;  %10299 = vmatprep.subr.bf16.mxu1 %v14804_v41  ;;  %v1238_v37 = vld [vmem:[#allocation7 + $0x22a8] sm:$0xff]  ;;  %v14841_v40 = vcombine.low %v1225_v26, %v1229_v27  ;;  %v14843_v41 = vcombine.low %v1226_v59, %v1230_v29  ;;  %v14882_v26 = vcombine.high %v1265_v13, %v1269_v14  ;;  %v1273_v59 = vld [vmem:[#allocation7 + $0x23c0] sm:$0xff] }
 0x292   :  { %v14852_v43 = vcombine.high %v1234_v36, %v1238_v37  ;;  %v1277_v29 = vld [vmem:[#allocation7 + $0x23e0] sm:$0xff] }
 0x294   :  { %9808 = vmatpush1.bf16.msra.mxu0 %v14801_v47  ;;  %10300 = vmatpush1.bf16.msra.mxu1 %v14803_v24  ;;  %v1242_v47 = vld [vmem:[#allocation7 + $0x22c8] sm:$0xff] }
 0x295   :  { %9809 = vmatprep.subr.bf16.mxu0 %v14810_v50  ;;  %10301 = vmatprep.subr.bf16.mxu1 %v14812_v51  ;;  %v1246_v24 = vld [vmem:[#allocation7 + $0x22e8] sm:$0xff]  ;;  %v14849_v50 = vcombine.low %v1233_v15, %v1237_v35  ;;  %v14851_v51 = vcombine.low %v1234_v36, %v1238_v37  ;;  %v14890_v15 = vcombine.high %v1273_v59, %v1277_v29  ;;  %v1281_v36 = vld [vmem:[#allocation7 + $0x2400] sm:$0xff] }
 0x296   :  { %v14860_v54 = vcombine.high %v1242_v47, %v1246_v24  ;;  %v1285_v37 = vld [vmem:[#allocation7 + $0x2420] sm:$0xff] }
 0x298   :  { %9810 = vmatpush1.bf16.msra.mxu0 %v14809_v19  ;;  %10302 = vmatpush1.bf16.msra.mxu1 %v14811_v61  ;;  %v1250_v19 = vld [vmem:[#allocation7 + $0x2308] sm:$0xff] }
 0x299   :  { %9811 = vmatprep.subr.bf16.mxu0 %v14818_v62  ;;  %10303 = vmatprep.subr.bf16.mxu1 %v14820_v63  ;;  %v1254_v61 = vld [vmem:[#allocation7 + $0x2328] sm:$0xff]  ;;  %v14857_v62 = vcombine.low %v1241_v44, %v1245_v45  ;;  %v14859_v63 = vcombine.low %v1242_v47, %v1246_v24  ;;  %v14898_v44 = vcombine.high %v1281_v36, %v1285_v37  ;;  %v1289_v47 = vld [vmem:[#allocation7 + $0x2440] sm:$0xff] }
 0x29a   :  { %v14868_v38 = vcombine.high %v1250_v19, %v1254_v61  ;;  %v1293_v24 = vld [vmem:[#allocation7 + $0x2460] sm:$0xff] }
 0x29c   :  { %9812 = vmatpush1.bf16.msra.mxu0 %v14817_v6  ;;  %10304 = vmatpush1.bf16.msra.mxu1 %v14819_v7  ;;  %v1258_v6 = vld [vmem:[#allocation7 + $0x2348] sm:$0xff] }
 0x29d   :  { %9813 = vmatprep.subr.bf16.mxu0 %v14826_v8  ;;  %10305 = vmatprep.subr.bf16.mxu1 %v14828_v9  ;;  %v1262_v7 = vld [vmem:[#allocation7 + $0x2368] sm:$0xff]  ;;  %v14865_v8 = vcombine.low %v1249_v56, %v1253_v58  ;;  %v14867_v9 = vcombine.low %v1250_v19, %v1254_v61  ;;  %v14897_v56 = vcombine.low %v1281_v36, %v1285_v37 }
 0x29e   :  { %v14876_v11 = vcombine.high %v1258_v6, %v1262_v7  ;;  %v14906_v19 = vcombine.high %v1289_v47, %v1293_v24 }
 0x2a0   :  { %9814 = vmatpush1.bf16.msra.mxu0 %v14825_v17  ;;  %10306 = vmatpush1.bf16.msra.mxu1 %v14827_v18  ;;  %v1266_v17 = vld [vmem:[#allocation7 + $0x2388] sm:$0xff] }
 0x2a1   :  { %9815 = vmatprep.subr.bf16.mxu0 %v14834_v21  ;;  %10307 = vmatprep.subr.bf16.mxu1 %v14836_v22  ;;  %v1270_v18 = vld [vmem:[#allocation7 + $0x23a8] sm:$0xff]  ;;  %v14873_v21 = vcombine.low %v1257_v4, %v1261_v5  ;;  %v14875_v22 = vcombine.low %v1258_v6, %v1262_v7  ;;  %v14905_v4 = vcombine.low %v1289_v47, %v1293_v24 }
 0x2a2   :  { %v14884_v27 = vcombine.high %v1266_v17, %v1270_v18 }
 0x2a4   :  { %9816 = vmatpush1.bf16.msra.mxu0 %v14833_v30  ;;  %10308 = vmatpush1.bf16.msra.mxu1 %v14835_v31  ;;  %v1274_v30 = vld [vmem:[#allocation7 + $0x23c8] sm:$0xff] }
 0x2a5   :  { %9817 = vmatprep.subr.bf16.mxu0 %v14842_v49  ;;  %10309 = vmatprep.subr.bf16.mxu1 %v14844_v33  ;;  %v1278_v31 = vld [vmem:[#allocation7 + $0x23e8] sm:$0xff]  ;;  %v14881_v49 = vcombine.low %v1265_v13, %v1269_v14  ;;  %v14883_v33 = vcombine.low %v1266_v17, %v1270_v18 }
 0x2a6   :  { %v14892_v35 = vcombine.high %v1274_v30, %v1278_v31 }
 0x2a8   :  { %9818 = vmatpush1.bf16.msra.mxu0 %v14841_v40  ;;  %10310 = vmatpush1.bf16.msra.mxu1 %v14843_v41  ;;  %v1282_v40 = vld [vmem:[#allocation7 + $0x2408] sm:$0xff] }
 0x2a9   :  { %9819 = vmatprep.subr.bf16.mxu0 %v14850_v42  ;;  %10311 = vmatprep.subr.bf16.mxu1 %v14852_v43  ;;  %v1286_v41 = vld [vmem:[#allocation7 + $0x2428] sm:$0xff]  ;;  %v14889_v42 = vcombine.low %v1273_v59, %v1277_v29  ;;  %v14891_v43 = vcombine.low %v1274_v30, %v1278_v31 }
 0x2aa   :  { %v14900_v45 = vcombine.high %v1282_v40, %v1286_v41  ;;  %v14899_v58 = vcombine.low %v1282_v40, %v1286_v41 }
 0x2ac   :  { %9820 = vmatpush1.bf16.msra.mxu0 %v14849_v50  ;;  %10312 = vmatpush1.bf16.msra.mxu1 %v14851_v51  ;;  %v16736_v50 = vcombine.low %v16724_v3, %v16724_v3  ;;  %v1290_v51 = vld [vmem:[#allocation7 + $0x2448] sm:$0xff] }
 0x2ad   :  { %9821 = vmatprep.subr.bf16.mxu0 %v14858_v52  ;;  %10313 = vmatprep.subr.bf16.mxu1 %v14860_v54  ;;  %v1294_v52 = vld [vmem:[#allocation7 + $0x2468] sm:$0xff] }
 0x2ae   :  { %v16738_v54 = vld [vmem:[#allocation4 + $0x48] sm:$0xff]  ;;  %v14908_v61 = vcombine.high %v1290_v51, %v1294_v52  ;;  %v14907_v5 = vcombine.low %v1290_v51, %v1294_v52 }
 0x2af   :  { %v1298_v3 = vld [vmem:[#allocation7 + $0x2488] sm:$0xff] }
 0x2b0   :  { %9822 = vmatpush1.bf16.msra.mxu0 %v14857_v62  ;;  %10314 = vmatpush1.bf16.msra.mxu1 %v14859_v63  ;;  %v1297_v62 = vld [vmem:[#allocation7 + $0x2480] sm:$0xff] }
 0x2b1   :  { %9823 = vmatprep.subr.bf16.mxu0 %v14866_v1  ;;  %10315 = vmatprep.subr.bf16.mxu1 %v14868_v38  ;;  %v1301_v63 = vld [vmem:[#allocation7 + $0x24a0] sm:$0xff]  ;;  %v16742_v1 = vcombine.high %v16738_v54, %v16738_v54  ;;  %v1302_v38 = vld [vmem:[#allocation7 + $0x24a8] sm:$0xff] }
 0x2b2   :  { %v14914_v6 = vcombine.high %v1297_v62, %v1301_v63  ;;  %v14916_v7 = vcombine.high %v1298_v3, %v1302_v38  ;;  %v14913_v13 = vcombine.low %v1297_v62, %v1301_v63  ;;  %v14915_v14 = vcombine.low %v1298_v3, %v1302_v38 }
 0x2b4   :  { %9824 = vmatpush1.bf16.msra.mxu0 %v14865_v8  ;;  %10316 = vmatpush1.bf16.msra.mxu1 %v14867_v9  ;;  %v1305_v8 = vld [vmem:[#allocation7 + $0x24c0] sm:$0xff] }
 0x2b5   :  { %9825 = vmatprep.subr.bf16.mxu0 %v14874_v23  ;;  %10317 = vmatprep.subr.bf16.mxu1 %v14876_v11  ;;  %v1309_v9 = vld [vmem:[#allocation7 + $0x24e0] sm:$0xff]  ;;  %v1306_v23 = vld [vmem:[#allocation7 + $0x24c8] sm:$0xff] }
 0x2b6   :  { %v1310_v11 = vld [vmem:[#allocation7 + $0x24e8] sm:$0xff]  ;;  %v14922_v17 = vcombine.high %v1305_v8, %v1309_v9  ;;  %v14921_v59 = vcombine.low %v1305_v8, %v1309_v9 }
 0x2b7   :  { %v14924_v18 = vcombine.high %v1306_v23, %v1310_v11  ;;  %v14923_v29 = vcombine.low %v1306_v23, %v1310_v11 }
 0x2b8   :  { %9826 = vmatpush1.bf16.msra.mxu0 %v14873_v21  ;;  %10318 = vmatpush1.bf16.msra.mxu1 %v14875_v22  ;;  %v1313_v21 = vld [vmem:[#allocation7 + $0x2500] sm:$0xff] }
 0x2b9   :  { %9827 = vmatprep.subr.bf16.mxu0 %v14882_v26  ;;  %10319 = vmatprep.subr.bf16.mxu1 %v14884_v27  ;;  %v1317_v22 = vld [vmem:[#allocation7 + $0x2520] sm:$0xff]  ;;  %v1314_v26 = vld [vmem:[#allocation7 + $0x2508] sm:$0xff] }
 0x2ba   :  { %v1318_v27 = vld [vmem:[#allocation7 + $0x2528] sm:$0xff]  ;;  %v14930_v30 = vcombine.high %v1313_v21, %v1317_v22  ;;  %v14929_v36 = vcombine.low %v1313_v21, %v1317_v22 }
 0x2bb   :  { %v14932_v31 = vcombine.high %v1314_v26, %v1318_v27  ;;  %v14931_v37 = vcombine.low %v1314_v26, %v1318_v27 }
 0x2bc   :  { %9828 = vmatpush1.bf16.msra.mxu0 %v14881_v49  ;;  %10320 = vmatpush1.bf16.msra.mxu1 %v14883_v33  ;;  %v1321_v49 = vld [vmem:[#allocation7 + $0x2540] sm:$0xff] }
 0x2bd   :  { %9829 = vmatprep.subr.bf16.mxu0 %v14890_v15  ;;  %10321 = vmatprep.subr.bf16.mxu1 %v14892_v35  ;;  %v1325_v33 = vld [vmem:[#allocation7 + $0x2560] sm:$0xff]  ;;  %v1322_v15 = vld [vmem:[#allocation7 + $0x2548] sm:$0xff] }
 0x2be   :  { %v1326_v35 = vld [vmem:[#allocation7 + $0x2568] sm:$0xff]  ;;  %v14938_v40 = vcombine.high %v1321_v49, %v1325_v33  ;;  %v14937_v47 = vcombine.low %v1321_v49, %v1325_v33 }
 0x2bf   :  { %v14940_v41 = vcombine.high %v1322_v15, %v1326_v35  ;;  %v14939_v24 = vcombine.low %v1322_v15, %v1326_v35 }
 0x2c0   :  { %9830 = vmatpush1.bf16.msra.mxu0 %v14889_v42  ;;  %10322 = vmatpush1.bf16.msra.mxu1 %v14891_v43  ;;  %v1329_v42 = vld [vmem:[#allocation7 + $0x2580] sm:$0xff] }
 0x2c1   :  { %9840 = vmatprep.subr.bf16.mxu0 %v14898_v44  ;;  %10332 = vmatprep.subr.bf16.mxu1 %v14900_v45  ;;  %v1333_v43 = vld [vmem:[#allocation7 + $0x25a0] sm:$0xff]  ;;  %v1330_v44 = vld [vmem:[#allocation7 + $0x2588] sm:$0xff] }
 0x2c2   :  { %v1334_v45 = vld [vmem:[#allocation7 + $0x25a8] sm:$0xff]  ;;  %v14946_v51 = vcombine.high %v1329_v42, %v1333_v43  ;;  %v14945_v62 = vcombine.low %v1329_v42, %v1333_v43 }
 0x2c3   :  { %9832 = vmatmul.mubr.bf16.vlgmr.msra.gmra.mrb[0].mxu0 %v16736_v50  ;;  %10324 = vmatmul.mubr.bf16.vlgmr.msra.gmra.mrb[0].mxu1 %v16736_v50  ;;  %v14948_v52 = vcombine.high %v1330_v44, %v1334_v45  ;;  %v14947_v63 = vcombine.low %v1330_v44, %v1334_v45 }
 0x2c4   :  { %9841 = vmatpush1.bf16.msra.mxu0 %v14897_v56  ;;  %10333 = vmatpush1.bf16.msra.mxu1 %v14899_v58  ;;  %v1337_v56 = vld [vmem:[#allocation7 + $0x25c0] sm:$0xff] }
 0x2c5   :  { %9842 = vmatprep.subr.bf16.mxu0 %v14906_v19  ;;  %10334 = vmatprep.subr.bf16.mxu1 %v14908_v61  ;;  %v1341_v58 = vld [vmem:[#allocation7 + $0x25e0] sm:$0xff]  ;;  %v1338_v19 = vld [vmem:[#allocation7 + $0x25c8] sm:$0xff] }
 0x2c6   :  { %9872 = vmatprep.mubr.bf16.mxu0 %v16742_v1  ;;  %10364 = vmatprep.mubr.bf16.mxu1 %v16742_v1  ;;  %v1342_v61 = vld [vmem:[#allocation7 + $0x25e8] sm:$0xff]  ;;  %v14954_v3 = vcombine.high %v1337_v56, %v1341_v58  ;;  %v14953_v8 = vcombine.low %v1337_v56, %v1341_v58 }
 0x2c7   :  { %v14956_v38 = vcombine.high %v1338_v19, %v1342_v61  ;;  %v14955_v9 = vcombine.low %v1338_v19, %v1342_v61 }
 0x2c8   :  { %9843 = vmatpush1.bf16.msra.mxu0 %v14905_v4  ;;  %10335 = vmatpush1.bf16.msra.mxu1 %v14907_v5  ;;  %v1345_v4 = vld [vmem:[#allocation7 + $0x2600] sm:$0xff] }
 0x2c9   :  { %9844 = vmatprep.subr.bf16.mxu0 %v14914_v6  ;;  %10336 = vmatprep.subr.bf16.mxu1 %v14916_v7  ;;  %v1349_v5 = vld [vmem:[#allocation7 + $0x2620] sm:$0xff]  ;;  %v1346_v6 = vld [vmem:[#allocation7 + $0x2608] sm:$0xff] }
 0x2ca   :  { %v1350_v7 = vld [vmem:[#allocation7 + $0x2628] sm:$0xff]  ;;  %v14962_v23 = vcombine.high %v1345_v4, %v1349_v5  ;;  %v14961_v21 = vcombine.low %v1345_v4, %v1349_v5 }
 0x2cb   :  { %v14964_v11 = vcombine.high %v1346_v6, %v1350_v7  ;;  %v14963_v22 = vcombine.low %v1346_v6, %v1350_v7 }
 0x2cc   :  { %9845 = vmatpush1.bf16.msra.mxu0 %v14913_v13  ;;  %10337 = vmatpush1.bf16.msra.mxu1 %v14915_v14  ;;  %v1353_v13 = vld [vmem:[#allocation7 + $0x2640] sm:$0xff] }
 0x2cd   :  { %9846 = vmatprep.subr.bf16.mxu0 %v14922_v17  ;;  %10338 = vmatprep.subr.bf16.mxu1 %v14924_v18  ;;  %v1357_v14 = vld [vmem:[#allocation7 + $0x2660] sm:$0xff]  ;;  %v1354_v17 = vld [vmem:[#allocation7 + $0x2648] sm:$0xff] }
 0x2ce   :  { %v1358_v18 = vld [vmem:[#allocation7 + $0x2668] sm:$0xff]  ;;  %v14970_v26 = vcombine.high %v1353_v13, %v1357_v14  ;;  %v14969_v49 = vcombine.low %v1353_v13, %v1357_v14 }
 0x2cf   :  { %v14972_v27 = vcombine.high %v1354_v17, %v1358_v18  ;;  %v14971_v33 = vcombine.low %v1354_v17, %v1358_v18 }
 0x2d0   :  { %9847 = vmatpush1.bf16.msra.mxu0 %v14921_v59  ;;  %10339 = vmatpush1.bf16.msra.mxu1 %v14923_v29  ;;  %v1361_v59 = vld [vmem:[#allocation7 + $0x2680] sm:$0xff] }
 0x2d1   :  { %9848 = vmatprep.subr.bf16.mxu0 %v14930_v30  ;;  %10340 = vmatprep.subr.bf16.mxu1 %v14932_v31  ;;  %v1365_v29 = vld [vmem:[#allocation7 + $0x26a0] sm:$0xff]  ;;  %v1362_v30 = vld [vmem:[#allocation7 + $0x2688] sm:$0xff] }
 0x2d2   :  { %v1366_v31 = vld [vmem:[#allocation7 + $0x26a8] sm:$0xff]  ;;  %v14978_v15 = vcombine.high %v1361_v59, %v1365_v29  ;;  %v14977_v42 = vcombine.low %v1361_v59, %v1365_v29 }
 0x2d3   :  { %v14980_v35 = vcombine.high %v1362_v30, %v1366_v31  ;;  %v14979_v43 = vcombine.low %v1362_v30, %v1366_v31 }
 0x2d4   :  { %9849 = vmatpush1.bf16.msra.mxu0 %v14929_v36  ;;  %10341 = vmatpush1.bf16.msra.mxu1 %v14931_v37  ;;  %v1369_v36 = vld [vmem:[#allocation7 + $0x26c0] sm:$0xff] }
 0x2d5   :  { %9850 = vmatprep.subr.bf16.mxu0 %v14938_v40  ;;  %10342 = vmatprep.subr.bf16.mxu1 %v14940_v41  ;;  %v1373_v37 = vld [vmem:[#allocation7 + $0x26e0] sm:$0xff]  ;;  %v1370_v40 = vld [vmem:[#allocation7 + $0x26c8] sm:$0xff] }
 0x2d6   :  { %v1374_v41 = vld [vmem:[#allocation7 + $0x26e8] sm:$0xff]  ;;  %v14986_v44 = vcombine.high %v1369_v36, %v1373_v37  ;;  %v14985_v56 = vcombine.low %v1369_v36, %v1373_v37 }
 0x2d7   :  { %v14988_v45 = vcombine.high %v1370_v40, %v1374_v41  ;;  %v14987_v58 = vcombine.low %v1370_v40, %v1374_v41 }
 0x2d8   :  { %9851 = vmatpush1.bf16.msra.mxu0 %v14937_v47  ;;  %10343 = vmatpush1.bf16.msra.mxu1 %v14939_v24  ;;  %v1377_v47 = vld [vmem:[#allocation7 + $0x2700] sm:$0xff] }
 0x2d9   :  { %9852 = vmatprep.subr.bf16.mxu0 %v14946_v51  ;;  %10344 = vmatprep.subr.bf16.mxu1 %v14948_v52  ;;  %v1381_v24 = vld [vmem:[#allocation7 + $0x2720] sm:$0xff]  ;;  %v1378_v51 = vld [vmem:[#allocation7 + $0x2708] sm:$0xff] }
 0x2da   :  { %v1382_v52 = vld [vmem:[#allocation7 + $0x2728] sm:$0xff]  ;;  %v14994_v19 = vcombine.high %v1377_v47, %v1381_v24  ;;  %v14993_v4 = vcombine.low %v1377_v47, %v1381_v24  ;;  %v16752_v24 = vld [vmem:[#allocation4 + $0x50] sm:$0xff] }
 0x2db   :  { %v14996_v61 = vcombine.high %v1378_v51, %v1382_v52  ;;  %v14995_v5 = vcombine.low %v1378_v51, %v1382_v52  ;;  %v1422_v47 = vld [vmem:[#allocation7 + $0x2868] sm:$0xff] }
 0x2dc   :  { %9853 = vmatpush1.bf16.msra.mxu0 %v14945_v62  ;;  %10345 = vmatpush1.bf16.msra.mxu1 %v14947_v63  ;;  %v1385_v62 = vld [vmem:[#allocation7 + $0x2740] sm:$0xff] }
 0x2dd   :  { %9854 = vmatprep.subr.bf16.mxu0 %v14954_v3  ;;  %10346 = vmatprep.subr.bf16.mxu1 %v14956_v38  ;;  %v1389_v63 = vld [vmem:[#allocation7 + $0x2760] sm:$0xff]  ;;  %v1386_v3 = vld [vmem:[#allocation7 + $0x2748] sm:$0xff] }
 0x2de   :  { %v1390_v38 = vld [vmem:[#allocation7 + $0x2768] sm:$0xff]  ;;  %v15002_v6 = vcombine.high %v1385_v62, %v1389_v63  ;;  %v15001_v13 = vcombine.low %v1385_v62, %v1389_v63  ;;  %v16756_v62 = vcombine.high %v16752_v24, %v16752_v24 }
 0x2df   :  { %v15004_v7 = vcombine.high %v1386_v3, %v1390_v38  ;;  %v15003_v14 = vcombine.low %v1386_v3, %v1390_v38  ;;  %v1430_v63 = vld [vmem:[#allocation7 + $0x28a8] sm:$0xff] }
 0x2e0   :  { %9855 = vmatpush1.bf16.msra.mxu0 %v14953_v8  ;;  %10347 = vmatpush1.bf16.msra.mxu1 %v14955_v9  ;;  %v1393_v8 = vld [vmem:[#allocation7 + $0x2780] sm:$0xff] }
 0x2e1   :  { %9856 = vmatprep.subr.bf16.mxu0 %v14962_v23  ;;  %10348 = vmatprep.subr.bf16.mxu1 %v14964_v11  ;;  %v1397_v9 = vld [vmem:[#allocation7 + $0x27a0] sm:$0xff]  ;;  %v1394_v23 = vld [vmem:[#allocation7 + $0x2788] sm:$0xff] }
 0x2e2   :  { %v1398_v11 = vld [vmem:[#allocation7 + $0x27a8] sm:$0xff]  ;;  %v15010_v17 = vcombine.high %v1393_v8, %v1397_v9  ;;  %v15009_v59 = vcombine.low %v1393_v8, %v1397_v9 }
 0x2e3   :  { %v15012_v18 = vcombine.high %v1394_v23, %v1398_v11  ;;  %v15011_v29 = vcombine.low %v1394_v23, %v1398_v11  ;;  %v1434_v8 = vld [vmem:[#allocation7 + $0x28c8] sm:$0xff] }
 0x2e4   :  { %9857 = vmatpush1.bf16.msra.mxu0 %v14961_v21  ;;  %10349 = vmatpush1.bf16.msra.mxu1 %v14963_v22  ;;  %v1401_v21 = vld [vmem:[#allocation7 + $0x27c0] sm:$0xff]  ;;  %v1438_v9 = vld [vmem:[#allocation7 + $0x28e8] sm:$0xff] }
 0x2e5   :  { %9858 = vmatprep.subr.bf16.mxu0 %v14970_v26  ;;  %10350 = vmatprep.subr.bf16.mxu1 %v14972_v27  ;;  %v1405_v22 = vld [vmem:[#allocation7 + $0x27e0] sm:$0xff]  ;;  %v1402_v26 = vld [vmem:[#allocation7 + $0x27c8] sm:$0xff] }
 0x2e6   :  { %v1406_v27 = vld [vmem:[#allocation7 + $0x27e8] sm:$0xff]  ;;  %v15018_v30 = vcombine.high %v1401_v21, %v1405_v22  ;;  %v15017_v36 = vcombine.low %v1401_v21, %v1405_v22 }
 0x2e7   :  { %v15020_v31 = vcombine.high %v1402_v26, %v1406_v27  ;;  %v15019_v37 = vcombine.low %v1402_v26, %v1406_v27  ;;  %v1442_v21 = vld [vmem:[#allocation7 + $0x2908] sm:$0xff]  ;;  %v15051_v27 = vcombine.low %v1434_v8, %v1438_v9 }
 0x2e8   :  { %9859 = vmatpush1.bf16.msra.mxu0 %v14969_v49  ;;  %10351 = vmatpush1.bf16.msra.mxu1 %v14971_v33  ;;  %v1409_v49 = vld [vmem:[#allocation7 + $0x2800] sm:$0xff]  ;;  %v1446_v22 = vld [vmem:[#allocation7 + $0x2928] sm:$0xff] }
 0x2e9   :  { %9860 = vmatprep.subr.bf16.mxu0 %v14978_v15  ;;  %10352 = vmatprep.subr.bf16.mxu1 %v14980_v35  ;;  %v1413_v33 = vld [vmem:[#allocation7 + $0x2820] sm:$0xff]  ;;  %v1410_v15 = vld [vmem:[#allocation7 + $0x2808] sm:$0xff] }
 0x2ea   :  { %v1414_v35 = vld [vmem:[#allocation7 + $0x2828] sm:$0xff]  ;;  %v15026_v40 = vcombine.high %v1409_v49, %v1413_v33  ;;  %v15025_v51 = vcombine.low %v1409_v49, %v1413_v33 }
 0x2eb   :  { %v15028_v41 = vcombine.high %v1410_v15, %v1414_v35  ;;  %v15027_v52 = vcombine.low %v1410_v15, %v1414_v35  ;;  %v1450_v49 = vld [vmem:[#allocation7 + $0x2948] sm:$0xff]  ;;  %v15059_v35 = vcombine.low %v1442_v21, %v1446_v22 }
 0x2ec   :  { %9861 = vmatpush1.bf16.msra.mxu0 %v14977_v42  ;;  %10353 = vmatpush1.bf16.msra.mxu1 %v14979_v43  ;;  %v1417_v42 = vld [vmem:[#allocation7 + $0x2840] sm:$0xff]  ;;  %v1454_v33 = vld [vmem:[#allocation7 + $0x2968] sm:$0xff] }
 0x2ed   :  { %9862 = vmatprep.subr.bf16.mxu0 %v14986_v44  ;;  %10354 = vmatprep.subr.bf16.mxu1 %v14988_v45  ;;  %v1421_v43 = vld [vmem:[#allocation7 + $0x2860] sm:$0xff]  ;;  %v16750_v44 = vcombine.low %v16738_v54, %v16738_v54  ;;  %v1418_v45 = vld [vmem:[#allocation7 + $0x2848] sm:$0xff] }
 0x2ee   :  { %v1426_v54 = vld [vmem:[#allocation7 + $0x2888] sm:$0xff]  ;;  %v15033_v3 = vcombine.low %v1417_v42, %v1421_v43  ;;  %v15035_v38 = vcombine.low %v1418_v45, %v1422_v47 }
 0x2ef   :  { %v15043_v11 = vcombine.low %v1426_v54, %v1430_v63 }
 0x2f0   :  { %9863 = vmatpush1.bf16.msra.mxu0 %v14985_v56  ;;  %10355 = vmatpush1.bf16.msra.mxu1 %v14987_v58  ;;  %v15034_v56 = vcombine.high %v1417_v42, %v1421_v43  ;;  %v15036_v58 = vcombine.high %v1418_v45, %v1422_v47  ;;  %v1458_v42 = vld [vmem:[#allocation7 + $0x2988] sm:$0xff]  ;;  %v15067_v47 = vcombine.low %v1450_v49, %v1454_v33 }
 0x2f1   :  { %9864 = vmatprep.subr.bf16.mxu0 %v14994_v19  ;;  %10356 = vmatprep.subr.bf16.mxu1 %v14996_v61  ;;  %v1425_v19 = vld [vmem:[#allocation7 + $0x2880] sm:$0xff]  ;;  %v1462_v43 = vld [vmem:[#allocation7 + $0x29a8] sm:$0xff] }
 0x2f2   :  { %v1429_v61 = vld [vmem:[#allocation7 + $0x28a0] sm:$0xff] }
 0x2f3   :  { %v15041_v23 = vcombine.low %v1425_v19, %v1429_v61 }
 0x2f4   :  { %9865 = vmatpush1.bf16.msra.mxu0 %v14993_v4  ;;  %10357 = vmatpush1.bf16.msra.mxu1 %v14995_v5  ;;  %v15042_v4 = vcombine.high %v1425_v19, %v1429_v61  ;;  %v15044_v5 = vcombine.high %v1426_v54, %v1430_v63  ;;  %v1466_v19 = vld [vmem:[#allocation7 + $0x29c8] sm:$0xff]  ;;  %v15075_v63 = vcombine.low %v1458_v42, %v1462_v43 }
 0x2f5   :  { %9866 = vmatprep.subr.bf16.mxu0 %v15002_v6  ;;  %10358 = vmatprep.subr.bf16.mxu1 %v15004_v7  ;;  %v1433_v6 = vld [vmem:[#allocation7 + $0x28c0] sm:$0xff]  ;;  %v1470_v61 = vld [vmem:[#allocation7 + $0x29e8] sm:$0xff] }
 0x2f6   :  { %v1437_v7 = vld [vmem:[#allocation7 + $0x28e0] sm:$0xff] }
 0x2f7   :  { %v15049_v26 = vcombine.low %v1433_v6, %v1437_v7 }
 0x2f8   :  { %9867 = vmatpush1.bf16.msra.mxu0 %v15001_v13  ;;  %10359 = vmatpush1.bf16.msra.mxu1 %v15003_v14  ;;  %v15050_v13 = vcombine.high %v1433_v6, %v1437_v7  ;;  %v15052_v14 = vcombine.high %v1434_v8, %v1438_v9  ;;  %v1474_v6 = vld [vmem:[#allocation7 + $0x2a08] sm:$0xff]  ;;  %v15083_v9 = vcombine.low %v1466_v19, %v1470_v61 }
 0x2f9   :  { %9868 = vmatprep.subr.bf16.mxu0 %v15010_v17  ;;  %10360 = vmatprep.subr.bf16.mxu1 %v15012_v18  ;;  %v1441_v17 = vld [vmem:[#allocation7 + $0x2900] sm:$0xff]  ;;  %v1478_v7 = vld [vmem:[#allocation7 + $0x2a28] sm:$0xff] }
 0x2fa   :  { %v1445_v18 = vld [vmem:[#allocation7 + $0x2920] sm:$0xff] }
 0x2fb   :  { %v15057_v15 = vcombine.low %v1441_v17, %v1445_v18 }
 0x2fc   :  { %9869 = vmatpush1.bf16.msra.mxu0 %v15009_v59  ;;  %10361 = vmatpush1.bf16.msra.mxu1 %v15011_v29  ;;  %v15058_v59 = vcombine.high %v1441_v17, %v1445_v18  ;;  %v15060_v29 = vcombine.high %v1442_v21, %v1446_v22  ;;  %v1482_v17 = vld [vmem:[#allocation7 + $0x2a48] sm:$0xff]  ;;  %v15091_v22 = vcombine.low %v1474_v6, %v1478_v7 }
 0x2fd   :  { %9870 = vmatprep.subr.bf16.mxu0 %v15018_v30  ;;  %10362 = vmatprep.subr.bf16.mxu1 %v15020_v31  ;;  %v1449_v30 = vld [vmem:[#allocation7 + $0x2940] sm:$0xff]  ;;  %v1486_v18 = vld [vmem:[#allocation7 + $0x2a68] sm:$0xff] }
 0x2fe   :  { %v1453_v31 = vld [vmem:[#allocation7 + $0x2960] sm:$0xff] }
 0x2ff   :  { %v15065_v45 = vcombine.low %v1449_v30, %v1453_v31 }
 0x300   :  { %9871 = vmatpush1.bf16.msra.mxu0 %v15017_v36  ;;  %10363 = vmatpush1.bf16.msra.mxu1 %v15019_v37  ;;  %v15066_v36 = vcombine.high %v1449_v30, %v1453_v31  ;;  %v15068_v37 = vcombine.high %v1450_v49, %v1454_v33  ;;  %v1490_v30 = vld [vmem:[#allocation7 + $0x2a88] sm:$0xff]  ;;  %v15099_v33 = vcombine.low %v1482_v17, %v1486_v18 }
 0x301   :  { %9881 = vmatprep.subr.bf16.mxu0 %v15026_v40  ;;  %10373 = vmatprep.subr.bf16.mxu1 %v15028_v41  ;;  %v1457_v40 = vld [vmem:[#allocation7 + $0x2980] sm:$0xff]  ;;  %v1494_v31 = vld [vmem:[#allocation7 + $0x2aa8] sm:$0xff] }
 0x302   :  { %v1461_v41 = vld [vmem:[#allocation7 + $0x29a0] sm:$0xff] }
 0x303   :  { %9873 = vmatmul.mubr.bf16.vlgmr.msra.gmra.mrb[0].mxu0 %v16750_v44  ;;  %10365 = vmatmul.mubr.bf16.vlgmr.msra.gmra.mrb[0].mxu1 %v16750_v44  ;;  %v15073_v54 = vcombine.low %v1457_v40, %v1461_v41 }
 0x304   :  { %9882 = vmatpush1.bf16.msra.mxu0 %v15025_v51  ;;  %10374 = vmatpush1.bf16.msra.mxu1 %v15027_v52  ;;  %v15074_v51 = vcombine.high %v1457_v40, %v1461_v41  ;;  %v15076_v52 = vcombine.high %v1458_v42, %v1462_v43  ;;  %v1498_v40 = vld [vmem:[#allocation7 + $0x2ac8] sm:$0xff]  ;;  %v15107_v43 = vcombine.low %v1490_v30, %v1494_v31 }
 0x305   :  { %9883 = vmatprep.subr.bf16.mxu0 %v15034_v56  ;;  %10375 = vmatprep.subr.bf16.mxu1 %v15036_v58  ;;  %v1465_v56 = vld [vmem:[#allocation7 + $0x29c0] sm:$0xff]  ;;  %v1502_v41 = vld [vmem:[#allocation7 + $0x2ae8] sm:$0xff] }
 0x306   :  { %9913 = vmatprep.mubr.bf16.mxu0 %v16756_v62  ;;  %10405 = vmatprep.mubr.bf16.mxu1 %v16756_v62  ;;  %v1469_v58 = vld [vmem:[#allocation7 + $0x29e0] sm:$0xff] }
 0x307   :  { %v15081_v8 = vcombine.low %v1465_v56, %v1469_v58 }
 0x308   :  { %9884 = vmatpush1.bf16.msra.mxu0 %v15033_v3  ;;  %10376 = vmatpush1.bf16.msra.mxu1 %v15035_v38  ;;  %v15082_v3 = vcombine.high %v1465_v56, %v1469_v58  ;;  %v15084_v38 = vcombine.high %v1466_v19, %v1470_v61  ;;  %v1506_v56 = vld [vmem:[#allocation7 + $0x2b08] sm:$0xff]  ;;  %v15115_v61 = vcombine.low %v1498_v40, %v1502_v41 }
 0x309   :  { %9885 = vmatprep.subr.bf16.mxu0 %v15042_v4  ;;  %10377 = vmatprep.subr.bf16.mxu1 %v15044_v5  ;;  %v1473_v4 = vld [vmem:[#allocation7 + $0x2a00] sm:$0xff]  ;;  %v1510_v58 = vld [vmem:[#allocation7 + $0x2b28] sm:$0xff] }
 0x30a   :  { %v1477_v5 = vld [vmem:[#allocation7 + $0x2a20] sm:$0xff] }
 0x30b   :  { %v15089_v21 = vcombine.low %v1473_v4, %v1477_v5 }
 0x30c   :  { %9886 = vmatpush1.bf16.msra.mxu0 %v15041_v23  ;;  %10378 = vmatpush1.bf16.msra.mxu1 %v15043_v11  ;;  %v15090_v23 = vcombine.high %v1473_v4, %v1477_v5  ;;  %v15092_v11 = vcombine.high %v1474_v6, %v1478_v7  ;;  %v1514_v4 = vld [vmem:[#allocation7 + $0x2b48] sm:$0xff]  ;;  %v15123_v7 = vcombine.low %v1506_v56, %v1510_v58 }
 0x30d   :  { %9887 = vmatprep.subr.bf16.mxu0 %v15050_v13  ;;  %10379 = vmatprep.subr.bf16.mxu1 %v15052_v14  ;;  %v1481_v13 = vld [vmem:[#allocation7 + $0x2a40] sm:$0xff]  ;;  %v1518_v5 = vld [vmem:[#allocation7 + $0x2b68] sm:$0xff] }
 0x30e   :  { %v1485_v14 = vld [vmem:[#allocation7 + $0x2a60] sm:$0xff] }
 0x30f   :  { %v15097_v49 = vcombine.low %v1481_v13, %v1485_v14 }
 0x310   :  { %9888 = vmatpush1.bf16.msra.mxu0 %v15049_v26  ;;  %10380 = vmatpush1.bf16.msra.mxu1 %v15051_v27  ;;  %v15098_v26 = vcombine.high %v1481_v13, %v1485_v14  ;;  %v15100_v27 = vcombine.high %v1482_v17, %v1486_v18  ;;  %v1522_v13 = vld [vmem:[#allocation7 + $0x2b88] sm:$0xff]  ;;  %v15131_v18 = vcombine.low %v1514_v4, %v1518_v5 }
 0x311   :  { %9889 = vmatprep.subr.bf16.mxu0 %v15058_v59  ;;  %10381 = vmatprep.subr.bf16.mxu1 %v15060_v29  ;;  %v1489_v59 = vld [vmem:[#allocation7 + $0x2a80] sm:$0xff]  ;;  %v1526_v14 = vld [vmem:[#allocation7 + $0x2ba8] sm:$0xff] }
 0x312   :  { %v1493_v29 = vld [vmem:[#allocation7 + $0x2aa0] sm:$0xff] }
 0x313   :  { %v15105_v42 = vcombine.low %v1489_v59, %v1493_v29 }
 0x314   :  { %9890 = vmatpush1.bf16.msra.mxu0 %v15057_v15  ;;  %10382 = vmatpush1.bf16.msra.mxu1 %v15059_v35  ;;  %v15106_v15 = vcombine.high %v1489_v59, %v1493_v29  ;;  %v15108_v35 = vcombine.high %v1490_v30, %v1494_v31  ;;  %v1530_v59 = vld [vmem:[#allocation7 + $0x2bc8] sm:$0xff]  ;;  %v15139_v31 = vcombine.low %v1522_v13, %v1526_v14 }
 0x315   :  { %9891 = vmatprep.subr.bf16.mxu0 %v15066_v36  ;;  %10383 = vmatprep.subr.bf16.mxu1 %v15068_v37  ;;  %v1497_v36 = vld [vmem:[#allocation7 + $0x2ac0] sm:$0xff]  ;;  %v1534_v29 = vld [vmem:[#allocation7 + $0x2be8] sm:$0xff] }
 0x316   :  { %v1501_v37 = vld [vmem:[#allocation7 + $0x2ae0] sm:$0xff] }
 0x317   :  { %v15113_v19 = vcombine.low %v1497_v36, %v1501_v37 }
 0x318   :  { %9892 = vmatpush1.bf16.msra.mxu0 %v15065_v45  ;;  %10384 = vmatpush1.bf16.msra.mxu1 %v15067_v47  ;;  %v15114_v45 = vcombine.high %v1497_v36, %v1501_v37  ;;  %v15116_v47 = vcombine.high %v1498_v40, %v1502_v41  ;;  %v1538_v36 = vld [vmem:[#allocation7 + $0x2c08] sm:$0xff]  ;;  %v15147_v41 = vcombine.low %v1530_v59, %v1534_v29 }
 0x319   :  { %9893 = vmatprep.subr.bf16.mxu0 %v15074_v51  ;;  %10385 = vmatprep.subr.bf16.mxu1 %v15076_v52  ;;  %v1505_v51 = vld [vmem:[#allocation7 + $0x2b00] sm:$0xff]  ;;  %v1542_v37 = vld [vmem:[#allocation7 + $0x2c28] sm:$0xff] }
 0x31a   :  { %v1509_v52 = vld [vmem:[#allocation7 + $0x2b20] sm:$0xff] }
 0x31b   :  { %v15121_v6 = vcombine.low %v1505_v51, %v1509_v52 }
 0x31c   :  { %9894 = vmatpush1.bf16.msra.mxu0 %v15073_v54  ;;  %10386 = vmatpush1.bf16.msra.mxu1 %v15075_v63  ;;  %v15122_v54 = vcombine.high %v1505_v51, %v1509_v52  ;;  %v15124_v63 = vcombine.high %v1506_v56, %v1510_v58  ;;  %v16764_v51 = vcombine.low %v16752_v24, %v16752_v24  ;;  %v1546_v52 = vld [vmem:[#allocation7 + $0x2c48] sm:$0xff]  ;;  %v16766_v58 = vld [vmem:[#allocation4 + $0x58] sm:$0xff] }
 0x31d   :  { %9895 = vmatprep.subr.bf16.mxu0 %v15082_v3  ;;  %10387 = vmatprep.subr.bf16.mxu1 %v15084_v38  ;;  %v1513_v3 = vld [vmem:[#allocation7 + $0x2b40] sm:$0xff]  ;;  %v1550_v56 = vld [vmem:[#allocation7 + $0x2c68] sm:$0xff] }
 0x31e   :  { %v1517_v38 = vld [vmem:[#allocation7 + $0x2b60] sm:$0xff]  ;;  %v1554_v24 = vld [vmem:[#allocation7 + $0x2c88] sm:$0xff] }
 0x31f   :  { %v15129_v17 = vcombine.low %v1513_v3, %v1517_v38 }
 0x320   :  { %9896 = vmatpush1.bf16.msra.mxu0 %v15081_v8  ;;  %10388 = vmatpush1.bf16.msra.mxu1 %v15083_v9  ;;  %v15130_v8 = vcombine.high %v1513_v3, %v1517_v38  ;;  %v15132_v9 = vcombine.high %v1514_v4, %v1518_v5  ;;  %v1553_v3 = vld [vmem:[#allocation7 + $0x2c80] sm:$0xff]  ;;  %v16770_v4 = vcombine.high %v16766_v58, %v16766_v58  ;;  %v1558_v5 = vld [vmem:[#allocation7 + $0x2ca8] sm:$0xff] }
 0x321   :  { %9897 = vmatprep.subr.bf16.mxu0 %v15090_v23  ;;  %10389 = vmatprep.subr.bf16.mxu1 %v15092_v11  ;;  %v1521_v23 = vld [vmem:[#allocation7 + $0x2b80] sm:$0xff] }
 0x322   :  { %v1525_v11 = vld [vmem:[#allocation7 + $0x2ba0] sm:$0xff] }
 0x323   :  { %v15137_v30 = vcombine.low %v1521_v23, %v1525_v11  ;;  %v1557_v38 = vld [vmem:[#allocation7 + $0x2ca0] sm:$0xff] }
 0x324   :  { %9898 = vmatpush1.bf16.msra.mxu0 %v15089_v21  ;;  %10390 = vmatpush1.bf16.msra.mxu1 %v15091_v22  ;;  %v15138_v21 = vcombine.high %v1521_v23, %v1525_v11  ;;  %v15140_v22 = vcombine.high %v1522_v13, %v1526_v14  ;;  %v1561_v23 = vld [vmem:[#allocation7 + $0x2cc0] sm:$0xff]  ;;  %v1562_v13 = vld [vmem:[#allocation7 + $0x2cc8] sm:$0xff] }
 0x325   :  { %9899 = vmatprep.subr.bf16.mxu0 %v15098_v26  ;;  %10391 = vmatprep.subr.bf16.mxu1 %v15100_v27  ;;  %v1529_v26 = vld [vmem:[#allocation7 + $0x2bc0] sm:$0xff]  ;;  %v1566_v14 = vld [vmem:[#allocation7 + $0x2ce8] sm:$0xff] }
 0x326   :  { %v1533_v27 = vld [vmem:[#allocation7 + $0x2be0] sm:$0xff] }
 0x327   :  { %v15145_v40 = vcombine.low %v1529_v26, %v1533_v27  ;;  %v1565_v11 = vld [vmem:[#allocation7 + $0x2ce0] sm:$0xff] }
 0x328   :  { %9900 = vmatpush1.bf16.msra.mxu0 %v15097_v49  ;;  %10392 = vmatpush1.bf16.msra.mxu1 %v15099_v33  ;;  %v15146_v49 = vcombine.high %v1529_v26, %v1533_v27  ;;  %v15148_v33 = vcombine.high %v1530_v59, %v1534_v29  ;;  %v1569_v26 = vld [vmem:[#allocation7 + $0x2d00] sm:$0xff]  ;;  %v1570_v59 = vld [vmem:[#allocation7 + $0x2d08] sm:$0xff] }
 0x329   :  { %9901 = vmatprep.subr.bf16.mxu0 %v15106_v15  ;;  %10393 = vmatprep.subr.bf16.mxu1 %v15108_v35  ;;  %v1537_v15 = vld [vmem:[#allocation7 + $0x2c00] sm:$0xff]  ;;  %v1574_v29 = vld [vmem:[#allocation7 + $0x2d28] sm:$0xff] }
 0x32a   :  { %v1541_v35 = vld [vmem:[#allocation7 + $0x2c20] sm:$0xff] }
 0x32b   :  { %v1573_v27 = vld [vmem:[#allocation7 + $0x2d20] sm:$0xff] }
 0x32c   :  { %9902 = vmatpush1.bf16.msra.mxu0 %v15105_v42  ;;  %10394 = vmatpush1.bf16.msra.mxu1 %v15107_v43  ;;  %v15154_v42 = vcombine.high %v1537_v15, %v1541_v35  ;;  %v15156_v43 = vcombine.high %v1538_v36, %v1542_v37 }
 0x32d   :  { %9903 = vmatprep.subr.bf16.mxu0 %v15114_v45  ;;  %10395 = vmatprep.subr.bf16.mxu1 %v15116_v47  ;;  %v1545_v45 = vld [vmem:[#allocation7 + $0x2c40] sm:$0xff] }
 0x32e   :  { %v1549_v47 = vld [vmem:[#allocation7 + $0x2c60] sm:$0xff] }
 0x330   :  { %9904 = vmatpush1.bf16.msra.mxu0 %v15113_v19  ;;  %10396 = vmatpush1.bf16.msra.mxu1 %v15115_v61  ;;  %v15153_v19 = vcombine.low %v1537_v15, %v1541_v35  ;;  %v15155_v61 = vcombine.low %v1538_v36, %v1542_v37  ;;  %v1577_v15 = vld [vmem:[#allocation7 + $0x2d40] sm:$0xff]  ;;  %v1578_v36 = vld [vmem:[#allocation7 + $0x2d48] sm:$0xff] }
 0x331   :  { %9905 = vmatprep.subr.bf16.mxu0 %v15122_v54  ;;  %10397 = vmatprep.subr.bf16.mxu1 %v15124_v63  ;;  %v15162_v54 = vcombine.high %v1545_v45, %v1549_v47  ;;  %v15164_v63 = vcombine.high %v1546_v52, %v1550_v56  ;;  %v1581_v35 = vld [vmem:[#allocation7 + $0x2d60] sm:$0xff]  ;;  %v1582_v37 = vld [vmem:[#allocation7 + $0x2d68] sm:$0xff] }
 0x334   :  { %9906 = vmatpush1.bf16.msra.mxu0 %v15121_v6  ;;  %10398 = vmatpush1.bf16.msra.mxu1 %v15123_v7  ;;  %v15161_v6 = vcombine.low %v1545_v45, %v1549_v47  ;;  %v15163_v7 = vcombine.low %v1546_v52, %v1550_v56  ;;  %v1585_v45 = vld [vmem:[#allocation7 + $0x2d80] sm:$0xff]  ;;  %v1586_v52 = vld [vmem:[#allocation7 + $0x2d88] sm:$0xff] }
 0x335   :  { %9907 = vmatprep.subr.bf16.mxu0 %v15130_v8  ;;  %10399 = vmatprep.subr.bf16.mxu1 %v15132_v9  ;;  %v15170_v8 = vcombine.high %v1553_v3, %v1557_v38  ;;  %v15172_v9 = vcombine.high %v1554_v24, %v1558_v5  ;;  %v1589_v47 = vld [vmem:[#allocation7 + $0x2da0] sm:$0xff]  ;;  %v1590_v56 = vld [vmem:[#allocation7 + $0x2da8] sm:$0xff] }
 0x338   :  { %9908 = vmatpush1.bf16.msra.mxu0 %v15129_v17  ;;  %10400 = vmatpush1.bf16.msra.mxu1 %v15131_v18  ;;  %v15169_v17 = vcombine.low %v1553_v3, %v1557_v38  ;;  %v15171_v18 = vcombine.low %v1554_v24, %v1558_v5  ;;  %v1593_v3 = vld [vmem:[#allocation7 + $0x2dc0] sm:$0xff]  ;;  %v1594_v24 = vld [vmem:[#allocation7 + $0x2dc8] sm:$0xff] }
 0x339   :  { %9909 = vmatprep.subr.bf16.mxu0 %v15138_v21  ;;  %10401 = vmatprep.subr.bf16.mxu1 %v15140_v22  ;;  %v15178_v21 = vcombine.high %v1561_v23, %v1565_v11  ;;  %v15180_v22 = vcombine.high %v1562_v13, %v1566_v14  ;;  %v1597_v38 = vld [vmem:[#allocation7 + $0x2de0] sm:$0xff]  ;;  %v1598_v5 = vld [vmem:[#allocation7 + $0x2de8] sm:$0xff] }
 0x33c   :  { %9910 = vmatpush1.bf16.msra.mxu0 %v15137_v30  ;;  %10402 = vmatpush1.bf16.msra.mxu1 %v15139_v31  ;;  %v15177_v30 = vcombine.low %v1561_v23, %v1565_v11  ;;  %v15179_v31 = vcombine.low %v1562_v13, %v1566_v14  ;;  %v1601_v23 = vld [vmem:[#allocation7 + $0x2e00] sm:$0xff]  ;;  %v1602_v13 = vld [vmem:[#allocation7 + $0x2e08] sm:$0xff] }
 0x33d   :  { %9911 = vmatprep.subr.bf16.mxu0 %v15146_v49  ;;  %10403 = vmatprep.subr.bf16.mxu1 %v15148_v33  ;;  %v15186_v49 = vcombine.high %v1569_v26, %v1573_v27  ;;  %v15188_v33 = vcombine.high %v1570_v59, %v1574_v29  ;;  %v1605_v11 = vld [vmem:[#allocation7 + $0x2e20] sm:$0xff]  ;;  %v1606_v14 = vld [vmem:[#allocation7 + $0x2e28] sm:$0xff] }
 0x340   :  { %9912 = vmatpush1.bf16.msra.mxu0 %v15145_v40  ;;  %10404 = vmatpush1.bf16.msra.mxu1 %v15147_v41  ;;  %v15185_v40 = vcombine.low %v1569_v26, %v1573_v27  ;;  %v15187_v41 = vcombine.low %v1570_v59, %v1574_v29  ;;  %v1609_v26 = vld [vmem:[#allocation7 + $0x2e40] sm:$0xff]  ;;  %v1610_v59 = vld [vmem:[#allocation7 + $0x2e48] sm:$0xff] }
 0x341   :  { %9922 = vmatprep.subr.bf16.mxu0 %v15154_v42  ;;  %10414 = vmatprep.subr.bf16.mxu1 %v15156_v43  ;;  %v15194_v42 = vcombine.high %v1577_v15, %v1581_v35  ;;  %v15196_v43 = vcombine.high %v1578_v36, %v1582_v37  ;;  %v1613_v27 = vld [vmem:[#allocation7 + $0x2e60] sm:$0xff]  ;;  %v1614_v29 = vld [vmem:[#allocation7 + $0x2e68] sm:$0xff] }
 0x343   :  { %9914 = vmatmul.mubr.bf16.vlgmr.msra.gmra.mrb[0].mxu0 %v16764_v51  ;;  %10406 = vmatmul.mubr.bf16.vlgmr.msra.gmra.mrb[0].mxu1 %v16764_v51 }
 0x344   :  { %9923 = vmatpush1.bf16.msra.mxu0 %v15153_v19  ;;  %10415 = vmatpush1.bf16.msra.mxu1 %v15155_v61  ;;  %v15193_v19 = vcombine.low %v1577_v15, %v1581_v35  ;;  %v15195_v61 = vcombine.low %v1578_v36, %v1582_v37  ;;  %v1617_v15 = vld [vmem:[#allocation7 + $0x2e80] sm:$0xff]  ;;  %v1618_v36 = vld [vmem:[#allocation7 + $0x2e88] sm:$0xff] }
 0x345   :  { %9924 = vmatprep.subr.bf16.mxu0 %v15162_v54  ;;  %10416 = vmatprep.subr.bf16.mxu1 %v15164_v63  ;;  %v15202_v54 = vcombine.high %v1585_v45, %v1589_v47  ;;  %v15204_v63 = vcombine.high %v1586_v52, %v1590_v56  ;;  %v1621_v35 = vld [vmem:[#allocation7 + $0x2ea0] sm:$0xff]  ;;  %v1622_v37 = vld [vmem:[#allocation7 + $0x2ea8] sm:$0xff] }
 0x346   :  { %9954 = vmatprep.mubr.bf16.mxu0 %v16770_v4  ;;  %10446 = vmatprep.mubr.bf16.mxu1 %v16770_v4 }
 0x348   :  { %9925 = vmatpush1.bf16.msra.mxu0 %v15161_v6  ;;  %10417 = vmatpush1.bf16.msra.mxu1 %v15163_v7  ;;  %v15201_v6 = vcombine.low %v1585_v45, %v1589_v47  ;;  %v15203_v7 = vcombine.low %v1586_v52, %v1590_v56  ;;  %v1625_v45 = vld [vmem:[#allocation7 + $0x2ec0] sm:$0xff]  ;;  %v1626_v52 = vld [vmem:[#allocation7 + $0x2ec8] sm:$0xff] }
 0x349   :  { %9926 = vmatprep.subr.bf16.mxu0 %v15170_v8  ;;  %10418 = vmatprep.subr.bf16.mxu1 %v15172_v9  ;;  %v15210_v8 = vcombine.high %v1593_v3, %v1597_v38  ;;  %v15212_v9 = vcombine.high %v1594_v24, %v1598_v5  ;;  %v1629_v47 = vld [vmem:[#allocation7 + $0x2ee0] sm:$0xff]  ;;  %v1630_v56 = vld [vmem:[#allocation7 + $0x2ee8] sm:$0xff] }
 0x34c   :  { %9927 = vmatpush1.bf16.msra.mxu0 %v15169_v17  ;;  %10419 = vmatpush1.bf16.msra.mxu1 %v15171_v18  ;;  %v15209_v17 = vcombine.low %v1593_v3, %v1597_v38  ;;  %v15211_v18 = vcombine.low %v1594_v24, %v1598_v5  ;;  %v1633_v3 = vld [vmem:[#allocation7 + $0x2f00] sm:$0xff]  ;;  %v1634_v24 = vld [vmem:[#allocation7 + $0x2f08] sm:$0xff] }
 0x34d   :  { %9928 = vmatprep.subr.bf16.mxu0 %v15178_v21  ;;  %10420 = vmatprep.subr.bf16.mxu1 %v15180_v22  ;;  %v15218_v21 = vcombine.high %v1601_v23, %v1605_v11  ;;  %v15220_v22 = vcombine.high %v1602_v13, %v1606_v14  ;;  %v1637_v38 = vld [vmem:[#allocation7 + $0x2f20] sm:$0xff]  ;;  %v1638_v5 = vld [vmem:[#allocation7 + $0x2f28] sm:$0xff] }
 0x350   :  { %9929 = vmatpush1.bf16.msra.mxu0 %v15177_v30  ;;  %10421 = vmatpush1.bf16.msra.mxu1 %v15179_v31  ;;  %v15217_v30 = vcombine.low %v1601_v23, %v1605_v11  ;;  %v15219_v31 = vcombine.low %v1602_v13, %v1606_v14  ;;  %v1641_v23 = vld [vmem:[#allocation7 + $0x2f40] sm:$0xff]  ;;  %v1642_v13 = vld [vmem:[#allocation7 + $0x2f48] sm:$0xff] }
 0x351   :  { %9930 = vmatprep.subr.bf16.mxu0 %v15186_v49  ;;  %10422 = vmatprep.subr.bf16.mxu1 %v15188_v33  ;;  %v15226_v49 = vcombine.high %v1609_v26, %v1613_v27  ;;  %v15228_v33 = vcombine.high %v1610_v59, %v1614_v29  ;;  %v1645_v11 = vld [vmem:[#allocation7 + $0x2f60] sm:$0xff]  ;;  %v1646_v14 = vld [vmem:[#allocation7 + $0x2f68] sm:$0xff] }
 0x354   :  { %9931 = vmatpush1.bf16.msra.mxu0 %v15185_v40  ;;  %10423 = vmatpush1.bf16.msra.mxu1 %v15187_v41  ;;  %v15225_v40 = vcombine.low %v1609_v26, %v1613_v27  ;;  %v15227_v41 = vcombine.low %v1610_v59, %v1614_v29  ;;  %v1649_v26 = vld [vmem:[#allocation7 + $0x2f80] sm:$0xff]  ;;  %v1650_v59 = vld [vmem:[#allocation7 + $0x2f88] sm:$0xff] }
 0x355   :  { %9932 = vmatprep.subr.bf16.mxu0 %v15194_v42  ;;  %10424 = vmatprep.subr.bf16.mxu1 %v15196_v43  ;;  %v15234_v42 = vcombine.high %v1617_v15, %v1621_v35  ;;  %v15236_v43 = vcombine.high %v1618_v36, %v1622_v37  ;;  %v1653_v27 = vld [vmem:[#allocation7 + $0x2fa0] sm:$0xff]  ;;  %v1654_v29 = vld [vmem:[#allocation7 + $0x2fa8] sm:$0xff] }
 0x358   :  { %9933 = vmatpush1.bf16.msra.mxu0 %v15193_v19  ;;  %10425 = vmatpush1.bf16.msra.mxu1 %v15195_v61  ;;  %v15233_v19 = vcombine.low %v1617_v15, %v1621_v35  ;;  %v15235_v61 = vcombine.low %v1618_v36, %v1622_v37  ;;  %v1657_v15 = vld [vmem:[#allocation7 + $0x2fc0] sm:$0xff]  ;;  %v1658_v36 = vld [vmem:[#allocation7 + $0x2fc8] sm:$0xff] }
 0x359   :  { %9934 = vmatprep.subr.bf16.mxu0 %v15202_v54  ;;  %10426 = vmatprep.subr.bf16.mxu1 %v15204_v63  ;;  %v15242_v54 = vcombine.high %v1625_v45, %v1629_v47  ;;  %v15244_v63 = vcombine.high %v1626_v52, %v1630_v56  ;;  %v1661_v35 = vld [vmem:[#allocation7 + $0x2fe0] sm:$0xff]  ;;  %v1662_v37 = vld [vmem:[#allocation7 + $0x2fe8] sm:$0xff] }
 0x35c   :  { %9935 = vmatpush1.bf16.msra.mxu0 %v15201_v6  ;;  %10427 = vmatpush1.bf16.msra.mxu1 %v15203_v7  ;;  %v15241_v6 = vcombine.low %v1625_v45, %v1629_v47  ;;  %v15243_v7 = vcombine.low %v1626_v52, %v1630_v56  ;;  %v131_v45 = vld [vmem:[#allocation7 + $0x10] sm:$0xff]  ;;  %v132_v52 = vld [vmem:[#allocation7 + $0x18] sm:$0xff] }
 0x35d   :  { %9936 = vmatprep.subr.bf16.mxu0 %v15210_v8  ;;  %10428 = vmatprep.subr.bf16.mxu1 %v15212_v9  ;;  %v15250_v8 = vcombine.high %v1633_v3, %v1637_v38  ;;  %v15252_v9 = vcombine.high %v1634_v24, %v1638_v5  ;;  %v135_v47 = vld [vmem:[#allocation7 + $0x30] sm:$0xff]  ;;  %v136_v56 = vld [vmem:[#allocation7 + $0x38] sm:$0xff] }
 0x360   :  { %9937 = vmatpush1.bf16.msra.mxu0 %v15209_v17  ;;  %10429 = vmatpush1.bf16.msra.mxu1 %v15211_v18  ;;  %v15249_v17 = vcombine.low %v1633_v3, %v1637_v38  ;;  %v15251_v18 = vcombine.low %v1634_v24, %v1638_v5  ;;  %v139_v3 = vld [vmem:[#allocation7 + $0x50] sm:$0xff]  ;;  %v16778_v24 = vcombine.low %v16766_v58, %v16766_v58  ;;  %v140_v5 = vld [vmem:[#allocation7 + $0x58] sm:$0xff] }
 0x361   :  { %9938 = vmatprep.subr.bf16.mxu0 %v15218_v21  ;;  %10430 = vmatprep.subr.bf16.mxu1 %v15220_v22  ;;  %v15258_v21 = vcombine.high %v1641_v23, %v1645_v11  ;;  %v15260_v22 = vcombine.high %v1642_v13, %v1646_v14  ;;  %v143_v38 = vld [vmem:[#allocation7 + $0x70] sm:$0xff] }
 0x362   :  { %v13757_v58 = vcombine.low %v139_v3, %v143_v38 }
 0x364   :  { %9939 = vmatpush1.bf16.msra.mxu0 %v15217_v30  ;;  %10431 = vmatpush1.bf16.msra.mxu1 %v15219_v31  ;;  %v15257_v30 = vcombine.low %v1641_v23, %v1645_v11  ;;  %v15259_v31 = vcombine.low %v1642_v13, %v1646_v14  ;;  %v147_v11 = vld [vmem:[#allocation7 + $0x90] sm:$0xff]  ;;  %v148_v14 = vld [vmem:[#allocation7 + $0x98] sm:$0xff] }
 0x365   :  { %9940 = vmatprep.subr.bf16.mxu0 %v15226_v49  ;;  %10432 = vmatprep.subr.bf16.mxu1 %v15228_v33  ;;  %v15266_v49 = vcombine.high %v1649_v26, %v1653_v27  ;;  %v15268_v33 = vcombine.high %v1650_v59, %v1654_v29  ;;  %v151_v13 = vld [vmem:[#allocation7 + $0xb0] sm:$0xff] }
 0x368   :  { %9941 = vmatpush1.bf16.msra.mxu0 %v15225_v40  ;;  %10433 = vmatpush1.bf16.msra.mxu1 %v15227_v41  ;;  %v15265_v40 = vcombine.low %v1649_v26, %v1653_v27  ;;  %v15267_v41 = vcombine.low %v1650_v59, %v1654_v29  ;;  %v155_v26 = vld [vmem:[#allocation7 + $0xd0] sm:$0xff]  ;;  %v156_v59 = vld [vmem:[#allocation7 + $0xd8] sm:$0xff] }
 0x369   :  { %9942 = vmatprep.subr.bf16.mxu0 %v15234_v42  ;;  %10434 = vmatprep.subr.bf16.mxu1 %v15236_v43  ;;  %v15274_v42 = vcombine.high %v1657_v15, %v1661_v35  ;;  %v15276_v43 = vcombine.high %v1658_v36, %v1662_v37  ;;  %v159_v27 = vld [vmem:[#allocation7 + $0xf0] sm:$0xff]  ;;  %v160_v29 = vld [vmem:[#allocation7 + $0xf8] sm:$0xff] }
 0x36c   :  { %9943 = vmatpush1.bf16.msra.mxu0 %v15233_v19  ;;  %10435 = vmatpush1.bf16.msra.mxu1 %v15235_v61  ;;  %v15273_v19 = vcombine.low %v1657_v15, %v1661_v35  ;;  %v15275_v61 = vcombine.low %v1658_v36, %v1662_v37  ;;  %v163_v15 = vld [vmem:[#allocation7 + $0x110] sm:$0xff]  ;;  %v164_v36 = vld [vmem:[#allocation7 + $0x118] sm:$0xff] }
 0x36d   :  { %9944 = vmatprep.subr.bf16.mxu0 %v15242_v54  ;;  %10436 = vmatprep.subr.bf16.mxu1 %v15244_v63  ;;  %v13750_v54 = vcombine.high %v131_v45, %v135_v47  ;;  %v13752_v63 = vcombine.high %v132_v52, %v136_v56  ;;  %v167_v35 = vld [vmem:[#allocation7 + $0x130] sm:$0xff]  ;;  %v168_v37 = vld [vmem:[#allocation7 + $0x138] sm:$0xff] }
 0x370   :  { %9945 = vmatpush1.bf16.msra.mxu0 %v15241_v6  ;;  %10437 = vmatpush1.bf16.msra.mxu1 %v15243_v7  ;;  %v144_v6 = vld [vmem:[#allocation7 + $0x78] sm:$0xff]  ;;  %v13749_v7 = vcombine.low %v131_v45, %v135_v47  ;;  %v175_v45 = vld [vmem:[#allocation7 + $0x170] sm:$0xff] }
 0x371   :  { %9946 = vmatprep.subr.bf16.mxu0 %v15250_v8  ;;  %10438 = vmatprep.subr.bf16.mxu1 %v15252_v9  ;;  %v13751_v8 = vcombine.low %v132_v52, %v136_v56  ;;  %v13758_v9 = vcombine.high %v139_v3, %v143_v38  ;;  %v13760_v23 = vcombine.high %v140_v5, %v144_v6  ;;  %v172_v47 = vld [vmem:[#allocation7 + $0x158] sm:$0xff]  ;;  %v183_v3 = vld [vmem:[#allocation7 + $0x1b0] sm:$0xff] }
 0x372   :  { %v176_v52 = vld [vmem:[#allocation7 + $0x178] sm:$0xff]  ;;  %v13781_v56 = vcombine.low %v163_v15, %v167_v35 }
 0x373   :  { %v180_v38 = vld [vmem:[#allocation7 + $0x198] sm:$0xff] }
 0x374   :  { %9947 = vmatpush1.bf16.msra.mxu0 %v15249_v17  ;;  %10439 = vmatpush1.bf16.msra.mxu1 %v15251_v18  ;;  %v152_v17 = vld [vmem:[#allocation7 + $0xb8] sm:$0xff]  ;;  %v13759_v18 = vcombine.low %v140_v5, %v144_v6 }
 0x375   :  { %9948 = vmatprep.subr.bf16.mxu0 %v15258_v21  ;;  %10440 = vmatprep.subr.bf16.mxu1 %v15260_v22  ;;  %v13766_v21 = vcombine.high %v147_v11, %v151_v13  ;;  %v13768_v22 = vcombine.high %v148_v14, %v152_v17  ;;  %v184_v5 = vld [vmem:[#allocation7 + $0x1b8] sm:$0xff] }
 0x378   :  { %9949 = vmatpush1.bf16.msra.mxu0 %v15257_v30  ;;  %10441 = vmatpush1.bf16.msra.mxu1 %v15259_v31  ;;  %v13765_v30 = vcombine.low %v147_v11, %v151_v13  ;;  %v13767_v31 = vcombine.low %v148_v14, %v152_v17  ;;  %v191_v11 = vld [vmem:[#allocation7 + $0x1f0] sm:$0xff]  ;;  %v188_v13 = vld [vmem:[#allocation7 + $0x1d8] sm:$0xff] }
 0x379   :  { %9950 = vmatprep.subr.bf16.mxu0 %v15266_v49  ;;  %10442 = vmatprep.subr.bf16.mxu1 %v15268_v33  ;;  %v13774_v49 = vcombine.high %v155_v26, %v159_v27  ;;  %v13776_v33 = vcombine.high %v156_v59, %v160_v29  ;;  %v192_v14 = vld [vmem:[#allocation7 + $0x1f8] sm:$0xff] }
 0x37c   :  { %9951 = vmatpush1.bf16.msra.mxu0 %v15265_v40  ;;  %10443 = vmatpush1.bf16.msra.mxu1 %v15267_v41  ;;  %v13773_v40 = vcombine.low %v155_v26, %v159_v27  ;;  %v13775_v41 = vcombine.low %v156_v59, %v160_v29  ;;  %v199_v26 = vld [vmem:[#allocation7 + $0x230] sm:$0xff]  ;;  %v196_v27 = vld [vmem:[#allocation7 + $0x218] sm:$0xff] }
 0x37d   :  { %9952 = vmatprep.subr.bf16.mxu0 %v15274_v42  ;;  %10444 = vmatprep.subr.bf16.mxu1 %v15276_v43  ;;  %v13782_v42 = vcombine.high %v163_v15, %v167_v35  ;;  %v171_v43 = vld [vmem:[#allocation7 + $0x150] sm:$0xff]  ;;  %v200_v59 = vld [vmem:[#allocation7 + $0x238] sm:$0xff] }
 0x37e   :  { %v13789_v6 = vcombine.low %v171_v43, %v175_v45  ;;  %v207_v15 = vld [vmem:[#allocation7 + $0x270] sm:$0xff]  ;;  %v204_v35 = vld [vmem:[#allocation7 + $0x258] sm:$0xff] }
 0x380   :  { %9953 = vmatpush1.bf16.msra.mxu0 %v15273_v19  ;;  %10445 = vmatpush1.bf16.msra.mxu1 %v15275_v61  ;;  %v13783_v19 = vcombine.low %v164_v36, %v168_v37  ;;  %v13790_v61 = vcombine.high %v171_v43, %v175_v45  ;;  %v215_v43 = vld [vmem:[#allocation7 + $0x2b0] sm:$0xff]  ;;  %v212_v45 = vld [vmem:[#allocation7 + $0x298] sm:$0xff] }
 0x381   :  { %10455 = vmatprep.subr.bf16.mxu0 %v13750_v54  ;;  %10947 = vmatprep.subr.bf16.mxu1 %v13752_v63  ;;  %v13792_v54 = vcombine.high %v172_v47, %v176_v52  ;;  %v179_v63 = vld [vmem:[#allocation7 + $0x190] sm:$0xff] }
 0x382   :  { %v13797_v17 = vcombine.low %v179_v63, %v183_v3 }
 0x383   :  { %9955 = vmatmul.mubr.bf16.vlgmr.msra.gmra.mrb[0].mxu0 %v16778_v24  ;;  %10447 = vmatmul.mubr.bf16.vlgmr.msra.gmra.mrb[0].mxu1 %v16778_v24 }
 0x384   :  { %10456 = vmatpush1.bf16.msra.mxu0 %v13749_v7  ;;  %10948 = vmatpush1.bf16.msra.mxu1 %v13751_v8  ;;  %v13791_v7 = vcombine.low %v172_v47, %v176_v52  ;;  %v13798_v8 = vcombine.high %v179_v63, %v183_v3  ;;  %v216_v47 = vld [vmem:[#allocation7 + $0x2b8] sm:$0xff]  ;;  %v223_v63 = vld [vmem:[#allocation7 + $0x2f0] sm:$0xff] }
 0x385   :  { %10457 = vmatprep.subr.bf16.mxu0 %v13758_v9  ;;  %10949 = vmatprep.subr.bf16.mxu1 %v13760_v23  ;;  %v13800_v9 = vcombine.high %v180_v38, %v184_v5  ;;  %v187_v23 = vld [vmem:[#allocation7 + $0x1d0] sm:$0xff]  ;;  %v220_v3 = vld [vmem:[#allocation7 + $0x2d8] sm:$0xff] }
 0x386   :  { %10487 = vmatprep.mubr.bf16.mxu0 %v16618_v57  ;;  %10979 = vmatprep.mubr.bf16.mxu1 %v16618_v57  ;;  %v13784_v57 = vcombine.high %v164_v36, %v168_v37  ;;  %v13805_v29 = vcombine.low %v187_v23, %v191_v11  ;;  %v208_v36 = vld [vmem:[#allocation7 + $0x278] sm:$0xff] }
 0x388   :  { %10458 = vmatpush1.bf16.msra.mxu0 %v13757_v58  ;;  %10950 = vmatpush1.bf16.msra.mxu1 %v13759_v18  ;;  %v13799_v58 = vcombine.low %v180_v38, %v184_v5  ;;  %v13806_v18 = vcombine.high %v187_v23, %v191_v11  ;;  %v224_v38 = vld [vmem:[#allocation7 + $0x2f8] sm:$0xff]  ;;  %v231_v23 = vld [vmem:[#allocation7 + $0x330] sm:$0xff] }
 0x389   :  { %10459 = vmatprep.subr.bf16.mxu0 %v13766_v21  ;;  %10951 = vmatprep.subr.bf16.mxu1 %v13768_v22  ;;  %v13808_v21 = vcombine.high %v188_v13, %v192_v14  ;;  %v195_v22 = vld [vmem:[#allocation7 + $0x210] sm:$0xff]  ;;  %v228_v11 = vld [vmem:[#allocation7 + $0x318] sm:$0xff] }
 0x38a   :  { %v13813_v37 = vcombine.low %v195_v22, %v199_v26 }
 0x38c   :  { %10460 = vmatpush1.bf16.msra.mxu0 %v13765_v30  ;;  %10952 = vmatpush1.bf16.msra.mxu1 %v13767_v31  ;;  %v13807_v30 = vcombine.low %v188_v13, %v192_v14  ;;  %v13814_v31 = vcombine.high %v195_v22, %v199_v26  ;;  %v232_v13 = vld [vmem:[#allocation7 + $0x338] sm:$0xff]  ;;  %v239_v22 = vld [vmem:[#allocation7 + $0x370] sm:$0xff] }
 0x38d   :  { %10461 = vmatprep.subr.bf16.mxu0 %v13774_v49  ;;  %10953 = vmatprep.subr.bf16.mxu1 %v13776_v33  ;;  %v13816_v49 = vcombine.high %v196_v27, %v200_v59  ;;  %v203_v33 = vld [vmem:[#allocation7 + $0x250] sm:$0xff]  ;;  %v236_v26 = vld [vmem:[#allocation7 + $0x358] sm:$0xff] }
 0x38e   :  { %v13821_v52 = vcombine.low %v203_v33, %v207_v15 }
 0x390   :  { %10462 = vmatpush1.bf16.msra.mxu0 %v13773_v40  ;;  %10954 = vmatpush1.bf16.msra.mxu1 %v13775_v41  ;;  %v13815_v40 = vcombine.low %v196_v27, %v200_v59  ;;  %v13822_v41 = vcombine.high %v203_v33, %v207_v15  ;;  %v240_v27 = vld [vmem:[#allocation7 + $0x378] sm:$0xff]  ;;  %v247_v33 = vld [vmem:[#allocation7 + $0x3b0] sm:$0xff] }
 0x391   :  { %10463 = vmatprep.subr.bf16.mxu0 %v13782_v42  ;;  %10955 = vmatprep.subr.bf16.mxu1 %v13784_v57  ;;  %v13824_v42 = vcombine.high %v204_v35, %v208_v36  ;;  %v211_v57 = vld [vmem:[#allocation7 + $0x290] sm:$0xff]  ;;  %v244_v15 = vld [vmem:[#allocation7 + $0x398] sm:$0xff] }
 0x392   :  { %v13829_v5 = vcombine.low %v211_v57, %v215_v43 }
 0x394   :  { %10464 = vmatpush1.bf16.msra.mxu0 %v13781_v56  ;;  %10956 = vmatpush1.bf16.msra.mxu1 %v13783_v19  ;;  %v13823_v56 = vcombine.low %v204_v35, %v208_v36  ;;  %v13830_v19 = vcombine.high %v211_v57, %v215_v43  ;;  %v248_v35 = vld [vmem:[#allocation7 + $0x3b8] sm:$0xff]  ;;  %v255_v57 = vld [vmem:[#allocation7 + $0x3f0] sm:$0xff] }
 0x395   :  { %10465 = vmatprep.subr.bf16.mxu0 %v13790_v61  ;;  %10957 = vmatprep.subr.bf16.mxu1 %v13792_v54  ;;  %v13832_v61 = vcombine.high %v212_v45, %v216_v47  ;;  %v219_v54 = vld [vmem:[#allocation7 + $0x2d0] sm:$0xff]  ;;  %v252_v43 = vld [vmem:[#allocation7 + $0x3d8] sm:$0xff] }
 0x396   :  { %v13837_v14 = vcombine.low %v219_v54, %v223_v63 }
 0x398   :  { %10466 = vmatpush1.bf16.msra.mxu0 %v13789_v6  ;;  %10958 = vmatpush1.bf16.msra.mxu1 %v13791_v7  ;;  %v13831_v6 = vcombine.low %v212_v45, %v216_v47  ;;  %v13838_v7 = vcombine.high %v219_v54, %v223_v63  ;;  %v256_v45 = vld [vmem:[#allocation7 + $0x3f8] sm:$0xff]  ;;  %v263_v54 = vld [vmem:[#allocation7 + $0x430] sm:$0xff] }
 0x399   :  { %10467 = vmatprep.subr.bf16.mxu0 %v13798_v8  ;;  %10959 = vmatprep.subr.bf16.mxu1 %v13800_v9  ;;  %v13840_v8 = vcombine.high %v220_v3, %v224_v38  ;;  %v227_v9 = vld [vmem:[#allocation7 + $0x310] sm:$0xff]  ;;  %v260_v63 = vld [vmem:[#allocation7 + $0x418] sm:$0xff] }
 0x39a   :  { %v13845_v59 = vcombine.low %v227_v9, %v231_v23 }
 0x39c   :  { %10468 = vmatpush1.bf16.msra.mxu0 %v13797_v17  ;;  %10960 = vmatpush1.bf16.msra.mxu1 %v13799_v58  ;;  %v13839_v17 = vcombine.low %v220_v3, %v224_v38  ;;  %v13846_v58 = vcombine.high %v227_v9, %v231_v23  ;;  %v264_v3 = vld [vmem:[#allocation7 + $0x438] sm:$0xff]  ;;  %v271_v9 = vld [vmem:[#allocation7 + $0x470] sm:$0xff] }
 0x39d   :  { %10469 = vmatprep.subr.bf16.mxu0 %v13806_v18  ;;  %10961 = vmatprep.subr.bf16.mxu1 %v13808_v21  ;;  %v13848_v18 = vcombine.high %v228_v11, %v232_v13  ;;  %v235_v21 = vld [vmem:[#allocation7 + $0x350] sm:$0xff]  ;;  %v268_v23 = vld [vmem:[#allocation7 + $0x458] sm:$0xff] }
 0x39e   :  { %v13853_v36 = vcombine.low %v235_v21, %v239_v22 }
 0x3a0   :  { %10470 = vmatpush1.bf16.msra.mxu0 %v13805_v29  ;;  %10962 = vmatpush1.bf16.msra.mxu1 %v13807_v30  ;;  %v13847_v29 = vcombine.low %v228_v11, %v232_v13  ;;  %v13854_v30 = vcombine.high %v235_v21, %v239_v22  ;;  %v272_v11 = vld [vmem:[#allocation7 + $0x478] sm:$0xff]  ;;  %v279_v21 = vld [vmem:[#allocation7 + $0x4b0] sm:$0xff] }
 0x3a1   :  { %10471 = vmatprep.subr.bf16.mxu0 %v13814_v31  ;;  %10963 = vmatprep.subr.bf16.mxu1 %v13816_v49  ;;  %v13856_v31 = vcombine.high %v236_v26, %v240_v27  ;;  %v243_v49 = vld [vmem:[#allocation7 + $0x390] sm:$0xff]  ;;  %v276_v22 = vld [vmem:[#allocation7 + $0x498] sm:$0xff] }
 0x3a2   :  { %v13861_v47 = vcombine.low %v243_v49, %v247_v33 }
 0x3a4   :  { %10472 = vmatpush1.bf16.msra.mxu0 %v13813_v37  ;;  %10964 = vmatpush1.bf16.msra.mxu1 %v13815_v40  ;;  %v13855_v37 = vcombine.low %v236_v26, %v240_v27  ;;  %v13862_v40 = vcombine.high %v243_v49, %v247_v33  ;;  %v280_v26 = vld [vmem:[#allocation7 + $0x4b8] sm:$0xff]  ;;  %v287_v49 = vld [vmem:[#allocation7 + $0x4f0] sm:$0xff] }
 0x3a5   :  { %10473 = vmatprep.subr.bf16.mxu0 %v13822_v41  ;;  %10965 = vmatprep.subr.bf16.mxu1 %v13824_v42  ;;  %v13864_v41 = vcombine.high %v244_v15, %v248_v35  ;;  %v251_v42 = vld [vmem:[#allocation7 + $0x3d0] sm:$0xff]  ;;  %v284_v33 = vld [vmem:[#allocation7 + $0x4d8] sm:$0xff] }
 0x3a6   :  { %v13869_v38 = vcombine.low %v251_v42, %v255_v57 }
 0x3a8   :  { %10474 = vmatpush1.bf16.msra.mxu0 %v13821_v52  ;;  %10966 = vmatpush1.bf16.msra.mxu1 %v13823_v56  ;;  %v13863_v52 = vcombine.low %v244_v15, %v248_v35  ;;  %v13870_v56 = vcombine.high %v251_v42, %v255_v57  ;;  %v288_v15 = vld [vmem:[#allocation7 + $0x4f8] sm:$0xff] }
 0x3a9   :  { %10475 = vmatprep.subr.bf16.mxu0 %v13830_v19  ;;  %10967 = vmatprep.subr.bf16.mxu1 %v13832_v61  ;;  %v13872_v19 = vcombine.high %v252_v43, %v256_v45  ;;  %v259_v61 = vld [vmem:[#allocation7 + $0x410] sm:$0xff]  ;;  %v292_v42 = vld [vmem:[#allocation7 + $0x518] sm:$0xff] }
 0x3aa   :  { %v13877_v13 = vcombine.low %v259_v61, %v263_v54  ;;  %v296_v57 = vld [vmem:[#allocation7 + $0x538] sm:$0xff] }
 0x3ac   :  { %10476 = vmatpush1.bf16.msra.mxu0 %v13829_v5  ;;  %10968 = vmatpush1.bf16.msra.mxu1 %v13831_v6  ;;  %v13871_v5 = vcombine.low %v252_v43, %v256_v45  ;;  %v13878_v6 = vcombine.high %v259_v61, %v263_v54  ;;  %v13903_v45 = vcombine.low %v284_v33, %v288_v15  ;;  %v304_v61 = vld [vmem:[#allocation7 + $0x578] sm:$0xff] }
 0x3ad   :  { %10477 = vmatprep.subr.bf16.mxu0 %v13838_v7  ;;  %10969 = vmatprep.subr.bf16.mxu1 %v13840_v8  ;;  %v13880_v7 = vcombine.high %v260_v63, %v264_v3  ;;  %v267_v8 = vld [vmem:[#allocation7 + $0x450] sm:$0xff] }
 0x3ae   :  { %v13885_v27 = vcombine.low %v267_v8, %v271_v9 }
 0x3b0   :  { %10478 = vmatpush1.bf16.msra.mxu0 %v13837_v14  ;;  %10970 = vmatpush1.bf16.msra.mxu1 %v13839_v17  ;;  %v13879_v14 = vcombine.low %v260_v63, %v264_v3  ;;  %v13886_v17 = vcombine.high %v267_v8, %v271_v9  ;;  %v13911_v63 = vcombine.low %v292_v42, %v296_v57  ;;  %v312_v8 = vld [vmem:[#allocation7 + $0x5b8] sm:$0xff] }
 0x3b1   :  { %10479 = vmatprep.subr.bf16.mxu0 %v13846_v58  ;;  %10971 = vmatprep.subr.bf16.mxu1 %v13848_v18  ;;  %v13888_v58 = vcombine.high %v268_v23, %v272_v11  ;;  %v275_v18 = vld [vmem:[#allocation7 + $0x490] sm:$0xff] }
 0x3b2   :  { %v13893_v35 = vcombine.low %v275_v18, %v279_v21 }
 0x3b4   :  { %10480 = vmatpush1.bf16.msra.mxu0 %v13845_v59  ;;  %10972 = vmatpush1.bf16.msra.mxu1 %v13847_v29  ;;  %v13887_v59 = vcombine.low %v268_v23, %v272_v11  ;;  %v13894_v29 = vcombine.high %v275_v18, %v279_v21  ;;  %v320_v18 = vld [vmem:[#allocation7 + $0x5f8] sm:$0xff] }
 0x3b5   :  { %10481 = vmatprep.subr.bf16.mxu0 %v13854_v30  ;;  %10973 = vmatprep.subr.bf16.mxu1 %v13856_v31  ;;  %v13896_v30 = vcombine.high %v276_v22, %v280_v26  ;;  %v283_v31 = vld [vmem:[#allocation7 + $0x4d0] sm:$0xff] }
 0x3b6   :  { %v13901_v43 = vcombine.low %v283_v31, %v287_v49 }
 0x3b8   :  { %10482 = vmatpush1.bf16.msra.mxu0 %v13853_v36  ;;  %10974 = vmatpush1.bf16.msra.mxu1 %v13855_v37  ;;  %v13902_v36 = vcombine.high %v283_v31, %v287_v49  ;;  %v13904_v37 = vcombine.high %v284_v33, %v288_v15  ;;  %v328_v31 = vld [vmem:[#allocation7 + $0x638] sm:$0xff] }
 0x3b9   :  { %10483 = vmatprep.subr.bf16.mxu0 %v13862_v40  ;;  %10975 = vmatprep.subr.bf16.mxu1 %v13864_v41  ;;  %v291_v40 = vld [vmem:[#allocation7 + $0x510] sm:$0xff] }
 0x3ba   :  { %v295_v41 = vld [vmem:[#allocation7 + $0x530] sm:$0xff] }
 0x3bb   :  { %v13909_v54 = vcombine.low %v291_v40, %v295_v41 }
 0x3bc   :  { %10484 = vmatpush1.bf16.msra.mxu0 %v13861_v47  ;;  %10976 = vmatpush1.bf16.msra.mxu1 %v13863_v52  ;;  %v13910_v47 = vcombine.high %v291_v40, %v295_v41  ;;  %v299_v52 = vld [vmem:[#allocation7 + $0x550] sm:$0xff]  ;;  %v336_v40 = vld [vmem:[#allocation7 + $0x678] sm:$0xff] }
 0x3bd   :  { %10485 = vmatprep.subr.bf16.mxu0 %v13870_v56  ;;  %10977 = vmatprep.subr.bf16.mxu1 %v13872_v19  ;;  %v303_v56 = vld [vmem:[#allocation7 + $0x570] sm:$0xff]  ;;  %v300_v19 = vld [vmem:[#allocation7 + $0x558] sm:$0xff] }
 0x3be   :  { %v13918_v3 = vcombine.high %v299_v52, %v303_v56  ;;  %v13917_v9 = vcombine.low %v299_v52, %v303_v56  ;;  %v13919_v23 = vcombine.low %v300_v19, %v304_v61  ;;  %v344_v52 = vld [vmem:[#allocation7 + $0x6b8] sm:$0xff] }
 0x3c0   :  { %10486 = vmatpush1.bf16.msra.mxu0 %v13869_v38  ;;  %10978 = vmatpush1.bf16.msra.mxu1 %v13871_v5  ;;  %v13920_v38 = vcombine.high %v300_v19, %v304_v61  ;;  %v307_v5 = vld [vmem:[#allocation7 + $0x590] sm:$0xff] }
 0x3c1   :  { %10496 = vmatprep.subr.bf16.mxu0 %v13878_v6  ;;  %10988 = vmatprep.subr.bf16.mxu1 %v13880_v7  ;;  %v311_v6 = vld [vmem:[#allocation7 + $0x5b0] sm:$0xff]  ;;  %v308_v7 = vld [vmem:[#allocation7 + $0x598] sm:$0xff] }
 0x3c2   :  { %v13926_v11 = vcombine.high %v307_v5, %v311_v6  ;;  %v13925_v21 = vcombine.low %v307_v5, %v311_v6  ;;  %v352_v5 = vld [vmem:[#allocation7 + $0x6f8] sm:$0xff] }
 0x3c3   :  { %10488 = vmatmul.mubr.bf16.vlgmr.msra.gmra.mrb[4].mxu0 %v16624_v12  ;;  %10980 = vmatmul.mubr.bf16.vlgmr.msra.gmra.mrb[4].mxu1 %v16624_v12  ;;  %v13895_v12 = vcombine.low %v276_v22, %v280_v26  ;;  %v13927_v22 = vcombine.low %v308_v7, %v312_v8 }
 0x3c4   :  { %10497 = vmatpush1.bf16.msra.mxu0 %v13877_v13  ;;  %10989 = vmatpush1.bf16.msra.mxu1 %v13879_v14  ;;  %v13928_v13 = vcombine.high %v308_v7, %v312_v8  ;;  %v315_v14 = vld [vmem:[#allocation7 + $0x5d0] sm:$0xff] }
 0x3c5   :  { %10498 = vmatprep.subr.bf16.mxu0 %v13886_v17  ;;  %10990 = vmatprep.subr.bf16.mxu1 %v13888_v58  ;;  %v319_v17 = vld [vmem:[#allocation7 + $0x5f0] sm:$0xff]  ;;  %v316_v58 = vld [vmem:[#allocation7 + $0x5d8] sm:$0xff] }
 0x3c6   :  { %10528 = vmatprep.mubr.bf16.mxu0 %v16630_v53  ;;  %11020 = vmatprep.mubr.bf16.mxu1 %v16630_v53  ;;  %v13912_v53 = vcombine.high %v292_v42, %v296_v57  ;;  %v13934_v26 = vcombine.high %v315_v14, %v319_v17  ;;  %v13933_v49 = vcombine.low %v315_v14, %v319_v17  ;;  %v360_v14 = vld [vmem:[#allocation7 + $0x738] sm:$0xff] }
 0x3c7   :  { %v13935_v33 = vcombine.low %v316_v58, %v320_v18 }
 0x3c8   :  { %10499 = vmatpush1.bf16.msra.mxu0 %v13885_v27  ;;  %10991 = vmatpush1.bf16.msra.mxu1 %v13887_v59  ;;  %v13936_v27 = vcombine.high %v316_v58, %v320_v18  ;;  %v323_v59 = vld [vmem:[#allocation7 + $0x610] sm:$0xff] }
 0x3c9   :  { %10500 = vmatprep.subr.bf16.mxu0 %v13894_v29  ;;  %10992 = vmatprep.subr.bf16.mxu1 %v13896_v30  ;;  %v327_v29 = vld [vmem:[#allocation7 + $0x630] sm:$0xff]  ;;  %v324_v30 = vld [vmem:[#allocation7 + $0x618] sm:$0xff] }
 0x3ca   :  { %v13942_v15 = vcombine.high %v323_v59, %v327_v29  ;;  %v13941_v41 = vcombine.low %v323_v59, %v327_v29  ;;  %v13943_v42 = vcombine.low %v324_v30, %v328_v31  ;;  %v368_v59 = vld [vmem:[#allocation7 + $0x778] sm:$0xff] }
 0x3cc   :  { %10501 = vmatpush1.bf16.msra.mxu0 %v13893_v35  ;;  %10993 = vmatpush1.bf16.msra.mxu1 %v13895_v12  ;;  %v13944_v35 = vcombine.high %v324_v30, %v328_v31  ;;  %v331_v12 = vld [vmem:[#allocation7 + $0x650] sm:$0xff] }
 0x3cd   :  { %10502 = vmatprep.subr.bf16.mxu0 %v13902_v36  ;;  %10994 = vmatprep.subr.bf16.mxu1 %v13904_v37  ;;  %v335_v36 = vld [vmem:[#allocation7 + $0x670] sm:$0xff]  ;;  %v332_v37 = vld [vmem:[#allocation7 + $0x658] sm:$0xff] }
 0x3ce   :  { %v13950_v57 = vcombine.high %v331_v12, %v335_v36  ;;  %v13949_v56 = vcombine.low %v331_v12, %v335_v36  ;;  %v13951_v19 = vcombine.low %v332_v37, %v336_v40  ;;  %v376_v12 = vld [vmem:[#allocation7 + $0x7b8] sm:$0xff] }
 0x3d0   :  { %10503 = vmatpush1.bf16.msra.mxu0 %v13901_v43  ;;  %10995 = vmatpush1.bf16.msra.mxu1 %v13903_v45  ;;  %v13952_v43 = vcombine.high %v332_v37, %v336_v40  ;;  %v339_v45 = vld [vmem:[#allocation7 + $0x690] sm:$0xff] }
 0x3d1   :  { %10504 = vmatprep.subr.bf16.mxu0 %v13910_v47  ;;  %10996 = vmatprep.subr.bf16.mxu1 %v13912_v53  ;;  %v343_v47 = vld [vmem:[#allocation7 + $0x6b0] sm:$0xff]  ;;  %v340_v53 = vld [vmem:[#allocation7 + $0x698] sm:$0xff] }
 0x3d2   :  { %v13958_v61 = vcombine.high %v339_v45, %v343_v47  ;;  %v13957_v6 = vcombine.low %v339_v45, %v343_v47  ;;  %v13959_v7 = vcombine.low %v340_v53, %v344_v52  ;;  %v384_v45 = vld [vmem:[#allocation7 + $0x7f8] sm:$0xff] }
 0x3d4   :  { %10505 = vmatpush1.bf16.msra.mxu0 %v13909_v54  ;;  %10997 = vmatpush1.bf16.msra.mxu1 %v13911_v63  ;;  %v13960_v54 = vcombine.high %v340_v53, %v344_v52  ;;  %v347_v63 = vld [vmem:[#allocation7 + $0x6d0] sm:$0xff] }
 0x3d5   :  { %10506 = vmatprep.subr.bf16.mxu0 %v13918_v3  ;;  %10998 = vmatprep.subr.bf16.mxu1 %v13920_v38  ;;  %v351_v3 = vld [vmem:[#allocation7 + $0x6f0] sm:$0xff]  ;;  %v348_v38 = vld [vmem:[#allocation7 + $0x6d8] sm:$0xff] }
 0x3d6   :  { %v13966_v8 = vcombine.high %v347_v63, %v351_v3  ;;  %v13965_v17 = vcombine.low %v347_v63, %v351_v3  ;;  %v13967_v58 = vcombine.low %v348_v38, %v352_v5  ;;  %v392_v63 = vld [vmem:[#allocation7 + $0x838] sm:$0xff] }
 0x3d8   :  { %10507 = vmatpush1.bf16.msra.mxu0 %v13917_v9  ;;  %10999 = vmatpush1.bf16.msra.mxu1 %v13919_v23  ;;  %v13968_v9 = vcombine.high %v348_v38, %v352_v5  ;;  %v355_v23 = vld [vmem:[#allocation7 + $0x710] sm:$0xff] }
 0x3d9   :  { %10508 = vmatprep.subr.bf16.mxu0 %v13926_v11  ;;  %11000 = vmatprep.subr.bf16.mxu1 %v13928_v13  ;;  %v359_v11 = vld [vmem:[#allocation7 + $0x730] sm:$0xff]  ;;  %v356_v13 = vld [vmem:[#allocation7 + $0x718] sm:$0xff] }
 0x3da   :  { %v13974_v18 = vcombine.high %v355_v23, %v359_v11  ;;  %v13973_v29 = vcombine.low %v355_v23, %v359_v11  ;;  %v13975_v30 = vcombine.low %v356_v13, %v360_v14  ;;  %v400_v23 = vld [vmem:[#allocation7 + $0x878] sm:$0xff] }
 0x3dc   :  { %10509 = vmatpush1.bf16.msra.mxu0 %v13925_v21  ;;  %11001 = vmatpush1.bf16.msra.mxu1 %v13927_v22  ;;  %v13976_v21 = vcombine.high %v356_v13, %v360_v14  ;;  %v363_v22 = vld [vmem:[#allocation7 + $0x750] sm:$0xff] }
 0x3dd   :  { %10510 = vmatprep.subr.bf16.mxu0 %v13934_v26  ;;  %11002 = vmatprep.subr.bf16.mxu1 %v13936_v27  ;;  %v367_v26 = vld [vmem:[#allocation7 + $0x770] sm:$0xff]  ;;  %v364_v27 = vld [vmem:[#allocation7 + $0x758] sm:$0xff] }
 0x3de   :  { %v13982_v31 = vcombine.high %v363_v22, %v367_v26  ;;  %v13981_v36 = vcombine.low %v363_v22, %v367_v26  ;;  %v13983_v37 = vcombine.low %v364_v27, %v368_v59  ;;  %v408_v22 = vld [vmem:[#allocation7 + $0x8b8] sm:$0xff] }
 0x3e0   :  { %10511 = vmatpush1.bf16.msra.mxu0 %v13933_v49  ;;  %11003 = vmatpush1.bf16.msra.mxu1 %v13935_v33  ;;  %v13984_v49 = vcombine.high %v364_v27, %v368_v59  ;;  %v371_v33 = vld [vmem:[#allocation7 + $0x790] sm:$0xff] }
 0x3e1   :  { %10512 = vmatprep.subr.bf16.mxu0 %v13942_v15  ;;  %11004 = vmatprep.subr.bf16.mxu1 %v13944_v35  ;;  %v375_v15 = vld [vmem:[#allocation7 + $0x7b0] sm:$0xff]  ;;  %v372_v35 = vld [vmem:[#allocation7 + $0x798] sm:$0xff] }
 0x3e2   :  { %v13990_v40 = vcombine.high %v371_v33, %v375_v15  ;;  %v13989_v47 = vcombine.low %v371_v33, %v375_v15  ;;  %v13991_v53 = vcombine.low %v372_v35, %v376_v12  ;;  %v416_v33 = vld [vmem:[#allocation7 + $0x8f8] sm:$0xff] }
 0x3e4   :  { %10513 = vmatpush1.bf16.msra.mxu0 %v13941_v41  ;;  %11005 = vmatpush1.bf16.msra.mxu1 %v13943_v42  ;;  %v13992_v41 = vcombine.high %v372_v35, %v376_v12  ;;  %v379_v42 = vld [vmem:[#allocation7 + $0x7d0] sm:$0xff] }
 0x3e5   :  { %10514 = vmatprep.subr.bf16.mxu0 %v13950_v57  ;;  %11006 = vmatprep.subr.bf16.mxu1 %v13952_v43  ;;  %v383_v57 = vld [vmem:[#allocation7 + $0x7f0] sm:$0xff]  ;;  %v380_v43 = vld [vmem:[#allocation7 + $0x7d8] sm:$0xff] }
 0x3e6   :  { %v13998_v52 = vcombine.high %v379_v42, %v383_v57  ;;  %v13997_v3 = vcombine.low %v379_v42, %v383_v57  ;;  %v13999_v38 = vcombine.low %v380_v43, %v384_v45 }
 0x3e8   :  { %10515 = vmatpush1.bf16.msra.mxu0 %v13949_v56  ;;  %11007 = vmatpush1.bf16.msra.mxu1 %v13951_v19  ;;  %v14000_v56 = vcombine.high %v380_v43, %v384_v45  ;;  %v387_v19 = vld [vmem:[#allocation7 + $0x810] sm:$0xff] }
 0x3e9   :  { %10516 = vmatprep.subr.bf16.mxu0 %v13958_v61  ;;  %11008 = vmatprep.subr.bf16.mxu1 %v13960_v54  ;;  %v391_v61 = vld [vmem:[#allocation7 + $0x830] sm:$0xff]  ;;  %v388_v54 = vld [vmem:[#allocation7 + $0x818] sm:$0xff] }
 0x3ea   :  { %v14006_v5 = vcombine.high %v387_v19, %v391_v61  ;;  %v14005_v11 = vcombine.low %v387_v19, %v391_v61  ;;  %v14007_v13 = vcombine.low %v388_v54, %v392_v63  ;;  %v427_v45 = vld [vmem:[#allocation7 + $0x950] sm:$0xff] }
 0x3ec   :  { %10517 = vmatpush1.bf16.msra.mxu0 %v13957_v6  ;;  %11009 = vmatpush1.bf16.msra.mxu1 %v13959_v7  ;;  %v14008_v6 = vcombine.high %v388_v54, %v392_v63  ;;  %v395_v7 = vld [vmem:[#allocation7 + $0x850] sm:$0xff] }
 0x3ed   :  { %10518 = vmatprep.subr.bf16.mxu0 %v13966_v8  ;;  %11010 = vmatprep.subr.bf16.mxu1 %v13968_v9  ;;  %v399_v8 = vld [vmem:[#allocation7 + $0x870] sm:$0xff]  ;;  %v396_v9 = vld [vmem:[#allocation7 + $0x858] sm:$0xff] }
 0x3ee   :  { %v14014_v14 = vcombine.high %v395_v7, %v399_v8  ;;  %v14013_v26 = vcombine.low %v395_v7, %v399_v8  ;;  %v14015_v27 = vcombine.low %v396_v9, %v400_v23  ;;  %v435_v63 = vld [vmem:[#allocation7 + $0x990] sm:$0xff] }
 0x3f0   :  { %10519 = vmatpush1.bf16.msra.mxu0 %v13965_v17  ;;  %11011 = vmatpush1.bf16.msra.mxu1 %v13967_v58  ;;  %v14016_v17 = vcombine.high %v396_v9, %v400_v23  ;;  %v403_v58 = vld [vmem:[#allocation7 + $0x890] sm:$0xff] }
 0x3f1   :  { %10520 = vmatprep.subr.bf16.mxu0 %v13974_v18  ;;  %11012 = vmatprep.subr.bf16.mxu1 %v13976_v21  ;;  %v407_v18 = vld [vmem:[#allocation7 + $0x8b0] sm:$0xff]  ;;  %v404_v21 = vld [vmem:[#allocation7 + $0x898] sm:$0xff] }
 0x3f2   :  { %v14022_v59 = vcombine.high %v403_v58, %v407_v18  ;;  %v14021_v15 = vcombine.low %v403_v58, %v407_v18  ;;  %v443_v23 = vld [vmem:[#allocation7 + $0x9d0] sm:$0xff] }
 0x3f4   :  { %10521 = vmatpush1.bf16.msra.mxu0 %v13973_v29  ;;  %11013 = vmatpush1.bf16.msra.mxu1 %v13975_v30  ;;  %v14024_v29 = vcombine.high %v404_v21, %v408_v22  ;;  %v411_v30 = vld [vmem:[#allocation7 + $0x8d0] sm:$0xff] }
 0x3f5   :  { %10522 = vmatprep.subr.bf16.mxu0 %v13982_v31  ;;  %11014 = vmatprep.subr.bf16.mxu1 %v13984_v49  ;;  %v415_v31 = vld [vmem:[#allocation7 + $0x8f0] sm:$0xff]  ;;  %v412_v49 = vld [vmem:[#allocation7 + $0x8d8] sm:$0xff] }
 0x3f6   :  { %v14030_v35 = vcombine.high %v411_v30, %v415_v31  ;;  %v14032_v12 = vcombine.high %v412_v49, %v416_v33  ;;  %v14029_v42 = vcombine.low %v411_v30, %v415_v31  ;;  %v14031_v57 = vcombine.low %v412_v49, %v416_v33  ;;  %v459_v33 = vld [vmem:[#allocation7 + $0xa50] sm:$0xff] }
 0x3f8   :  { %10523 = vmatpush1.bf16.msra.mxu0 %v13981_v36  ;;  %11015 = vmatpush1.bf16.msra.mxu1 %v13983_v37  ;;  %v419_v36 = vld [vmem:[#allocation7 + $0x910] sm:$0xff] }
 0x3f9   :  { %10524 = vmatprep.subr.bf16.mxu0 %v13990_v40  ;;  %11016 = vmatprep.subr.bf16.mxu1 %v13992_v41  ;;  %v423_v37 = vld [vmem:[#allocation7 + $0x930] sm:$0xff]  ;;  %v420_v40 = vld [vmem:[#allocation7 + $0x918] sm:$0xff] }
 0x3fa   :  { %v424_v41 = vld [vmem:[#allocation7 + $0x938] sm:$0xff]  ;;  %v14038_v43 = vcombine.high %v419_v36, %v423_v37 }
 0x3fb   :  { %v14039_v19 = vcombine.low %v420_v40, %v424_v41 }
 0x3fc   :  { %10525 = vmatpush1.bf16.msra.mxu0 %v13989_v47  ;;  %11017 = vmatpush1.bf16.msra.mxu1 %v13991_v53  ;;  %v431_v47 = vld [vmem:[#allocation7 + $0x970] sm:$0xff]  ;;  %v428_v53 = vld [vmem:[#allocation7 + $0x958] sm:$0xff] }
 0x3fd   :  { %10526 = vmatprep.subr.bf16.mxu0 %v13998_v52  ;;  %11018 = vmatprep.subr.bf16.mxu1 %v14000_v56  ;;  %v432_v52 = vld [vmem:[#allocation7 + $0x978] sm:$0xff]  ;;  %v14037_v56 = vcombine.low %v419_v36, %v423_v37  ;;  %v14046_v61 = vcombine.high %v427_v45, %v431_v47 }
 0x3fe   :  { %v14048_v54 = vcombine.high %v428_v53, %v432_v52  ;;  %v14047_v7 = vcombine.low %v428_v53, %v432_v52  ;;  %v475_v52 = vld [vmem:[#allocation7 + $0xad0] sm:$0xff] }
 0x400   :  { %10527 = vmatpush1.bf16.msra.mxu0 %v13997_v3  ;;  %11019 = vmatpush1.bf16.msra.mxu1 %v13999_v38  ;;  %v439_v3 = vld [vmem:[#allocation7 + $0x9b0] sm:$0xff]  ;;  %v436_v38 = vld [vmem:[#allocation7 + $0x998] sm:$0xff] }
 0x401   :  { %10537 = vmatprep.subr.bf16.mxu0 %v14006_v5  ;;  %11029 = vmatprep.subr.bf16.mxu1 %v14008_v6  ;;  %v440_v5 = vld [vmem:[#allocation7 + $0x9b8] sm:$0xff]  ;;  %v14045_v6 = vcombine.low %v427_v45, %v431_v47  ;;  %v14054_v8 = vcombine.high %v435_v63, %v439_v3 }
 0x402   :  { %v14056_v9 = vcombine.high %v436_v38, %v440_v5  ;;  %v14055_v58 = vcombine.low %v436_v38, %v440_v5  ;;  %v483_v5 = vld [vmem:[#allocation7 + $0xb10] sm:$0xff] }
 0x403   :  { %10529 = vmatmul.mubr.bf16.vlgmr.msra.gmra.mrb[4].mxu0 %v16640_v25  ;;  %11021 = vmatmul.mubr.bf16.vlgmr.msra.gmra.mrb[4].mxu1 %v16640_v25  ;;  %v14023_v25 = vcombine.low %v404_v21, %v408_v22  ;;  %v451_v22 = vld [vmem:[#allocation7 + $0xa10] sm:$0xff] }
 0x404   :  { %10538 = vmatpush1.bf16.msra.mxu0 %v14005_v11  ;;  %11030 = vmatpush1.bf16.msra.mxu1 %v14007_v13  ;;  %v447_v11 = vld [vmem:[#allocation7 + $0x9f0] sm:$0xff]  ;;  %v444_v13 = vld [vmem:[#allocation7 + $0x9d8] sm:$0xff] }
 0x405   :  { %10539 = vmatprep.subr.bf16.mxu0 %v14014_v14  ;;  %11031 = vmatprep.subr.bf16.mxu1 %v14016_v17  ;;  %v448_v14 = vld [vmem:[#allocation7 + $0x9f8] sm:$0xff]  ;;  %v14053_v17 = vcombine.low %v435_v63, %v439_v3  ;;  %v14062_v18 = vcombine.high %v443_v23, %v447_v11 }
 0x406   :  { %10569 = vmatprep.mubr.bf16.mxu0 %v16644_v34  ;;  %11061 = vmatprep.mubr.bf16.mxu1 %v16644_v34  ;;  %v14040_v34 = vcombine.high %v420_v40, %v424_v41  ;;  %v14064_v21 = vcombine.high %v444_v13, %v448_v14  ;;  %v14063_v30 = vcombine.low %v444_v13, %v448_v14  ;;  %v467_v41 = vld [vmem:[#allocation7 + $0xa90] sm:$0xff] }
 0x407   :  { %v491_v14 = vld [vmem:[#allocation7 + $0xb50] sm:$0xff] }
 0x408   :  { %10540 = vmatpush1.bf16.msra.mxu0 %v14013_v26  ;;  %11032 = vmatpush1.bf16.msra.mxu1 %v14015_v27  ;;  %v455_v26 = vld [vmem:[#allocation7 + $0xa30] sm:$0xff]  ;;  %v452_v27 = vld [vmem:[#allocation7 + $0xa18] sm:$0xff] }
 0x409   :  { %10541 = vmatprep.subr.bf16.mxu0 %v14022_v59  ;;  %11033 = vmatprep.subr.bf16.mxu1 %v14024_v29  ;;  %v456_v59 = vld [vmem:[#allocation7 + $0xa38] sm:$0xff]  ;;  %v14061_v29 = vcombine.low %v443_v23, %v447_v11  ;;  %v14070_v31 = vcombine.high %v451_v22, %v455_v26 }
 0x40a   :  { %v14072_v49 = vcombine.high %v452_v27, %v456_v59  ;;  %v14071_v36 = vcombine.low %v452_v27, %v456_v59  ;;  %v499_v59 = vld [vmem:[#allocation7 + $0xb90] sm:$0xff] }
 0x40c   :  { %10542 = vmatpush1.bf16.msra.mxu0 %v14021_v15  ;;  %11034 = vmatpush1.bf16.msra.mxu1 %v14023_v25  ;;  %v463_v15 = vld [vmem:[#allocation7 + $0xa70] sm:$0xff]  ;;  %v460_v25 = vld [vmem:[#allocation7 + $0xa58] sm:$0xff] }
 0x40d   :  { %10543 = vmatprep.subr.bf16.mxu0 %v14030_v35  ;;  %11035 = vmatprep.subr.bf16.mxu1 %v14032_v12  ;;  %v464_v35 = vld [vmem:[#allocation7 + $0xa78] sm:$0xff]  ;;  %v14069_v12 = vcombine.low %v451_v22, %v455_v26  ;;  %v14078_v37 = vcombine.high %v459_v33, %v463_v15 }
 0x40e   :  { %v14080_v40 = vcombine.high %v460_v25, %v464_v35  ;;  %v14079_v45 = vcombine.low %v460_v25, %v464_v35  ;;  %v507_v35 = vld [vmem:[#allocation7 + $0xbd0] sm:$0xff] }
 0x410   :  { %10544 = vmatpush1.bf16.msra.mxu0 %v14029_v42  ;;  %11036 = vmatpush1.bf16.msra.mxu1 %v14031_v57  ;;  %v471_v42 = vld [vmem:[#allocation7 + $0xab0] sm:$0xff]  ;;  %v468_v57 = vld [vmem:[#allocation7 + $0xa98] sm:$0xff] }
 0x411   :  { %10545 = vmatprep.subr.bf16.mxu0 %v14038_v43  ;;  %11037 = vmatprep.subr.bf16.mxu1 %v14040_v34  ;;  %v472_v43 = vld [vmem:[#allocation7 + $0xab8] sm:$0xff]  ;;  %v14077_v34 = vcombine.low %v459_v33, %v463_v15  ;;  %v14086_v47 = vcombine.high %v467_v41, %v471_v42 }
 0x412   :  { %v14088_v53 = vcombine.high %v468_v57, %v472_v43  ;;  %v14087_v63 = vcombine.low %v468_v57, %v472_v43  ;;  %v515_v43 = vld [vmem:[#allocation7 + $0xc10] sm:$0xff] }
 0x414   :  { %10546 = vmatpush1.bf16.msra.mxu0 %v14037_v56  ;;  %11038 = vmatpush1.bf16.msra.mxu1 %v14039_v19  ;;  %v479_v56 = vld [vmem:[#allocation7 + $0xaf0] sm:$0xff]  ;;  %v476_v19 = vld [vmem:[#allocation7 + $0xad8] sm:$0xff] }
 0x415   :  { %10547 = vmatprep.subr.bf16.mxu0 %v14046_v61  ;;  %11039 = vmatprep.subr.bf16.mxu1 %v14048_v54  ;;  %v480_v61 = vld [vmem:[#allocation7 + $0xaf8] sm:$0xff]  ;;  %v14085_v54 = vcombine.low %v467_v41, %v471_v42  ;;  %v14094_v3 = vcombine.high %v475_v52, %v479_v56 }
 0x416   :  { %v14096_v38 = vcombine.high %v476_v19, %v480_v61  ;;  %v14095_v23 = vcombine.low %v476_v19, %v480_v61  ;;  %v523_v61 = vld [vmem:[#allocation7 + $0xc50] sm:$0xff] }
 0x418   :  { %10548 = vmatpush1.bf16.msra.mxu0 %v14045_v6  ;;  %11040 = vmatpush1.bf16.msra.mxu1 %v14047_v7  ;;  %v487_v6 = vld [vmem:[#allocation7 + $0xb30] sm:$0xff]  ;;  %v484_v7 = vld [vmem:[#allocation7 + $0xb18] sm:$0xff] }
 0x419   :  { %10549 = vmatprep.subr.bf16.mxu0 %v14054_v8  ;;  %11041 = vmatprep.subr.bf16.mxu1 %v14056_v9  ;;  %v488_v8 = vld [vmem:[#allocation7 + $0xb38] sm:$0xff]  ;;  %v14093_v9 = vcombine.low %v475_v52, %v479_v56  ;;  %v14102_v11 = vcombine.high %v483_v5, %v487_v6 }
 0x41a   :  { %v14104_v13 = vcombine.high %v484_v7, %v488_v8  ;;  %v14103_v22 = vcombine.low %v484_v7, %v488_v8  ;;  %v531_v8 = vld [vmem:[#allocation7 + $0xc90] sm:$0xff] }
 0x41c   :  { %10550 = vmatpush1.bf16.msra.mxu0 %v14053_v17  ;;  %11042 = vmatpush1.bf16.msra.mxu1 %v14055_v58  ;;  %v495_v17 = vld [vmem:[#allocation7 + $0xb70] sm:$0xff]  ;;  %v492_v58 = vld [vmem:[#allocation7 + $0xb58] sm:$0xff] }
 0x41d   :  { %10551 = vmatprep.subr.bf16.mxu0 %v14062_v18  ;;  %11043 = vmatprep.subr.bf16.mxu1 %v14064_v21  ;;  %v496_v18 = vld [vmem:[#allocation7 + $0xb78] sm:$0xff]  ;;  %v14101_v21 = vcombine.low %v483_v5, %v487_v6  ;;  %v14110_v26 = vcombine.high %v491_v14, %v495_v17 }
 0x41e   :  { %v14112_v27 = vcombine.high %v492_v58, %v496_v18  ;;  %v14111_v33 = vcombine.low %v492_v58, %v496_v18  ;;  %v539_v18 = vld [vmem:[#allocation7 + $0xcd0] sm:$0xff] }
 0x420   :  { %10552 = vmatpush1.bf16.msra.mxu0 %v14061_v29  ;;  %11044 = vmatpush1.bf16.msra.mxu1 %v14063_v30  ;;  %v503_v29 = vld [vmem:[#allocation7 + $0xbb0] sm:$0xff]  ;;  %v500_v30 = vld [vmem:[#allocation7 + $0xb98] sm:$0xff] }
 0x421   :  { %10553 = vmatprep.subr.bf16.mxu0 %v14070_v31  ;;  %11045 = vmatprep.subr.bf16.mxu1 %v14072_v49  ;;  %v504_v31 = vld [vmem:[#allocation7 + $0xbb8] sm:$0xff]  ;;  %v14109_v49 = vcombine.low %v491_v14, %v495_v17  ;;  %v14118_v15 = vcombine.high %v499_v59, %v503_v29 }
 0x422   :  { %v14120_v25 = vcombine.high %v500_v30, %v504_v31  ;;  %v14119_v41 = vcombine.low %v500_v30, %v504_v31  ;;  %v547_v30 = vld [vmem:[#allocation7 + $0xd10] sm:$0xff] }
 0x423   :  { %v551_v31 = vld [vmem:[#allocation7 + $0xd30] sm:$0xff] }
 0x424   :  { %10554 = vmatpush1.bf16.msra.mxu0 %v14069_v12  ;;  %11046 = vmatpush1.bf16.msra.mxu1 %v14071_v36  ;;  %v511_v12 = vld [vmem:[#allocation7 + $0xbf0] sm:$0xff]  ;;  %v508_v36 = vld [vmem:[#allocation7 + $0xbd8] sm:$0xff] }
 0x425   :  { %10555 = vmatprep.subr.bf16.mxu0 %v14078_v37  ;;  %11047 = vmatprep.subr.bf16.mxu1 %v14080_v40  ;;  %v512_v37 = vld [vmem:[#allocation7 + $0xbf8] sm:$0xff]  ;;  %v14117_v40 = vcombine.low %v499_v59, %v503_v29  ;;  %v14126_v42 = vcombine.high %v507_v35, %v511_v12 }
 0x426   :  { %v14128_v57 = vcombine.high %v508_v36, %v512_v37  ;;  %v14127_v52 = vcombine.low %v508_v36, %v512_v37  ;;  %v559_v36 = vld [vmem:[#allocation7 + $0xd70] sm:$0xff]  ;;  %v556_v37 = vld [vmem:[#allocation7 + $0xd58] sm:$0xff] }
 0x428   :  { %10556 = vmatpush1.bf16.msra.mxu0 %v14077_v34  ;;  %11048 = vmatpush1.bf16.msra.mxu1 %v14079_v45  ;;  %v519_v34 = vld [vmem:[#allocation7 + $0xc30] sm:$0xff]  ;;  %v516_v45 = vld [vmem:[#allocation7 + $0xc18] sm:$0xff] }
 0x429   :  { %10557 = vmatprep.subr.bf16.mxu0 %v14086_v47  ;;  %11049 = vmatprep.subr.bf16.mxu1 %v14088_v53  ;;  %v520_v47 = vld [vmem:[#allocation7 + $0xc38] sm:$0xff]  ;;  %v14125_v53 = vcombine.low %v507_v35, %v511_v12  ;;  %v14134_v56 = vcombine.high %v515_v43, %v519_v34  ;;  %v14166_v35 = vcombine.high %v547_v30, %v551_v31  ;;  %v555_v12 = vld [vmem:[#allocation7 + $0xd50] sm:$0xff] }
 0x42a   :  { %v14136_v19 = vcombine.high %v516_v45, %v520_v47  ;;  %v14135_v5 = vcombine.low %v516_v45, %v520_v47  ;;  %v567_v45 = vld [vmem:[#allocation7 + $0xdb0] sm:$0xff]  ;;  %v564_v47 = vld [vmem:[#allocation7 + $0xd98] sm:$0xff] }
 0x42c   :  { %10558 = vmatpush1.bf16.msra.mxu0 %v14085_v54  ;;  %11050 = vmatpush1.bf16.msra.mxu1 %v14087_v63  ;;  %v527_v54 = vld [vmem:[#allocation7 + $0xc70] sm:$0xff]  ;;  %v524_v63 = vld [vmem:[#allocation7 + $0xc58] sm:$0xff] }
 0x42d   :  { %10559 = vmatprep.subr.bf16.mxu0 %v14094_v3  ;;  %11051 = vmatprep.subr.bf16.mxu1 %v14096_v38  ;;  %v528_v3 = vld [vmem:[#allocation7 + $0xc78] sm:$0xff]  ;;  %v14133_v38 = vcombine.low %v515_v43, %v519_v34  ;;  %v14142_v6 = vcombine.high %v523_v61, %v527_v54  ;;  %v563_v34 = vld [vmem:[#allocation7 + $0xd90] sm:$0xff] }
 0x42e   :  { %v14144_v7 = vcombine.high %v524_v63, %v528_v3  ;;  %v14143_v14 = vcombine.low %v524_v63, %v528_v3  ;;  %v571_v63 = vld [vmem:[#allocation7 + $0xdd0] sm:$0xff] }
 0x42f   :  { %v575_v3 = vld [vmem:[#allocation7 + $0xdf0] sm:$0xff] }
 0x430   :  { %10560 = vmatpush1.bf16.msra.mxu0 %v14093_v9  ;;  %11052 = vmatpush1.bf16.msra.mxu1 %v14095_v23  ;;  %v535_v9 = vld [vmem:[#allocation7 + $0xcb0] sm:$0xff]  ;;  %v532_v23 = vld [vmem:[#allocation7 + $0xc98] sm:$0xff] }
 0x431   :  { %10561 = vmatprep.subr.bf16.mxu0 %v14102_v11  ;;  %11053 = vmatprep.subr.bf16.mxu1 %v14104_v13  ;;  %v536_v11 = vld [vmem:[#allocation7 + $0xcb8] sm:$0xff]  ;;  %v14141_v13 = vcombine.low %v523_v61, %v527_v54  ;;  %v14150_v17 = vcombine.high %v531_v8, %v535_v9 }
 0x432   :  { %v14152_v58 = vcombine.high %v532_v23, %v536_v11 }
 0x434   :  { %10562 = vmatpush1.bf16.msra.mxu0 %v14101_v21  ;;  %11054 = vmatpush1.bf16.msra.mxu1 %v14103_v22  ;;  %v543_v21 = vld [vmem:[#allocation7 + $0xcf0] sm:$0xff]  ;;  %v540_v22 = vld [vmem:[#allocation7 + $0xcd8] sm:$0xff] }
 0x435   :  { %10563 = vmatprep.subr.bf16.mxu0 %v14110_v26  ;;  %11055 = vmatprep.subr.bf16.mxu1 %v14112_v27  ;;  %v544_v26 = vld [vmem:[#allocation7 + $0xcf8] sm:$0xff]  ;;  %v14149_v27 = vcombine.low %v531_v8, %v535_v9  ;;  %v14158_v59 = vcombine.high %v539_v18, %v543_v21 }
 0x436   :  { %v14160_v29 = vcombine.high %v540_v22, %v544_v26 }
 0x438   :  { %10564 = vmatpush1.bf16.msra.mxu0 %v14109_v49  ;;  %11056 = vmatpush1.bf16.msra.mxu1 %v14111_v33  ;;  %v548_v49 = vld [vmem:[#allocation7 + $0xd18] sm:$0xff] }
 0x439   :  { %10565 = vmatprep.subr.bf16.mxu0 %v14118_v15  ;;  %11057 = vmatprep.subr.bf16.mxu1 %v14120_v25  ;;  %v552_v33 = vld [vmem:[#allocation7 + $0xd38] sm:$0xff]  ;;  %v14157_v15 = vcombine.low %v539_v18, %v543_v21  ;;  %v14159_v25 = vcombine.low %v540_v22, %v544_v26  ;;  %v579_v21 = vld [vmem:[#allocation7 + $0xe10] sm:$0xff] }
 0x43a   :  { %v583_v22 = vld [vmem:[#allocation7 + $0xe30] sm:$0xff]  ;;  %v580_v26 = vld [vmem:[#allocation7 + $0xe18] sm:$0xff] }
 0x43c   :  { %10566 = vmatpush1.bf16.msra.mxu0 %v14117_v40  ;;  %11058 = vmatpush1.bf16.msra.mxu1 %v14119_v41  ;;  %v560_v40 = vld [vmem:[#allocation7 + $0xd78] sm:$0xff]  ;;  %v14165_v41 = vcombine.low %v547_v30, %v551_v31  ;;  %v587_v31 = vld [vmem:[#allocation7 + $0xe50] sm:$0xff] }
 0x43d   :  { %10567 = vmatprep.subr.bf16.mxu0 %v14126_v42  ;;  %11059 = vmatprep.subr.bf16.mxu1 %v14128_v57  ;;  %v14167_v42 = vcombine.low %v548_v49, %v552_v33  ;;  %v14174_v57 = vcombine.high %v555_v12, %v559_v36  ;;  %v14176_v43 = vcombine.high %v556_v37, %v560_v40 }
 0x440   :  { %10568 = vmatpush1.bf16.msra.mxu0 %v14125_v53  ;;  %11060 = vmatpush1.bf16.msra.mxu1 %v14127_v52  ;;  %v568_v53 = vld [vmem:[#allocation7 + $0xdb8] sm:$0xff]  ;;  %v14173_v52 = vcombine.low %v555_v12, %v559_v36  ;;  %v595_v36 = vld [vmem:[#allocation7 + $0xe90] sm:$0xff] }
 0x441   :  { %10578 = vmatprep.subr.bf16.mxu0 %v14134_v56  ;;  %11070 = vmatprep.subr.bf16.mxu1 %v14136_v19  ;;  %v14175_v56 = vcombine.low %v556_v37, %v560_v40  ;;  %v14182_v19 = vcombine.high %v563_v34, %v567_v45  ;;  %v14184_v54 = vcombine.high %v564_v47, %v568_v53  ;;  %v599_v37 = vld [vmem:[#allocation7 + $0xeb0] sm:$0xff]  ;;  %v596_v40 = vld [vmem:[#allocation7 + $0xe98] sm:$0xff] }
 0x443   :  { %10570 = vmatmul.mubr.bf16.vlgmr.msra.gmra.mrb[4].mxu0 %v16654_v39  ;;  %11062 = vmatmul.mubr.bf16.vlgmr.msra.gmra.mrb[4].mxu1 %v16654_v39  ;;  %v14151_v39 = vcombine.low %v532_v23, %v536_v11  ;;  %v14181_v23 = vcombine.low %v563_v34, %v567_v45  ;;  %v603_v45 = vld [vmem:[#allocation7 + $0xed0] sm:$0xff] }
 0x444   :  { %10579 = vmatpush1.bf16.msra.mxu0 %v14133_v38  ;;  %11071 = vmatpush1.bf16.msra.mxu1 %v14135_v5 }
 0x445   :  { %10580 = vmatprep.subr.bf16.mxu0 %v14142_v6  ;;  %11072 = vmatprep.subr.bf16.mxu1 %v14144_v7  ;;  %v572_v6 = vld [vmem:[#allocation7 + $0xdd8] sm:$0xff] }
 0x446   :  { %10610 = vmatprep.mubr.bf16.mxu0 %v16658_v48  ;;  %11102 = vmatprep.mubr.bf16.mxu1 %v16658_v48  ;;  %v14168_v48 = vcombine.high %v548_v49, %v552_v33  ;;  %v576_v7 = vld [vmem:[#allocation7 + $0xdf8] sm:$0xff]  ;;  %v591_v49 = vld [vmem:[#allocation7 + $0xe70] sm:$0xff] }
 0x447   :  { %v14192_v18 = vcombine.high %v572_v6, %v576_v7  ;;  %v588_v33 = vld [vmem:[#allocation7 + $0xe58] sm:$0xff] }
 0x448   :  { %10581 = vmatpush1.bf16.msra.mxu0 %v14141_v13  ;;  %11073 = vmatpush1.bf16.msra.mxu1 %v14143_v14  ;;  %v14183_v14 = vcombine.low %v564_v47, %v568_v53  ;;  %v607_v47 = vld [vmem:[#allocation7 + $0xef0] sm:$0xff]  ;;  %v604_v53 = vld [vmem:[#allocation7 + $0xed8] sm:$0xff] }
 0x449   :  { %10582 = vmatprep.subr.bf16.mxu0 %v14150_v17  ;;  %11074 = vmatprep.subr.bf16.mxu1 %v14152_v58  ;;  %v14190_v17 = vcombine.high %v571_v63, %v575_v3 }
 0x44c   :  { %10583 = vmatpush1.bf16.msra.mxu0 %v14149_v27  ;;  %11075 = vmatpush1.bf16.msra.mxu1 %v14151_v39  ;;  %v584_v27 = vld [vmem:[#allocation7 + $0xe38] sm:$0xff]  ;;  %v14189_v39 = vcombine.low %v571_v63, %v575_v3  ;;  %v611_v3 = vld [vmem:[#allocation7 + $0xf10] sm:$0xff] }
 0x44d   :  { %10584 = vmatprep.subr.bf16.mxu0 %v14158_v59  ;;  %11076 = vmatprep.subr.bf16.mxu1 %v14160_v29  ;;  %v14191_v59 = vcombine.low %v572_v6, %v576_v7  ;;  %v14198_v29 = vcombine.high %v579_v21, %v583_v22  ;;  %v14200_v30 = vcombine.high %v580_v26, %v584_v27  ;;  %v615_v6 = vld [vmem:[#allocation7 + $0xf30] sm:$0xff]  ;;  %v612_v7 = vld [vmem:[#allocation7 + $0xf18] sm:$0xff] }
 0x450   :  { %10585 = vmatpush1.bf16.msra.mxu0 %v14157_v15  ;;  %11077 = vmatpush1.bf16.msra.mxu1 %v14159_v25  ;;  %v592_v15 = vld [vmem:[#allocation7 + $0xe78] sm:$0xff]  ;;  %v14197_v25 = vcombine.low %v579_v21, %v583_v22  ;;  %v14229_v22 = vcombine.low %v611_v3, %v615_v6 }
 0x451   :  { %10586 = vmatprep.subr.bf16.mxu0 %v14166_v35  ;;  %11078 = vmatprep.subr.bf16.mxu1 %v14168_v48  ;;  %v14199_v35 = vcombine.low %v580_v26, %v584_v27  ;;  %v14206_v48 = vcombine.high %v587_v31, %v591_v49  ;;  %v14208_v12 = vcombine.high %v588_v33, %v592_v15  ;;  %v624_v21 = vld [vmem:[#allocation7 + $0xf78] sm:$0xff] }
 0x454   :  { %10587 = vmatpush1.bf16.msra.mxu0 %v14165_v41  ;;  %11079 = vmatpush1.bf16.msra.mxu1 %v14167_v42  ;;  %v600_v41 = vld [vmem:[#allocation7 + $0xeb8] sm:$0xff]  ;;  %v14205_v42 = vcombine.low %v587_v31, %v591_v49 }
 0x455   :  { %10588 = vmatprep.subr.bf16.mxu0 %v14174_v57  ;;  %11080 = vmatprep.subr.bf16.mxu1 %v14176_v43  ;;  %v14207_v57 = vcombine.low %v588_v33, %v592_v15  ;;  %v14214_v43 = vcombine.high %v595_v36, %v599_v37  ;;  %v14216_v34 = vcombine.high %v596_v40, %v600_v41  ;;  %v632_v31 = vld [vmem:[#allocation7 + $0xfb8] sm:$0xff] }
 0x456   :  { %v16796_v61 = vpop.f32.mrb[0].mxu0  ;;  %v16798_v38 = vpop.f32.mrb[0].mxu1 }
 0x457   :  { %v16800_v5 = vpop.f32.mrb[1].mxu0  ;;  %v16802_v8 = vpop.f32.mrb[1].mxu1 }
 0x458   :  { %v9960_v9 = vpop.f32.mrb[2].mxu0  ;;  %10589 = vmatpush1.bf16.msra.mxu0 %v14173_v52  ;;  %v10452_v11 = vpop.f32.mrb[2].mxu1  ;;  %11081 = vmatpush1.bf16.msra.mxu1 %v14175_v56  ;;  %v608_v52 = vld [vmem:[#allocation7 + $0xef8] sm:$0xff]  ;;  %v14213_v56 = vcombine.low %v595_v36, %v599_v37 }
 0x459   :  { %v9961_v13 = vpop.f32.mrb[3].mxu0  ;;  %10590 = vmatprep.subr.bf16.mxu0 %v14182_v19  ;;  %v10453_v58 = vpop.f32.mrb[3].mxu1  ;;  %11082 = vmatprep.subr.bf16.mxu1 %v14184_v54  ;;  %v14215_v19 = vcombine.low %v596_v40, %v600_v41  ;;  %v14222_v54 = vcombine.high %v603_v45, %v607_v47  ;;  %v14224_v63 = vcombine.high %v604_v53, %v608_v52  ;;  %v616_v9 = vld [vmem:[#allocation7 + $0xf38] sm:$0xff] }
 0x45a   :  { %v14223_v11 = vcombine.low %v604_v53, %v608_v52  ;;  %v14230_v13 = vcombine.high %v611_v3, %v615_v6  ;;  %v623_v58 = vld [vmem:[#allocation7 + $0xf70] sm:$0xff]  ;;  %v14231_v26 = vcombine.low %v612_v7, %v616_v9  ;;  %v640_v36 = vld [vmem:[#allocation7 + $0xff8] sm:$0xff] }
 0x45b   :  { %v656_v3 = vld [vmem:[#allocation7 + $0x1078] sm:$0xff] }
 0x45c   :  { %10591 = vmatpush1.bf16.msra.mxu0 %v14181_v23  ;;  %11083 = vmatpush1.bf16.msra.mxu1 %v14183_v14  ;;  %v14221_v23 = vcombine.low %v603_v45, %v607_v47  ;;  %v14232_v14 = vcombine.high %v612_v7, %v616_v9  ;;  %v648_v45 = vld [vmem:[#allocation7 + $0x1038] sm:$0xff] }
 0x45d   :  { %10592 = vmatprep.subr.bf16.mxu0 %v14190_v17  ;;  %11084 = vmatprep.subr.bf16.mxu1 %v14192_v18  ;;  %v619_v17 = vld [vmem:[#allocation7 + $0xf50] sm:$0xff]  ;;  %v620_v18 = vld [vmem:[#allocation7 + $0xf58] sm:$0xff] }
 0x45e   :  { %v14238_v27 = vcombine.high %v619_v17, %v623_v58  ;;  %v14237_v49 = vcombine.low %v619_v17, %v623_v58  ;;  %v14239_v33 = vcombine.low %v620_v18, %v624_v21  ;;  %v664_v17 = vld [vmem:[#allocation7 + $0x10b8] sm:$0xff] }
 0x460   :  { %10593 = vmatpush1.bf16.msra.mxu0 %v14189_v39  ;;  %11085 = vmatpush1.bf16.msra.mxu1 %v14191_v59  ;;  %v14240_v39 = vcombine.high %v620_v18, %v624_v21  ;;  %v627_v59 = vld [vmem:[#allocation7 + $0xf90] sm:$0xff] }
 0x461   :  { %10594 = vmatprep.subr.bf16.mxu0 %v14198_v29  ;;  %11086 = vmatprep.subr.bf16.mxu1 %v14200_v30  ;;  %v631_v29 = vld [vmem:[#allocation7 + $0xfb0] sm:$0xff]  ;;  %v628_v30 = vld [vmem:[#allocation7 + $0xf98] sm:$0xff] }
 0x462   :  { %v14246_v15 = vcombine.high %v627_v59, %v631_v29  ;;  %v14245_v37 = vcombine.low %v627_v59, %v631_v29  ;;  %v14247_v40 = vcombine.low %v628_v30, %v632_v31  ;;  %v672_v59 = vld [vmem:[#allocation7 + $0x10f8] sm:$0xff] }
 0x464   :  { %10595 = vmatpush1.bf16.msra.mxu0 %v14197_v25  ;;  %11087 = vmatpush1.bf16.msra.mxu1 %v14199_v35  ;;  %v14248_v25 = vcombine.high %v628_v30, %v632_v31  ;;  %v635_v35 = vld [vmem:[#allocation7 + $0xfd0] sm:$0xff] }
 0x465   :  { %10596 = vmatprep.subr.bf16.mxu0 %v14206_v48  ;;  %11088 = vmatprep.subr.bf16.mxu1 %v14208_v12  ;;  %v639_v48 = vld [vmem:[#allocation7 + $0xff0] sm:$0xff]  ;;  %v636_v12 = vld [vmem:[#allocation7 + $0xfd8] sm:$0xff] }
 0x466   :  { %v14254_v41 = vcombine.high %v635_v35, %v639_v48  ;;  %v14253_v47 = vcombine.low %v635_v35, %v639_v48  ;;  %v14255_v53 = vcombine.low %v636_v12, %v640_v36 }
 0x468   :  { %10597 = vmatpush1.bf16.msra.mxu0 %v14205_v42  ;;  %11089 = vmatpush1.bf16.msra.mxu1 %v14207_v57  ;;  %v14256_v42 = vcombine.high %v636_v12, %v640_v36  ;;  %v643_v57 = vld [vmem:[#allocation7 + $0x1010] sm:$0xff] }
 0x469   :  { %10598 = vmatprep.subr.bf16.mxu0 %v14214_v43  ;;  %11090 = vmatprep.subr.bf16.mxu1 %v14216_v34  ;;  %v647_v43 = vld [vmem:[#allocation7 + $0x1030] sm:$0xff]  ;;  %v644_v34 = vld [vmem:[#allocation7 + $0x1018] sm:$0xff] }
 0x46a   :  { %v14262_v52 = vcombine.high %v643_v57, %v647_v43  ;;  %v14261_v6 = vcombine.low %v643_v57, %v647_v43  ;;  %v14263_v7 = vcombine.low %v644_v34, %v648_v45  ;;  %v683_v36 = vld [vmem:[#allocation7 + $0x1150] sm:$0xff] }
 0x46c   :  { %10599 = vmatpush1.bf16.msra.mxu0 %v14213_v56  ;;  %11091 = vmatpush1.bf16.msra.mxu1 %v14215_v19  ;;  %v14264_v56 = vcombine.high %v644_v34, %v648_v45  ;;  %v651_v19 = vld [vmem:[#allocation7 + $0x1050] sm:$0xff] }
 0x46d   :  { %10600 = vmatprep.subr.bf16.mxu0 %v14222_v54  ;;  %11092 = vmatprep.subr.bf16.mxu1 %v14224_v63  ;;  %v655_v54 = vld [vmem:[#allocation7 + $0x1070] sm:$0xff]  ;;  %v652_v63 = vld [vmem:[#allocation7 + $0x1058] sm:$0xff] }
 0x46e   :  { %v14270_v9 = vcombine.high %v651_v19, %v655_v54  ;;  %v14269_v58 = vcombine.low %v651_v19, %v655_v54  ;;  %v14271_v18 = vcombine.low %v652_v63, %v656_v3  ;;  %v691_v45 = vld [vmem:[#allocation7 + $0x1190] sm:$0xff] }
 0x470   :  { %10601 = vmatpush1.bf16.msra.mxu0 %v14221_v23  ;;  %11093 = vmatpush1.bf16.msra.mxu1 %v14223_v11  ;;  %v14272_v23 = vcombine.high %v652_v63, %v656_v3  ;;  %v659_v11 = vld [vmem:[#allocation7 + $0x1090] sm:$0xff] }
 0x471   :  { %10602 = vmatprep.subr.bf16.mxu0 %v14230_v13  ;;  %11094 = vmatprep.subr.bf16.mxu1 %v14232_v14  ;;  %v663_v13 = vld [vmem:[#allocation7 + $0x10b0] sm:$0xff]  ;;  %v660_v14 = vld [vmem:[#allocation7 + $0x1098] sm:$0xff] }
 0x472   :  { %v14278_v21 = vcombine.high %v659_v11, %v663_v13  ;;  %v14277_v29 = vcombine.low %v659_v11, %v663_v13  ;;  %v699_v3 = vld [vmem:[#allocation7 + $0x11d0] sm:$0xff] }
 0x474   :  { %10603 = vmatpush1.bf16.msra.mxu0 %v14229_v22  ;;  %11095 = vmatpush1.bf16.msra.mxu1 %v14231_v26  ;;  %v14280_v22 = vcombine.high %v660_v14, %v664_v17  ;;  %v667_v26 = vld [vmem:[#allocation7 + $0x10d0] sm:$0xff] }
 0x475   :  { %10604 = vmatprep.subr.bf16.mxu0 %v14238_v27  ;;  %11096 = vmatprep.subr.bf16.mxu1 %v14240_v39  ;;  %v671_v27 = vld [vmem:[#allocation7 + $0x10f0] sm:$0xff]  ;;  %v668_v39 = vld [vmem:[#allocation7 + $0x10d8] sm:$0xff] }
 0x476   :  { %v14286_v30 = vcombine.high %v667_v26, %v671_v27  ;;  %v14288_v31 = vcombine.high %v668_v39, %v672_v59  ;;  %v14285_v35 = vcombine.low %v667_v26, %v671_v27  ;;  %v14287_v48 = vcombine.low %v668_v39, %v672_v59  ;;  %v715_v59 = vld [vmem:[#allocation7 + $0x1250] sm:$0xff] }
 0x478   :  { %10605 = vmatpush1.bf16.msra.mxu0 %v14237_v49  ;;  %11097 = vmatpush1.bf16.msra.mxu1 %v14239_v33  ;;  %v675_v49 = vld [vmem:[#allocation7 + $0x1110] sm:$0xff] }
 0x479   :  { %10606 = vmatprep.subr.bf16.mxu0 %v14246_v15  ;;  %11098 = vmatprep.subr.bf16.mxu1 %v14248_v25  ;;  %v679_v33 = vld [vmem:[#allocation7 + $0x1130] sm:$0xff]  ;;  %v676_v15 = vld [vmem:[#allocation7 + $0x1118] sm:$0xff] }
 0x47a   :  { %v680_v25 = vld [vmem:[#allocation7 + $0x1138] sm:$0xff]  ;;  %v14294_v12 = vcombine.high %v675_v49, %v679_v33 }
 0x47b   :  { %v14295_v57 = vcombine.low %v676_v15, %v680_v25 }
 0x47c   :  { %10607 = vmatpush1.bf16.msra.mxu0 %v14245_v37  ;;  %11099 = vmatpush1.bf16.msra.mxu1 %v14247_v40  ;;  %v687_v37 = vld [vmem:[#allocation7 + $0x1170] sm:$0xff]  ;;  %v684_v40 = vld [vmem:[#allocation7 + $0x1158] sm:$0xff] }
 0x47d   :  { %10608 = vmatprep.subr.bf16.mxu0 %v14254_v41  ;;  %11100 = vmatprep.subr.bf16.mxu1 %v14256_v42  ;;  %v688_v41 = vld [vmem:[#allocation7 + $0x1178] sm:$0xff]  ;;  %v14293_v42 = vcombine.low %v675_v49, %v679_v33  ;;  %v14302_v43 = vcombine.high %v683_v36, %v687_v37 }
 0x47e   :  { %v14304_v34 = vcombine.high %v684_v40, %v688_v41  ;;  %v14303_v19 = vcombine.low %v684_v40, %v688_v41  ;;  %v731_v41 = vld [vmem:[#allocation7 + $0x12d0] sm:$0xff] }
 0x480   :  { %10609 = vmatpush1.bf16.msra.mxu0 %v14253_v47  ;;  %11101 = vmatpush1.bf16.msra.mxu1 %v14255_v53  ;;  %v695_v47 = vld [vmem:[#allocation7 + $0x11b0] sm:$0xff]  ;;  %v692_v53 = vld [vmem:[#allocation7 + $0x1198] sm:$0xff] }
 0x481   :  { %10619 = vmatprep.subr.bf16.mxu0 %v14262_v52  ;;  %11111 = vmatprep.subr.bf16.mxu1 %v14264_v56  ;;  %v696_v52 = vld [vmem:[#allocation7 + $0x11b8] sm:$0xff]  ;;  %v14301_v56 = vcombine.low %v683_v36, %v687_v37  ;;  %v14310_v54 = vcombine.high %v691_v45, %v695_v47 }
 0x482   :  { %v14312_v63 = vcombine.high %v692_v53, %v696_v52  ;;  %v14311_v11 = vcombine.low %v692_v53, %v696_v52  ;;  %v739_v52 = vld [vmem:[#allocation7 + $0x1310] sm:$0xff] }
 0x483   :  { %10611 = vmatmul.mubr.bf16.vlgmr.msra.gmra.mrb[4].mxu0 %v16666_v55  ;;  %11103 = vmatmul.mubr.bf16.vlgmr.msra.gmra.mrb[4].mxu1 %v16666_v55  ;;  %v14279_v55 = vcombine.low %v660_v14, %v664_v17  ;;  %v707_v17 = vld [vmem:[#allocation7 + $0x1210] sm:$0xff] }
 0x484   :  { %10620 = vmatpush1.bf16.msra.mxu0 %v14261_v6  ;;  %11112 = vmatpush1.bf16.msra.mxu1 %v14263_v7  ;;  %v703_v6 = vld [vmem:[#allocation7 + $0x11f0] sm:$0xff]  ;;  %v700_v7 = vld [vmem:[#allocation7 + $0x11d8] sm:$0xff] }
 0x485   :  { %10621 = vmatprep.subr.bf16.mxu0 %v14270_v9  ;;  %11113 = vmatprep.subr.bf16.mxu1 %v14272_v23  ;;  %v704_v9 = vld [vmem:[#allocation7 + $0x11f8] sm:$0xff]  ;;  %v14309_v23 = vcombine.low %v691_v45, %v695_v47  ;;  %v14318_v13 = vcombine.high %v699_v3, %v703_v6 }
 0x486   :  { %10651 = vmatprep.mubr.bf16.mxu0 %v16672_v2  ;;  %11143 = vmatprep.mubr.bf16.mxu1 %v16672_v2  ;;  %v14296_v2 = vcombine.high %v676_v15, %v680_v25  ;;  %v14320_v14 = vcombine.high %v700_v7, %v704_v9  ;;  %v14319_v26 = vcombine.low %v700_v7, %v704_v9  ;;  %v723_v25 = vld [vmem:[#allocation7 + $0x1290] sm:$0xff] }
 0x487   :  { %v747_v9 = vld [vmem:[#allocation7 + $0x1350] sm:$0xff] }
 0x488   :  { %10622 = vmatpush1.bf16.msra.mxu0 %v14269_v58  ;;  %11114 = vmatpush1.bf16.msra.mxu1 %v14271_v18  ;;  %v711_v58 = vld [vmem:[#allocation7 + $0x1230] sm:$0xff]  ;;  %v708_v18 = vld [vmem:[#allocation7 + $0x1218] sm:$0xff] }
 0x489   :  { %10623 = vmatprep.subr.bf16.mxu0 %v14278_v21  ;;  %11115 = vmatprep.subr.bf16.mxu1 %v14280_v22  ;;  %v712_v21 = vld [vmem:[#allocation7 + $0x1238] sm:$0xff]  ;;  %v14317_v22 = vcombine.low %v699_v3, %v703_v6  ;;  %v14326_v27 = vcombine.high %v707_v17, %v711_v58 }
 0x48a   :  { %v14328_v39 = vcombine.high %v708_v18, %v712_v21  ;;  %v14327_v49 = vcombine.low %v708_v18, %v712_v21  ;;  %v755_v21 = vld [vmem:[#allocation7 + $0x1390] sm:$0xff] }
 0x48c   :  { %10624 = vmatpush1.bf16.msra.mxu0 %v14277_v29  ;;  %11116 = vmatpush1.bf16.msra.mxu1 %v14279_v55  ;;  %v719_v29 = vld [vmem:[#allocation7 + $0x1270] sm:$0xff]  ;;  %v716_v55 = vld [vmem:[#allocation7 + $0x1258] sm:$0xff] }
 0x48d   :  { %10625 = vmatprep.subr.bf16.mxu0 %v14286_v30  ;;  %11117 = vmatprep.subr.bf16.mxu1 %v14288_v31  ;;  %v720_v30 = vld [vmem:[#allocation7 + $0x1278] sm:$0xff]  ;;  %v14325_v31 = vcombine.low %v707_v17, %v711_v58  ;;  %v14334_v33 = vcombine.high %v715_v59, %v719_v29 }
 0x48e   :  { %v14336_v15 = vcombine.high %v716_v55, %v720_v30  ;;  %v14335_v36 = vcombine.low %v716_v55, %v720_v30  ;;  %v763_v30 = vld [vmem:[#allocation7 + $0x13d0] sm:$0xff] }
 0x490   :  { %10626 = vmatpush1.bf16.msra.mxu0 %v14285_v35  ;;  %11118 = vmatpush1.bf16.msra.mxu1 %v14287_v48  ;;  %v727_v35 = vld [vmem:[#allocation7 + $0x12b0] sm:$0xff]  ;;  %v724_v48 = vld [vmem:[#allocation7 + $0x1298] sm:$0xff] }
 0x491   :  { %10627 = vmatprep.subr.bf16.mxu0 %v14294_v12  ;;  %11119 = vmatprep.subr.bf16.mxu1 %v14296_v2  ;;  %v728_v12 = vld [vmem:[#allocation7 + $0x12b8] sm:$0xff]  ;;  %v14333_v2 = vcombine.low %v715_v59, %v719_v29  ;;  %v14342_v37 = vcombine.high %v723_v25, %v727_v35 }
 0x492   :  { %v14344_v40 = vcombine.high %v724_v48, %v728_v12  ;;  %v14343_v45 = vcombine.low %v724_v48, %v728_v12  ;;  %v771_v12 = vld [vmem:[#allocation7 + $0x1410] sm:$0xff] }
 0x494   :  { %10628 = vmatpush1.bf16.msra.mxu0 %v14293_v42  ;;  %11120 = vmatpush1.bf16.msra.mxu1 %v14295_v57  ;;  %v735_v42 = vld [vmem:[#allocation7 + $0x12f0] sm:$0xff]  ;;  %v732_v57 = vld [vmem:[#allocation7 + $0x12d8] sm:$0xff] }
 0x495   :  { %10629 = vmatprep.subr.bf16.mxu0 %v14302_v43  ;;  %11121 = vmatprep.subr.bf16.mxu1 %v14304_v34  ;;  %v736_v43 = vld [vmem:[#allocation7 + $0x12f8] sm:$0xff]  ;;  %v14341_v34 = vcombine.low %v723_v25, %v727_v35  ;;  %v14350_v47 = vcombine.high %v731_v41, %v735_v42 }
 0x496   :  { %v14352_v53 = vcombine.high %v732_v57, %v736_v43  ;;  %v14351_v3 = vcombine.low %v732_v57, %v736_v43  ;;  %v779_v43 = vld [vmem:[#allocation7 + $0x1450] sm:$0xff] }
 0x498   :  { %10630 = vmatpush1.bf16.msra.mxu0 %v14301_v56  ;;  %11122 = vmatpush1.bf16.msra.mxu1 %v14303_v19  ;;  %v743_v56 = vld [vmem:[#allocation7 + $0x1330] sm:$0xff]  ;;  %v740_v19 = vld [vmem:[#allocation7 + $0x1318] sm:$0xff] }
 0x499   :  { %10631 = vmatprep.subr.bf16.mxu0 %v14310_v54  ;;  %11123 = vmatprep.subr.bf16.mxu1 %v14312_v63  ;;  %v744_v54 = vld [vmem:[#allocation7 + $0x1338] sm:$0xff]  ;;  %v14349_v63 = vcombine.low %v731_v41, %v735_v42  ;;  %v14358_v6 = vcombine.high %v739_v52, %v743_v56 }
 0x49a   :  { %v14360_v7 = vcombine.high %v740_v19, %v744_v54  ;;  %v14359_v17 = vcombine.low %v740_v19, %v744_v54  ;;  %v787_v54 = vld [vmem:[#allocation7 + $0x1490] sm:$0xff] }
 0x49c   :  { %10632 = vmatpush1.bf16.msra.mxu0 %v14309_v23  ;;  %11124 = vmatpush1.bf16.msra.mxu1 %v14311_v11  ;;  %v751_v23 = vld [vmem:[#allocation7 + $0x1370] sm:$0xff]  ;;  %v748_v11 = vld [vmem:[#allocation7 + $0x1358] sm:$0xff] }
 0x49d   :  { %10633 = vmatprep.subr.bf16.mxu0 %v14318_v13  ;;  %11125 = vmatprep.subr.bf16.mxu1 %v14320_v14  ;;  %v752_v13 = vld [vmem:[#allocation7 + $0x1378] sm:$0xff]  ;;  %v14357_v14 = vcombine.low %v739_v52, %v743_v56  ;;  %v14366_v58 = vcombine.high %v747_v9, %v751_v23 }
 0x49e   :  { %v14368_v18 = vcombine.high %v748_v11, %v752_v13  ;;  %v14367_v59 = vcombine.low %v748_v11, %v752_v13  ;;  %v795_v13 = vld [vmem:[#allocation7 + $0x14d0] sm:$0xff] }
 0x4a0   :  { %10634 = vmatpush1.bf16.msra.mxu0 %v14317_v22  ;;  %11126 = vmatpush1.bf16.msra.mxu1 %v14319_v26  ;;  %v759_v22 = vld [vmem:[#allocation7 + $0x13b0] sm:$0xff]  ;;  %v756_v26 = vld [vmem:[#allocation7 + $0x1398] sm:$0xff] }
 0x4a1   :  { %10635 = vmatprep.subr.bf16.mxu0 %v14326_v27  ;;  %11127 = vmatprep.subr.bf16.mxu1 %v14328_v39  ;;  %v760_v27 = vld [vmem:[#allocation7 + $0x13b8] sm:$0xff]  ;;  %v14365_v39 = vcombine.low %v747_v9, %v751_v23  ;;  %v14374_v29 = vcombine.high %v755_v21, %v759_v22 }
 0x4a2   :  { %v14376_v55 = vcombine.high %v756_v26, %v760_v27  ;;  %v14375_v25 = vcombine.low %v756_v26, %v760_v27  ;;  %v803_v26 = vld [vmem:[#allocation7 + $0x1510] sm:$0xff] }
 0x4a3   :  { %v807_v27 = vld [vmem:[#allocation7 + $0x1530] sm:$0xff] }
 0x4a4   :  { %10636 = vmatpush1.bf16.msra.mxu0 %v14325_v31  ;;  %11128 = vmatpush1.bf16.msra.mxu1 %v14327_v49  ;;  %v767_v31 = vld [vmem:[#allocation7 + $0x13f0] sm:$0xff]  ;;  %v764_v49 = vld [vmem:[#allocation7 + $0x13d8] sm:$0xff] }
 0x4a5   :  { %10637 = vmatprep.subr.bf16.mxu0 %v14334_v33  ;;  %11129 = vmatprep.subr.bf16.mxu1 %v14336_v15  ;;  %v768_v33 = vld [vmem:[#allocation7 + $0x13f8] sm:$0xff]  ;;  %v14373_v15 = vcombine.low %v755_v21, %v759_v22  ;;  %v14382_v35 = vcombine.high %v763_v30, %v767_v31 }
 0x4a6   :  { %v14384_v48 = vcombine.high %v764_v49, %v768_v33  ;;  %v14383_v41 = vcombine.low %v764_v49, %v768_v33  ;;  %v815_v49 = vld [vmem:[#allocation7 + $0x1570] sm:$0xff]  ;;  %v812_v33 = vld [vmem:[#allocation7 + $0x1558] sm:$0xff] }
 0x4a8   :  { %10638 = vmatpush1.bf16.msra.mxu0 %v14333_v2  ;;  %11130 = vmatpush1.bf16.msra.mxu1 %v14335_v36  ;;  %v775_v2 = vld [vmem:[#allocation7 + $0x1430] sm:$0xff]  ;;  %v772_v36 = vld [vmem:[#allocation7 + $0x1418] sm:$0xff] }
 0x4a9   :  { %10639 = vmatprep.subr.bf16.mxu0 %v14342_v37  ;;  %11131 = vmatprep.subr.bf16.mxu1 %v14344_v40  ;;  %v776_v37 = vld [vmem:[#allocation7 + $0x1438] sm:$0xff]  ;;  %v14381_v40 = vcombine.low %v763_v30, %v767_v31  ;;  %v14390_v42 = vcombine.high %v771_v12, %v775_v2  ;;  %v14422_v30 = vcombine.high %v803_v26, %v807_v27  ;;  %v811_v31 = vld [vmem:[#allocation7 + $0x1550] sm:$0xff] }
 0x4aa   :  { %v14392_v57 = vcombine.high %v772_v36, %v776_v37  ;;  %v14391_v52 = vcombine.low %v772_v36, %v776_v37  ;;  %v823_v36 = vld [vmem:[#allocation7 + $0x15b0] sm:$0xff]  ;;  %v820_v37 = vld [vmem:[#allocation7 + $0x1598] sm:$0xff] }
 0x4ac   :  { %10640 = vmatpush1.bf16.msra.mxu0 %v14341_v34  ;;  %11132 = vmatpush1.bf16.msra.mxu1 %v14343_v45  ;;  %v783_v34 = vld [vmem:[#allocation7 + $0x1470] sm:$0xff]  ;;  %v780_v45 = vld [vmem:[#allocation7 + $0x1458] sm:$0xff] }
 0x4ad   :  { %10641 = vmatprep.subr.bf16.mxu0 %v14350_v47  ;;  %11133 = vmatprep.subr.bf16.mxu1 %v14352_v53  ;;  %v784_v47 = vld [vmem:[#allocation7 + $0x1478] sm:$0xff]  ;;  %v14389_v53 = vcombine.low %v771_v12, %v775_v2  ;;  %v14398_v56 = vcombine.high %v779_v43, %v783_v34  ;;  %v819_v2 = vld [vmem:[#allocation7 + $0x1590] sm:$0xff] }
 0x4ae   :  { %v14400_v19 = vcombine.high %v780_v45, %v784_v47  ;;  %v14399_v9 = vcombine.low %v780_v45, %v784_v47  ;;  %v831_v45 = vld [vmem:[#allocation7 + $0x15f0] sm:$0xff]  ;;  %v828_v47 = vld [vmem:[#allocation7 + $0x15d8] sm:$0xff] }
 0x4b0   :  { %10642 = vmatpush1.bf16.msra.mxu0 %v14349_v63  ;;  %11134 = vmatpush1.bf16.msra.mxu1 %v14351_v3  ;;  %v791_v63 = vld [vmem:[#allocation7 + $0x14b0] sm:$0xff]  ;;  %v788_v3 = vld [vmem:[#allocation7 + $0x1498] sm:$0xff] }
 0x4b1   :  { %10643 = vmatprep.subr.bf16.mxu0 %v14358_v6  ;;  %11135 = vmatprep.subr.bf16.mxu1 %v14360_v7  ;;  %v792_v6 = vld [vmem:[#allocation7 + $0x14b8] sm:$0xff]  ;;  %v14397_v7 = vcombine.low %v779_v43, %v783_v34  ;;  %v14406_v23 = vcombine.high %v787_v54, %v791_v63  ;;  %v827_v34 = vld [vmem:[#allocation7 + $0x15d0] sm:$0xff] }
 0x4b2   :  { %v14408_v11 = vcombine.high %v788_v3, %v792_v6 }
 0x4b4   :  { %10644 = vmatpush1.bf16.msra.mxu0 %v14357_v14  ;;  %11136 = vmatpush1.bf16.msra.mxu1 %v14359_v17  ;;  %v799_v14 = vld [vmem:[#allocation7 + $0x14f0] sm:$0xff]  ;;  %v796_v17 = vld [vmem:[#allocation7 + $0x14d8] sm:$0xff] }
 0x4b5   :  { %10645 = vmatprep.subr.bf16.mxu0 %v14366_v58  ;;  %11137 = vmatprep.subr.bf16.mxu1 %v14368_v18  ;;  %v800_v58 = vld [vmem:[#allocation7 + $0x14f8] sm:$0xff]  ;;  %v14405_v18 = vcombine.low %v787_v54, %v791_v63  ;;  %v14414_v21 = vcombine.high %v795_v13, %v799_v14  ;;  %v835_v63 = vld [vmem:[#allocation7 + $0x1610] sm:$0xff] }
 0x4b6   :  { %v14416_v22 = vcombine.high %v796_v17, %v800_v58 }
 0x4b8   :  { %10646 = vmatpush1.bf16.msra.mxu0 %v14365_v39  ;;  %11138 = vmatpush1.bf16.msra.mxu1 %v14367_v59  ;;  %v804_v39 = vld [vmem:[#allocation7 + $0x1518] sm:$0xff] }
 0x4b9   :  { %10647 = vmatprep.subr.bf16.mxu0 %v14374_v29  ;;  %11139 = vmatprep.subr.bf16.mxu1 %v14376_v55  ;;  %v808_v59 = vld [vmem:[#allocation7 + $0x1538] sm:$0xff]  ;;  %v14413_v29 = vcombine.low %v795_v13, %v799_v14  ;;  %v14415_v55 = vcombine.low %v796_v17, %v800_v58  ;;  %v843_v14 = vld [vmem:[#allocation7 + $0x1650] sm:$0xff] }
 0x4ba   :  { %v847_v17 = vld [vmem:[#allocation7 + $0x1670] sm:$0xff]  ;;  %v844_v58 = vld [vmem:[#allocation7 + $0x1658] sm:$0xff] }
 0x4bc   :  { %10648 = vmatpush1.bf16.msra.mxu0 %v14373_v15  ;;  %11140 = vmatpush1.bf16.msra.mxu1 %v14375_v25  ;;  %v816_v15 = vld [vmem:[#allocation7 + $0x1578] sm:$0xff]  ;;  %v14421_v25 = vcombine.low %v803_v26, %v807_v27  ;;  %v851_v27 = vld [vmem:[#allocation7 + $0x1690] sm:$0xff] }
 0x4bd   :  { %10649 = vmatprep.subr.bf16.mxu0 %v14382_v35  ;;  %11141 = vmatprep.subr.bf16.mxu1 %v14384_v48  ;;  %v14423_v35 = vcombine.low %v804_v39, %v808_v59  ;;  %v14430_v48 = vcombine.high %v811_v31, %v815_v49  ;;  %v14432_v12 = vcombine.high %v812_v33, %v816_v15 }
 0x4c0   :  { %10650 = vmatpush1.bf16.msra.mxu0 %v14381_v40  ;;  %11142 = vmatpush1.bf16.msra.mxu1 %v14383_v41  ;;  %v824_v40 = vld [vmem:[#allocation7 + $0x15b8] sm:$0xff]  ;;  %v14429_v41 = vcombine.low %v811_v31, %v815_v49  ;;  %v859_v49 = vld [vmem:[#allocation7 + $0x16d0] sm:$0xff] }
 0x4c1   :  { %10660 = vmatprep.subr.bf16.mxu0 %v14390_v42  ;;  %11152 = vmatprep.subr.bf16.mxu1 %v14392_v57  ;;  %v14431_v42 = vcombine.low %v812_v33, %v816_v15  ;;  %v14438_v57 = vcombine.high %v819_v2, %v823_v36  ;;  %v14440_v43 = vcombine.high %v820_v37, %v824_v40  ;;  %v863_v33 = vld [vmem:[#allocation7 + $0x16f0] sm:$0xff]  ;;  %v860_v15 = vld [vmem:[#allocation7 + $0x16d8] sm:$0xff] }
 0x4c3   :  { %10652 = vmatmul.mubr.bf16.vlgmr.msra.gmra.mrb[4].mxu0 %v16680_v16  ;;  %11144 = vmatmul.mubr.bf16.vlgmr.msra.gmra.mrb[4].mxu1 %v16680_v16  ;;  %v14407_v16 = vcombine.low %v788_v3, %v792_v6  ;;  %v839_v3 = vld [vmem:[#allocation7 + $0x1630] sm:$0xff]  ;;  %v836_v6 = vld [vmem:[#allocation7 + $0x1618] sm:$0xff] }
 0x4c4   :  { %10661 = vmatpush1.bf16.msra.mxu0 %v14389_v53  ;;  %11153 = vmatpush1.bf16.msra.mxu1 %v14391_v52  ;;  %v832_v53 = vld [vmem:[#allocation7 + $0x15f8] sm:$0xff]  ;;  %v14437_v52 = vcombine.low %v819_v2, %v823_v36  ;;  %v867_v36 = vld [vmem:[#allocation7 + $0x1710] sm:$0xff] }
 0x4c5   :  { %10662 = vmatprep.subr.bf16.mxu0 %v14398_v56  ;;  %11154 = vmatprep.subr.bf16.mxu1 %v14400_v19  ;;  %v14439_v56 = vcombine.low %v820_v37, %v824_v40  ;;  %v14446_v19 = vcombine.high %v827_v34, %v831_v45  ;;  %v14448_v54 = vcombine.high %v828_v47, %v832_v53  ;;  %v871_v37 = vld [vmem:[#allocation7 + $0x1730] sm:$0xff]  ;;  %v868_v40 = vld [vmem:[#allocation7 + $0x1718] sm:$0xff] }
 0x4c6   :  { %10692 = vmatprep.mubr.bf16.mxu0 %v16686_v28  ;;  %11184 = vmatprep.mubr.bf16.mxu1 %v16686_v28  ;;  %v14424_v28 = vcombine.high %v804_v39, %v808_v59  ;;  %v855_v39 = vld [vmem:[#allocation7 + $0x16b0] sm:$0xff]  ;;  %v852_v59 = vld [vmem:[#allocation7 + $0x1698] sm:$0xff] }
 0x4c8   :  { %10663 = vmatpush1.bf16.msra.mxu0 %v14397_v7  ;;  %11155 = vmatpush1.bf16.msra.mxu1 %v14399_v9  ;;  %v840_v7 = vld [vmem:[#allocation7 + $0x1638] sm:$0xff]  ;;  %v14445_v9 = vcombine.low %v827_v34, %v831_v45  ;;  %v875_v45 = vld [vmem:[#allocation7 + $0x1750] sm:$0xff] }
 0x4c9   :  { %10664 = vmatprep.subr.bf16.mxu0 %v14406_v23  ;;  %11156 = vmatprep.subr.bf16.mxu1 %v14408_v11  ;;  %v14447_v23 = vcombine.low %v828_v47, %v832_v53  ;;  %v14454_v11 = vcombine.high %v835_v63, %v839_v3  ;;  %v14456_v13 = vcombine.high %v836_v6, %v840_v7  ;;  %v879_v47 = vld [vmem:[#allocation7 + $0x1770] sm:$0xff]  ;;  %v876_v53 = vld [vmem:[#allocation7 + $0x1758] sm:$0xff] }
 0x4cc   :  { %10665 = vmatpush1.bf16.msra.mxu0 %v14405_v18  ;;  %11157 = vmatpush1.bf16.msra.mxu1 %v14407_v16  ;;  %v848_v18 = vld [vmem:[#allocation7 + $0x1678] sm:$0xff]  ;;  %v14453_v16 = vcombine.low %v835_v63, %v839_v3  ;;  %v883_v3 = vld [vmem:[#allocation7 + $0x1790] sm:$0xff] }
 0x4cd   :  { %10666 = vmatprep.subr.bf16.mxu0 %v14414_v21  ;;  %11158 = vmatprep.subr.bf16.mxu1 %v14416_v22  ;;  %v14455_v21 = vcombine.low %v836_v6, %v840_v7  ;;  %v14462_v22 = vcombine.high %v843_v14, %v847_v17  ;;  %v14464_v26 = vcombine.high %v844_v58, %v848_v18  ;;  %v887_v6 = vld [vmem:[#allocation7 + $0x17b0] sm:$0xff]  ;;  %v884_v7 = vld [vmem:[#allocation7 + $0x1798] sm:$0xff] }
 0x4d0   :  { %10667 = vmatpush1.bf16.msra.mxu0 %v14413_v29  ;;  %11159 = vmatpush1.bf16.msra.mxu1 %v14415_v55  ;;  %v856_v29 = vld [vmem:[#allocation7 + $0x16b8] sm:$0xff]  ;;  %v14461_v55 = vcombine.low %v843_v14, %v847_v17  ;;  %v891_v17 = vld [vmem:[#allocation7 + $0x17d0] sm:$0xff] }
 0x4d1   :  { %10668 = vmatprep.subr.bf16.mxu0 %v14422_v30  ;;  %11160 = vmatprep.subr.bf16.mxu1 %v14424_v28  ;;  %v14463_v30 = vcombine.low %v844_v58, %v848_v18  ;;  %v14470_v28 = vcombine.high %v851_v27, %v855_v39  ;;  %v14472_v31 = vcombine.high %v852_v59, %v856_v29  ;;  %v895_v58 = vld [vmem:[#allocation7 + $0x17f0] sm:$0xff]  ;;  %v892_v18 = vld [vmem:[#allocation7 + $0x17d8] sm:$0xff] }
 0x4d4   :  { %10669 = vmatpush1.bf16.msra.mxu0 %v14421_v25  ;;  %11161 = vmatpush1.bf16.msra.mxu1 %v14423_v35  ;;  %v864_v25 = vld [vmem:[#allocation7 + $0x16f8] sm:$0xff]  ;;  %v14469_v35 = vcombine.low %v851_v27, %v855_v39  ;;  %v899_v39 = vld [vmem:[#allocation7 + $0x1810] sm:$0xff] }
 0x4d5   :  { %10670 = vmatprep.subr.bf16.mxu0 %v14430_v48  ;;  %11162 = vmatprep.subr.bf16.mxu1 %v14432_v12  ;;  %v14471_v48 = vcombine.low %v852_v59, %v856_v29  ;;  %v14478_v12 = vcombine.high %v859_v49, %v863_v33  ;;  %v14480_v2 = vcombine.high %v860_v15, %v864_v25  ;;  %v903_v59 = vld [vmem:[#allocation7 + $0x1830] sm:$0xff]  ;;  %v900_v29 = vld [vmem:[#allocation7 + $0x1818] sm:$0xff] }
 0x4d8   :  { %10671 = vmatpush1.bf16.msra.mxu0 %v14429_v41  ;;  %11163 = vmatpush1.bf16.msra.mxu1 %v14431_v42  ;;  %v872_v41 = vld [vmem:[#allocation7 + $0x1738] sm:$0xff]  ;;  %v14477_v42 = vcombine.low %v859_v49, %v863_v33  ;;  %v907_v33 = vld [vmem:[#allocation7 + $0x1850] sm:$0xff] }
 0x4d9   :  { %10672 = vmatprep.subr.bf16.mxu0 %v14438_v57  ;;  %11164 = vmatprep.subr.bf16.mxu1 %v14440_v43  ;;  %v14479_v57 = vcombine.low %v860_v15, %v864_v25  ;;  %v14486_v43 = vcombine.high %v867_v36, %v871_v37  ;;  %v14488_v34 = vcombine.high %v868_v40, %v872_v41  ;;  %v911_v15 = vld [vmem:[#allocation7 + $0x1870] sm:$0xff]  ;;  %v908_v25 = vld [vmem:[#allocation7 + $0x1858] sm:$0xff] }
 0x4dc   :  { %10673 = vmatpush1.bf16.msra.mxu0 %v14437_v52  ;;  %11165 = vmatpush1.bf16.msra.mxu1 %v14439_v56  ;;  %v880_v52 = vld [vmem:[#allocation7 + $0x1778] sm:$0xff]  ;;  %v14485_v56 = vcombine.low %v867_v36, %v871_v37  ;;  %v915_v37 = vld [vmem:[#allocation7 + $0x1890] sm:$0xff] }
 0x4dd   :  { %10674 = vmatprep.subr.bf16.mxu0 %v14446_v19  ;;  %11166 = vmatprep.subr.bf16.mxu1 %v14448_v54  ;;  %v14487_v19 = vcombine.low %v868_v40, %v872_v41  ;;  %v14494_v54 = vcombine.high %v875_v45, %v879_v47  ;;  %v14496_v63 = vcombine.high %v876_v53, %v880_v52  ;;  %v919_v40 = vld [vmem:[#allocation7 + $0x18b0] sm:$0xff]  ;;  %v916_v41 = vld [vmem:[#allocation7 + $0x1898] sm:$0xff] }
 0x4e0   :  { %10675 = vmatpush1.bf16.msra.mxu0 %v14445_v9  ;;  %11167 = vmatpush1.bf16.msra.mxu1 %v14447_v23  ;;  %v888_v9 = vld [vmem:[#allocation7 + $0x17b8] sm:$0xff]  ;;  %v14493_v23 = vcombine.low %v875_v45, %v879_v47  ;;  %v923_v47 = vld [vmem:[#allocation7 + $0x18d0] sm:$0xff] }
 0x4e1   :  { %10676 = vmatprep.subr.bf16.mxu0 %v14454_v11  ;;  %11168 = vmatprep.subr.bf16.mxu1 %v14456_v13  ;;  %v14495_v11 = vcombine.low %v876_v53, %v880_v52  ;;  %v14502_v13 = vcombine.high %v883_v3, %v887_v6  ;;  %v14504_v14 = vcombine.high %v884_v7, %v888_v9  ;;  %v927_v53 = vld [vmem:[#allocation7 + $0x18f0] sm:$0xff]  ;;  %v924_v52 = vld [vmem:[#allocation7 + $0x18d8] sm:$0xff] }
 0x4e4   :  { %10677 = vmatpush1.bf16.msra.mxu0 %v14453_v16  ;;  %11169 = vmatpush1.bf16.msra.mxu1 %v14455_v21  ;;  %v896_v16 = vld [vmem:[#allocation7 + $0x17f8] sm:$0xff]  ;;  %v14501_v21 = vcombine.low %v883_v3, %v887_v6  ;;  %v931_v3 = vld [vmem:[#allocation7 + $0x1910] sm:$0xff] }
 0x4e5   :  { %10678 = vmatprep.subr.bf16.mxu0 %v14462_v22  ;;  %11170 = vmatprep.subr.bf16.mxu1 %v14464_v26  ;;  %v14503_v22 = vcombine.low %v884_v7, %v888_v9  ;;  %v14510_v26 = vcombine.high %v891_v17, %v895_v58  ;;  %v14512_v27 = vcombine.high %v892_v18, %v896_v16  ;;  %v935_v6 = vld [vmem:[#allocation7 + $0x1930] sm:$0xff]  ;;  %v932_v7 = vld [vmem:[#allocation7 + $0x1918] sm:$0xff] }
 0x4e6   :  { %v936_v9 = vld [vmem:[#allocation7 + $0x1938] sm:$0xff] }
 0x4e8   :  { %10679 = vmatpush1.bf16.msra.mxu0 %v14461_v55  ;;  %11171 = vmatpush1.bf16.msra.mxu1 %v14463_v30  ;;  %v904_v55 = vld [vmem:[#allocation7 + $0x1838] sm:$0xff]  ;;  %v14509_v30 = vcombine.low %v891_v17, %v895_v58  ;;  %v943_v17 = vld [vmem:[#allocation7 + $0x1970] sm:$0xff] }
 0x4e9   :  { %10680 = vmatprep.subr.bf16.mxu0 %v14470_v28  ;;  %11172 = vmatprep.subr.bf16.mxu1 %v14472_v31  ;;  %v14511_v28 = vcombine.low %v892_v18, %v896_v16  ;;  %v14518_v31 = vcombine.high %v899_v39, %v903_v59  ;;  %v14520_v49 = vcombine.high %v900_v29, %v904_v55  ;;  %v940_v58 = vld [vmem:[#allocation7 + $0x1958] sm:$0xff] }
 0x4ea   :  { %v944_v18 = vld [vmem:[#allocation7 + $0x1978] sm:$0xff]  ;;  %v14549_v16 = vcombine.low %v931_v3, %v935_v6 }
 0x4ec   :  { %10681 = vmatpush1.bf16.msra.mxu0 %v14469_v35  ;;  %11173 = vmatpush1.bf16.msra.mxu1 %v14471_v48  ;;  %v912_v35 = vld [vmem:[#allocation7 + $0x1878] sm:$0xff]  ;;  %v14517_v48 = vcombine.low %v899_v39, %v903_v59  ;;  %v951_v39 = vld [vmem:[#allocation7 + $0x19b0] sm:$0xff] }
 0x4ed   :  { %10682 = vmatprep.subr.bf16.mxu0 %v14478_v12  ;;  %11174 = vmatprep.subr.bf16.mxu1 %v14480_v2  ;;  %v14519_v12 = vcombine.low %v900_v29, %v904_v55  ;;  %v14526_v2 = vcombine.high %v907_v33, %v911_v15  ;;  %v14528_v36 = vcombine.high %v908_v25, %v912_v35  ;;  %v948_v59 = vld [vmem:[#allocation7 + $0x1998] sm:$0xff] }
 0x4ee   :  { %v952_v29 = vld [vmem:[#allocation7 + $0x19b8] sm:$0xff] }
 0x4f0   :  { %10683 = vmatpush1.bf16.msra.mxu0 %v14477_v42  ;;  %11175 = vmatpush1.bf16.msra.mxu1 %v14479_v57  ;;  %v920_v42 = vld [vmem:[#allocation7 + $0x18b8] sm:$0xff]  ;;  %v14525_v57 = vcombine.low %v907_v33, %v911_v15  ;;  %v959_v33 = vld [vmem:[#allocation7 + $0x19f0] sm:$0xff] }
 0x4f1   :  { %10684 = vmatprep.subr.bf16.mxu0 %v14486_v43  ;;  %11176 = vmatprep.subr.bf16.mxu1 %v14488_v34  ;;  %v14527_v43 = vcombine.low %v908_v25, %v912_v35  ;;  %v14534_v34 = vcombine.high %v915_v37, %v919_v40  ;;  %v14536_v45 = vcombine.high %v916_v41, %v920_v42  ;;  %v956_v15 = vld [vmem:[#allocation7 + $0x19d8] sm:$0xff] }
 0x4f2   :  { %v960_v25 = vld [vmem:[#allocation7 + $0x19f8] sm:$0xff] }
 0x4f4   :  { %10685 = vmatpush1.bf16.msra.mxu0 %v14485_v56  ;;  %11177 = vmatpush1.bf16.msra.mxu1 %v14487_v19  ;;  %v928_v56 = vld [vmem:[#allocation7 + $0x18f8] sm:$0xff]  ;;  %v14533_v19 = vcombine.low %v915_v37, %v919_v40  ;;  %v967_v37 = vld [vmem:[#allocation7 + $0x1a30] sm:$0xff] }
 0x4f5   :  { %10686 = vmatprep.subr.bf16.mxu0 %v14494_v54  ;;  %11178 = vmatprep.subr.bf16.mxu1 %v14496_v63  ;;  %v14542_v54 = vcombine.high %v923_v47, %v927_v53  ;;  %v14544_v63 = vcombine.high %v924_v52, %v928_v56  ;;  %v964_v40 = vld [vmem:[#allocation7 + $0x1a18] sm:$0xff] }
 0x4f8   :  { %10687 = vmatpush1.bf16.msra.mxu0 %v14493_v23  ;;  %11179 = vmatpush1.bf16.msra.mxu1 %v14495_v11  ;;  %v14541_v23 = vcombine.low %v923_v47, %v927_v53  ;;  %v14543_v11 = vcombine.low %v924_v52, %v928_v56  ;;  %v975_v47 = vld [vmem:[#allocation7 + $0x1a70] sm:$0xff]  ;;  %v972_v53 = vld [vmem:[#allocation7 + $0x1a58] sm:$0xff] }
 0x4f9   :  { %10688 = vmatprep.subr.bf16.mxu0 %v14502_v13  ;;  %11180 = vmatprep.subr.bf16.mxu1 %v14504_v14  ;;  %v14550_v13 = vcombine.high %v931_v3, %v935_v6  ;;  %v939_v14 = vld [vmem:[#allocation7 + $0x1950] sm:$0xff]  ;;  %v976_v52 = vld [vmem:[#allocation7 + $0x1a78] sm:$0xff] }
 0x4fa   :  { %v14557_v55 = vcombine.low %v939_v14, %v943_v17  ;;  %v983_v3 = vld [vmem:[#allocation7 + $0x1ab0] sm:$0xff]  ;;  %v980_v6 = vld [vmem:[#allocation7 + $0x1a98] sm:$0xff] }
 0x4fc   :  { %10689 = vmatpush1.bf16.msra.mxu0 %v14501_v21  ;;  %11181 = vmatpush1.bf16.msra.mxu1 %v14503_v22  ;;  %v14551_v21 = vcombine.low %v932_v7, %v936_v9  ;;  %v14558_v22 = vcombine.high %v939_v14, %v943_v17  ;;  %v991_v14 = vld [vmem:[#allocation7 + $0x1af0] sm:$0xff]  ;;  %v988_v17 = vld [vmem:[#allocation7 + $0x1ad8] sm:$0xff] }
 0x4fd   :  { %10690 = vmatprep.subr.bf16.mxu0 %v14510_v26  ;;  %11182 = vmatprep.subr.bf16.mxu1 %v14512_v27  ;;  %v14560_v26 = vcombine.high %v940_v58, %v944_v18  ;;  %v947_v27 = vld [vmem:[#allocation7 + $0x1990] sm:$0xff] }
 0x4fe   :  { %v14565_v35 = vcombine.low %v947_v27, %v951_v39 }
 0x500   :  { %10691 = vmatpush1.bf16.msra.mxu0 %v14509_v30  ;;  %11183 = vmatpush1.bf16.msra.mxu1 %v14511_v28  ;;  %v14559_v30 = vcombine.low %v940_v58, %v944_v18  ;;  %v14566_v28 = vcombine.high %v947_v27, %v951_v39  ;;  %v992_v58 = vld [vmem:[#allocation7 + $0x1af8] sm:$0xff]  ;;  %v999_v27 = vld [vmem:[#allocation7 + $0x1b30] sm:$0xff] }
 0x501   :  { %10701 = vmatprep.subr.bf16.mxu0 %v14518_v31  ;;  %11193 = vmatprep.subr.bf16.mxu1 %v14520_v49  ;;  %v14568_v31 = vcombine.high %v948_v59, %v952_v29  ;;  %v955_v49 = vld [vmem:[#allocation7 + $0x19d0] sm:$0xff]  ;;  %v996_v39 = vld [vmem:[#allocation7 + $0x1b18] sm:$0xff] }
 0x503   :  { %10693 = vmatmul.mubr.bf16.vlgmr.msra.gmra.mrb[4].mxu0 %v16694_v46  ;;  %11185 = vmatmul.mubr.bf16.vlgmr.msra.gmra.mrb[4].mxu1 %v16694_v46  ;;  %v14535_v46 = vcombine.low %v916_v41, %v920_v42  ;;  %v968_v41 = vld [vmem:[#allocation7 + $0x1a38] sm:$0xff]  ;;  %v14573_v42 = vcombine.low %v955_v49, %v959_v33 }
 0x504   :  { %10702 = vmatpush1.bf16.msra.mxu0 %v14517_v48  ;;  %11194 = vmatpush1.bf16.msra.mxu1 %v14519_v12  ;;  %v14567_v48 = vcombine.low %v948_v59, %v952_v29  ;;  %v14574_v12 = vcombine.high %v955_v49, %v959_v33  ;;  %v1000_v59 = vld [vmem:[#allocation7 + $0x1b38] sm:$0xff]  ;;  %v1007_v49 = vld [vmem:[#allocation7 + $0x1b70] sm:$0xff] }
 0x505   :  { %10703 = vmatprep.subr.bf16.mxu0 %v14526_v2  ;;  %11195 = vmatprep.subr.bf16.mxu1 %v14528_v36  ;;  %v14576_v2 = vcombine.high %v956_v15, %v960_v25  ;;  %v963_v36 = vld [vmem:[#allocation7 + $0x1a10] sm:$0xff]  ;;  %v1004_v33 = vld [vmem:[#allocation7 + $0x1b58] sm:$0xff] }
 0x506   :  { %10733 = vmatprep.mubr.bf16.mxu0 %v16700_v60  ;;  %11225 = vmatprep.mubr.bf16.mxu1 %v16700_v60  ;;  %v14552_v60 = vcombine.high %v932_v7, %v936_v9  ;;  %v14581_v56 = vcombine.low %v963_v36, %v967_v37  ;;  %v984_v7 = vld [vmem:[#allocation7 + $0x1ab8] sm:$0xff] }
 0x508   :  { %10704 = vmatpush1.bf16.msra.mxu0 %v14525_v57  ;;  %11196 = vmatpush1.bf16.msra.mxu1 %v14527_v43  ;;  %v14575_v57 = vcombine.low %v956_v15, %v960_v25  ;;  %v14582_v43 = vcombine.high %v963_v36, %v967_v37  ;;  %v1008_v15 = vld [vmem:[#allocation7 + $0x1b78] sm:$0xff]  ;;  %v1015_v36 = vld [vmem:[#allocation7 + $0x1bb0] sm:$0xff] }
 0x509   :  { %10705 = vmatprep.subr.bf16.mxu0 %v14534_v34  ;;  %11197 = vmatprep.subr.bf16.mxu1 %v14536_v45  ;;  %v14584_v34 = vcombine.high %v964_v40, %v968_v41  ;;  %v971_v45 = vld [vmem:[#allocation7 + $0x1a50] sm:$0xff]  ;;  %v1012_v37 = vld [vmem:[#allocation7 + $0x1b98] sm:$0xff] }
 0x50a   :  { %v14589_v9 = vcombine.low %v971_v45, %v975_v47 }
 0x50c   :  { %10706 = vmatpush1.bf16.msra.mxu0 %v14533_v19  ;;  %11198 = vmatpush1.bf16.msra.mxu1 %v14535_v46  ;;  %v14583_v19 = vcombine.low %v964_v40, %v968_v41  ;;  %v14590_v46 = vcombine.high %v971_v45, %v975_v47  ;;  %v1016_v40 = vld [vmem:[#allocation7 + $0x1bb8] sm:$0xff]  ;;  %v1023_v45 = vld [vmem:[#allocation7 + $0x1bf0] sm:$0xff] }
 0x50d   :  { %10707 = vmatprep.subr.bf16.mxu0 %v14542_v54  ;;  %11199 = vmatprep.subr.bf16.mxu1 %v14544_v63  ;;  %v14592_v54 = vcombine.high %v972_v53, %v976_v52  ;;  %v979_v63 = vld [vmem:[#allocation7 + $0x1a90] sm:$0xff]  ;;  %v1020_v47 = vld [vmem:[#allocation7 + $0x1bd8] sm:$0xff] }
 0x50e   :  { %v14597_v18 = vcombine.low %v979_v63, %v983_v3 }
 0x510   :  { %10708 = vmatpush1.bf16.msra.mxu0 %v14541_v23  ;;  %11200 = vmatpush1.bf16.msra.mxu1 %v14543_v11  ;;  %v14591_v23 = vcombine.low %v972_v53, %v976_v52  ;;  %v14598_v11 = vcombine.high %v979_v63, %v983_v3  ;;  %v1024_v53 = vld [vmem:[#allocation7 + $0x1bf8] sm:$0xff]  ;;  %v1031_v63 = vld [vmem:[#allocation7 + $0x1c30] sm:$0xff] }
 0x511   :  { %10709 = vmatprep.subr.bf16.mxu0 %v14550_v13  ;;  %11201 = vmatprep.subr.bf16.mxu1 %v14552_v60  ;;  %v14600_v13 = vcombine.high %v980_v6, %v984_v7  ;;  %v987_v60 = vld [vmem:[#allocation7 + $0x1ad0] sm:$0xff]  ;;  %v1028_v3 = vld [vmem:[#allocation7 + $0x1c18] sm:$0xff] }
 0x512   :  { %v14605_v29 = vcombine.low %v987_v60, %v991_v14 }
 0x514   :  { %10710 = vmatpush1.bf16.msra.mxu0 %v14549_v16  ;;  %11202 = vmatpush1.bf16.msra.mxu1 %v14551_v21  ;;  %v14599_v16 = vcombine.low %v980_v6, %v984_v7  ;;  %v14606_v21 = vcombine.high %v987_v60, %v991_v14  ;;  %v1032_v6 = vld [vmem:[#allocation7 + $0x1c38] sm:$0xff]  ;;  %v1039_v60 = vld [vmem:[#allocation7 + $0x1c70] sm:$0xff] }
 0x515   :  { %10711 = vmatprep.subr.bf16.mxu0 %v14558_v22  ;;  %11203 = vmatprep.subr.bf16.mxu1 %v14560_v26  ;;  %v14608_v22 = vcombine.high %v988_v17, %v992_v58  ;;  %v995_v26 = vld [vmem:[#allocation7 + $0x1b10] sm:$0xff]  ;;  %v1036_v14 = vld [vmem:[#allocation7 + $0x1c58] sm:$0xff] }
 0x516   :  { %v14613_v25 = vcombine.low %v995_v26, %v999_v27 }
 0x518   :  { %10712 = vmatpush1.bf16.msra.mxu0 %v14557_v55  ;;  %11204 = vmatpush1.bf16.msra.mxu1 %v14559_v30  ;;  %v14607_v55 = vcombine.low %v988_v17, %v992_v58  ;;  %v14614_v30 = vcombine.high %v995_v26, %v999_v27  ;;  %v1040_v17 = vld [vmem:[#allocation7 + $0x1c78] sm:$0xff]  ;;  %v1047_v26 = vld [vmem:[#allocation7 + $0x1cb0] sm:$0xff] }
 0x519   :  { %10713 = vmatprep.subr.bf16.mxu0 %v14566_v28  ;;  %11205 = vmatprep.subr.bf16.mxu1 %v14568_v31  ;;  %v14616_v28 = vcombine.high %v996_v39, %v1000_v59  ;;  %v1003_v31 = vld [vmem:[#allocation7 + $0x1b50] sm:$0xff]  ;;  %v1044_v27 = vld [vmem:[#allocation7 + $0x1c98] sm:$0xff] }
 0x51a   :  { %v14621_v41 = vcombine.low %v1003_v31, %v1007_v49 }
 0x51c   :  { %10714 = vmatpush1.bf16.msra.mxu0 %v14565_v35  ;;  %11206 = vmatpush1.bf16.msra.mxu1 %v14567_v48  ;;  %v14615_v35 = vcombine.low %v996_v39, %v1000_v59  ;;  %v14622_v48 = vcombine.high %v1003_v31, %v1007_v49  ;;  %v1048_v39 = vld [vmem:[#allocation7 + $0x1cb8] sm:$0xff]  ;;  %v1055_v31 = vld [vmem:[#allocation7 + $0x1cf0] sm:$0xff] }
 0x51d   :  { %10715 = vmatprep.subr.bf16.mxu0 %v14574_v12  ;;  %11207 = vmatprep.subr.bf16.mxu1 %v14576_v2  ;;  %v14624_v12 = vcombine.high %v1004_v33, %v1008_v15  ;;  %v1011_v2 = vld [vmem:[#allocation7 + $0x1b90] sm:$0xff]  ;;  %v1052_v49 = vld [vmem:[#allocation7 + $0x1cd8] sm:$0xff] }
 0x51e   :  { %v14629_v52 = vcombine.low %v1011_v2, %v1015_v36 }
 0x520   :  { %10716 = vmatpush1.bf16.msra.mxu0 %v14573_v42  ;;  %11208 = vmatpush1.bf16.msra.mxu1 %v14575_v57  ;;  %v14623_v42 = vcombine.low %v1004_v33, %v1008_v15  ;;  %v14630_v57 = vcombine.high %v1011_v2, %v1015_v36  ;;  %v1056_v33 = vld [vmem:[#allocation7 + $0x1cf8] sm:$0xff] }
 0x521   :  { %10717 = vmatprep.subr.bf16.mxu0 %v14582_v43  ;;  %11209 = vmatprep.subr.bf16.mxu1 %v14584_v34  ;;  %v14632_v43 = vcombine.high %v1012_v37, %v1016_v40  ;;  %v1019_v34 = vld [vmem:[#allocation7 + $0x1bd0] sm:$0xff]  ;;  %v1060_v2 = vld [vmem:[#allocation7 + $0x1d18] sm:$0xff] }
 0x522   :  { %v14637_v7 = vcombine.low %v1019_v34, %v1023_v45  ;;  %v1064_v36 = vld [vmem:[#allocation7 + $0x1d38] sm:$0xff] }
 0x524   :  { %10718 = vmatpush1.bf16.msra.mxu0 %v14581_v56  ;;  %11210 = vmatpush1.bf16.msra.mxu1 %v14583_v19  ;;  %v14631_v56 = vcombine.low %v1012_v37, %v1016_v40  ;;  %v14638_v19 = vcombine.high %v1019_v34, %v1023_v45  ;;  %v14671_v40 = vcombine.low %v1052_v49, %v1056_v33  ;;  %v1072_v34 = vld [vmem:[#allocation7 + $0x1d78] sm:$0xff] }
 0x525   :  { %10719 = vmatprep.subr.bf16.mxu0 %v14590_v46  ;;  %11211 = vmatprep.subr.bf16.mxu1 %v14592_v54  ;;  %v14640_v46 = vcombine.high %v1020_v47, %v1024_v53  ;;  %v1027_v54 = vld [vmem:[#allocation7 + $0x1c10] sm:$0xff] }
 0x526   :  { %v14645_v58 = vcombine.low %v1027_v54, %v1031_v63 }
 0x528   :  { %10720 = vmatpush1.bf16.msra.mxu0 %v14589_v9  ;;  %11212 = vmatpush1.bf16.msra.mxu1 %v14591_v23  ;;  %v14639_v9 = vcombine.low %v1020_v47, %v1024_v53  ;;  %v14646_v23 = vcombine.high %v1027_v54, %v1031_v63  ;;  %v14679_v47 = vcombine.low %v1060_v2, %v1064_v36  ;;  %v1080_v54 = vld [vmem:[#allocation7 + $0x1db8] sm:$0xff] }
 0x529   :  { %10721 = vmatprep.subr.bf16.mxu0 %v14598_v11  ;;  %11213 = vmatprep.subr.bf16.mxu1 %v14600_v13  ;;  %v14648_v11 = vcombine.high %v1028_v3, %v1032_v6  ;;  %v1035_v13 = vld [vmem:[#allocation7 + $0x1c50] sm:$0xff] }
 0x52a   :  { %v14653_v59 = vcombine.low %v1035_v13, %v1039_v60 }
 0x52c   :  { %10722 = vmatpush1.bf16.msra.mxu0 %v14597_v18  ;;  %11214 = vmatpush1.bf16.msra.mxu1 %v14599_v16  ;;  %v14647_v18 = vcombine.low %v1028_v3, %v1032_v6  ;;  %v14654_v16 = vcombine.high %v1035_v13, %v1039_v60  ;;  %v1088_v13 = vld [vmem:[#allocation7 + $0x1df8] sm:$0xff] }
 0x52d   :  { %10723 = vmatprep.subr.bf16.mxu0 %v14606_v21  ;;  %11215 = vmatprep.subr.bf16.mxu1 %v14608_v22  ;;  %v14656_v21 = vcombine.high %v1036_v14, %v1040_v17  ;;  %v1043_v22 = vld [vmem:[#allocation7 + $0x1c90] sm:$0xff] }
 0x52e   :  { %v14661_v15 = vcombine.low %v1043_v22, %v1047_v26 }
 0x530   :  { %10724 = vmatpush1.bf16.msra.mxu0 %v14605_v29  ;;  %11216 = vmatpush1.bf16.msra.mxu1 %v14607_v55  ;;  %v14655_v29 = vcombine.low %v1036_v14, %v1040_v17  ;;  %v14662_v55 = vcombine.high %v1043_v22, %v1047_v26  ;;  %v1096_v22 = vld [vmem:[#allocation7 + $0x1e38] sm:$0xff] }
 0x531   :  { %10725 = vmatprep.subr.bf16.mxu0 %v14614_v30  ;;  %11217 = vmatprep.subr.bf16.mxu1 %v14616_v28  ;;  %v14664_v30 = vcombine.high %v1044_v27, %v1048_v39  ;;  %v1051_v28 = vld [vmem:[#allocation7 + $0x1cd0] sm:$0xff] }
 0x532   :  { %v14669_v37 = vcombine.low %v1051_v28, %v1055_v31 }
 0x534   :  { %10726 = vmatpush1.bf16.msra.mxu0 %v14613_v25  ;;  %11218 = vmatpush1.bf16.msra.mxu1 %v14615_v35  ;;  %v14670_v25 = vcombine.high %v1051_v28, %v1055_v31  ;;  %v14672_v35 = vcombine.high %v1052_v49, %v1056_v33  ;;  %v1104_v28 = vld [vmem:[#allocation7 + $0x1e78] sm:$0xff] }
 0x535   :  { %10727 = vmatprep.subr.bf16.mxu0 %v14622_v48  ;;  %11219 = vmatprep.subr.bf16.mxu1 %v14624_v12  ;;  %v1059_v48 = vld [vmem:[#allocation7 + $0x1d10] sm:$0xff] }
 0x536   :  { %v1063_v12 = vld [vmem:[#allocation7 + $0x1d30] sm:$0xff] }
 0x537   :  { %v14677_v45 = vcombine.low %v1059_v48, %v1063_v12 }
 0x538   :  { %10728 = vmatpush1.bf16.msra.mxu0 %v14621_v41  ;;  %11220 = vmatpush1.bf16.msra.mxu1 %v14623_v42  ;;  %v14678_v41 = vcombine.high %v1059_v48, %v1063_v12  ;;  %v1067_v42 = vld [vmem:[#allocation7 + $0x1d50] sm:$0xff]  ;;  %v1112_v48 = vld [vmem:[#allocation7 + $0x1eb8] sm:$0xff] }
 0x539   :  { %10729 = vmatprep.subr.bf16.mxu0 %v14630_v57  ;;  %11221 = vmatprep.subr.bf16.mxu1 %v14632_v43  ;;  %v1071_v57 = vld [vmem:[#allocation7 + $0x1d70] sm:$0xff]  ;;  %v1068_v43 = vld [vmem:[#allocation7 + $0x1d58] sm:$0xff] }
 0x53a   :  { %v14686_v53 = vcombine.high %v1067_v42, %v1071_v57  ;;  %v14685_v63 = vcombine.low %v1067_v42, %v1071_v57  ;;  %v14687_v3 = vcombine.low %v1068_v43, %v1072_v34  ;;  %v1120_v42 = vld [vmem:[#allocation7 + $0x1ef8] sm:$0xff] }
 0x53c   :  { %10730 = vmatpush1.bf16.msra.mxu0 %v14629_v52  ;;  %11222 = vmatpush1.bf16.msra.mxu1 %v14631_v56  ;;  %v14688_v52 = vcombine.high %v1068_v43, %v1072_v34  ;;  %v1075_v56 = vld [vmem:[#allocation7 + $0x1d90] sm:$0xff] }
 0x53d   :  { %10731 = vmatprep.subr.bf16.mxu0 %v14638_v19  ;;  %11223 = vmatprep.subr.bf16.mxu1 %v14640_v46  ;;  %v1079_v19 = vld [vmem:[#allocation7 + $0x1db0] sm:$0xff]  ;;  %v1076_v46 = vld [vmem:[#allocation7 + $0x1d98] sm:$0xff] }
 0x53e   :  { %v14694_v6 = vcombine.high %v1075_v56, %v1079_v19  ;;  %v14693_v60 = vcombine.low %v1075_v56, %v1079_v19  ;;  %v14695_v14 = vcombine.low %v1076_v46, %v1080_v54  ;;  %v1128_v56 = vld [vmem:[#allocation7 + $0x1f38] sm:$0xff] }
 0x540   :  { %10732 = vmatpush1.bf16.msra.mxu0 %v14637_v7  ;;  %11224 = vmatpush1.bf16.msra.mxu1 %v14639_v9  ;;  %v14696_v7 = vcombine.high %v1076_v46, %v1080_v54  ;;  %v1083_v9 = vld [vmem:[#allocation7 + $0x1dd0] sm:$0xff] }
 0x541   :  { %10742 = vmatprep.subr.bf16.mxu0 %v14646_v23  ;;  %11234 = vmatprep.subr.bf16.mxu1 %v14648_v11  ;;  %v1087_v23 = vld [vmem:[#allocation7 + $0x1df0] sm:$0xff]  ;;  %v1084_v11 = vld [vmem:[#allocation7 + $0x1dd8] sm:$0xff] }
 0x542   :  { %v14702_v17 = vcombine.high %v1083_v9, %v1087_v23  ;;  %v14701_v26 = vcombine.low %v1083_v9, %v1087_v23  ;;  %v1136_v9 = vld [vmem:[#allocation7 + $0x1f78] sm:$0xff] }
 0x543   :  { %10734 = vmatmul.mubr.bf16.vlgmr.msra.gmra.mrb[4].mxu0 %v16708_v20  ;;  %11226 = vmatmul.mubr.bf16.vlgmr.msra.gmra.mrb[4].mxu1 %v16708_v20  ;;  %v14663_v20 = vcombine.low %v1044_v27, %v1048_v39  ;;  %v14703_v27 = vcombine.low %v1084_v11, %v1088_v13 }
 0x544   :  { %10743 = vmatpush1.bf16.msra.mxu0 %v14645_v58  ;;  %11235 = vmatpush1.bf16.msra.mxu1 %v14647_v18  ;;  %v14704_v58 = vcombine.high %v1084_v11, %v1088_v13  ;;  %v1091_v18 = vld [vmem:[#allocation7 + $0x1e10] sm:$0xff] }
 0x545   :  { %10744 = vmatprep.subr.bf16.mxu0 %v14654_v16  ;;  %11236 = vmatprep.subr.bf16.mxu1 %v14656_v21  ;;  %v1095_v16 = vld [vmem:[#allocation7 + $0x1e30] sm:$0xff]  ;;  %v1092_v21 = vld [vmem:[#allocation7 + $0x1e18] sm:$0xff] }
 0x546   :  { %10774 = vmatprep.mubr.bf16.mxu0 %v16714_v32  ;;  %11266 = vmatprep.mubr.bf16.mxu1 %v16714_v32  ;;  %v14680_v32 = vcombine.high %v1060_v2, %v1064_v36  ;;  %v14710_v39 = vcombine.high %v1091_v18, %v1095_v16  ;;  %v14709_v31 = vcombine.low %v1091_v18, %v1095_v16  ;;  %v1144_v18 = vld [vmem:[#allocation7 + $0x1fb8] sm:$0xff] }
 0x547   :  { %v14711_v49 = vcombine.low %v1092_v21, %v1096_v22 }
 0x548   :  { %10745 = vmatpush1.bf16.msra.mxu0 %v14653_v59  ;;  %11237 = vmatpush1.bf16.msra.mxu1 %v14655_v29  ;;  %v14712_v59 = vcombine.high %v1092_v21, %v1096_v22  ;;  %v1099_v29 = vld [vmem:[#allocation7 + $0x1e50] sm:$0xff] }
 0x549   :  { %10746 = vmatprep.subr.bf16.mxu0 %v14662_v55  ;;  %11238 = vmatprep.subr.bf16.mxu1 %v14664_v30  ;;  %v1103_v55 = vld [vmem:[#allocation7 + $0x1e70] sm:$0xff]  ;;  %v1100_v30 = vld [vmem:[#allocation7 + $0x1e58] sm:$0xff] }
 0x54a   :  { %v14718_v33 = vcombine.high %v1099_v29, %v1103_v55  ;;  %v14717_v12 = vcombine.low %v1099_v29, %v1103_v55  ;;  %v14719_v2 = vcombine.low %v1100_v30, %v1104_v28  ;;  %v1152_v29 = vld [vmem:[#allocation7 + $0x1ff8] sm:$0xff] }
 0x54c   :  { %10747 = vmatpush1.bf16.msra.mxu0 %v14661_v15  ;;  %11239 = vmatpush1.bf16.msra.mxu1 %v14663_v20  ;;  %v14720_v15 = vcombine.high %v1100_v30, %v1104_v28  ;;  %v1107_v20 = vld [vmem:[#allocation7 + $0x1e90] sm:$0xff] }
 0x54d   :  { %10748 = vmatprep.subr.bf16.mxu0 %v14670_v25  ;;  %11240 = vmatprep.subr.bf16.mxu1 %v14672_v35  ;;  %v1111_v25 = vld [vmem:[#allocation7 + $0x1eb0] sm:$0xff]  ;;  %v1108_v35 = vld [vmem:[#allocation7 + $0x1e98] sm:$0xff] }
 0x54e   :  { %v14726_v36 = vcombine.high %v1107_v20, %v1111_v25  ;;  %v14725_v57 = vcombine.low %v1107_v20, %v1111_v25  ;;  %v14727_v43 = vcombine.low %v1108_v35, %v1112_v48  ;;  %v1160_v20 = vld [vmem:[#allocation7 + $0x2038] sm:$0xff] }
 0x550   :  { %10749 = vmatpush1.bf16.msra.mxu0 %v14669_v37  ;;  %11241 = vmatpush1.bf16.msra.mxu1 %v14671_v40  ;;  %v14728_v37 = vcombine.high %v1108_v35, %v1112_v48  ;;  %v1115_v40 = vld [vmem:[#allocation7 + $0x1ed0] sm:$0xff] }
 0x551   :  { %10750 = vmatprep.subr.bf16.mxu0 %v14678_v41  ;;  %11242 = vmatprep.subr.bf16.mxu1 %v14680_v32  ;;  %v1119_v41 = vld [vmem:[#allocation7 + $0x1ef0] sm:$0xff]  ;;  %v1116_v32 = vld [vmem:[#allocation7 + $0x1ed8] sm:$0xff] }
 0x552   :  { %v14734_v34 = vcombine.high %v1115_v40, %v1119_v41  ;;  %v14733_v19 = vcombine.low %v1115_v40, %v1119_v41  ;;  %v14735_v46 = vcombine.low %v1116_v32, %v1120_v42  ;;  %v1168_v40 = vld [vmem:[#allocation7 + $0x2078] sm:$0xff] }
 0x554   :  { %10751 = vmatpush1.bf16.msra.mxu0 %v14677_v45  ;;  %11243 = vmatpush1.bf16.msra.mxu1 %v14679_v47  ;;  %v14736_v45 = vcombine.high %v1116_v32, %v1120_v42  ;;  %v1123_v47 = vld [vmem:[#allocation7 + $0x1f10] sm:$0xff] }
 0x555   :  { %10752 = vmatprep.subr.bf16.mxu0 %v14686_v53  ;;  %11244 = vmatprep.subr.bf16.mxu1 %v14688_v52  ;;  %v1127_v53 = vld [vmem:[#allocation7 + $0x1f30] sm:$0xff]  ;;  %v1124_v52 = vld [vmem:[#allocation7 + $0x1f18] sm:$0xff] }
 0x556   :  { %v14742_v54 = vcombine.high %v1123_v47, %v1127_v53  ;;  %v14741_v23 = vcombine.low %v1123_v47, %v1127_v53  ;;  %v14743_v11 = vcombine.low %v1124_v52, %v1128_v56  ;;  %v1176_v47 = vld [vmem:[#allocation7 + $0x20b8] sm:$0xff] }
 0x558   :  { %10753 = vmatpush1.bf16.msra.mxu0 %v14685_v63  ;;  %11245 = vmatpush1.bf16.msra.mxu1 %v14687_v3  ;;  %v14744_v63 = vcombine.high %v1124_v52, %v1128_v56  ;;  %v1131_v3 = vld [vmem:[#allocation7 + $0x1f50] sm:$0xff] }
 0x559   :  { %10754 = vmatprep.subr.bf16.mxu0 %v14694_v6  ;;  %11246 = vmatprep.subr.bf16.mxu1 %v14696_v7  ;;  %v1135_v6 = vld [vmem:[#allocation7 + $0x1f70] sm:$0xff]  ;;  %v1132_v7 = vld [vmem:[#allocation7 + $0x1f58] sm:$0xff] }
 0x55a   :  { %v14750_v13 = vcombine.high %v1131_v3, %v1135_v6  ;;  %v14749_v16 = vcombine.low %v1131_v3, %v1135_v6  ;;  %v14751_v21 = vcombine.low %v1132_v7, %v1136_v9  ;;  %v1184_v3 = vld [vmem:[#allocation7 + $0x20f8] sm:$0xff] }
 0x55c   :  { %10755 = vmatpush1.bf16.msra.mxu0 %v14693_v60  ;;  %11247 = vmatpush1.bf16.msra.mxu1 %v14695_v14  ;;  %v14752_v60 = vcombine.high %v1132_v7, %v1136_v9  ;;  %v1139_v14 = vld [vmem:[#allocation7 + $0x1f90] sm:$0xff] }
 0x55d   :  { %10756 = vmatprep.subr.bf16.mxu0 %v14702_v17  ;;  %11248 = vmatprep.subr.bf16.mxu1 %v14704_v58  ;;  %v1143_v17 = vld [vmem:[#allocation7 + $0x1fb0] sm:$0xff]  ;;  %v1140_v58 = vld [vmem:[#allocation7 + $0x1f98] sm:$0xff] }
 0x55e   :  { %v14758_v22 = vcombine.high %v1139_v14, %v1143_v17  ;;  %v14757_v55 = vcombine.low %v1139_v14, %v1143_v17  ;;  %v14759_v30 = vcombine.low %v1140_v58, %v1144_v18 }
 0x560   :  { %10757 = vmatpush1.bf16.msra.mxu0 %v14701_v26  ;;  %11249 = vmatpush1.bf16.msra.mxu1 %v14703_v27  ;;  %v14760_v26 = vcombine.high %v1140_v58, %v1144_v18  ;;  %v1147_v27 = vld [vmem:[#allocation7 + $0x1fd0] sm:$0xff] }
 0x561   :  { %10758 = vmatprep.subr.bf16.mxu0 %v14710_v39  ;;  %11250 = vmatprep.subr.bf16.mxu1 %v14712_v59  ;;  %v1151_v39 = vld [vmem:[#allocation7 + $0x1ff0] sm:$0xff]  ;;  %v1148_v59 = vld [vmem:[#allocation7 + $0x1fd8] sm:$0xff] }
 0x562   :  { %v14766_v28 = vcombine.high %v1147_v27, %v1151_v39  ;;  %v14765_v25 = vcombine.low %v1147_v27, %v1151_v39  ;;  %v14767_v35 = vcombine.low %v1148_v59, %v1152_v29  ;;  %v1195_v18 = vld [vmem:[#allocation7 + $0x2150] sm:$0xff] }
 0x564   :  { %10759 = vmatpush1.bf16.msra.mxu0 %v14709_v31  ;;  %11251 = vmatpush1.bf16.msra.mxu1 %v14711_v49  ;;  %v14768_v31 = vcombine.high %v1148_v59, %v1152_v29  ;;  %v1155_v49 = vld [vmem:[#allocation7 + $0x2010] sm:$0xff] }
 0x565   :  { %10760 = vmatprep.subr.bf16.mxu0 %v14718_v33  ;;  %11252 = vmatprep.subr.bf16.mxu1 %v14720_v15  ;;  %v1159_v33 = vld [vmem:[#allocation7 + $0x2030] sm:$0xff]  ;;  %v1156_v15 = vld [vmem:[#allocation7 + $0x2018] sm:$0xff] }
 0x566   :  { %v14774_v48 = vcombine.high %v1155_v49, %v1159_v33  ;;  %v14773_v41 = vcombine.low %v1155_v49, %v1159_v33  ;;  %v14775_v32 = vcombine.low %v1156_v15, %v1160_v20  ;;  %v1203_v29 = vld [vmem:[#allocation7 + $0x2190] sm:$0xff] }
 0x568   :  { %10761 = vmatpush1.bf16.msra.mxu0 %v14717_v12  ;;  %11253 = vmatpush1.bf16.msra.mxu1 %v14719_v2  ;;  %v14776_v12 = vcombine.high %v1156_v15, %v1160_v20  ;;  %v1163_v2 = vld [vmem:[#allocation7 + $0x2050] sm:$0xff] }
 0x569   :  { %10762 = vmatprep.subr.bf16.mxu0 %v14726_v36  ;;  %11254 = vmatprep.subr.bf16.mxu1 %v14728_v37  ;;  %v1167_v36 = vld [vmem:[#allocation7 + $0x2070] sm:$0xff]  ;;  %v1164_v37 = vld [vmem:[#allocation7 + $0x2058] sm:$0xff] }
 0x56a   :  { %v14782_v42 = vcombine.high %v1163_v2, %v1167_v36  ;;  %v14781_v53 = vcombine.low %v1163_v2, %v1167_v36  ;;  %v14783_v52 = vcombine.low %v1164_v37, %v1168_v40  ;;  %v1211_v20 = vld [vmem:[#allocation7 + $0x21d0] sm:$0xff] }
 0x56c   :  { %10763 = vmatpush1.bf16.msra.mxu0 %v14725_v57  ;;  %11255 = vmatpush1.bf16.msra.mxu1 %v14727_v43  ;;  %v14784_v57 = vcombine.high %v1164_v37, %v1168_v40  ;;  %v1171_v43 = vld [vmem:[#allocation7 + $0x2090] sm:$0xff] }
 0x56d   :  { %10764 = vmatprep.subr.bf16.mxu0 %v14734_v34  ;;  %11256 = vmatprep.subr.bf16.mxu1 %v14736_v45  ;;  %v1175_v34 = vld [vmem:[#allocation7 + $0x20b0] sm:$0xff]  ;;  %v1172_v45 = vld [vmem:[#allocation7 + $0x2098] sm:$0xff] }
 0x56e   :  { %v14790_v56 = vcombine.high %v1171_v43, %v1175_v34  ;;  %v14789_v6 = vcombine.low %v1171_v43, %v1175_v34  ;;  %v1219_v40 = vld [vmem:[#allocation7 + $0x2210] sm:$0xff] }
 0x570   :  { %10765 = vmatpush1.bf16.msra.mxu0 %v14733_v19  ;;  %11257 = vmatpush1.bf16.msra.mxu1 %v14735_v46  ;;  %v14792_v19 = vcombine.high %v1172_v45, %v1176_v47  ;;  %v1179_v46 = vld [vmem:[#allocation7 + $0x20d0] sm:$0xff] }
 0x571   :  { %10766 = vmatprep.subr.bf16.mxu0 %v14742_v54  ;;  %11258 = vmatprep.subr.bf16.mxu1 %v14744_v63  ;;  %v1183_v54 = vld [vmem:[#allocation7 + $0x20f0] sm:$0xff]  ;;  %v1180_v63 = vld [vmem:[#allocation7 + $0x20d8] sm:$0xff] }
 0x572   :  { %v14798_v7 = vcombine.high %v1179_v46, %v1183_v54  ;;  %v14800_v9 = vcombine.high %v1180_v63, %v1184_v3  ;;  %v14797_v14 = vcombine.low %v1179_v46, %v1183_v54  ;;  %v14799_v17 = vcombine.low %v1180_v63, %v1184_v3  ;;  %v1235_v3 = vld [vmem:[#allocation7 + $0x2290] sm:$0xff] }
 0x574   :  { %10767 = vmatpush1.bf16.msra.mxu0 %v14741_v23  ;;  %11259 = vmatpush1.bf16.msra.mxu1 %v14743_v11  ;;  %v1187_v23 = vld [vmem:[#allocation7 + $0x2110] sm:$0xff] }
 0x575   :  { %10768 = vmatprep.subr.bf16.mxu0 %v14750_v13  ;;  %11260 = vmatprep.subr.bf16.mxu1 %v14752_v60  ;;  %v1191_v11 = vld [vmem:[#allocation7 + $0x2130] sm:$0xff]  ;;  %v1188_v13 = vld [vmem:[#allocation7 + $0x2118] sm:$0xff] }
 0x576   :  { %v1192_v60 = vld [vmem:[#allocation7 + $0x2138] sm:$0xff]  ;;  %v14806_v58 = vcombine.high %v1187_v23, %v1191_v11 }
 0x577   :  { %v14807_v27 = vcombine.low %v1188_v13, %v1192_v60 }
 0x578   :  { %10769 = vmatpush1.bf16.msra.mxu0 %v14749_v16  ;;  %11261 = vmatpush1.bf16.msra.mxu1 %v14751_v21  ;;  %v1199_v16 = vld [vmem:[#allocation7 + $0x2170] sm:$0xff]  ;;  %v1196_v21 = vld [vmem:[#allocation7 + $0x2158] sm:$0xff] }
 0x579   :  { %10770 = vmatprep.subr.bf16.mxu0 %v14758_v22  ;;  %11262 = vmatprep.subr.bf16.mxu1 %v14760_v26  ;;  %v1200_v22 = vld [vmem:[#allocation7 + $0x2178] sm:$0xff]  ;;  %v14805_v26 = vcombine.low %v1187_v23, %v1191_v11  ;;  %v14814_v39 = vcombine.high %v1195_v18, %v1199_v16 }
 0x57a   :  { %v14816_v59 = vcombine.high %v1196_v21, %v1200_v22  ;;  %v14815_v49 = vcombine.low %v1196_v21, %v1200_v22  ;;  %v1251_v22 = vld [vmem:[#allocation7 + $0x2310] sm:$0xff] }
 0x57c   :  { %10771 = vmatpush1.bf16.msra.mxu0 %v14757_v55  ;;  %11263 = vmatpush1.bf16.msra.mxu1 %v14759_v30  ;;  %v1207_v55 = vld [vmem:[#allocation7 + $0x21b0] sm:$0xff]  ;;  %v1204_v30 = vld [vmem:[#allocation7 + $0x2198] sm:$0xff] }
 0x57d   :  { %10772 = vmatprep.subr.bf16.mxu0 %v14766_v28  ;;  %11264 = vmatprep.subr.bf16.mxu1 %v14768_v31  ;;  %v1208_v28 = vld [vmem:[#allocation7 + $0x21b8] sm:$0xff]  ;;  %v14813_v31 = vcombine.low %v1195_v18, %v1199_v16  ;;  %v14822_v33 = vcombine.high %v1203_v29, %v1207_v55 }
 0x57e   :  { %v14824_v15 = vcombine.high %v1204_v30, %v1208_v28  ;;  %v14823_v2 = vcombine.low %v1204_v30, %v1208_v28  ;;  %v1259_v28 = vld [vmem:[#allocation7 + $0x2350] sm:$0xff] }
 0x580   :  { %10773 = vmatpush1.bf16.msra.mxu0 %v14765_v25  ;;  %11265 = vmatpush1.bf16.msra.mxu1 %v14767_v35  ;;  %v1215_v25 = vld [vmem:[#allocation7 + $0x21f0] sm:$0xff]  ;;  %v1212_v35 = vld [vmem:[#allocation7 + $0x21d8] sm:$0xff] }
 0x581   :  { %10783 = vmatprep.subr.bf16.mxu0 %v14774_v48  ;;  %11275 = vmatprep.subr.bf16.mxu1 %v14776_v12  ;;  %v1216_v48 = vld [vmem:[#allocation7 + $0x21f8] sm:$0xff]  ;;  %v14821_v12 = vcombine.low %v1203_v29, %v1207_v55  ;;  %v14830_v36 = vcombine.high %v1211_v20, %v1215_v25 }
 0x582   :  { %v14832_v37 = vcombine.high %v1212_v35, %v1216_v48  ;;  %v14831_v43 = vcombine.low %v1212_v35, %v1216_v48  ;;  %v1267_v48 = vld [vmem:[#allocation7 + $0x2390] sm:$0xff] }
 0x583   :  { %10775 = vmatmul.mubr.bf16.vlgmr.msra.gmra.mrb[4].mxu0 %v16722_v0  ;;  %11267 = vmatmul.mubr.bf16.vlgmr.msra.gmra.mrb[4].mxu1 %v16722_v0  ;;  %v14791_v0 = vcombine.low %v1172_v45, %v1176_v47  ;;  %v1227_v47 = vld [vmem:[#allocation7 + $0x2250] sm:$0xff] }
 0x584   :  { %10784 = vmatpush1.bf16.msra.mxu0 %v14773_v41  ;;  %11276 = vmatpush1.bf16.msra.mxu1 %v14775_v32  ;;  %v1223_v41 = vld [vmem:[#allocation7 + $0x2230] sm:$0xff]  ;;  %v1220_v32 = vld [vmem:[#allocation7 + $0x2218] sm:$0xff] }
 0x585   :  { %10785 = vmatprep.subr.bf16.mxu0 %v14782_v42  ;;  %11277 = vmatprep.subr.bf16.mxu1 %v14784_v57  ;;  %v1224_v42 = vld [vmem:[#allocation7 + $0x2238] sm:$0xff]  ;;  %v14829_v57 = vcombine.low %v1211_v20, %v1215_v25  ;;  %v14838_v34 = vcombine.high %v1219_v40, %v1223_v41 }
 0x586   :  { %10815 = vmatprep.mubr.bf16.mxu0 %v16728_v10  ;;  %11307 = vmatprep.mubr.bf16.mxu1 %v16728_v10  ;;  %v14808_v10 = vcombine.high %v1188_v13, %v1192_v60  ;;  %v14840_v45 = vcombine.high %v1220_v32, %v1224_v42  ;;  %v14839_v46 = vcombine.low %v1220_v32, %v1224_v42  ;;  %v1243_v60 = vld [vmem:[#allocation7 + $0x22d0] sm:$0xff] }
 0x587   :  { %v1275_v42 = vld [vmem:[#allocation7 + $0x23d0] sm:$0xff] }
 0x588   :  { %10786 = vmatpush1.bf16.msra.mxu0 %v14781_v53  ;;  %11278 = vmatpush1.bf16.msra.mxu1 %v14783_v52  ;;  %v1231_v53 = vld [vmem:[#allocation7 + $0x2270] sm:$0xff]  ;;  %v1228_v52 = vld [vmem:[#allocation7 + $0x2258] sm:$0xff] }
 0x589   :  { %10787 = vmatprep.subr.bf16.mxu0 %v14790_v56  ;;  %11279 = vmatprep.subr.bf16.mxu1 %v14792_v19  ;;  %v1232_v56 = vld [vmem:[#allocation7 + $0x2278] sm:$0xff]  ;;  %v14837_v19 = vcombine.low %v1219_v40, %v1223_v41  ;;  %v14846_v54 = vcombine.high %v1227_v47, %v1231_v53 }
 0x58a   :  { %v14848_v63 = vcombine.high %v1228_v52, %v1232_v56  ;;  %v14847_v23 = vcombine.low %v1228_v52, %v1232_v56  ;;  %v1283_v56 = vld [vmem:[#allocation7 + $0x2410] sm:$0xff] }
 0x58c   :  { %10788 = vmatpush1.bf16.msra.mxu0 %v14789_v6  ;;  %11280 = vmatpush1.bf16.msra.mxu1 %v14791_v0  ;;  %v1239_v6 = vld [vmem:[#allocation7 + $0x22b0] sm:$0xff]  ;;  %v1236_v0 = vld [vmem:[#allocation7 + $0x2298] sm:$0xff] }
 0x58d   :  { %10789 = vmatprep.subr.bf16.mxu0 %v14798_v7  ;;  %11281 = vmatprep.subr.bf16.mxu1 %v14800_v9  ;;  %v1240_v7 = vld [vmem:[#allocation7 + $0x22b8] sm:$0xff]  ;;  %v14845_v9 = vcombine.low %v1227_v47, %v1231_v53  ;;  %v14854_v11 = vcombine.high %v1235_v3, %v1239_v6 }
 0x58e   :  { %v14856_v13 = vcombine.high %v1236_v0, %v1240_v7  ;;  %v14855_v18 = vcombine.low %v1236_v0, %v1240_v7  ;;  %v1291_v7 = vld [vmem:[#allocation7 + $0x2450] sm:$0xff] }
 0x590   :  { %10790 = vmatpush1.bf16.msra.mxu0 %v14797_v14  ;;  %11282 = vmatpush1.bf16.msra.mxu1 %v14799_v17  ;;  %v1247_v14 = vld [vmem:[#allocation7 + $0x22f0] sm:$0xff]  ;;  %v1244_v17 = vld [vmem:[#allocation7 + $0x22d8] sm:$0xff] }
 0x591   :  { %10791 = vmatprep.subr.bf16.mxu0 %v14806_v58  ;;  %11283 = vmatprep.subr.bf16.mxu1 %v14808_v10  ;;  %v1248_v58 = vld [vmem:[#allocation7 + $0x22f8] sm:$0xff]  ;;  %v14853_v10 = vcombine.low %v1235_v3, %v1239_v6  ;;  %v14862_v16 = vcombine.high %v1243_v60, %v1247_v14 }
 0x592   :  { %v14864_v21 = vcombine.high %v1244_v17, %v1248_v58  ;;  %v14863_v29 = vcombine.low %v1244_v17, %v1248_v58  ;;  %v1299_v58 = vld [vmem:[#allocation7 + $0x2490] sm:$0xff] }
 0x594   :  { %10792 = vmatpush1.bf16.msra.mxu0 %v14805_v26  ;;  %11284 = vmatpush1.bf16.msra.mxu1 %v14807_v27  ;;  %v1255_v26 = vld [vmem:[#allocation7 + $0x2330] sm:$0xff]  ;;  %v1252_v27 = vld [vmem:[#allocation7 + $0x2318] sm:$0xff] }
 0x595   :  { %10793 = vmatprep.subr.bf16.mxu0 %v14814_v39  ;;  %11285 = vmatprep.subr.bf16.mxu1 %v14816_v59  ;;  %v1256_v39 = vld [vmem:[#allocation7 + $0x2338] sm:$0xff]  ;;  %v14861_v59 = vcombine.low %v1243_v60, %v1247_v14  ;;  %v14870_v55 = vcombine.high %v1251_v22, %v1255_v26 }
 0x596   :  { %v14872_v30 = vcombine.high %v1252_v27, %v1256_v39  ;;  %v14871_v20 = vcombine.low %v1252_v27, %v1256_v39  ;;  %v1307_v39 = vld [vmem:[#allocation7 + $0x24d0] sm:$0xff] }
 0x598   :  { %10794 = vmatpush1.bf16.msra.mxu0 %v14813_v31  ;;  %11286 = vmatpush1.bf16.msra.mxu1 %v14815_v49  ;;  %v1263_v31 = vld [vmem:[#allocation7 + $0x2370] sm:$0xff]  ;;  %v1260_v49 = vld [vmem:[#allocation7 + $0x2358] sm:$0xff] }
 0x599   :  { %10795 = vmatprep.subr.bf16.mxu0 %v14822_v33  ;;  %11287 = vmatprep.subr.bf16.mxu1 %v14824_v15  ;;  %v1264_v33 = vld [vmem:[#allocation7 + $0x2378] sm:$0xff]  ;;  %v14869_v15 = vcombine.low %v1251_v22, %v1255_v26  ;;  %v14878_v25 = vcombine.high %v1259_v28, %v1263_v31 }
 0x59a   :  { %v14880_v35 = vcombine.high %v1260_v49, %v1264_v33  ;;  %v14879_v40 = vcombine.low %v1260_v49, %v1264_v33  ;;  %v1315_v49 = vld [vmem:[#allocation7 + $0x2510] sm:$0xff] }
 0x59b   :  { %v1319_v33 = vld [vmem:[#allocation7 + $0x2530] sm:$0xff] }
 0x59c   :  { %10796 = vmatpush1.bf16.msra.mxu0 %v14821_v12  ;;  %11288 = vmatpush1.bf16.msra.mxu1 %v14823_v2  ;;  %v1271_v12 = vld [vmem:[#allocation7 + $0x23b0] sm:$0xff]  ;;  %v1268_v2 = vld [vmem:[#allocation7 + $0x2398] sm:$0xff] }
 0x59d   :  { %10797 = vmatprep.subr.bf16.mxu0 %v14830_v36  ;;  %11289 = vmatprep.subr.bf16.mxu1 %v14832_v37  ;;  %v1272_v36 = vld [vmem:[#allocation7 + $0x23b8] sm:$0xff]  ;;  %v14877_v37 = vcombine.low %v1259_v28, %v1263_v31  ;;  %v14886_v41 = vcombine.high %v1267_v48, %v1271_v12 }
 0x59e   :  { %v14888_v32 = vcombine.high %v1268_v2, %v1272_v36  ;;  %v14887_v47 = vcombine.low %v1268_v2, %v1272_v36  ;;  %v1327_v2 = vld [vmem:[#allocation7 + $0x2570] sm:$0xff]  ;;  %v1324_v36 = vld [vmem:[#allocation7 + $0x2558] sm:$0xff] }
 0x5a0   :  { %10798 = vmatpush1.bf16.msra.mxu0 %v14829_v57  ;;  %11290 = vmatpush1.bf16.msra.mxu1 %v14831_v43  ;;  %v1279_v57 = vld [vmem:[#allocation7 + $0x23f0] sm:$0xff]  ;;  %v1276_v43 = vld [vmem:[#allocation7 + $0x23d8] sm:$0xff] }
 0x5a1   :  { %10799 = vmatprep.subr.bf16.mxu0 %v14838_v34  ;;  %11291 = vmatprep.subr.bf16.mxu1 %v14840_v45  ;;  %v1280_v34 = vld [vmem:[#allocation7 + $0x23f8] sm:$0xff]  ;;  %v14885_v45 = vcombine.low %v1267_v48, %v1271_v12  ;;  %v14894_v53 = vcombine.high %v1275_v42, %v1279_v57  ;;  %v14934_v48 = vcombine.high %v1315_v49, %v1319_v33  ;;  %v1323_v12 = vld [vmem:[#allocation7 + $0x2550] sm:$0xff] }
 0x5a2   :  { %v14896_v52 = vcombine.high %v1276_v43, %v1280_v34  ;;  %v14895_v3 = vcombine.low %v1276_v43, %v1280_v34  ;;  %v1335_v43 = vld [vmem:[#allocation7 + $0x25b0] sm:$0xff]  ;;  %v1332_v34 = vld [vmem:[#allocation7 + $0x2598] sm:$0xff] }
 0x5a4   :  { %10800 = vmatpush1.bf16.msra.mxu0 %v14837_v19  ;;  %11292 = vmatpush1.bf16.msra.mxu1 %v14839_v46  ;;  %v1287_v19 = vld [vmem:[#allocation7 + $0x2430] sm:$0xff]  ;;  %v1284_v46 = vld [vmem:[#allocation7 + $0x2418] sm:$0xff] }
 0x5a5   :  { %10801 = vmatprep.subr.bf16.mxu0 %v14846_v54  ;;  %11293 = vmatprep.subr.bf16.mxu1 %v14848_v63  ;;  %v1288_v54 = vld [vmem:[#allocation7 + $0x2438] sm:$0xff]  ;;  %v14893_v63 = vcombine.low %v1275_v42, %v1279_v57  ;;  %v14902_v6 = vcombine.high %v1283_v56, %v1287_v19  ;;  %v1331_v57 = vld [vmem:[#allocation7 + $0x2590] sm:$0xff] }
 0x5a6   :  { %v14904_v0 = vcombine.high %v1284_v46, %v1288_v54  ;;  %v14903_v60 = vcombine.low %v1284_v46, %v1288_v54  ;;  %v1343_v46 = vld [vmem:[#allocation7 + $0x25f0] sm:$0xff]  ;;  %v1340_v54 = vld [vmem:[#allocation7 + $0x25d8] sm:$0xff] }
 0x5a8   :  { %10802 = vmatpush1.bf16.msra.mxu0 %v14845_v9  ;;  %11294 = vmatpush1.bf16.msra.mxu1 %v14847_v23  ;;  %v1295_v9 = vld [vmem:[#allocation7 + $0x2470] sm:$0xff]  ;;  %v1292_v23 = vld [vmem:[#allocation7 + $0x2458] sm:$0xff] }
 0x5a9   :  { %10803 = vmatprep.subr.bf16.mxu0 %v14854_v11  ;;  %11295 = vmatprep.subr.bf16.mxu1 %v14856_v13  ;;  %v1296_v11 = vld [vmem:[#allocation7 + $0x2478] sm:$0xff]  ;;  %v14901_v13 = vcombine.low %v1283_v56, %v1287_v19  ;;  %v14910_v14 = vcombine.high %v1291_v7, %v1295_v9  ;;  %v1339_v19 = vld [vmem:[#allocation7 + $0x25d0] sm:$0xff] }
 0x5aa   :  { %v14912_v17 = vcombine.high %v1292_v23, %v1296_v11  ;;  %v14911_v22 = vcombine.low %v1292_v23, %v1296_v11  ;;  %v1351_v23 = vld [vmem:[#allocation7 + $0x2630] sm:$0xff]  ;;  %v1348_v11 = vld [vmem:[#allocation7 + $0x2618] sm:$0xff] }
 0x5ac   :  { %10804 = vmatpush1.bf16.msra.mxu0 %v14853_v10  ;;  %11296 = vmatpush1.bf16.msra.mxu1 %v14855_v18  ;;  %v1303_v10 = vld [vmem:[#allocation7 + $0x24b0] sm:$0xff]  ;;  %v1300_v18 = vld [vmem:[#allocation7 + $0x2498] sm:$0xff] }
 0x5ad   :  { %10805 = vmatprep.subr.bf16.mxu0 %v14862_v16  ;;  %11297 = vmatprep.subr.bf16.mxu1 %v14864_v21  ;;  %v1304_v16 = vld [vmem:[#allocation7 + $0x24b8] sm:$0xff]  ;;  %v14909_v21 = vcombine.low %v1291_v7, %v1295_v9  ;;  %v14918_v26 = vcombine.high %v1299_v58, %v1303_v10  ;;  %v1347_v9 = vld [vmem:[#allocation7 + $0x2610] sm:$0xff] }
 0x5ae   :  { %v14920_v27 = vcombine.high %v1300_v18, %v1304_v16 }
 0x5b0   :  { %10806 = vmatpush1.bf16.msra.mxu0 %v14861_v59  ;;  %11298 = vmatpush1.bf16.msra.mxu1 %v14863_v29  ;;  %v1311_v59 = vld [vmem:[#allocation7 + $0x24f0] sm:$0xff]  ;;  %v1308_v29 = vld [vmem:[#allocation7 + $0x24d8] sm:$0xff] }
 0x5b1   :  { %10807 = vmatprep.subr.bf16.mxu0 %v14870_v55  ;;  %11299 = vmatprep.subr.bf16.mxu1 %v14872_v30  ;;  %v1312_v55 = vld [vmem:[#allocation7 + $0x24f8] sm:$0xff]  ;;  %v14917_v30 = vcombine.low %v1299_v58, %v1303_v10  ;;  %v14926_v28 = vcombine.high %v1307_v39, %v1311_v59  ;;  %v1355_v10 = vld [vmem:[#allocation7 + $0x2650] sm:$0xff] }
 0x5b2   :  { %v14928_v31 = vcombine.high %v1308_v29, %v1312_v55 }
 0x5b4   :  { %10808 = vmatpush1.bf16.msra.mxu0 %v14869_v15  ;;  %11300 = vmatpush1.bf16.msra.mxu1 %v14871_v20  ;;  %v1316_v15 = vld [vmem:[#allocation7 + $0x2518] sm:$0xff] }
 0x5b5   :  { %10809 = vmatprep.subr.bf16.mxu0 %v14878_v25  ;;  %11301 = vmatprep.subr.bf16.mxu1 %v14880_v35  ;;  %v1320_v20 = vld [vmem:[#allocation7 + $0x2538] sm:$0xff]  ;;  %v14925_v25 = vcombine.low %v1307_v39, %v1311_v59  ;;  %v14927_v35 = vcombine.low %v1308_v29, %v1312_v55  ;;  %v1363_v59 = vld [vmem:[#allocation7 + $0x2690] sm:$0xff] }
 0x5b6   :  { %v1367_v29 = vld [vmem:[#allocation7 + $0x26b0] sm:$0xff]  ;;  %v1364_v55 = vld [vmem:[#allocation7 + $0x2698] sm:$0xff] }
 0x5b8   :  { %10810 = vmatpush1.bf16.msra.mxu0 %v14877_v37  ;;  %11302 = vmatpush1.bf16.msra.mxu1 %v14879_v40  ;;  %v1328_v37 = vld [vmem:[#allocation7 + $0x2578] sm:$0xff]  ;;  %v14933_v40 = vcombine.low %v1315_v49, %v1319_v33  ;;  %v1371_v33 = vld [vmem:[#allocation7 + $0x26d0] sm:$0xff] }
 0x5b9   :  { %10811 = vmatprep.subr.bf16.mxu0 %v14886_v41  ;;  %11303 = vmatprep.subr.bf16.mxu1 %v14888_v32  ;;  %v14935_v41 = vcombine.low %v1316_v15, %v1320_v20  ;;  %v14942_v32 = vcombine.high %v1323_v12, %v1327_v2  ;;  %v14944_v42 = vcombine.high %v1324_v36, %v1328_v37 }
 0x5bc   :  { %10812 = vmatpush1.bf16.msra.mxu0 %v14885_v45  ;;  %11304 = vmatpush1.bf16.msra.mxu1 %v14887_v47  ;;  %v1336_v45 = vld [vmem:[#allocation7 + $0x25b8] sm:$0xff]  ;;  %v14941_v47 = vcombine.low %v1323_v12, %v1327_v2  ;;  %v1379_v2 = vld [vmem:[#allocation7 + $0x2710] sm:$0xff] }
 0x5bd   :  { %10813 = vmatprep.subr.bf16.mxu0 %v14894_v53  ;;  %11305 = vmatprep.subr.bf16.mxu1 %v14896_v52  ;;  %v14943_v53 = vcombine.low %v1324_v36, %v1328_v37  ;;  %v14950_v52 = vcombine.high %v1331_v57, %v1335_v43  ;;  %v14952_v56 = vcombine.high %v1332_v34, %v1336_v45  ;;  %v1383_v36 = vld [vmem:[#allocation7 + $0x2730] sm:$0xff]  ;;  %v1380_v37 = vld [vmem:[#allocation7 + $0x2718] sm:$0xff] }
 0x5c0   :  { %10814 = vmatpush1.bf16.msra.mxu0 %v14893_v63  ;;  %11306 = vmatpush1.bf16.msra.mxu1 %v14895_v3  ;;  %v1344_v63 = vld [vmem:[#allocation7 + $0x25f8] sm:$0xff]  ;;  %v14949_v3 = vcombine.low %v1331_v57, %v1335_v43  ;;  %v1387_v43 = vld [vmem:[#allocation7 + $0x2750] sm:$0xff] }
 0x5c1   :  { %10824 = vmatprep.subr.bf16.mxu0 %v14902_v6  ;;  %11316 = vmatprep.subr.bf16.mxu1 %v14904_v0  ;;  %v14951_v6 = vcombine.low %v1332_v34, %v1336_v45  ;;  %v14958_v0 = vcombine.high %v1339_v19, %v1343_v46  ;;  %v14960_v7 = vcombine.high %v1340_v54, %v1344_v63  ;;  %v1391_v34 = vld [vmem:[#allocation7 + $0x2770] sm:$0xff]  ;;  %v1388_v45 = vld [vmem:[#allocation7 + $0x2758] sm:$0xff] }
 0x5c3   :  { %10816 = vmatmul.mubr.bf16.vlgmr.msra.gmra.mrb[4].mxu0 %v16736_v50  ;;  %11308 = vmatmul.mubr.bf16.vlgmr.msra.gmra.mrb[4].mxu1 %v16736_v50  ;;  %v14919_v50 = vcombine.low %v1300_v18, %v1304_v16  ;;  %v1359_v18 = vld [vmem:[#allocation7 + $0x2670] sm:$0xff]  ;;  %v1356_v16 = vld [vmem:[#allocation7 + $0x2658] sm:$0xff] }
 0x5c4   :  { %10825 = vmatpush1.bf16.msra.mxu0 %v14901_v13  ;;  %11317 = vmatpush1.bf16.msra.mxu1 %v14903_v60  ;;  %v1352_v13 = vld [vmem:[#allocation7 + $0x2638] sm:$0xff]  ;;  %v14957_v60 = vcombine.low %v1339_v19, %v1343_v46  ;;  %v1395_v46 = vld [vmem:[#allocation7 + $0x2790] sm:$0xff] }
 0x5c5   :  { %10826 = vmatprep.subr.bf16.mxu0 %v14910_v14  ;;  %11318 = vmatprep.subr.bf16.mxu1 %v14912_v17  ;;  %v14959_v14 = vcombine.low %v1340_v54, %v1344_v63  ;;  %v14966_v17 = vcombine.high %v1347_v9, %v1351_v23  ;;  %v14968_v58 = vcombine.high %v1348_v11, %v1352_v13  ;;  %v1399_v54 = vld [vmem:[#allocation7 + $0x27b0] sm:$0xff]  ;;  %v1396_v63 = vld [vmem:[#allocation7 + $0x2798] sm:$0xff] }
 0x5c6   :  { %10856 = vmatprep.mubr.bf16.mxu0 %v16742_v1  ;;  %11348 = vmatprep.mubr.bf16.mxu1 %v16742_v1  ;;  %v14936_v1 = vcombine.high %v1316_v15, %v1320_v20  ;;  %v1375_v15 = vld [vmem:[#allocation7 + $0x26f0] sm:$0xff]  ;;  %v1372_v20 = vld [vmem:[#allocation7 + $0x26d8] sm:$0xff] }
 0x5c8   :  { %10827 = vmatpush1.bf16.msra.mxu0 %v14909_v21  ;;  %11319 = vmatpush1.bf16.msra.mxu1 %v14911_v22  ;;  %v1360_v21 = vld [vmem:[#allocation7 + $0x2678] sm:$0xff]  ;;  %v14965_v22 = vcombine.low %v1347_v9, %v1351_v23  ;;  %v1403_v23 = vld [vmem:[#allocation7 + $0x27d0] sm:$0xff] }
 0x5c9   :  { %10828 = vmatprep.subr.bf16.mxu0 %v14918_v26  ;;  %11320 = vmatprep.subr.bf16.mxu1 %v14920_v27  ;;  %v14967_v26 = vcombine.low %v1348_v11, %v1352_v13  ;;  %v14974_v27 = vcombine.high %v1355_v10, %v1359_v18  ;;  %v14976_v39 = vcombine.high %v1356_v16, %v1360_v21  ;;  %v1407_v11 = vld [vmem:[#allocation7 + $0x27f0] sm:$0xff]  ;;  %v1404_v13 = vld [vmem:[#allocation7 + $0x27d8] sm:$0xff] }
 0x5cc   :  { %10829 = vmatpush1.bf16.msra.mxu0 %v14917_v30  ;;  %11321 = vmatpush1.bf16.msra.mxu1 %v14919_v50  ;;  %v1368_v30 = vld [vmem:[#allocation7 + $0x26b8] sm:$0xff]  ;;  %v14973_v50 = vcombine.low %v1355_v10, %v1359_v18  ;;  %v1411_v18 = vld [vmem:[#allocation7 + $0x2810] sm:$0xff] }
 0x5cd   :  { %10830 = vmatprep.subr.bf16.mxu0 %v14926_v28  ;;  %11322 = vmatprep.subr.bf16.mxu1 %v14928_v31  ;;  %v14975_v28 = vcombine.low %v1356_v16, %v1360_v21  ;;  %v14982_v31 = vcombine.high %v1363_v59, %v1367_v29  ;;  %v14984_v49 = vcombine.high %v1364_v55, %v1368_v30  ;;  %v1415_v16 = vld [vmem:[#allocation7 + $0x2830] sm:$0xff]  ;;  %v1412_v21 = vld [vmem:[#allocation7 + $0x2818] sm:$0xff] }
 0x5d0   :  { %10831 = vmatpush1.bf16.msra.mxu0 %v14925_v25  ;;  %11323 = vmatpush1.bf16.msra.mxu1 %v14927_v35  ;;  %v1376_v25 = vld [vmem:[#allocation7 + $0x26f8] sm:$0xff]  ;;  %v14981_v35 = vcombine.low %v1363_v59, %v1367_v29  ;;  %v1419_v29 = vld [vmem:[#allocation7 + $0x2850] sm:$0xff] }
 0x5d1   :  { %10832 = vmatprep.subr.bf16.mxu0 %v14934_v48  ;;  %11324 = vmatprep.subr.bf16.mxu1 %v14936_v1  ;;  %v14983_v48 = vcombine.low %v1364_v55, %v1368_v30  ;;  %v14990_v1 = vcombine.high %v1371_v33, %v1375_v15  ;;  %v14992_v12 = vcombine.high %v1372_v20, %v1376_v25  ;;  %v1423_v55 = vld [vmem:[#allocation7 + $0x2870] sm:$0xff]  ;;  %v1420_v30 = vld [vmem:[#allocation7 + $0x2858] sm:$0xff] }
 0x5d4   :  { %10833 = vmatpush1.bf16.msra.mxu0 %v14933_v40  ;;  %11325 = vmatpush1.bf16.msra.mxu1 %v14935_v41  ;;  %v1384_v40 = vld [vmem:[#allocation7 + $0x2738] sm:$0xff]  ;;  %v14989_v41 = vcombine.low %v1371_v33, %v1375_v15  ;;  %v1427_v15 = vld [vmem:[#allocation7 + $0x2890] sm:$0xff] }
 0x5d5   :  { %10834 = vmatprep.subr.bf16.mxu0 %v14942_v32  ;;  %11326 = vmatprep.subr.bf16.mxu1 %v14944_v42  ;;  %v14991_v32 = vcombine.low %v1372_v20, %v1376_v25  ;;  %v14998_v42 = vcombine.high %v1379_v2, %v1383_v36  ;;  %v15000_v57 = vcombine.high %v1380_v37, %v1384_v40  ;;  %v1431_v20 = vld [vmem:[#allocation7 + $0x28b0] sm:$0xff]  ;;  %v1428_v25 = vld [vmem:[#allocation7 + $0x2898] sm:$0xff] }
 0x5d8   :  { %10835 = vmatpush1.bf16.msra.mxu0 %v14941_v47  ;;  %11327 = vmatpush1.bf16.msra.mxu1 %v14943_v53  ;;  %v1392_v47 = vld [vmem:[#allocation7 + $0x2778] sm:$0xff]  ;;  %v14997_v53 = vcombine.low %v1379_v2, %v1383_v36  ;;  %v1435_v36 = vld [vmem:[#allocation7 + $0x28d0] sm:$0xff] }
 0x5d9   :  { %10836 = vmatprep.subr.bf16.mxu0 %v14950_v52  ;;  %11328 = vmatprep.subr.bf16.mxu1 %v14952_v56  ;;  %v14999_v52 = vcombine.low %v1380_v37, %v1384_v40  ;;  %v15006_v56 = vcombine.high %v1387_v43, %v1391_v34  ;;  %v15008_v19 = vcombine.high %v1388_v45, %v1392_v47  ;;  %v1439_v37 = vld [vmem:[#allocation7 + $0x28f0] sm:$0xff]  ;;  %v1436_v40 = vld [vmem:[#allocation7 + $0x28d8] sm:$0xff] }
 0x5dc   :  { %10837 = vmatpush1.bf16.msra.mxu0 %v14949_v3  ;;  %11329 = vmatpush1.bf16.msra.mxu1 %v14951_v6  ;;  %v1400_v3 = vld [vmem:[#allocation7 + $0x27b8] sm:$0xff]  ;;  %v15005_v6 = vcombine.low %v1387_v43, %v1391_v34  ;;  %v1443_v43 = vld [vmem:[#allocation7 + $0x2910] sm:$0xff] }
 0x5dd   :  { %10838 = vmatprep.subr.bf16.mxu0 %v14958_v0  ;;  %11330 = vmatprep.subr.bf16.mxu1 %v14960_v7  ;;  %v15007_v0 = vcombine.low %v1388_v45, %v1392_v47  ;;  %v15014_v7 = vcombine.high %v1395_v46, %v1399_v54  ;;  %v15016_v9 = vcombine.high %v1396_v63, %v1400_v3  ;;  %v1447_v34 = vld [vmem:[#allocation7 + $0x2930] sm:$0xff]  ;;  %v1444_v45 = vld [vmem:[#allocation7 + $0x2918] sm:$0xff] }
 0x5de   :  { %v1448_v47 = vld [vmem:[#allocation7 + $0x2938] sm:$0xff] }
 0x5e0   :  { %10839 = vmatpush1.bf16.msra.mxu0 %v14957_v60  ;;  %11331 = vmatpush1.bf16.msra.mxu1 %v14959_v14  ;;  %v1408_v60 = vld [vmem:[#allocation7 + $0x27f8] sm:$0xff]  ;;  %v15013_v14 = vcombine.low %v1395_v46, %v1399_v54  ;;  %v1455_v46 = vld [vmem:[#allocation7 + $0x2970] sm:$0xff] }
 0x5e1   :  { %10840 = vmatprep.subr.bf16.mxu0 %v14966_v17  ;;  %11332 = vmatprep.subr.bf16.mxu1 %v14968_v58  ;;  %v15015_v17 = vcombine.low %v1396_v63, %v1400_v3  ;;  %v15022_v58 = vcombine.high %v1403_v23, %v1407_v11  ;;  %v15024_v10 = vcombine.high %v1404_v13, %v1408_v60  ;;  %v1452_v54 = vld [vmem:[#allocation7 + $0x2958] sm:$0xff] }
 0x5e2   :  { %v1456_v63 = vld [vmem:[#allocation7 + $0x2978] sm:$0xff]  ;;  %v15061_v3 = vcombine.low %v1443_v43, %v1447_v34 }
 0x5e4   :  { %10841 = vmatpush1.bf16.msra.mxu0 %v14965_v22  ;;  %11333 = vmatpush1.bf16.msra.mxu1 %v14967_v26  ;;  %v1416_v22 = vld [vmem:[#allocation7 + $0x2838] sm:$0xff]  ;;  %v15021_v26 = vcombine.low %v1403_v23, %v1407_v11  ;;  %v1463_v23 = vld [vmem:[#allocation7 + $0x29b0] sm:$0xff] }
 0x5e5   :  { %10842 = vmatprep.subr.bf16.mxu0 %v14974_v27  ;;  %11334 = vmatprep.subr.bf16.mxu1 %v14976_v39  ;;  %v15023_v27 = vcombine.low %v1404_v13, %v1408_v60  ;;  %v15030_v39 = vcombine.high %v1411_v18, %v1415_v16  ;;  %v15032_v59 = vcombine.high %v1412_v21, %v1416_v22  ;;  %v1460_v11 = vld [vmem:[#allocation7 + $0x2998] sm:$0xff] }
 0x5e6   :  { %v1464_v13 = vld [vmem:[#allocation7 + $0x29b8] sm:$0xff] }
 0x5e8   :  { %10843 = vmatpush1.bf16.msra.mxu0 %v14973_v50  ;;  %11335 = vmatpush1.bf16.msra.mxu1 %v14975_v28  ;;  %v1424_v50 = vld [vmem:[#allocation7 + $0x2878] sm:$0xff]  ;;  %v15029_v28 = vcombine.low %v1411_v18, %v1415_v16  ;;  %v1471_v18 = vld [vmem:[#allocation7 + $0x29f0] sm:$0xff] }
 0x5e9   :  { %10844 = vmatprep.subr.bf16.mxu0 %v14982_v31  ;;  %11336 = vmatprep.subr.bf16.mxu1 %v14984_v49  ;;  %v15031_v31 = vcombine.low %v1412_v21, %v1416_v22  ;;  %v15038_v49 = vcombine.high %v1419_v29, %v1423_v55  ;;  %v15040_v33 = vcombine.high %v1420_v30, %v1424_v50  ;;  %v1468_v16 = vld [vmem:[#allocation7 + $0x29d8] sm:$0xff] }
 0x5ea   :  { %v1472_v21 = vld [vmem:[#allocation7 + $0x29f8] sm:$0xff] }
 0x5ec   :  { %10845 = vmatpush1.bf16.msra.mxu0 %v14981_v35  ;;  %11337 = vmatpush1.bf16.msra.mxu1 %v14983_v48  ;;  %v1432_v35 = vld [vmem:[#allocation7 + $0x28b8] sm:$0xff]  ;;  %v15037_v48 = vcombine.low %v1419_v29, %v1423_v55  ;;  %v1479_v29 = vld [vmem:[#allocation7 + $0x2a30] sm:$0xff] }
 0x5ed   :  { %10846 = vmatprep.subr.bf16.mxu0 %v14990_v1  ;;  %11338 = vmatprep.subr.bf16.mxu1 %v14992_v12  ;;  %v15039_v1 = vcombine.low %v1420_v30, %v1424_v50  ;;  %v15046_v12 = vcombine.high %v1427_v15, %v1431_v20  ;;  %v15048_v2 = vcombine.high %v1428_v25, %v1432_v35  ;;  %v1476_v55 = vld [vmem:[#allocation7 + $0x2a18] sm:$0xff] }
 0x5ee   :  { %v1480_v30 = vld [vmem:[#allocation7 + $0x2a38] sm:$0xff] }
 0x5f0   :  { %10847 = vmatpush1.bf16.msra.mxu0 %v14989_v41  ;;  %11339 = vmatpush1.bf16.msra.mxu1 %v14991_v32  ;;  %v1440_v41 = vld [vmem:[#allocation7 + $0x28f8] sm:$0xff]  ;;  %v15045_v32 = vcombine.low %v1427_v15, %v1431_v20  ;;  %v1487_v15 = vld [vmem:[#allocation7 + $0x2a70] sm:$0xff] }
 0x5f1   :  { %10848 = vmatprep.subr.bf16.mxu0 %v14998_v42  ;;  %11340 = vmatprep.subr.bf16.mxu1 %v15000_v57  ;;  %v15054_v42 = vcombine.high %v1435_v36, %v1439_v37  ;;  %v15056_v57 = vcombine.high %v1436_v40, %v1440_v41  ;;  %v1484_v20 = vld [vmem:[#allocation7 + $0x2a58] sm:$0xff] }
 0x5f4   :  { %10849 = vmatpush1.bf16.msra.mxu0 %v14997_v53  ;;  %11341 = vmatpush1.bf16.msra.mxu1 %v14999_v52  ;;  %v15053_v53 = vcombine.low %v1435_v36, %v1439_v37  ;;  %v15055_v52 = vcombine.low %v1436_v40, %v1440_v41  ;;  %v1495_v36 = vld [vmem:[#allocation7 + $0x2ab0] sm:$0xff]  ;;  %v1492_v37 = vld [vmem:[#allocation7 + $0x2a98] sm:$0xff] }
 0x5f5   :  { %10850 = vmatprep.subr.bf16.mxu0 %v15006_v56  ;;  %11342 = vmatprep.subr.bf16.mxu1 %v15008_v19  ;;  %v15062_v56 = vcombine.high %v1443_v43, %v1447_v34  ;;  %v1451_v19 = vld [vmem:[#allocation7 + $0x2950] sm:$0xff]  ;;  %v1496_v40 = vld [vmem:[#allocation7 + $0x2ab8] sm:$0xff] }
 0x5f6   :  { %v15069_v60 = vcombine.low %v1451_v19, %v1455_v46  ;;  %v1503_v43 = vld [vmem:[#allocation7 + $0x2af0] sm:$0xff]  ;;  %v1500_v34 = vld [vmem:[#allocation7 + $0x2ad8] sm:$0xff] }
 0x5f8   :  { %10851 = vmatpush1.bf16.msra.mxu0 %v15005_v6  ;;  %11343 = vmatpush1.bf16.msra.mxu1 %v15007_v0  ;;  %v15063_v6 = vcombine.low %v1444_v45, %v1448_v47  ;;  %v15070_v0 = vcombine.high %v1451_v19, %v1455_v46  ;;  %v1511_v19 = vld [vmem:[#allocation7 + $0x2b30] sm:$0xff]  ;;  %v1508_v46 = vld [vmem:[#allocation7 + $0x2b18] sm:$0xff] }
 0x5f9   :  { %10852 = vmatprep.subr.bf16.mxu0 %v15014_v7  ;;  %11344 = vmatprep.subr.bf16.mxu1 %v15016_v9  ;;  %v15072_v7 = vcombine.high %v1452_v54, %v1456_v63  ;;  %v1459_v9 = vld [vmem:[#allocation7 + $0x2990] sm:$0xff] }
 0x5fa   :  { %v15077_v22 = vcombine.low %v1459_v9, %v1463_v23 }
 0x5fc   :  { %10853 = vmatpush1.bf16.msra.mxu0 %v15013_v14  ;;  %11345 = vmatpush1.bf16.msra.mxu1 %v15015_v17  ;;  %v15071_v14 = vcombine.low %v1452_v54, %v1456_v63  ;;  %v15078_v17 = vcombine.high %v1459_v9, %v1463_v23  ;;  %v1512_v54 = vld [vmem:[#allocation7 + $0x2b38] sm:$0xff]  ;;  %v1519_v9 = vld [vmem:[#allocation7 + $0x2b70] sm:$0xff] }
 0x5fd   :  { %10854 = vmatprep.subr.bf16.mxu0 %v15022_v58  ;;  %11346 = vmatprep.subr.bf16.mxu1 %v15024_v10  ;;  %v15080_v58 = vcombine.high %v1460_v11, %v1464_v13  ;;  %v1467_v10 = vld [vmem:[#allocation7 + $0x29d0] sm:$0xff]  ;;  %v1516_v23 = vld [vmem:[#allocation7 + $0x2b58] sm:$0xff] }
 0x5fe   :  { %v15085_v50 = vcombine.low %v1467_v10, %v1471_v18 }
 0x600   :  { %10855 = vmatpush1.bf16.msra.mxu0 %v15021_v26  ;;  %11347 = vmatpush1.bf16.msra.mxu1 %v15023_v27  ;;  %v15079_v26 = vcombine.low %v1460_v11, %v1464_v13  ;;  %v15086_v27 = vcombine.high %v1467_v10, %v1471_v18  ;;  %v1520_v11 = vld [vmem:[#allocation7 + $0x2b78] sm:$0xff]  ;;  %v1527_v10 = vld [vmem:[#allocation7 + $0x2bb0] sm:$0xff] }
 0x601   :  { %10865 = vmatprep.subr.bf16.mxu0 %v15030_v39  ;;  %11357 = vmatprep.subr.bf16.mxu1 %v15032_v59  ;;  %v15088_v39 = vcombine.high %v1468_v16, %v1472_v21  ;;  %v1475_v59 = vld [vmem:[#allocation7 + $0x2a10] sm:$0xff]  ;;  %v1524_v18 = vld [vmem:[#allocation7 + $0x2b98] sm:$0xff] }
 0x603   :  { %10857 = vmatmul.mubr.bf16.vlgmr.msra.gmra.mrb[4].mxu0 %v16750_v44  ;;  %11349 = vmatmul.mubr.bf16.vlgmr.msra.gmra.mrb[4].mxu1 %v16750_v44  ;;  %v15047_v44 = vcombine.low %v1428_v25, %v1432_v35  ;;  %v1488_v25 = vld [vmem:[#allocation7 + $0x2a78] sm:$0xff]  ;;  %v15093_v35 = vcombine.low %v1475_v59, %v1479_v29 }
 0x604   :  { %10866 = vmatpush1.bf16.msra.mxu0 %v15029_v28  ;;  %11358 = vmatpush1.bf16.msra.mxu1 %v15031_v31  ;;  %v15087_v28 = vcombine.low %v1468_v16, %v1472_v21  ;;  %v15094_v31 = vcombine.high %v1475_v59, %v1479_v29  ;;  %v1528_v16 = vld [vmem:[#allocation7 + $0x2bb8] sm:$0xff]  ;;  %v1535_v59 = vld [vmem:[#allocation7 + $0x2bf0] sm:$0xff] }
 0x605   :  { %10867 = vmatprep.subr.bf16.mxu0 %v15038_v49  ;;  %11359 = vmatprep.subr.bf16.mxu1 %v15040_v33  ;;  %v15096_v49 = vcombine.high %v1476_v55, %v1480_v30  ;;  %v1483_v33 = vld [vmem:[#allocation7 + $0x2a50] sm:$0xff]  ;;  %v1532_v29 = vld [vmem:[#allocation7 + $0x2bd8] sm:$0xff] }
 0x606   :  { %10897 = vmatprep.mubr.bf16.mxu0 %v16756_v62  ;;  %11389 = vmatprep.mubr.bf16.mxu1 %v16756_v62  ;;  %v15064_v62 = vcombine.high %v1444_v45, %v1448_v47  ;;  %v15101_v41 = vcombine.low %v1483_v33, %v1487_v15  ;;  %v1504_v45 = vld [vmem:[#allocation7 + $0x2af8] sm:$0xff] }
 0x608   :  { %10868 = vmatpush1.bf16.msra.mxu0 %v15037_v48  ;;  %11360 = vmatpush1.bf16.msra.mxu1 %v15039_v1  ;;  %v15095_v48 = vcombine.low %v1476_v55, %v1480_v30  ;;  %v15102_v1 = vcombine.high %v1483_v33, %v1487_v15  ;;  %v1536_v55 = vld [vmem:[#allocation7 + $0x2bf8] sm:$0xff]  ;;  %v1543_v33 = vld [vmem:[#allocation7 + $0x2c30] sm:$0xff] }
 0x609   :  { %10869 = vmatprep.subr.bf16.mxu0 %v15046_v12  ;;  %11361 = vmatprep.subr.bf16.mxu1 %v15048_v2  ;;  %v15104_v12 = vcombine.high %v1484_v20, %v1488_v25  ;;  %v1491_v2 = vld [vmem:[#allocation7 + $0x2a90] sm:$0xff]  ;;  %v1540_v15 = vld [vmem:[#allocation7 + $0x2c18] sm:$0xff] }
 0x60a   :  { %v15109_v47 = vcombine.low %v1491_v2, %v1495_v36 }
 0x60c   :  { %10870 = vmatpush1.bf16.msra.mxu0 %v15045_v32  ;;  %11362 = vmatpush1.bf16.msra.mxu1 %v15047_v44  ;;  %v15103_v32 = vcombine.low %v1484_v20, %v1488_v25  ;;  %v15110_v44 = vcombine.high %v1491_v2, %v1495_v36  ;;  %v1544_v20 = vld [vmem:[#allocation7 + $0x2c38] sm:$0xff]  ;;  %v1551_v2 = vld [vmem:[#allocation7 + $0x2c70] sm:$0xff] }
 0x60d   :  { %10871 = vmatprep.subr.bf16.mxu0 %v15054_v42  ;;  %11363 = vmatprep.subr.bf16.mxu1 %v15056_v57  ;;  %v15112_v42 = vcombine.high %v1492_v37, %v1496_v40  ;;  %v1499_v57 = vld [vmem:[#allocation7 + $0x2ad0] sm:$0xff]  ;;  %v1548_v36 = vld [vmem:[#allocation7 + $0x2c58] sm:$0xff] }
 0x60e   :  { %v15117_v63 = vcombine.low %v1499_v57, %v1503_v43 }
 0x610   :  { %10872 = vmatpush1.bf16.msra.mxu0 %v15053_v53  ;;  %11364 = vmatpush1.bf16.msra.mxu1 %v15055_v52  ;;  %v15111_v53 = vcombine.low %v1492_v37, %v1496_v40  ;;  %v15118_v52 = vcombine.high %v1499_v57, %v1503_v43  ;;  %v1552_v37 = vld [vmem:[#allocation7 + $0x2c78] sm:$0xff]  ;;  %v1559_v57 = vld [vmem:[#allocation7 + $0x2cb0] sm:$0xff] }
 0x611   :  { %10873 = vmatprep.subr.bf16.mxu0 %v15062_v56  ;;  %11365 = vmatprep.subr.bf16.mxu1 %v15064_v62  ;;  %v15120_v56 = vcombine.high %v1500_v34, %v1504_v45  ;;  %v1507_v62 = vld [vmem:[#allocation7 + $0x2b10] sm:$0xff]  ;;  %v1556_v43 = vld [vmem:[#allocation7 + $0x2c98] sm:$0xff] }
 0x612   :  { %v15125_v13 = vcombine.low %v1507_v62, %v1511_v19 }
 0x614   :  { %10874 = vmatpush1.bf16.msra.mxu0 %v15061_v3  ;;  %11366 = vmatpush1.bf16.msra.mxu1 %v15063_v6  ;;  %v15119_v3 = vcombine.low %v1500_v34, %v1504_v45  ;;  %v15126_v6 = vcombine.high %v1507_v62, %v1511_v19  ;;  %v1560_v34 = vld [vmem:[#allocation7 + $0x2cb8] sm:$0xff]  ;;  %v1567_v62 = vld [vmem:[#allocation7 + $0x2cf0] sm:$0xff] }
 0x615   :  { %10875 = vmatprep.subr.bf16.mxu0 %v15070_v0  ;;  %11367 = vmatprep.subr.bf16.mxu1 %v15072_v7  ;;  %v15128_v0 = vcombine.high %v1508_v46, %v1512_v54  ;;  %v1515_v7 = vld [vmem:[#allocation7 + $0x2b50] sm:$0xff]  ;;  %v1564_v19 = vld [vmem:[#allocation7 + $0x2cd8] sm:$0xff] }
 0x616   :  { %v15133_v21 = vcombine.low %v1515_v7, %v1519_v9 }
 0x618   :  { %10876 = vmatpush1.bf16.msra.mxu0 %v15069_v60  ;;  %11368 = vmatpush1.bf16.msra.mxu1 %v15071_v14  ;;  %v15127_v60 = vcombine.low %v1508_v46, %v1512_v54  ;;  %v15134_v14 = vcombine.high %v1515_v7, %v1519_v9  ;;  %v1568_v46 = vld [vmem:[#allocation7 + $0x2cf8] sm:$0xff] }
 0x619   :  { %10877 = vmatprep.subr.bf16.mxu0 %v15078_v17  ;;  %11369 = vmatprep.subr.bf16.mxu1 %v15080_v58  ;;  %v15136_v17 = vcombine.high %v1516_v23, %v1520_v11  ;;  %v1523_v58 = vld [vmem:[#allocation7 + $0x2b90] sm:$0xff]  ;;  %v1572_v7 = vld [vmem:[#allocation7 + $0x2d18] sm:$0xff] }
 0x61a   :  { %v15141_v30 = vcombine.low %v1523_v58, %v1527_v10  ;;  %v1576_v9 = vld [vmem:[#allocation7 + $0x2d38] sm:$0xff] }
 0x61c   :  { %10878 = vmatpush1.bf16.msra.mxu0 %v15077_v22  ;;  %11370 = vmatpush1.bf16.msra.mxu1 %v15079_v26  ;;  %v15135_v22 = vcombine.low %v1516_v23, %v1520_v11  ;;  %v15142_v26 = vcombine.high %v1523_v58, %v1527_v10  ;;  %v15183_v11 = vcombine.low %v1564_v19, %v1568_v46  ;;  %v1584_v58 = vld [vmem:[#allocation7 + $0x2d78] sm:$0xff] }
 0x61d   :  { %10879 = vmatprep.subr.bf16.mxu0 %v15086_v27  ;;  %11371 = vmatprep.subr.bf16.mxu1 %v15088_v39  ;;  %v15144_v27 = vcombine.high %v1524_v18, %v1528_v16  ;;  %v1531_v39 = vld [vmem:[#allocation7 + $0x2bd0] sm:$0xff] }
 0x61e   :  { %v15149_v25 = vcombine.low %v1531_v39, %v1535_v59 }
 0x620   :  { %10880 = vmatpush1.bf16.msra.mxu0 %v15085_v50  ;;  %11372 = vmatpush1.bf16.msra.mxu1 %v15087_v28  ;;  %v15143_v50 = vcombine.low %v1524_v18, %v1528_v16  ;;  %v15150_v28 = vcombine.high %v1531_v39, %v1535_v59  ;;  %v15191_v18 = vcombine.low %v1572_v7, %v1576_v9  ;;  %v1592_v39 = vld [vmem:[#allocation7 + $0x2db8] sm:$0xff] }
 0x621   :  { %10881 = vmatprep.subr.bf16.mxu0 %v15094_v31  ;;  %11373 = vmatprep.subr.bf16.mxu1 %v15096_v49  ;;  %v15152_v31 = vcombine.high %v1532_v29, %v1536_v55  ;;  %v1539_v49 = vld [vmem:[#allocation7 + $0x2c10] sm:$0xff] }
 0x622   :  { %v15157_v40 = vcombine.low %v1539_v49, %v1543_v33 }
 0x624   :  { %10882 = vmatpush1.bf16.msra.mxu0 %v15093_v35  ;;  %11374 = vmatpush1.bf16.msra.mxu1 %v15095_v48  ;;  %v15151_v35 = vcombine.low %v1532_v29, %v1536_v55  ;;  %v15158_v48 = vcombine.high %v1539_v49, %v1543_v33  ;;  %v1600_v49 = vld [vmem:[#allocation7 + $0x2df8] sm:$0xff] }
 0x625   :  { %10883 = vmatprep.subr.bf16.mxu0 %v15102_v1  ;;  %11375 = vmatprep.subr.bf16.mxu1 %v15104_v12  ;;  %v15160_v1 = vcombine.high %v1540_v15, %v1544_v20  ;;  %v1547_v12 = vld [vmem:[#allocation7 + $0x2c50] sm:$0xff] }
 0x626   :  { %v15165_v45 = vcombine.low %v1547_v12, %v1551_v2 }
 0x628   :  { %10884 = vmatpush1.bf16.msra.mxu0 %v15101_v41  ;;  %11376 = vmatpush1.bf16.msra.mxu1 %v15103_v32  ;;  %v15159_v41 = vcombine.low %v1540_v15, %v1544_v20  ;;  %v15166_v32 = vcombine.high %v1547_v12, %v1551_v2  ;;  %v1608_v12 = vld [vmem:[#allocation7 + $0x2e38] sm:$0xff] }
 0x629   :  { %10885 = vmatprep.subr.bf16.mxu0 %v15110_v44  ;;  %11377 = vmatprep.subr.bf16.mxu1 %v15112_v42  ;;  %v15168_v44 = vcombine.high %v1548_v36, %v1552_v37  ;;  %v1555_v42 = vld [vmem:[#allocation7 + $0x2c90] sm:$0xff] }
 0x62a   :  { %v15173_v54 = vcombine.low %v1555_v42, %v1559_v57 }
 0x62c   :  { %10886 = vmatpush1.bf16.msra.mxu0 %v15109_v47  ;;  %11378 = vmatpush1.bf16.msra.mxu1 %v15111_v53  ;;  %v15167_v47 = vcombine.low %v1548_v36, %v1552_v37  ;;  %v15174_v53 = vcombine.high %v1555_v42, %v1559_v57  ;;  %v1616_v42 = vld [vmem:[#allocation7 + $0x2e78] sm:$0xff] }
 0x62d   :  { %10887 = vmatprep.subr.bf16.mxu0 %v15118_v52  ;;  %11379 = vmatprep.subr.bf16.mxu1 %v15120_v56  ;;  %v15176_v52 = vcombine.high %v1556_v43, %v1560_v34  ;;  %v1563_v56 = vld [vmem:[#allocation7 + $0x2cd0] sm:$0xff] }
 0x62e   :  { %v15181_v23 = vcombine.low %v1563_v56, %v1567_v62 }
 0x630   :  { %10888 = vmatpush1.bf16.msra.mxu0 %v15117_v63  ;;  %11380 = vmatpush1.bf16.msra.mxu1 %v15119_v3  ;;  %v15182_v63 = vcombine.high %v1563_v56, %v1567_v62  ;;  %v15184_v3 = vcombine.high %v1564_v19, %v1568_v46  ;;  %v1624_v56 = vld [vmem:[#allocation7 + $0x2eb8] sm:$0xff] }
 0x631   :  { %10889 = vmatprep.subr.bf16.mxu0 %v15126_v6  ;;  %11381 = vmatprep.subr.bf16.mxu1 %v15128_v0  ;;  %v1571_v6 = vld [vmem:[#allocation7 + $0x2d10] sm:$0xff] }
 0x632   :  { %v1575_v0 = vld [vmem:[#allocation7 + $0x2d30] sm:$0xff] }
 0x633   :  { %v15189_v10 = vcombine.low %v1571_v6, %v1575_v0 }
 0x634   :  { %10890 = vmatpush1.bf16.msra.mxu0 %v15125_v13  ;;  %11382 = vmatpush1.bf16.msra.mxu1 %v15127_v60  ;;  %v15190_v13 = vcombine.high %v1571_v6, %v1575_v0  ;;  %v1579_v60 = vld [vmem:[#allocation7 + $0x2d50] sm:$0xff]  ;;  %v1632_v6 = vld [vmem:[#allocation7 + $0x2ef8] sm:$0xff] }
 0x635   :  { %10891 = vmatprep.subr.bf16.mxu0 %v15134_v14  ;;  %11383 = vmatprep.subr.bf16.mxu1 %v15136_v17  ;;  %v1583_v14 = vld [vmem:[#allocation7 + $0x2d70] sm:$0xff]  ;;  %v1580_v17 = vld [vmem:[#allocation7 + $0x2d58] sm:$0xff] }
 0x636   :  { %v15198_v16 = vcombine.high %v1579_v60, %v1583_v14  ;;  %v15197_v59 = vcombine.low %v1579_v60, %v1583_v14  ;;  %v15199_v29 = vcombine.low %v1580_v17, %v1584_v58  ;;  %v1636_v60 = vld [vmem:[#allocation7 + $0x2f18] sm:$0xff] }
 0x637   :  { %v1640_v14 = vld [vmem:[#allocation7 + $0x2f38] sm:$0xff] }
 0x638   :  { %10892 = vmatpush1.bf16.msra.mxu0 %v15133_v21  ;;  %11384 = vmatpush1.bf16.msra.mxu1 %v15135_v22  ;;  %v15200_v21 = vcombine.high %v1580_v17, %v1584_v58  ;;  %v1587_v22 = vld [vmem:[#allocation7 + $0x2d90] sm:$0xff] }
 0x639   :  { %10893 = vmatprep.subr.bf16.mxu0 %v15142_v26  ;;  %11385 = vmatprep.subr.bf16.mxu1 %v15144_v27  ;;  %v1591_v26 = vld [vmem:[#allocation7 + $0x2db0] sm:$0xff]  ;;  %v1588_v27 = vld [vmem:[#allocation7 + $0x2d98] sm:$0xff] }
 0x63a   :  { %v15206_v55 = vcombine.high %v1587_v22, %v1591_v26  ;;  %v15205_v33 = vcombine.low %v1587_v22, %v1591_v26  ;;  %v15207_v15 = vcombine.low %v1588_v27, %v1592_v39  ;;  %v1644_v26 = vld [vmem:[#allocation7 + $0x2f58] sm:$0xff] }
 0x63c   :  { %10894 = vmatpush1.bf16.msra.mxu0 %v15141_v30  ;;  %11386 = vmatpush1.bf16.msra.mxu1 %v15143_v50  ;;  %v15208_v30 = vcombine.high %v1588_v27, %v1592_v39  ;;  %v1595_v50 = vld [vmem:[#allocation7 + $0x2dd0] sm:$0xff]  ;;  %v1648_v27 = vld [vmem:[#allocation7 + $0x2f78] sm:$0xff] }
 0x63d   :  { %10895 = vmatprep.subr.bf16.mxu0 %v15150_v28  ;;  %11387 = vmatprep.subr.bf16.mxu1 %v15152_v31  ;;  %v1599_v28 = vld [vmem:[#allocation7 + $0x2df0] sm:$0xff]  ;;  %v1596_v31 = vld [vmem:[#allocation7 + $0x2dd8] sm:$0xff] }
 0x63e   :  { %v15214_v20 = vcombine.high %v1595_v50, %v1599_v28  ;;  %v15213_v2 = vcombine.low %v1595_v50, %v1599_v28  ;;  %v15215_v36 = vcombine.low %v1596_v31, %v1600_v49  ;;  %v1655_v50 = vld [vmem:[#allocation7 + $0x2fb0] sm:$0xff] }
 0x640   :  { %10896 = vmatpush1.bf16.msra.mxu0 %v15149_v25  ;;  %11388 = vmatpush1.bf16.msra.mxu1 %v15151_v35  ;;  %v15216_v25 = vcombine.high %v1596_v31, %v1600_v49  ;;  %v1603_v35 = vld [vmem:[#allocation7 + $0x2e10] sm:$0xff]  ;;  %v1652_v31 = vld [vmem:[#allocation7 + $0x2f98] sm:$0xff] }
 0x641   :  { %10906 = vmatprep.subr.bf16.mxu0 %v15158_v48  ;;  %11398 = vmatprep.subr.bf16.mxu1 %v15160_v1  ;;  %v1607_v48 = vld [vmem:[#allocation7 + $0x2e30] sm:$0xff]  ;;  %v1604_v1 = vld [vmem:[#allocation7 + $0x2e18] sm:$0xff] }
 0x642   :  { %v15222_v37 = vcombine.high %v1603_v35, %v1607_v48  ;;  %v15221_v57 = vcombine.low %v1603_v35, %v1607_v48  ;;  %v1656_v49 = vld [vmem:[#allocation7 + $0x2fb8] sm:$0xff]  ;;  %v1659_v48 = vld [vmem:[#allocation7 + $0x2fd0] sm:$0xff] }
 0x643   :  { %10898 = vmatmul.mubr.bf16.vlgmr.msra.gmra.mrb[4].mxu0 %v16764_v51  ;;  %11390 = vmatmul.mubr.bf16.vlgmr.msra.gmra.mrb[4].mxu1 %v16764_v51  ;;  %v15175_v51 = vcombine.low %v1556_v43, %v1560_v34  ;;  %v15223_v43 = vcombine.low %v1604_v1, %v1608_v12  ;;  %v15272_v35 = vcombine.high %v1652_v31, %v1656_v49 }
 0x644   :  { %10907 = vmatpush1.bf16.msra.mxu0 %v15157_v40  ;;  %11399 = vmatpush1.bf16.msra.mxu1 %v15159_v41  ;;  %v15224_v40 = vcombine.high %v1604_v1, %v1608_v12  ;;  %v1611_v41 = vld [vmem:[#allocation7 + $0x2e50] sm:$0xff] }
 0x645   :  { %10908 = vmatprep.subr.bf16.mxu0 %v15166_v32  ;;  %11400 = vmatprep.subr.bf16.mxu1 %v15168_v44  ;;  %v1615_v32 = vld [vmem:[#allocation7 + $0x2e70] sm:$0xff]  ;;  %v1612_v44 = vld [vmem:[#allocation7 + $0x2e58] sm:$0xff] }
 0x646   :  { %10938 = vmatprep.mubr.bf16.mxu0 %v16770_v4  ;;  %11430 = vmatprep.mubr.bf16.mxu1 %v16770_v4  ;;  %v15192_v4 = vcombine.high %v1572_v7, %v1576_v9  ;;  %v15230_v34 = vcombine.high %v1611_v41, %v1615_v32  ;;  %v15229_v62 = vcombine.low %v1611_v41, %v1615_v32  ;;  %v1663_v1 = vld [vmem:[#allocation7 + $0x2ff0] sm:$0xff] }
 0x647   :  { %v15231_v19 = vcombine.low %v1612_v44, %v1616_v42  ;;  %v15278_v41 = vcombine.high %v1659_v48, %v1663_v1 }
 0x648   :  { %10909 = vmatpush1.bf16.msra.mxu0 %v15165_v45  ;;  %11401 = vmatpush1.bf16.msra.mxu1 %v15167_v47  ;;  %v15232_v45 = vcombine.high %v1612_v44, %v1616_v42  ;;  %v1619_v47 = vld [vmem:[#allocation7 + $0x2e90] sm:$0xff]  ;;  %v15277_v42 = vcombine.low %v1659_v48, %v1663_v1  ;;  %v15932_v48 = vld [vmem:[#allocation10 + $0x164] ss:$16 sps:$4 sm:$0xff]  }
 0x649   :  { %10910 = vmatprep.subr.bf16.mxu0 %v15174_v53  ;;  %11402 = vmatprep.subr.bf16.mxu1 %v15176_v52  ;;  %v1623_v53 = vld [vmem:[#allocation7 + $0x2eb0] sm:$0xff]  ;;  %v1620_v52 = vld [vmem:[#allocation7 + $0x2e98] sm:$0xff] }
 0x64a   :  { %v15238_v46 = vcombine.high %v1619_v47, %v1623_v53  ;;  %v15237_v0 = vcombine.low %v1619_v47, %v1623_v53  ;;  %v15239_v7 = vcombine.low %v1620_v52, %v1624_v56  ;;  %v15864_v47 = vld [vmem:[#allocation10] ss:$16 sps:$4 sm:$0xff]   ;;  %v15867_v53 = vld [vmem:[#allocation10 + $0x8] ss:$16 sps:$4 sm:$0xff]   ;;  %v15935_v1 = vld [vmem:[#allocation10 + $0x16c] ss:$16 sps:$4 sm:$0xff]  }
 0x64c   :  { %10911 = vmatpush1.bf16.msra.mxu0 %v15173_v54  ;;  %11403 = vmatpush1.bf16.msra.mxu1 %v15175_v51  ;;  %v15240_v54 = vcombine.high %v1620_v52, %v1624_v56  ;;  %v1627_v51 = vld [vmem:[#allocation7 + $0x2ed0] sm:$0xff]  ;;  %v15872_v52 = vld [vmem:[#allocation10 + $0x24] ss:$16 sps:$4 sm:$0xff]  }
 0x64d   :  { %10912 = vmatprep.subr.bf16.mxu0 %v15182_v63  ;;  %11404 = vmatprep.subr.bf16.mxu1 %v15184_v3  ;;  %v1631_v63 = vld [vmem:[#allocation7 + $0x2ef0] sm:$0xff]  ;;  %v1628_v3 = vld [vmem:[#allocation7 + $0x2ed8] sm:$0xff] }
 0x64e   :  { %v15246_v9 = vcombine.high %v1627_v51, %v1631_v63  ;;  %v15245_v17 = vcombine.low %v1627_v51, %v1631_v63  ;;  %v15247_v58 = vcombine.low %v1628_v3, %v1632_v6  ;;  %v15876_v51 = vld [vmem:[#allocation10 + $0x40] ss:$16 sps:$4 sm:$0xff]   ;;  %v15879_v63 = vld [vmem:[#allocation10 + $0x48] ss:$16 sps:$4 sm:$0xff]  }
 0x650   :  { %10913 = vmatpush1.bf16.msra.mxu0 %v15181_v23  ;;  %11405 = vmatpush1.bf16.msra.mxu1 %v15183_v11  ;;  %v15248_v23 = vcombine.high %v1628_v3, %v1632_v6  ;;  %v1635_v11 = vld [vmem:[#allocation7 + $0x2f10] sm:$0xff]  ;;  %v15884_v3 = vld [vmem:[#allocation10 + $0x64] ss:$16 sps:$4 sm:$0xff]  }
 0x651   :  { %10914 = vmatprep.subr.bf16.mxu0 %v15190_v13  ;;  %11406 = vmatprep.subr.bf16.mxu1 %v15192_v4  ;;  %v1639_v13 = vld [vmem:[#allocation7 + $0x2f30] sm:$0xff]  ;;  %v1667_v4 = vlaneseq }
 0x652   :  { %v15253_v39 = vcombine.low %v1635_v11, %v1639_v13  ;;  %v15887_v6 = vld [vmem:[#allocation10 + $0x6c] ss:$16 sps:$4 sm:$0xff]  }
 0x653   :  { %v16836_v22 = vshrl.u32 %v1667_v4, 7  ;;  %v15899_v4 = vld [vmem:[#allocation10 + $0xac] ss:$16 sps:$4 sm:$0xff]  }
 0x654   :  { %10915 = vmatpush1.bf16.msra.mxu0 %v15189_v10  ;;  %11407 = vmatpush1.bf16.msra.mxu1 %v15191_v18  ;;  %v15254_v10 = vcombine.high %v1635_v11, %v1639_v13  ;;  %v15256_v18 = vcombine.high %v1636_v60, %v1640_v14  ;;  %v15891_v11 = vld [vmem:[#allocation10 + $0x88] ss:$16 sps:$4 sm:$0xff]   ;;  %v15896_v13 = vld [vmem:[#allocation10 + $0xa4] ss:$16 sps:$4 sm:$0xff]  }
 0x655   :  { %10916 = vmatprep.subr.bf16.mxu0 %v15198_v16  ;;  %11408 = vmatprep.subr.bf16.mxu1 %v15200_v21  ;;  %v1643_v16 = vld [vmem:[#allocation7 + $0x2f50] sm:$0xff]  ;;  %v1673_v28 = vsub.s32 1, %v16836_v22 }
 0x656   :  { %v1647_v21 = vld [vmem:[#allocation7 + $0x2f70] sm:$0xff] }
 0x658   :  { %10917 = vmatpush1.bf16.msra.mxu0 %v15197_v59  ;;  %11409 = vmatpush1.bf16.msra.mxu1 %v15199_v29  ;;  %v15255_v59 = vcombine.low %v1636_v60, %v1640_v14  ;;  %v15262_v29 = vcombine.high %v1643_v16, %v1647_v21  ;;  %v15894_v60 = vld [vmem:[#allocation10 + $0xa0] ss:$16 sps:$4 sm:$0xff]   ;;  %v15897_v14 = vld [vmem:[#allocation10 + $0xa8] ss:$16 sps:$4 sm:$0xff]  }
 0x659   :  { %10918 = vmatprep.subr.bf16.mxu0 %v15206_v55  ;;  %11410 = vmatprep.subr.bf16.mxu1 %v15208_v30  ;;  %v15264_v55 = vcombine.high %v1644_v26, %v1648_v27  ;;  %v1651_v30 = vld [vmem:[#allocation7 + $0x2f90] sm:$0xff] }
 0x65c   :  { %10919 = vmatpush1.bf16.msra.mxu0 %v15205_v33  ;;  %11411 = vmatpush1.bf16.msra.mxu1 %v15207_v15  ;;  %v16839_v33 = vld [vmem:[#allocation9] sm:$0xff]  ;;  %v15261_v15 = vcombine.low %v1643_v16, %v1647_v21  ;;  %v15908_v16 = vld [vmem:[#allocation10 + $0xe4] ss:$16 sps:$4 sm:$0xff]  }
 0x65d   :  { %10920 = vmatprep.subr.bf16.mxu0 %v15214_v20  ;;  %11412 = vmatprep.subr.bf16.mxu1 %v15216_v25  ;;  %v15263_v20 = vcombine.low %v1644_v26, %v1648_v27  ;;  %v15270_v25 = vcombine.high %v1651_v30, %v1655_v50  ;;  %v1674_v12 = vrot.slane %v16839_v33, %v1673_v28  ;;  %v15911_v21 = vld [vmem:[#allocation10 + $0xec] ss:$16 sps:$4 sm:$0xff]   ;;  %v15906_v26 = vld [vmem:[#allocation10 + $0xe0] ss:$16 sps:$4 sm:$0xff]   ;;  %v15909_v27 = vld [vmem:[#allocation10 + $0xe8] ss:$16 sps:$4 sm:$0xff]  }
 0x65f   :  { %v15615_v44 = vadd.f32 %v16800_v5, %v1674_v12  ;;  %v15875_v5 = vld [vmem:[#allocation10 + $0x2c] ss:$16 sps:$4 sm:$0xff]   ;;  %v15930_v12 = vld [vmem:[#allocation10 + $0x160] ss:$16 sps:$4 sm:$0xff]  }
 0x660   :  { %10921 = vmatpush1.bf16.msra.mxu0 %v15213_v2  ;;  %11413 = vmatpush1.bf16.msra.mxu1 %v15215_v36  ;;  %v1660_v2 = vld [vmem:[#allocation7 + $0x2fd8] sm:$0xff] }
 0x661   :  { %10922 = vmatprep.subr.bf16.mxu0 %v15222_v37  ;;  %11414 = vmatprep.subr.bf16.mxu1 %v15224_v40  ;;  %v1664_v36 = vld [vmem:[#allocation7 + $0x2ff8] sm:$0xff]  ;;  %v15269_v37 = vcombine.low %v1651_v30, %v1655_v50  ;;  %v15271_v40 = vcombine.low %v1652_v31, %v1656_v49  ;;  %v15923_v50 = vld [vmem:[#allocation10 + $0x12c] ss:$16 sps:$4 sm:$0xff]   ;;  %v15921_v49 = vld [vmem:[#allocation10 + $0x128] ss:$16 sps:$4 sm:$0xff]  }
 0x662   :  { %v15280_v32 = vcombine.high %v1660_v2, %v1664_v36  ;;  %v15920_v30 = vld [vmem:[#allocation10 + $0x124] ss:$16 sps:$4 sm:$0xff]   ;;  %v15918_v31 = vld [vmem:[#allocation10 + $0x120] ss:$16 sps:$4 sm:$0xff]  }
 0x664   :  { %10923 = vmatpush1.bf16.msra.mxu0 %v15221_v57  ;;  %11415 = vmatpush1.bf16.msra.mxu1 %v15223_v43  ;;  %v15279_v57 = vcombine.low %v1660_v2, %v1664_v36  ;;  %v15866_v43 = vld [vmem:[#allocation10 + $0x4] ss:$16 sps:$4 sm:$0xff]   ;;  %v15933_v2 = vld [vmem:[#allocation10 + $0x168] ss:$16 sps:$4 sm:$0xff]  }
 0x665   :  { %10924 = vmatprep.subr.bf16.mxu0 %v15230_v34  ;;  %11416 = vmatprep.subr.bf16.mxu1 %v15232_v45  ;;  %v15869_v34 = vld [vmem:[#allocation10 + $0xc] ss:$16 sps:$4 sm:$0xff]   ;;  %v11440_v45 = vmax.f32 %v15615_v44, 0.0  ;;  %v15938_v36 = vld [vmem:[#allocation10 + $0x184] ss:$16 sps:$4 sm:$0xff]  }
 0x666   :  { %v15944_v44 = vld [vmem:[#allocation10 + $0x1a4] ss:$16 sps:$4 sm:$0xff]  }
 0x667   :  { %v11448_v56 = vpack.c.bf16 %v11440_v45, %v11440_v45  ;;  %v15945_v45 = vld [vmem:[#allocation10 + $0x1a8] ss:$16 sps:$4 sm:$0xff]  }
 0x668   :  { %10925 = vmatpush1.bf16.msra.mxu0 %v15229_v62  ;;  %11417 = vmatpush1.bf16.msra.mxu1 %v15231_v19  ;;  %v15870_v62 = vld [vmem:[#allocation10 + $0x20] ss:$16 sps:$4 sm:$0xff]   ;;  %v15873_v19 = vld [vmem:[#allocation10 + $0x28] ss:$16 sps:$4 sm:$0xff]  }
 0x669   :  { %10926 = vmatprep.subr.bf16.mxu0 %v15238_v46  ;;  %11418 = vmatprep.subr.bf16.mxu1 %v15240_v54  ;;  %v15878_v46 = vld [vmem:[#allocation10 + $0x44] ss:$16 sps:$4 sm:$0xff]   ;;  %v15881_v54 = vld [vmem:[#allocation10 + $0x4c] ss:$16 sps:$4 sm:$0xff]  }
 0x66c   :  { %10927 = vmatpush1.bf16.msra.mxu0 %v15237_v0  ;;  %11419 = vmatpush1.bf16.msra.mxu1 %v15239_v7  ;;  %v15885_v0 = vld [vmem:[#allocation10 + $0x68] ss:$16 sps:$4 sm:$0xff]   ;;  %v15890_v7 = vld [vmem:[#allocation10 + $0x84] ss:$16 sps:$4 sm:$0xff]  }
 0x66d   :  { %10928 = vmatprep.subr.bf16.mxu0 %v15246_v9  ;;  %11420 = vmatprep.subr.bf16.mxu1 %v15248_v23  ;;  %v15893_v9 = vld [vmem:[#allocation10 + $0x8c] ss:$16 sps:$4 sm:$0xff]   ;;  %v15888_v23 = vld [vmem:[#allocation10 + $0x80] ss:$16 sps:$4 sm:$0xff]  }
 0x670   :  { %10929 = vmatpush1.bf16.msra.mxu0 %v15245_v17  ;;  %11421 = vmatpush1.bf16.msra.mxu1 %v15247_v58  ;;  %v15902_v17 = vld [vmem:[#allocation10 + $0xc4] ss:$16 sps:$4 sm:$0xff]   ;;  %v15905_v58 = vld [vmem:[#allocation10 + $0xcc] ss:$16 sps:$4 sm:$0xff]  }
 0x671   :  { %10930 = vmatprep.subr.bf16.mxu0 %v15254_v10  ;;  %11422 = vmatprep.subr.bf16.mxu1 %v15256_v18  ;;  %v15900_v10 = vld [vmem:[#allocation10 + $0xc0] ss:$16 sps:$4 sm:$0xff]   ;;  %v15903_v18 = vld [vmem:[#allocation10 + $0xc8] ss:$16 sps:$4 sm:$0xff]  }
 0x674   :  { %10931 = vmatpush1.bf16.msra.mxu0 %v15253_v39  ;;  %11423 = vmatpush1.bf16.msra.mxu1 %v15255_v59  ;;  %v15914_v39 = vld [vmem:[#allocation10 + $0x104] ss:$16 sps:$4 sm:$0xff]   ;;  %v15917_v59 = vld [vmem:[#allocation10 + $0x10c] ss:$16 sps:$4 sm:$0xff]  }
 0x675   :  { %10932 = vmatprep.subr.bf16.mxu0 %v15262_v29  ;;  %11424 = vmatprep.subr.bf16.mxu1 %v15264_v55  ;;  %v15912_v29 = vld [vmem:[#allocation10 + $0x100] ss:$16 sps:$4 sm:$0xff]   ;;  %v15915_v55 = vld [vmem:[#allocation10 + $0x108] ss:$16 sps:$4 sm:$0xff]  }
 0x678   :  { %10933 = vmatpush1.bf16.msra.mxu0 %v15261_v15  ;;  %11425 = vmatpush1.bf16.msra.mxu1 %v15263_v20  ;;  %v15926_v15 = vld [vmem:[#allocation10 + $0x144] ss:$16 sps:$4 sm:$0xff]   ;;  %v15929_v20 = vld [vmem:[#allocation10 + $0x14c] ss:$16 sps:$4 sm:$0xff]  }
 0x679   :  { %10934 = vmatprep.subr.bf16.mxu0 %v15270_v25  ;;  %11426 = vmatprep.subr.bf16.mxu1 %v15272_v35  ;;  %v15924_v25 = vld [vmem:[#allocation10 + $0x140] ss:$16 sps:$4 sm:$0xff]   ;;  %v15927_v35 = vld [vmem:[#allocation10 + $0x148] ss:$16 sps:$4 sm:$0xff]  }
 0x67c   :  { %10935 = vmatpush1.bf16.msra.mxu0 %v15269_v37  ;;  %11427 = vmatpush1.bf16.msra.mxu1 %v15271_v40  ;;  %v15941_v37 = vld [vmem:[#allocation10 + $0x18c] ss:$16 sps:$4 sm:$0xff]   ;;  %v15936_v40 = vld [vmem:[#allocation10 + $0x180] ss:$16 sps:$4 sm:$0xff]  }
 0x67d   :  { %10936 = vmatprep.subr.bf16.mxu0 %v15278_v41  ;;  %11428 = vmatprep.subr.bf16.mxu1 %v15280_v32  ;;  %v1669_v41 = vsub.s32 0, %v16836_v22  ;;  %v15939_v32 = vld [vmem:[#allocation10 + $0x188] ss:$16 sps:$4 sm:$0xff]  }
 0x680   :  { %10937 = vmatpush1.bf16.msra.mxu0 %v15277_v42  ;;  %11429 = vmatpush1.bf16.msra.mxu1 %v15279_v57  ;;  %v15947_v42 = vld [vmem:[#allocation10 + $0x1ac] ss:$16 sps:$4 sm:$0xff]   ;;  %v1681_v57 = vsub.s32 3, %v16836_v22 }
 0x681   :  { %13013 = vmatprep.subr.bf16.mxu0 %v15866_v43  ;;  %13177 = vmatprep.subr.bf16.mxu1 %v15869_v34  ;;  %v15942_v43 = vld [vmem:[#allocation10 + $0x1a0] ss:$16 sps:$4 sm:$0xff]   ;;  %v1670_v34 = vrot.slane %v16839_v33, %v1669_v41 }
 0x683   :  { %10939 = vmatmul.mubr.bf16.vlgmr.msra.gmra.mrb[4].mxu0 %v16778_v24  ;;  %11431 = vmatmul.mubr.bf16.vlgmr.msra.gmra.mrb[4].mxu1 %v16778_v24  ;;  %v15882_v24 = vld [vmem:[#allocation10 + $0x60] ss:$16 sps:$4 sm:$0xff]  }
 0x684   :  { %13014 = vmatpush1.bf16.msra.mxu0 %v15864_v47  ;;  %13045 = vmatprep.mubr.bf16.mxu0 %v11448_v56  ;;  %v15950_v47 = vld [vmem:[#allocation10 + $0x1c4] ss:$16 sps:$4 sm:$0xff]  }
 0x685   :  { %13178 = vmatpush1.bf16.msra.mxu1 %v15867_v53  ;;  %13209 = vmatprep.mubr.bf16.mxu1 %v11448_v56  ;;  %v15953_v53 = vld [vmem:[#allocation10 + $0x1cc] ss:$16 sps:$4 sm:$0xff]   ;;  %v15948_v56 = vld [vmem:[#allocation10 + $0x1c0] ss:$16 sps:$4 sm:$0xff]  }
 0x686   :  { %13015 = vmatprep.subr.bf16.mxu0 %v15872_v52  ;;  %13179 = vmatprep.subr.bf16.mxu1 %v15875_v5  ;;  %v1682_v52 = vrot.slane %v16839_v33, %v1681_v57  ;;  %v15614_v5 = vadd.f32 %v16796_v61, %v1670_v34  ;;  %v15960_v61 = vld [vmem:[#allocation10 + $0x200] ss:$16 sps:$4 sm:$0xff]   ;;  %v16025_v34 = vld [vmem:[#allocation10 + $0x34c] ss:$16 sps:$4 sm:$0xff]  }
 0x688   :  { %13016 = vmatpush1.bf16.msra.mxu0 %v15870_v62  ;;  %v15951_v62 = vld [vmem:[#allocation10 + $0x1c8] ss:$16 sps:$4 sm:$0xff]  }
 0x689   :  { %13180 = vmatpush1.bf16.msra.mxu1 %v15873_v19  ;;  %13017 = vmatprep.subr.bf16.mxu0 %v15878_v46  ;;  %v15956_v19 = vld [vmem:[#allocation10 + $0x1e4] ss:$16 sps:$4 sm:$0xff]   ;;  %v15959_v46 = vld [vmem:[#allocation10 + $0x1ec] ss:$16 sps:$4 sm:$0xff]  }
 0x68a   :  { %13181 = vmatprep.subr.bf16.mxu1 %v15881_v54  ;;  %v15617_v54 = vadd.f32 %v16802_v8, %v1682_v52  ;;  %v15971_v8 = vld [vmem:[#allocation10 + $0x22c] ss:$16 sps:$4 sm:$0xff]  }
 0x68b   :  { %v16031_v52 = vld [vmem:[#allocation10 + $0x36c] ss:$16 sps:$4 sm:$0xff]  }
 0x68c   :  { %13018 = vmatpush1.bf16.msra.mxu0 %v15876_v51  ;;  %v15954_v51 = vld [vmem:[#allocation10 + $0x1e0] ss:$16 sps:$4 sm:$0xff]  }
 0x68d   :  { %13182 = vmatpush1.bf16.msra.mxu1 %v15879_v63  ;;  %13019 = vmatprep.subr.bf16.mxu0 %v15884_v3  ;;  %v11439_v63 = vmax.f32 %v15614_v5, 0.0  ;;  %v15957_v3 = vld [vmem:[#allocation10 + $0x1e8] ss:$16 sps:$4 sm:$0xff]  }
 0x68e   :  { %13183 = vmatprep.subr.bf16.mxu1 %v15887_v6  ;;  %v15962_v6 = vld [vmem:[#allocation10 + $0x204] ss:$16 sps:$4 sm:$0xff]   ;;  %v16029_v5 = vld [vmem:[#allocation10 + $0x368] ss:$16 sps:$4 sm:$0xff]  }
 0x690   :  { %13020 = vmatpush1.bf16.msra.mxu0 %v15882_v24  ;;  %v15965_v24 = vld [vmem:[#allocation10 + $0x20c] ss:$16 sps:$4 sm:$0xff]  }
 0x691   :  { %13184 = vmatpush1.bf16.msra.mxu1 %v15885_v0  ;;  %13021 = vmatprep.subr.bf16.mxu0 %v15890_v7  ;;  %v11442_v0 = vmax.f32 %v15617_v54, 0.0  ;;  %v11447_v7 = vpack.c.bf16 %v11439_v63, %v11439_v63  ;;  %v1677_v54 = vsub.s32 2, %v16836_v22  ;;  %v16040_v63 = vld [vmem:[#allocation10 + $0x3a4] ss:$16 sps:$4 sm:$0xff]  }
 0x692   :  { %13185 = vmatprep.subr.bf16.mxu1 %v15893_v9  ;;  %v15963_v9 = vld [vmem:[#allocation10 + $0x208] ss:$16 sps:$4 sm:$0xff]  }
 0x694   :  { %13022 = vmatpush1.bf16.msra.mxu0 %v15888_v23  ;;  %v15968_v23 = vld [vmem:[#allocation10 + $0x224] ss:$16 sps:$4 sm:$0xff]  }
 0x695   :  { %13186 = vmatpush1.bf16.msra.mxu1 %v15891_v11  ;;  %13023 = vmatprep.subr.bf16.mxu0 %v15896_v13  ;;  %v11450_v11 = vpack.c.bf16 %v11442_v0, %v11442_v0  ;;  %v15966_v13 = vld [vmem:[#allocation10 + $0x220] ss:$16 sps:$4 sm:$0xff]   ;;  %v16041_v0 = vld [vmem:[#allocation10 + $0x3a8] ss:$16 sps:$4 sm:$0xff]  }
 0x696   :  { %13187 = vmatprep.subr.bf16.mxu1 %v15899_v4  ;;  %v15969_v4 = vld [vmem:[#allocation10 + $0x228] ss:$16 sps:$4 sm:$0xff]  }
 0x698   :  { %13024 = vmatpush1.bf16.msra.mxu0 %v15894_v60  ;;  %v15974_v60 = vld [vmem:[#allocation10 + $0x244] ss:$16 sps:$4 sm:$0xff]  }
 0x699   :  { %13188 = vmatpush1.bf16.msra.mxu1 %v15897_v14  ;;  %13025 = vmatprep.subr.bf16.mxu0 %v15902_v17  ;;  %v15977_v14 = vld [vmem:[#allocation10 + $0x24c] ss:$16 sps:$4 sm:$0xff]   ;;  %v15972_v17 = vld [vmem:[#allocation10 + $0x240] ss:$16 sps:$4 sm:$0xff]  }
 0x69a   :  { %13189 = vmatprep.subr.bf16.mxu1 %v15905_v58  ;;  %v15975_v58 = vld [vmem:[#allocation10 + $0x248] ss:$16 sps:$4 sm:$0xff]  }
 0x69c   :  { %13026 = vmatpush1.bf16.msra.mxu0 %v15900_v10  ;;  %v15980_v10 = vld [vmem:[#allocation10 + $0x264] ss:$16 sps:$4 sm:$0xff]  }
 0x69d   :  { %13190 = vmatpush1.bf16.msra.mxu1 %v15903_v18  ;;  %13027 = vmatprep.subr.bf16.mxu0 %v15908_v16  ;;  %v15983_v18 = vld [vmem:[#allocation10 + $0x26c] ss:$16 sps:$4 sm:$0xff]   ;;  %v15978_v16 = vld [vmem:[#allocation10 + $0x260] ss:$16 sps:$4 sm:$0xff]  }
 0x69e   :  { %13191 = vmatprep.subr.bf16.mxu1 %v15911_v21  ;;  %v15981_v21 = vld [vmem:[#allocation10 + $0x268] ss:$16 sps:$4 sm:$0xff]  }
 0x6a0   :  { %13028 = vmatpush1.bf16.msra.mxu0 %v15906_v26  ;;  %v15986_v26 = vld [vmem:[#allocation10 + $0x284] ss:$16 sps:$4 sm:$0xff]  }
 0x6a1   :  { %13192 = vmatpush1.bf16.msra.mxu1 %v15909_v27  ;;  %13029 = vmatprep.subr.bf16.mxu0 %v15914_v39  ;;  %v15989_v27 = vld [vmem:[#allocation10 + $0x28c] ss:$16 sps:$4 sm:$0xff]   ;;  %v15984_v39 = vld [vmem:[#allocation10 + $0x280] ss:$16 sps:$4 sm:$0xff]  }
 0x6a2   :  { %13193 = vmatprep.subr.bf16.mxu1 %v15917_v59  ;;  %v15987_v59 = vld [vmem:[#allocation10 + $0x288] ss:$16 sps:$4 sm:$0xff]  }
 0x6a4   :  { %13030 = vmatpush1.bf16.msra.mxu0 %v15912_v29  ;;  %v15992_v29 = vld [vmem:[#allocation10 + $0x2a4] ss:$16 sps:$4 sm:$0xff]  }
 0x6a5   :  { %13194 = vmatpush1.bf16.msra.mxu1 %v15915_v55  ;;  %13031 = vmatprep.subr.bf16.mxu0 %v15920_v30  ;;  %v15995_v55 = vld [vmem:[#allocation10 + $0x2ac] ss:$16 sps:$4 sm:$0xff]   ;;  %v15990_v30 = vld [vmem:[#allocation10 + $0x2a0] ss:$16 sps:$4 sm:$0xff]  }
 0x6a6   :  { %13195 = vmatprep.subr.bf16.mxu1 %v15923_v50  ;;  %v15993_v50 = vld [vmem:[#allocation10 + $0x2a8] ss:$16 sps:$4 sm:$0xff]  }
 0x6a8   :  { %13032 = vmatpush1.bf16.msra.mxu0 %v15918_v31  ;;  %v15998_v31 = vld [vmem:[#allocation10 + $0x2c4] ss:$16 sps:$4 sm:$0xff]  }
 0x6a9   :  { %13196 = vmatpush1.bf16.msra.mxu1 %v15921_v49  ;;  %13033 = vmatprep.subr.bf16.mxu0 %v15926_v15  ;;  %v16001_v49 = vld [vmem:[#allocation10 + $0x2cc] ss:$16 sps:$4 sm:$0xff]   ;;  %v15996_v15 = vld [vmem:[#allocation10 + $0x2c0] ss:$16 sps:$4 sm:$0xff]  }
 0x6aa   :  { %13197 = vmatprep.subr.bf16.mxu1 %v15929_v20  ;;  %v15999_v20 = vld [vmem:[#allocation10 + $0x2c8] ss:$16 sps:$4 sm:$0xff]  }
 0x6ac   :  { %13034 = vmatpush1.bf16.msra.mxu0 %v15924_v25  ;;  %v16004_v25 = vld [vmem:[#allocation10 + $0x2e4] ss:$16 sps:$4 sm:$0xff]  }
 0x6ad   :  { %13198 = vmatpush1.bf16.msra.mxu1 %v15927_v35  ;;  %13035 = vmatprep.subr.bf16.mxu0 %v15932_v48  ;;  %v16007_v35 = vld [vmem:[#allocation10 + $0x2ec] ss:$16 sps:$4 sm:$0xff]   ;;  %v16002_v48 = vld [vmem:[#allocation10 + $0x2e0] ss:$16 sps:$4 sm:$0xff]  }
 0x6ae   :  { %13199 = vmatprep.subr.bf16.mxu1 %v15935_v1  ;;  %v16005_v1 = vld [vmem:[#allocation10 + $0x2e8] ss:$16 sps:$4 sm:$0xff]  }
 0x6b0   :  { %13036 = vmatpush1.bf16.msra.mxu0 %v15930_v12  ;;  %v16010_v12 = vld [vmem:[#allocation10 + $0x304] ss:$16 sps:$4 sm:$0xff]  }
 0x6b1   :  { %13200 = vmatpush1.bf16.msra.mxu1 %v15933_v2  ;;  %13037 = vmatprep.subr.bf16.mxu0 %v15938_v36  ;;  %v16013_v2 = vld [vmem:[#allocation10 + $0x30c] ss:$16 sps:$4 sm:$0xff]   ;;  %v16008_v36 = vld [vmem:[#allocation10 + $0x300] ss:$16 sps:$4 sm:$0xff]  }
 0x6b2   :  { %13201 = vmatprep.subr.bf16.mxu1 %v15941_v37  ;;  %v16011_v37 = vld [vmem:[#allocation10 + $0x308] ss:$16 sps:$4 sm:$0xff]  }
 0x6b4   :  { %13038 = vmatpush1.bf16.msra.mxu0 %v15936_v40  ;;  %v16016_v40 = vld [vmem:[#allocation10 + $0x324] ss:$16 sps:$4 sm:$0xff]  }
 0x6b5   :  { %13202 = vmatpush1.bf16.msra.mxu1 %v15939_v32  ;;  %13039 = vmatprep.subr.bf16.mxu0 %v15944_v44  ;;  %v16019_v32 = vld [vmem:[#allocation10 + $0x32c] ss:$16 sps:$4 sm:$0xff]   ;;  %v16014_v44 = vld [vmem:[#allocation10 + $0x320] ss:$16 sps:$4 sm:$0xff]  }
 0x6b6   :  { %13203 = vmatprep.subr.bf16.mxu1 %v15947_v42  ;;  %v16017_v42 = vld [vmem:[#allocation10 + $0x328] ss:$16 sps:$4 sm:$0xff]  }
 0x6b8   :  { %13040 = vmatpush1.bf16.msra.mxu0 %v15942_v43  ;;  %v16022_v43 = vld [vmem:[#allocation10 + $0x344] ss:$16 sps:$4 sm:$0xff]  }
 0x6b9   :  { %13204 = vmatpush1.bf16.msra.mxu1 %v15945_v45  ;;  %13041 = vmatprep.subr.bf16.mxu0 %v15950_v47  ;;  %v16020_v45 = vld [vmem:[#allocation10 + $0x340] ss:$16 sps:$4 sm:$0xff]   ;;  %v16023_v47 = vld [vmem:[#allocation10 + $0x348] ss:$16 sps:$4 sm:$0xff]  }
 0x6ba   :  { %13205 = vmatprep.subr.bf16.mxu1 %v15953_v53  ;;  %v16028_v53 = vld [vmem:[#allocation10 + $0x364] ss:$16 sps:$4 sm:$0xff]  }
 0x6bc   :  { %13042 = vmatpush1.bf16.msra.mxu0 %v15948_v56  ;;  %v16026_v56 = vld [vmem:[#allocation10 + $0x360] ss:$16 sps:$4 sm:$0xff]  }
 0x6bd   :  { %13206 = vmatpush1.bf16.msra.mxu1 %v15951_v62  ;;  %13043 = vmatprep.subr.bf16.mxu0 %v15956_v19  ;;  %v16034_v62 = vld [vmem:[#allocation10 + $0x384] ss:$16 sps:$4 sm:$0xff]   ;;  %v16037_v19 = vld [vmem:[#allocation10 + $0x38c] ss:$16 sps:$4 sm:$0xff]  }
 0x6be   :  { %13207 = vmatprep.subr.bf16.mxu1 %v15959_v46  ;;  %v16032_v46 = vld [vmem:[#allocation10 + $0x380] ss:$16 sps:$4 sm:$0xff]  }
 0x6c0   :  { %13044 = vmatpush1.bf16.msra.mxu0 %v15954_v51  ;;  %v16035_v51 = vld [vmem:[#allocation10 + $0x388] ss:$16 sps:$4 sm:$0xff]  }
 0x6c1   :  { %13208 = vmatpush1.bf16.msra.mxu1 %v15957_v3  ;;  %13054 = vmatprep.subr.bf16.mxu0 %v15962_v6  ;;  %v16043_v3 = vld [vmem:[#allocation10 + $0x3ac] ss:$16 sps:$4 sm:$0xff]   ;;  %v16038_v6 = vld [vmem:[#allocation10 + $0x3a0] ss:$16 sps:$4 sm:$0xff]  }
 0x6c2   :  { %13218 = vmatprep.subr.bf16.mxu1 %v15965_v24  ;;  %v1678_v24 = vrot.slane %v16839_v33, %v1677_v54 }
 0x6c3   :  { %13046 = vmatmul.mubr.bf16.vlgmr.msra.gmra.mrb[8].mxu0 %v11447_v7 }
 0x6c4   :  { %13210 = vmatmul.mubr.bf16.vlgmr.msra.gmra.mrb[8].mxu1 %v11447_v7  ;;  %13055 = vmatpush1.bf16.msra.mxu0 %v15960_v61  ;;  %v16046_v61 = vld [vmem:[#allocation10 + $0x3c4] ss:$16 sps:$4 sm:$0xff]   ;;  %v16049_v7 = vld [vmem:[#allocation10 + $0x3cc] ss:$16 sps:$4 sm:$0xff]  }
 0x6c5   :  { %13086 = vmatprep.mubr.bf16.mxu0 %v11450_v11  ;;  %13219 = vmatpush1.bf16.msra.mxu1 %v15963_v9  ;;  %v16044_v9 = vld [vmem:[#allocation10 + $0x3c0] ss:$16 sps:$4 sm:$0xff]  }
 0x6c6   :  { %13250 = vmatprep.mubr.bf16.mxu1 %v11450_v11  ;;  %13056 = vmatprep.subr.bf16.mxu0 %v15968_v23  ;;  %v15616_v23 = vadd.f32 %v16798_v38, %v1678_v24  ;;  %v16047_v11 = vld [vmem:[#allocation10 + $0x3c8] ss:$16 sps:$4 sm:$0xff]   ;;  %v16127_v24 = vld [vmem:[#allocation10 + $0x56c] ss:$16 sps:$4 sm:$0xff]  }
 0x6c7   :  { %13220 = vmatprep.subr.bf16.mxu1 %v15971_v8  ;;  %v16052_v8 = vld [vmem:[#allocation10 + $0x3e4] ss:$16 sps:$4 sm:$0xff]   ;;  %v16059_v38 = vld [vmem:[#allocation10 + $0x408] ss:$16 sps:$4 sm:$0xff]  }
 0x6c8   :  { %13057 = vmatpush1.bf16.msra.mxu0 %v15966_v13  ;;  %v16055_v13 = vld [vmem:[#allocation10 + $0x3ec] ss:$16 sps:$4 sm:$0xff]  }
 0x6c9   :  { %13221 = vmatpush1.bf16.msra.mxu1 %v15969_v4  ;;  %13058 = vmatprep.subr.bf16.mxu0 %v15974_v60  ;;  %v16050_v4 = vld [vmem:[#allocation10 + $0x3e0] ss:$16 sps:$4 sm:$0xff]   ;;  %v11441_v60 = vmax.f32 %v15616_v23, 0.0 }
 0x6ca   :  { %13222 = vmatprep.subr.bf16.mxu1 %v15977_v14  ;;  %v16053_v14 = vld [vmem:[#allocation10 + $0x3e8] ss:$16 sps:$4 sm:$0xff]   ;;  %v16128_v23 = vld [vmem:[#allocation10 + $0x580] ss:$16 sps:$4 sm:$0xff]  }
 0x6cc   :  { %13059 = vmatpush1.bf16.msra.mxu0 %v15972_v17  ;;  %v16058_v17 = vld [vmem:[#allocation10 + $0x404] ss:$16 sps:$4 sm:$0xff]  }
 0x6cd   :  { %13223 = vmatpush1.bf16.msra.mxu1 %v15975_v58  ;;  %13060 = vmatprep.subr.bf16.mxu0 %v15980_v10  ;;  %v16061_v58 = vld [vmem:[#allocation10 + $0x40c] ss:$16 sps:$4 sm:$0xff]   ;;  %v16056_v10 = vld [vmem:[#allocation10 + $0x400] ss:$16 sps:$4 sm:$0xff]  }
 0x6ce   :  { %13224 = vmatprep.subr.bf16.mxu1 %v15983_v18  ;;  %v11449_v18 = vpack.c.bf16 %v11441_v60, %v11441_v60  ;;  %v16137_v60 = vld [vmem:[#allocation10 + $0x5a8] ss:$16 sps:$4 sm:$0xff]  }
 0x6d0   :  { %13061 = vmatpush1.bf16.msra.mxu0 %v15978_v16  ;;  %v16064_v16 = vld [vmem:[#allocation10 + $0x424] ss:$16 sps:$4 sm:$0xff]  }
 0x6d1   :  { %13225 = vmatpush1.bf16.msra.mxu1 %v15981_v21  ;;  %13062 = vmatprep.subr.bf16.mxu0 %v15986_v26  ;;  %v16067_v21 = vld [vmem:[#allocation10 + $0x42c] ss:$16 sps:$4 sm:$0xff]   ;;  %v16062_v26 = vld [vmem:[#allocation10 + $0x420] ss:$16 sps:$4 sm:$0xff]  }
 0x6d2   :  { %13226 = vmatprep.subr.bf16.mxu1 %v15989_v27  ;;  %v16065_v27 = vld [vmem:[#allocation10 + $0x428] ss:$16 sps:$4 sm:$0xff]  }
 0x6d4   :  { %13063 = vmatpush1.bf16.msra.mxu0 %v15984_v39  ;;  %v16070_v39 = vld [vmem:[#allocation10 + $0x444] ss:$16 sps:$4 sm:$0xff]  }
 0x6d5   :  { %13227 = vmatpush1.bf16.msra.mxu1 %v15987_v59  ;;  %13064 = vmatprep.subr.bf16.mxu0 %v15992_v29  ;;  %v16073_v59 = vld [vmem:[#allocation10 + $0x44c] ss:$16 sps:$4 sm:$0xff]   ;;  %v16068_v29 = vld [vmem:[#allocation10 + $0x440] ss:$16 sps:$4 sm:$0xff]  }
 0x6d6   :  { %13228 = vmatprep.subr.bf16.mxu1 %v15995_v55  ;;  %v16071_v55 = vld [vmem:[#allocation10 + $0x448] ss:$16 sps:$4 sm:$0xff]  }
 0x6d8   :  { %13065 = vmatpush1.bf16.msra.mxu0 %v15990_v30  ;;  %v16076_v30 = vld [vmem:[#allocation10 + $0x464] ss:$16 sps:$4 sm:$0xff]  }
 0x6d9   :  { %13229 = vmatpush1.bf16.msra.mxu1 %v15993_v50  ;;  %13066 = vmatprep.subr.bf16.mxu0 %v15998_v31  ;;  %v16079_v50 = vld [vmem:[#allocation10 + $0x46c] ss:$16 sps:$4 sm:$0xff]   ;;  %v16074_v31 = vld [vmem:[#allocation10 + $0x460] ss:$16 sps:$4 sm:$0xff]  }
 0x6da   :  { %13230 = vmatprep.subr.bf16.mxu1 %v16001_v49  ;;  %v16077_v49 = vld [vmem:[#allocation10 + $0x468] ss:$16 sps:$4 sm:$0xff]  }
 0x6dc   :  { %13067 = vmatpush1.bf16.msra.mxu0 %v15996_v15  ;;  %v16082_v15 = vld [vmem:[#allocation10 + $0x484] ss:$16 sps:$4 sm:$0xff]  }
 0x6dd   :  { %13231 = vmatpush1.bf16.msra.mxu1 %v15999_v20  ;;  %13068 = vmatprep.subr.bf16.mxu0 %v16004_v25  ;;  %v16085_v20 = vld [vmem:[#allocation10 + $0x48c] ss:$16 sps:$4 sm:$0xff]   ;;  %v16080_v25 = vld [vmem:[#allocation10 + $0x480] ss:$16 sps:$4 sm:$0xff]  }
 0x6de   :  { %13232 = vmatprep.subr.bf16.mxu1 %v16007_v35  ;;  %v16083_v35 = vld [vmem:[#allocation10 + $0x488] ss:$16 sps:$4 sm:$0xff]  }
 0x6e0   :  { %13069 = vmatpush1.bf16.msra.mxu0 %v16002_v48  ;;  %v16088_v48 = vld [vmem:[#allocation10 + $0x4a4] ss:$16 sps:$4 sm:$0xff]  }
 0x6e1   :  { %13233 = vmatpush1.bf16.msra.mxu1 %v16005_v1  ;;  %13070 = vmatprep.subr.bf16.mxu0 %v16010_v12  ;;  %v16091_v1 = vld [vmem:[#allocation10 + $0x4ac] ss:$16 sps:$4 sm:$0xff]   ;;  %v16086_v12 = vld [vmem:[#allocation10 + $0x4a0] ss:$16 sps:$4 sm:$0xff]  }
 0x6e2   :  { %13234 = vmatprep.subr.bf16.mxu1 %v16013_v2  ;;  %v16089_v2 = vld [vmem:[#allocation10 + $0x4a8] ss:$16 sps:$4 sm:$0xff]  }
 0x6e4   :  { %13071 = vmatpush1.bf16.msra.mxu0 %v16008_v36  ;;  %v16094_v36 = vld [vmem:[#allocation10 + $0x4c4] ss:$16 sps:$4 sm:$0xff]  }
 0x6e5   :  { %13235 = vmatpush1.bf16.msra.mxu1 %v16011_v37  ;;  %13072 = vmatprep.subr.bf16.mxu0 %v16016_v40  ;;  %v16097_v37 = vld [vmem:[#allocation10 + $0x4cc] ss:$16 sps:$4 sm:$0xff]   ;;  %v16092_v40 = vld [vmem:[#allocation10 + $0x4c0] ss:$16 sps:$4 sm:$0xff]  }
 0x6e6   :  { %13236 = vmatprep.subr.bf16.mxu1 %v16019_v32  ;;  %v16095_v32 = vld [vmem:[#allocation10 + $0x4c8] ss:$16 sps:$4 sm:$0xff]  }
 0x6e8   :  { %13073 = vmatpush1.bf16.msra.mxu0 %v16014_v44  ;;  %v16100_v44 = vld [vmem:[#allocation10 + $0x4e4] ss:$16 sps:$4 sm:$0xff]  }
 0x6e9   :  { %13237 = vmatpush1.bf16.msra.mxu1 %v16017_v42  ;;  %13074 = vmatprep.subr.bf16.mxu0 %v16022_v43  ;;  %v16103_v42 = vld [vmem:[#allocation10 + $0x4ec] ss:$16 sps:$4 sm:$0xff]   ;;  %v16098_v43 = vld [vmem:[#allocation10 + $0x4e0] ss:$16 sps:$4 sm:$0xff]  }
 0x6ea   :  { %13238 = vmatprep.subr.bf16.mxu1 %v16025_v34  ;;  %v16101_v34 = vld [vmem:[#allocation10 + $0x4e8] ss:$16 sps:$4 sm:$0xff]  }
 0x6ec   :  { %13075 = vmatpush1.bf16.msra.mxu0 %v16020_v45  ;;  %v16106_v45 = vld [vmem:[#allocation10 + $0x504] ss:$16 sps:$4 sm:$0xff]  }
 0x6ed   :  { %13239 = vmatpush1.bf16.msra.mxu1 %v16023_v47  ;;  %13076 = vmatprep.subr.bf16.mxu0 %v16028_v53  ;;  %v16109_v47 = vld [vmem:[#allocation10 + $0x50c] ss:$16 sps:$4 sm:$0xff]   ;;  %v16104_v53 = vld [vmem:[#allocation10 + $0x500] ss:$16 sps:$4 sm:$0xff]  }
 0x6ee   :  { %13240 = vmatprep.subr.bf16.mxu1 %v16031_v52  ;;  %v16107_v52 = vld [vmem:[#allocation10 + $0x508] ss:$16 sps:$4 sm:$0xff]  }
 0x6f0   :  { %13077 = vmatpush1.bf16.msra.mxu0 %v16026_v56  ;;  %v16112_v56 = vld [vmem:[#allocation10 + $0x524] ss:$16 sps:$4 sm:$0xff]  }
 0x6f1   :  { %13241 = vmatpush1.bf16.msra.mxu1 %v16029_v5  ;;  %13078 = vmatprep.subr.bf16.mxu0 %v16034_v62  ;;  %v16115_v5 = vld [vmem:[#allocation10 + $0x52c] ss:$16 sps:$4 sm:$0xff]   ;;  %v16110_v62 = vld [vmem:[#allocation10 + $0x520] ss:$16 sps:$4 sm:$0xff]  }
 0x6f2   :  { %13242 = vmatprep.subr.bf16.mxu1 %v16037_v19  ;;  %v16113_v19 = vld [vmem:[#allocation10 + $0x528] ss:$16 sps:$4 sm:$0xff]  }
 0x6f4   :  { %13079 = vmatpush1.bf16.msra.mxu0 %v16032_v46  ;;  %v16118_v46 = vld [vmem:[#allocation10 + $0x544] ss:$16 sps:$4 sm:$0xff]  }
 0x6f5   :  { %13243 = vmatpush1.bf16.msra.mxu1 %v16035_v51  ;;  %13080 = vmatprep.subr.bf16.mxu0 %v16040_v63  ;;  %v16121_v51 = vld [vmem:[#allocation10 + $0x54c] ss:$16 sps:$4 sm:$0xff]   ;;  %v16116_v63 = vld [vmem:[#allocation10 + $0x540] ss:$16 sps:$4 sm:$0xff]  }
 0x6f6   :  { %13244 = vmatprep.subr.bf16.mxu1 %v16043_v3  ;;  %v16119_v3 = vld [vmem:[#allocation10 + $0x548] ss:$16 sps:$4 sm:$0xff]  }
 0x6f8   :  { %13081 = vmatpush1.bf16.msra.mxu0 %v16038_v6  ;;  %v16124_v6 = vld [vmem:[#allocation10 + $0x564] ss:$16 sps:$4 sm:$0xff]  }
 0x6f9   :  { %13245 = vmatpush1.bf16.msra.mxu1 %v16041_v0  ;;  %13082 = vmatprep.subr.bf16.mxu0 %v16046_v61  ;;  %v16122_v0 = vld [vmem:[#allocation10 + $0x560] ss:$16 sps:$4 sm:$0xff]   ;;  %v16125_v61 = vld [vmem:[#allocation10 + $0x568] ss:$16 sps:$4 sm:$0xff]  }
 0x6fa   :  { %13246 = vmatprep.subr.bf16.mxu1 %v16049_v7  ;;  %v16130_v7 = vld [vmem:[#allocation10 + $0x584] ss:$16 sps:$4 sm:$0xff]  }
 0x6fc   :  { %13083 = vmatpush1.bf16.msra.mxu0 %v16044_v9  ;;  %v16133_v9 = vld [vmem:[#allocation10 + $0x58c] ss:$16 sps:$4 sm:$0xff]  }
 0x6fd   :  { %13247 = vmatpush1.bf16.msra.mxu1 %v16047_v11  ;;  %13084 = vmatprep.subr.bf16.mxu0 %v16052_v8  ;;  %v16131_v11 = vld [vmem:[#allocation10 + $0x588] ss:$16 sps:$4 sm:$0xff]   ;;  %v16136_v8 = vld [vmem:[#allocation10 + $0x5a4] ss:$16 sps:$4 sm:$0xff]  }
 0x6fe   :  { %13248 = vmatprep.subr.bf16.mxu1 %v16055_v13  ;;  %v16139_v13 = vld [vmem:[#allocation10 + $0x5ac] ss:$16 sps:$4 sm:$0xff]  }
 0x700   :  { %13085 = vmatpush1.bf16.msra.mxu0 %v16050_v4  ;;  %v16134_v4 = vld [vmem:[#allocation10 + $0x5a0] ss:$16 sps:$4 sm:$0xff]  }
 0x701   :  { %13249 = vmatpush1.bf16.msra.mxu1 %v16053_v14  ;;  %13095 = vmatprep.subr.bf16.mxu0 %v16058_v17  ;;  %v16142_v14 = vld [vmem:[#allocation10 + $0x5c4] ss:$16 sps:$4 sm:$0xff]   ;;  %v16145_v17 = vld [vmem:[#allocation10 + $0x5cc] ss:$16 sps:$4 sm:$0xff]  }
 0x702   :  { %13259 = vmatprep.subr.bf16.mxu1 %v16061_v58  ;;  %v16140_v58 = vld [vmem:[#allocation10 + $0x5c0] ss:$16 sps:$4 sm:$0xff]  }
 0x703   :  { %13087 = vmatmul.mubr.bf16.vlgmr.msra.gmra.mrb[8].mxu0 %v11449_v18 }
 0x704   :  { %13251 = vmatmul.mubr.bf16.vlgmr.msra.gmra.mrb[8].mxu1 %v11449_v18  ;;  %13096 = vmatpush1.bf16.msra.mxu0 %v16056_v10  ;;  %v16143_v10 = vld [vmem:[#allocation10 + $0x5c8] ss:$16 sps:$4 sm:$0xff]   ;;  %v16148_v18 = vld [vmem:[#allocation10 + $0x5e4] ss:$16 sps:$4 sm:$0xff]  }
 0x705   :  { %13260 = vmatpush1.bf16.msra.mxu1 %v16059_v38  ;;  %13097 = vmatprep.subr.bf16.mxu0 %v16064_v16  ;;  %v16151_v38 = vld [vmem:[#allocation10 + $0x5ec] ss:$16 sps:$4 sm:$0xff]   ;;  %v16146_v16 = vld [vmem:[#allocation10 + $0x5e0] ss:$16 sps:$4 sm:$0xff]  }
 0x706   :  { %13261 = vmatprep.subr.bf16.mxu1 %v16067_v21  ;;  %v16149_v21 = vld [vmem:[#allocation10 + $0x5e8] ss:$16 sps:$4 sm:$0xff]  }
 0x708   :  { %13098 = vmatpush1.bf16.msra.mxu0 %v16062_v26  ;;  %v16154_v26 = vld [vmem:[#allocation10 + $0x604] ss:$16 sps:$4 sm:$0xff]  }
 0x709   :  { %13262 = vmatpush1.bf16.msra.mxu1 %v16065_v27  ;;  %13099 = vmatprep.subr.bf16.mxu0 %v16070_v39  ;;  %v16157_v27 = vld [vmem:[#allocation10 + $0x60c] ss:$16 sps:$4 sm:$0xff]   ;;  %v1685_v39 = vsub.s32 4, %v16836_v22 }
 0x70a   :  { %13263 = vmatprep.subr.bf16.mxu1 %v16073_v59  ;;  %v1689_v59 = vsub.s32 5, %v16836_v22 }
 0x70c   :  { %13100 = vmatpush1.bf16.msra.mxu0 %v16068_v29  ;;  %v1697_v29 = vsub.s32 7, %v16836_v22 }
 0x70d   :  { %13264 = vmatpush1.bf16.msra.mxu1 %v16071_v55  ;;  %13101 = vmatprep.subr.bf16.mxu0 %v16076_v30  ;;  %v1686_v55 = vrot.slane %v16839_v33, %v1685_v39  ;;  %v1690_v30 = vrot.slane %v16839_v33, %v1689_v59  ;;  %v16206_v39 = vld [vmem:[#allocation10 + $0x720] ss:$16 sps:$4 sm:$0xff]   ;;  %v16209_v59 = vld [vmem:[#allocation10 + $0x728] ss:$16 sps:$4 sm:$0xff]  }
 0x70e   :  { %13265 = vmatprep.subr.bf16.mxu1 %v16079_v50  ;;  %v1698_v50 = vrot.slane %v16839_v33, %v1697_v29  ;;  %v16160_v33 = vld [vmem:[#allocation10 + $0x624] ss:$16 sps:$4 sm:$0xff]  }
 0x70f   :  { %v16214_v29 = vld [vmem:[#allocation10 + $0x744] ss:$16 sps:$4 sm:$0xff]  }
 0x710   :  { %13102 = vmatpush1.bf16.msra.mxu0 %v16074_v31 }
 0x711   :  { %13266 = vmatpush1.bf16.msra.mxu1 %v16077_v49  ;;  %13103 = vmatprep.subr.bf16.mxu0 %v16082_v15 }
 0x712   :  { %13267 = vmatprep.subr.bf16.mxu1 %v16085_v20 }
 0x714   :  { %13104 = vmatpush1.bf16.msra.mxu0 %v16080_v25 }
 0x715   :  { %13268 = vmatpush1.bf16.msra.mxu1 %v16083_v35  ;;  %13105 = vmatprep.subr.bf16.mxu0 %v16088_v48 }
 0x716   :  { %13269 = vmatprep.subr.bf16.mxu1 %v16091_v1 }
 0x718   :  { %13106 = vmatpush1.bf16.msra.mxu0 %v16086_v12 }
 0x719   :  { %13270 = vmatpush1.bf16.msra.mxu1 %v16089_v2  ;;  %13107 = vmatprep.subr.bf16.mxu0 %v16094_v36 }
 0x71a   :  { %13271 = vmatprep.subr.bf16.mxu1 %v16097_v37 }
 0x71c   :  { %13108 = vmatpush1.bf16.msra.mxu0 %v16092_v40 }
 0x71d   :  { %13272 = vmatpush1.bf16.msra.mxu1 %v16095_v32  ;;  %13109 = vmatprep.subr.bf16.mxu0 %v16100_v44 }
 0x71e   :  { %13273 = vmatprep.subr.bf16.mxu1 %v16103_v42  ;;  %v16152_v42 = vld [vmem:[#allocation10 + $0x600] ss:$16 sps:$4 sm:$0xff]  }
 0x720   :  { %13110 = vmatpush1.bf16.msra.mxu0 %v16098_v43  ;;  %v16155_v43 = vld [vmem:[#allocation10 + $0x608] ss:$16 sps:$4 sm:$0xff]  }
 0x721   :  { %13274 = vmatpush1.bf16.msra.mxu1 %v16101_v34  ;;  %13111 = vmatprep.subr.bf16.mxu0 %v16106_v45  ;;  %v16163_v45 = vld [vmem:[#allocation10 + $0x62c] ss:$16 sps:$4 sm:$0xff]  }
 0x722   :  { %13275 = vmatprep.subr.bf16.mxu1 %v16109_v47 }
 0x724   :  { %13112 = vmatpush1.bf16.msra.mxu0 %v16104_v53  ;;  %v16158_v53 = vld [vmem:[#allocation10 + $0x620] ss:$16 sps:$4 sm:$0xff]  }
 0x725   :  { %13276 = vmatpush1.bf16.msra.mxu1 %v16107_v52  ;;  %13113 = vmatprep.subr.bf16.mxu0 %v16112_v56  ;;  %v16161_v52 = vld [vmem:[#allocation10 + $0x628] ss:$16 sps:$4 sm:$0xff]   ;;  %v16166_v56 = vld [vmem:[#allocation10 + $0x644] ss:$16 sps:$4 sm:$0xff]  }
 0x726   :  { %13277 = vmatprep.subr.bf16.mxu1 %v16115_v5  ;;  %v16169_v5 = vld [vmem:[#allocation10 + $0x64c] ss:$16 sps:$4 sm:$0xff]  }
 0x728   :  { %13114 = vmatpush1.bf16.msra.mxu0 %v16110_v62  ;;  %v16164_v62 = vld [vmem:[#allocation10 + $0x640] ss:$16 sps:$4 sm:$0xff]  }
 0x729   :  { %13278 = vmatpush1.bf16.msra.mxu1 %v16113_v19  ;;  %13115 = vmatprep.subr.bf16.mxu0 %v16118_v46  ;;  %v16167_v19 = vld [vmem:[#allocation10 + $0x648] ss:$16 sps:$4 sm:$0xff]   ;;  %v16172_v46 = vld [vmem:[#allocation10 + $0x664] ss:$16 sps:$4 sm:$0xff]  }
 0x72a   :  { %13279 = vmatprep.subr.bf16.mxu1 %v16121_v51  ;;  %v16175_v51 = vld [vmem:[#allocation10 + $0x66c] ss:$16 sps:$4 sm:$0xff]  }
 0x72c   :  { %13116 = vmatpush1.bf16.msra.mxu0 %v16116_v63  ;;  %v16170_v63 = vld [vmem:[#allocation10 + $0x660] ss:$16 sps:$4 sm:$0xff]  }
 0x72d   :  { %13280 = vmatpush1.bf16.msra.mxu1 %v16119_v3  ;;  %13117 = vmatprep.subr.bf16.mxu0 %v16124_v6  ;;  %v16173_v3 = vld [vmem:[#allocation10 + $0x668] ss:$16 sps:$4 sm:$0xff]   ;;  %v16178_v6 = vld [vmem:[#allocation10 + $0x684] ss:$16 sps:$4 sm:$0xff]  }
 0x72e   :  { %13281 = vmatprep.subr.bf16.mxu1 %v16127_v24  ;;  %v16181_v24 = vld [vmem:[#allocation10 + $0x68c] ss:$16 sps:$4 sm:$0xff]  }
 0x730   :  { %13118 = vmatpush1.bf16.msra.mxu0 %v16122_v0  ;;  %v16176_v0 = vld [vmem:[#allocation10 + $0x680] ss:$16 sps:$4 sm:$0xff]  }
 0x731   :  { %13282 = vmatpush1.bf16.msra.mxu1 %v16125_v61  ;;  %13119 = vmatprep.subr.bf16.mxu0 %v16130_v7  ;;  %v16179_v61 = vld [vmem:[#allocation10 + $0x688] ss:$16 sps:$4 sm:$0xff]   ;;  %v16184_v7 = vld [vmem:[#allocation10 + $0x6a4] ss:$16 sps:$4 sm:$0xff]  }
 0x732   :  { %13283 = vmatprep.subr.bf16.mxu1 %v16133_v9  ;;  %v16187_v9 = vld [vmem:[#allocation10 + $0x6ac] ss:$16 sps:$4 sm:$0xff]  }
 0x734   :  { %13120 = vmatpush1.bf16.msra.mxu0 %v16128_v23  ;;  %v16182_v23 = vld [vmem:[#allocation10 + $0x6a0] ss:$16 sps:$4 sm:$0xff]  }
 0x735   :  { %13284 = vmatpush1.bf16.msra.mxu1 %v16131_v11  ;;  %13121 = vmatprep.subr.bf16.mxu0 %v16136_v8  ;;  %v16185_v11 = vld [vmem:[#allocation10 + $0x6a8] ss:$16 sps:$4 sm:$0xff]   ;;  %v16190_v8 = vld [vmem:[#allocation10 + $0x6c4] ss:$16 sps:$4 sm:$0xff]  }
 0x736   :  { %13285 = vmatprep.subr.bf16.mxu1 %v16139_v13  ;;  %v16193_v13 = vld [vmem:[#allocation10 + $0x6cc] ss:$16 sps:$4 sm:$0xff]  }
 0x738   :  { %13122 = vmatpush1.bf16.msra.mxu0 %v16134_v4  ;;  %v16188_v4 = vld [vmem:[#allocation10 + $0x6c0] ss:$16 sps:$4 sm:$0xff]  }
 0x739   :  { %13286 = vmatpush1.bf16.msra.mxu1 %v16137_v60  ;;  %13123 = vmatprep.subr.bf16.mxu0 %v16142_v14  ;;  %v16191_v60 = vld [vmem:[#allocation10 + $0x6c8] ss:$16 sps:$4 sm:$0xff]   ;;  %v16196_v14 = vld [vmem:[#allocation10 + $0x6e4] ss:$16 sps:$4 sm:$0xff]  }
 0x73a   :  { %13287 = vmatprep.subr.bf16.mxu1 %v16145_v17  ;;  %v16199_v17 = vld [vmem:[#allocation10 + $0x6ec] ss:$16 sps:$4 sm:$0xff]  }
 0x73c   :  { %13124 = vmatpush1.bf16.msra.mxu0 %v16140_v58  ;;  %v16194_v58 = vld [vmem:[#allocation10 + $0x6e0] ss:$16 sps:$4 sm:$0xff]  }
 0x73d   :  { %13288 = vmatpush1.bf16.msra.mxu1 %v16143_v10  ;;  %13125 = vmatprep.subr.bf16.mxu0 %v16148_v18  ;;  %v16197_v10 = vld [vmem:[#allocation10 + $0x6e8] ss:$16 sps:$4 sm:$0xff]   ;;  %v16202_v18 = vld [vmem:[#allocation10 + $0x704] ss:$16 sps:$4 sm:$0xff]  }
 0x73e   :  { %13289 = vmatprep.subr.bf16.mxu1 %v16151_v38  ;;  %v16205_v38 = vld [vmem:[#allocation10 + $0x70c] ss:$16 sps:$4 sm:$0xff]  }
 0x740   :  { %13126 = vmatpush1.bf16.msra.mxu0 %v16146_v16  ;;  %v16200_v16 = vld [vmem:[#allocation10 + $0x700] ss:$16 sps:$4 sm:$0xff]  }
 0x741   :  { %13290 = vmatpush1.bf16.msra.mxu1 %v16149_v21  ;;  %13136 = vmatprep.subr.bf16.mxu0 %v16154_v26  ;;  %v16203_v21 = vld [vmem:[#allocation10 + $0x708] ss:$16 sps:$4 sm:$0xff]   ;;  %v16208_v26 = vld [vmem:[#allocation10 + $0x724] ss:$16 sps:$4 sm:$0xff]  }
 0x742   :  { %13300 = vmatprep.subr.bf16.mxu1 %v16157_v27  ;;  %v16211_v27 = vld [vmem:[#allocation10 + $0x72c] ss:$16 sps:$4 sm:$0xff]  }
 0x756   :  { %v10940_v31 = vpop.f32.mrb[4].mxu0  ;;  %v16868_v15 = vpop.f32.mrb[4].mxu1 }
 0x757   :  { %v15618_v49 = vadd.f32 %v10940_v31, %v1686_v55  ;;  %v10942_v20 = vpop.f32.mrb[5].mxu0  ;;  %v11434_v35 = vpop.f32.mrb[5].mxu1  ;;  %v16217_v55 = vld [vmem:[#allocation10 + $0x74c] ss:$16 sps:$4 sm:$0xff]   ;;  %v16220_v31 = vld [vmem:[#allocation10 + $0x764] ss:$16 sps:$4 sm:$0xff]  }
 0x758   :  { %v15619_v25 = vadd.f32 %v10942_v20, %v1690_v30  ;;  %v10944_v48 = vpop.f32.mrb[6].mxu0  ;;  %v15621_v12 = vadd.f32 %v11434_v35, %v1698_v50  ;;  %v11436_v2 = vpop.f32.mrb[6].mxu1  ;;  %v16212_v30 = vld [vmem:[#allocation10 + $0x740] ss:$16 sps:$4 sm:$0xff]   ;;  %v16215_v50 = vld [vmem:[#allocation10 + $0x748] ss:$16 sps:$4 sm:$0xff]  }
 0x759   :  { %v11443_v1 = vmax.f32 %v15618_v49, 0.0  ;;  %v10945_v36 = vpop.f32.mrb[7].mxu0  ;;  %v11437_v40 = vpop.f32.mrb[7].mxu1  ;;  %v16223_v49 = vld [vmem:[#allocation10 + $0x76c] ss:$16 sps:$4 sm:$0xff]   ;;  %v1693_v2 = vsub.s32 6, %v16836_v22 }
 0x75a   :  { %v11444_v37 = vmax.f32 %v15619_v25, 0.0  ;;  %v11446_v32 = vmax.f32 %v15621_v12, 0.0  ;;  %v16218_v20 = vld [vmem:[#allocation10 + $0x760] ss:$16 sps:$4 sm:$0xff]   ;;  %v16221_v25 = vld [vmem:[#allocation10 + $0x768] ss:$16 sps:$4 sm:$0xff]  }
 0x75b   :  { %v11451_v34 = vpack.c.bf16 %v11443_v1, %v11443_v1  ;;  %v16226_v35 = vld [vmem:[#allocation10 + $0x784] ss:$16 sps:$4 sm:$0xff]   ;;  %v16229_v48 = vld [vmem:[#allocation10 + $0x78c] ss:$16 sps:$4 sm:$0xff]   ;;  %v16224_v1 = vld [vmem:[#allocation10 + $0x780] ss:$16 sps:$4 sm:$0xff]  }
 0x75c   :  { %v11452_v44 = vpack.c.bf16 %v11444_v37, %v11444_v37  ;;  %v11454_v47 = vpack.c.bf16 %v11446_v32, %v11446_v32  ;;  %v16227_v12 = vld [vmem:[#allocation10 + $0x788] ss:$16 sps:$4 sm:$0xff]   ;;  %v16232_v36 = vld [vmem:[#allocation10 + $0x7a4] ss:$16 sps:$4 sm:$0xff]   ;;  %v16235_v37 = vld [vmem:[#allocation10 + $0x7ac] ss:$16 sps:$4 sm:$0xff]  }
 0x75d   :  { %v16230_v40 = vld [vmem:[#allocation10 + $0x7a0] ss:$16 sps:$4 sm:$0xff]   ;;  %v16233_v32 = vld [vmem:[#allocation10 + $0x7a8] ss:$16 sps:$4 sm:$0xff]  }
 0x75e   :  { %13127 = vmatprep.mubr.bf16.mxu0 %v11452_v44  ;;  %13291 = vmatprep.mubr.bf16.mxu1 %v11452_v44  ;;  %v16284_v44 = vld [vmem:[#allocation9] sm:$0xff] }
 0x75f   :  { %13128 = vmatmul.mubr.bf16.vlgmr.msra.gmra.mrb[8].mxu0 %v11451_v34  ;;  %13292 = vmatmul.mubr.bf16.vlgmr.msra.gmra.mrb[8].mxu1 %v11451_v34  ;;  %v16241_v34 = vld [vmem:[#allocation10 + $0x7cc] ss:$16 sps:$4 sm:$0xff]  }
 0x760   :  { %13137 = vmatpush1.bf16.msra.mxu0 %v16152_v42  ;;  %13301 = vmatpush1.bf16.msra.mxu1 %v16155_v43  ;;  %v1694_v42 = vrot.slane %v16284_v44, %v1693_v2  ;;  %v16238_v43 = vld [vmem:[#allocation10 + $0x7c4] ss:$16 sps:$4 sm:$0xff]  }
 0x761   :  { %13168 = vmatprep.mubr.bf16.mxu0 %v11454_v47  ;;  %13332 = vmatprep.mubr.bf16.mxu1 %v11454_v47 }
 0x762   :  { %13138 = vmatprep.subr.bf16.mxu0 %v16160_v33  ;;  %13302 = vmatprep.subr.bf16.mxu1 %v16163_v45  ;;  %v16236_v33 = vld [vmem:[#allocation10 + $0x7c0] ss:$16 sps:$4 sm:$0xff]   ;;  %v16239_v45 = vld [vmem:[#allocation10 + $0x7c8] ss:$16 sps:$4 sm:$0xff]   ;;  %v15620_v47 = vadd.f32 %v16868_v15, %v1694_v42 }
 0x763   :  { %v16252_v15 = vld [vmem:[#allocation13 + $0x48] sm:$0xff]  }
 0x764   :  { %13139 = vmatpush1.bf16.msra.mxu0 %v16158_v53  ;;  %13303 = vmatpush1.bf16.msra.mxu1 %v16161_v52  ;;  %v16244_v53 = vld [vmem:[#allocation10 + $0x7e4] ss:$16 sps:$4 sm:$0xff]   ;;  %v16247_v52 = vld [vmem:[#allocation10 + $0x7ec] ss:$16 sps:$4 sm:$0xff]  }
 0x765   :  { %13140 = vmatprep.subr.bf16.mxu0 %v16166_v56  ;;  %13304 = vmatprep.subr.bf16.mxu1 %v16169_v5  ;;  %v16242_v56 = vld [vmem:[#allocation10 + $0x7e0] ss:$16 sps:$4 sm:$0xff]   ;;  %v16245_v5 = vld [vmem:[#allocation10 + $0x7e8] ss:$16 sps:$4 sm:$0xff]  }
 0x768   :  { %13141 = vmatpush1.bf16.msra.mxu0 %v16164_v62  ;;  %13305 = vmatpush1.bf16.msra.mxu1 %v16167_v19  ;;  %v11445_v62 = vmax.f32 %v15620_v47, 0.0  ;;  %v16248_v19 = vld [vmem:[#allocation13 + $0x40] sm:$0xff]  }
 0x769   :  { %13142 = vmatprep.subr.bf16.mxu0 %v16172_v46  ;;  %13306 = vmatprep.subr.bf16.mxu1 %v16175_v51  ;;  %v16249_v46 = vld [vmem:[#allocation13 + $0xc0] sm:$0xff]  }
 0x76a   :  { %v16250_v51 = vld [vmem:[#allocation13] sm:$0xff]  }
 0x76c   :  { %13143 = vmatpush1.bf16.msra.mxu0 %v16170_v63  ;;  %13307 = vmatpush1.bf16.msra.mxu1 %v16173_v3  ;;  %v16251_v63 = vld [vmem:[#allocation13 + $0x80] sm:$0xff]   ;;  %v11453_v3 = vpack.c.bf16 %v11445_v62, %v11445_v62 }
 0x76d   :  { %13144 = vmatprep.subr.bf16.mxu0 %v16178_v6  ;;  %13308 = vmatprep.subr.bf16.mxu1 %v16181_v24  ;;  %v16253_v6 = vld [vmem:[#allocation13 + $0xc8] sm:$0xff]  }
 0x76e   :  { %v16254_v24 = vld [vmem:[#allocation13 + $0x8] sm:$0xff]  }
 0x770   :  { %13145 = vmatpush1.bf16.msra.mxu0 %v16176_v0  ;;  %13309 = vmatpush1.bf16.msra.mxu1 %v16179_v61  ;;  %v16255_v0 = vld [vmem:[#allocation13 + $0x88] sm:$0xff]   ;;  %v16256_v61 = vld [vmem:[#allocation13 + $0x50] sm:$0xff]  }
 0x771   :  { %13146 = vmatprep.subr.bf16.mxu0 %v16184_v7  ;;  %13310 = vmatprep.subr.bf16.mxu1 %v16187_v9  ;;  %v16257_v7 = vld [vmem:[#allocation13 + $0xd0] sm:$0xff]  }
 0x772   :  { %v16258_v9 = vld [vmem:[#allocation13 + $0x10] sm:$0xff]  }
 0x774   :  { %13147 = vmatpush1.bf16.msra.mxu0 %v16182_v23  ;;  %13311 = vmatpush1.bf16.msra.mxu1 %v16185_v11  ;;  %v16259_v23 = vld [vmem:[#allocation13 + $0x90] sm:$0xff]   ;;  %v16260_v11 = vld [vmem:[#allocation13 + $0x58] sm:$0xff]  }
 0x775   :  { %13148 = vmatprep.subr.bf16.mxu0 %v16190_v8  ;;  %13312 = vmatprep.subr.bf16.mxu1 %v16193_v13  ;;  %v16261_v8 = vld [vmem:[#allocation13 + $0xd8] sm:$0xff]  }
 0x776   :  { %v16262_v13 = vld [vmem:[#allocation13 + $0x18] sm:$0xff]  }
 0x778   :  { %13149 = vmatpush1.bf16.msra.mxu0 %v16188_v4  ;;  %13313 = vmatpush1.bf16.msra.mxu1 %v16191_v60  ;;  %v16263_v4 = vld [vmem:[#allocation13 + $0x98] sm:$0xff]   ;;  %v16264_v60 = vld [vmem:[#allocation13 + $0x60] sm:$0xff]  }
 0x779   :  { %13150 = vmatprep.subr.bf16.mxu0 %v16196_v14  ;;  %13314 = vmatprep.subr.bf16.mxu1 %v16199_v17  ;;  %v16265_v14 = vld [vmem:[#allocation13 + $0xe0] sm:$0xff]  }
 0x77a   :  { %v16266_v17 = vld [vmem:[#allocation13 + $0x20] sm:$0xff]  }
 0x77c   :  { %13151 = vmatpush1.bf16.msra.mxu0 %v16194_v58  ;;  %13315 = vmatpush1.bf16.msra.mxu1 %v16197_v10  ;;  %v16267_v58 = vld [vmem:[#allocation13 + $0xa0] sm:$0xff]   ;;  %v16268_v10 = vld [vmem:[#allocation13 + $0x68] sm:$0xff]  }
 0x77d   :  { %13152 = vmatprep.subr.bf16.mxu0 %v16202_v18  ;;  %13316 = vmatprep.subr.bf16.mxu1 %v16205_v38  ;;  %v16269_v18 = vld [vmem:[#allocation13 + $0xe8] sm:$0xff]  }
 0x77e   :  { %v16270_v38 = vld [vmem:[#allocation13 + $0x28] sm:$0xff]  }
 0x780   :  { %13153 = vmatpush1.bf16.msra.mxu0 %v16200_v16  ;;  %13317 = vmatpush1.bf16.msra.mxu1 %v16203_v21  ;;  %v16271_v16 = vld [vmem:[#allocation13 + $0xa8] sm:$0xff]   ;;  %v16272_v21 = vld [vmem:[#allocation13 + $0x70] sm:$0xff]  }
 0x781   :  { %13154 = vmatprep.subr.bf16.mxu0 %v16208_v26  ;;  %13318 = vmatprep.subr.bf16.mxu1 %v16211_v27  ;;  %v16273_v26 = vld [vmem:[#allocation13 + $0xf0] sm:$0xff]  }
 0x782   :  { %v16274_v27 = vld [vmem:[#allocation13 + $0x30] sm:$0xff]  }
 0x784   :  { %13155 = vmatpush1.bf16.msra.mxu0 %v16206_v39  ;;  %13319 = vmatpush1.bf16.msra.mxu1 %v16209_v59  ;;  %v16275_v39 = vld [vmem:[#allocation13 + $0xb0] sm:$0xff]   ;;  %v16276_v59 = vld [vmem:[#allocation13 + $0x78] sm:$0xff]  }
 0x785   :  { %13156 = vmatprep.subr.bf16.mxu0 %v16214_v29  ;;  %13320 = vmatprep.subr.bf16.mxu1 %v16217_v55  ;;  %v16277_v29 = vld [vmem:[#allocation13 + $0xf8] sm:$0xff]  }
 0x786   :  { %v16278_v55 = vld [vmem:[#allocation13 + $0x38] sm:$0xff]  }
 0x788   :  { %13157 = vmatpush1.bf16.msra.mxu0 %v16212_v30  ;;  %13321 = vmatpush1.bf16.msra.mxu1 %v16215_v50  ;;  %v16279_v30 = vld [vmem:[#allocation13 + $0xb8] sm:$0xff]  }
 0x789   :  { %13158 = vmatprep.subr.bf16.mxu0 %v16220_v31  ;;  %13322 = vmatprep.subr.bf16.mxu1 %v16223_v49  ;;  %v11711_v50 = vld [vmem:[#allocation12] sm:$0xf] }
 0x78a   :  { %v11716_v31 = vrot.slane %v11711_v50, %v1669_v41  ;;  %v11724_v49 = vrot.slane %v11711_v50, %v1677_v54 }
 0x78c   :  { %13159 = vmatpush1.bf16.msra.mxu0 %v16218_v20  ;;  %13323 = vmatpush1.bf16.msra.mxu1 %v16221_v25  ;;  %v11720_v20 = vrot.slane %v11711_v50, %v1673_v28  ;;  %v11728_v25 = vrot.slane %v11711_v50, %v1681_v57 }
 0x78d   :  { %13160 = vmatprep.subr.bf16.mxu0 %v16226_v35  ;;  %13324 = vmatprep.subr.bf16.mxu1 %v16229_v48 }
 0x790   :  { %13161 = vmatpush1.bf16.msra.mxu0 %v16224_v1  ;;  %13325 = vmatpush1.bf16.msra.mxu1 %v16227_v12 }
 0x791   :  { %13162 = vmatprep.subr.bf16.mxu0 %v16232_v36  ;;  %13326 = vmatprep.subr.bf16.mxu1 %v16235_v37 }
 0x794   :  { %13163 = vmatpush1.bf16.msra.mxu0 %v16230_v40  ;;  %13327 = vmatpush1.bf16.msra.mxu1 %v16233_v32 }
 0x795   :  { %13164 = vmatprep.subr.bf16.mxu0 %v16238_v43  ;;  %13328 = vmatprep.subr.bf16.mxu1 %v16241_v34 }
 0x798   :  { %13165 = vmatpush1.bf16.msra.mxu0 %v16236_v33  ;;  %13329 = vmatpush1.bf16.msra.mxu1 %v16239_v45 }
 0x799   :  { %13166 = vmatprep.subr.bf16.mxu0 %v16244_v53  ;;  %13330 = vmatprep.subr.bf16.mxu1 %v16247_v52  ;;  %v15537_v52 = vld [vmem:[#allocation15] ss:$0 sm:$0xff] }
 0x79c   :  { %13167 = vmatpush1.bf16.msra.mxu0 %v16242_v56  ;;  %13331 = vmatpush1.bf16.msra.mxu1 %v16245_v5 }
 0x79d   :  { %15570 = vmatprep.subr.bf16.mxu0 %v16248_v19  ;;  %15592 = vmatprep.subr.bf16.mxu1 %v16249_v46 }
 0x79f   :  { %13169 = vmatmul.mubr.bf16.vlgmr.msra.gmra.mrb[8].mxu0 %v11453_v3  ;;  %13333 = vmatmul.mubr.bf16.vlgmr.msra.gmra.mrb[8].mxu1 %v11453_v3 }
 0x7a0   :  { %15571 = vmatpush3.bf16.msra.mxu0 %v16250_v51  ;;  %15593 = vmatpush3.bf16.msra.mxu1 %v16251_v63 }
 0x7a1   :  { %15572 = vmatprep.subr.bf16.mxu0 %v16252_v15  ;;  %15594 = vmatprep.subr.bf16.mxu1 %v16253_v6 }
 0x7a4   :  { %15573 = vmatpush3.bf16.msra.mxu0 %v16254_v24  ;;  %15595 = vmatpush3.bf16.msra.mxu1 %v16255_v0 }
 0x7a5   :  { %15574 = vmatprep.subr.bf16.mxu0 %v16256_v61  ;;  %15596 = vmatprep.subr.bf16.mxu1 %v16257_v7 }
 0x7a8   :  { %15575 = vmatpush3.bf16.msra.mxu0 %v16258_v9  ;;  %15597 = vmatpush3.bf16.msra.mxu1 %v16259_v23 }
 0x7a9   :  { %15576 = vmatprep.subr.bf16.mxu0 %v16260_v11  ;;  %15598 = vmatprep.subr.bf16.mxu1 %v16261_v8 }
 0x7ac   :  { %15577 = vmatpush3.bf16.msra.mxu0 %v16262_v13  ;;  %15599 = vmatpush3.bf16.msra.mxu1 %v16263_v4 }
 0x7ad   :  { %15578 = vmatprep.subr.bf16.mxu0 %v16264_v60  ;;  %15600 = vmatprep.subr.bf16.mxu1 %v16265_v14 }
 0x7b0   :  { %15579 = vmatpush3.bf16.msra.mxu0 %v16266_v17  ;;  %15601 = vmatpush3.bf16.msra.mxu1 %v16267_v58 }
 0x7b1   :  { %15580 = vmatprep.subr.bf16.mxu0 %v16268_v10  ;;  %15602 = vmatprep.subr.bf16.mxu1 %v16269_v18 }
 0x7b4   :  { %15581 = vmatpush3.bf16.msra.mxu0 %v16270_v38  ;;  %15603 = vmatpush3.bf16.msra.mxu1 %v16271_v16 }
 0x7b5   :  { %15582 = vmatprep.subr.bf16.mxu0 %v16272_v21  ;;  %15604 = vmatprep.subr.bf16.mxu1 %v16273_v26 }
 0x7b8   :  { %15583 = vmatpush3.bf16.msra.mxu0 %v16274_v27  ;;  %15605 = vmatpush3.bf16.msra.mxu1 %v16275_v39 }
 0x7b9   :  { %15584 = vmatprep.subr.bf16.mxu0 %v16276_v59  ;;  %15606 = vmatprep.subr.bf16.mxu1 %v16277_v29 }
 0x7bc   :  { %15585 = vmatpush3.bf16.msra.mxu0 %v16278_v55  ;;  %15607 = vmatpush3.bf16.msra.mxu1 %v16279_v30 }
 0x872   :  { %v13170_v35 = vpop.f32.mrb[8].mxu0  ;;  %v13334_v48 = vpop.f32.mrb[8].mxu1 }
 0x873   :  { %v15622_v1 = vadd.f32 %v13170_v35, %v11716_v31  ;;  %v15624_v12 = vadd.f32 %v13334_v48, %v11724_v49  ;;  %v13172_v2 = vpop.f32.mrb[9].mxu0  ;;  %v13336_v36 = vpop.f32.mrb[9].mxu1 }
 0x874   :  { %v15623_v37 = vadd.f32 %v13172_v2, %v11720_v20  ;;  %v15625_v40 = vadd.f32 %v13336_v36, %v11728_v25  ;;  %v13174_v32 = vpop.f32.mrb[10].mxu0  ;;  %v13338_v44 = vpop.f32.mrb[10].mxu1 }
 0x875   :  { %v13341_v41 = vmax.f32 %v15622_v1, 0.0  ;;  %v13343_v42 = vmax.f32 %v15624_v12, 0.0  ;;  %v13175_v43 = vpop.f32.mrb[11].mxu0  ;;  %v13339_v54 = vpop.f32.mrb[11].mxu1 }
 0x876   :  { %v13342_v34 = vmax.f32 %v15623_v37, 0.0  ;;  %v13344_v33 = vmax.f32 %v15625_v40, 0.0 }
 0x877   :  { %v13345_v22 = vpack.c.bf16 %v13341_v41, %v13341_v41  ;;  %v13347_v57 = vpack.c.bf16 %v13343_v42, %v13343_v42 }
 0x878   :  { %v13346_v28 = vpack.c.bf16 %v13342_v34, %v13342_v34  ;;  %v13348_v45 = vpack.c.bf16 %v13344_v33, %v13344_v33 }
 0x87a   :  { %13644 = vmatprep.mubr.bf16.mxu0 %v13346_v28  ;;  %13684 = vmatprep.mubr.bf16.mxu1 %v13348_v45 }
 0x87b   :  { %13645 = vmatmul.mubr.bf16.vlgmr.msra.gmra.mrb[12].mxu0 %v13345_v22  ;;  %13685 = vmatmul.mubr.bf16.vlgmr.msra.gmra.mrb[12].mxu1 %v13347_v57 }
 0x94e   :  { %v15586_v47 = vpop.f32.mrb[12].mxu0  ;;  %v15608_v53 = vpop.f32.mrb[12].mxu1 }
 0x94f   :  { %v15587_v56 = vpop.f32.mrb[13].mxu0  ;;  %v15609_v5 = vpop.f32.mrb[13].mxu1 }
 0x950   :  { %v15588_v62 = vadd.f32 %v15587_v56, %v15586_v47  ;;  %v15610_v19 = vadd.f32 %v15609_v5, %v15608_v53  ;;  %v15589_v46 = vpop.f32.mrb[14].mxu0  ;;  %v15611_v51 = vpop.f32.mrb[14].mxu1 }
 0x951   :  { %v15590_v63 = vpop.f32.mrb[15].mxu0  ;;  %v15612_v3 = vpop.f32.mrb[15].mxu1 }
 0x952   :  { %v13647_v15 = vadd.f32 %v15588_v62, %v15537_v52 }
 0x954   :  { %v13687_v6 = vadd.f32 %v15610_v19, %v13647_v15 }
 0x956   :  { %13692 = vmax.xlane.f32.xlu0 %v13687_v6 }
 0x9e3   :  { %v13693_v24 = vpop.xlane.xlu0 %13692 }
 0x9e4   :  { %v13694_v0 = vsub.f32 %v13687_v6, %v13693_v24 }
 0x9e6   :  { %v13695_v61 = vmul.f32 1.442695, %v13694_v0 }
 0x9e8   :  { %16280 = vpow2.f32 %v13695_v61 }
 0x9f2   :  { %v16281_v7 = vpop.eup %16280 }
 0x9f3   :  { %13697 = vadd.xlane.f32.xlu0 %v16281_v7 }
 0xa80   :  { %v13698_v9 = vpop.xlane.xlu0 %13697 }
 0xa81   :  { %16282 = vlog2.f32 %v13698_v9 }
 0xa8b   :  { %v16283_v23 = vpop.eup %16282 }
 0xa8c   :  { %v13700_v11 = vmul.f32 0.6931472, %v16283_v23 }
 0xa8e   :  { %v13701_v8 = vsub.f32 %v13694_v0, %v13700_v11 }
 0xa90   :  { %13702 = vst [vmem:[#allocation16] sm:$0xff] %v13701_v8 }
 0xa91   :  { %16450 = shalt.err (!%p16447_p4)
}
 0xa92   :  { %s16451_s18 = scalar_lea.hbm %s16900_s8, 128 }
 0xa93   :  { %p16452_p5 = scmp.ne.s32.totalorder %s16900_s8, %s16451_s18  ;;  %p16455_p6 = scmp.lt.u32.totalorder %s16451_s18, %s16900_s8 }
 0xa95   :  { %p16457_p7 = pnand %p16455_p6, %p16452_p5 }
 0xa97   :  { %16460 = shalt.err (!%p16457_p7)
}
 0xa98   :  { %13712 = dma.vmem_to_hbm [thread:$0]  %s13710_s16, 128, %s16900_s8, [#allocation6]  }
 0xa99   :  { %16469 = dma.done.wait [#allocation6], 128  }
 0xa9a   :  { %16470 = vsyncadd [#allocation6], 4294967168 }
 0xa9b   :  { %13716 = vsyncpa [#allocation5], 1 }
 0xa9c   :  { %13717 = vsyncpa [#allocation8], 1 }
 0xa9d   :  { %13718 = vsyncpa [#allocation11], 1 }
 0xa9e   :  { %13719 = vsyncpa [#allocation14], 1 }
 0xa9f   :  { %13720 = vsyncpa [#allocation6], 1 }

</bundles_post_ra>
